<compile_context>
chip_gen: v5e
topology: v5e:2x2
jax: 0.10.0
libtpu: 0.0.40
codegen_flags: <defaults>
</compile_context>

<pallas_src>
import math

import jax
import jax.numpy as jnp
from jax.experimental import pallas as pl
from jax.experimental.pallas import tpu as pltpu


def _pick_chunk(n, target=8):
    """Largest divisor of n that is <= target (timesteps per grid step)."""
    for c in range(min(n, target), 0, -1):
        if n % c == 0:
            return c
    return 1


def _vmem_limit(*arrays):
    """Explicit scoped-VMEM budget derived from the operands (with headroom)."""
    total = sum(math.prod(a.shape) * a.dtype.itemsize for a in arrays)
    return int(min(64 << 20, max(8 << 20, 2 * total + (4 << 20))))


# --------------------------- fused encoder kernel ----------------------------

def _encoder_kernel(embf_ref, embb_ref,
                    wf_ih_ref, wf_hh_ref, bf_ref,
                    wb_ih_ref, wb_hh_ref, bb_ref,
                    fch_wf_ref, fch_wb_ref, fch_b_ref,
                    fcc_wf_ref, fcc_wb_ref, fcc_b_ref,
                    encf_ref, encb_ref, h0_ref, c0_ref,
                    hf_scr, cf_scr, hb_scr, cb_scr):
    c = pl.program_id(0)
    nc = pl.num_programs(0)
    Tc = embf_ref.shape[0]
    H = hf_scr.shape[1]

    @pl.when(c == 0)
    def _init():
        hf_scr[...] = jnp.zeros_like(hf_scr)
        cf_scr[...] = jnp.zeros_like(cf_scr)
        hb_scr[...] = jnp.zeros_like(hb_scr)
        cb_scr[...] = jnp.zeros_like(cb_scr)

    def lstm_cell(x16, h, c_prev, w_ih_ref, w_hh_ref, b_ref):
        # two lane-aligned dots summed in f32 (no misaligned [x; h] staging)
        gates = (jnp.dot(x16, w_ih_ref[...], preferred_element_type=jnp.float32)
                 + jnp.dot(h.astype(jnp.bfloat16), w_hh_ref[...],
                           preferred_element_type=jnp.float32)
                 + b_ref[...])
        # NOTE: gate slices are lane-aligned only when H % 128 == 0.
        ig = jax.nn.sigmoid(gates[:, 0 * H:1 * H])
        fg = jax.nn.sigmoid(gates[:, 1 * H:2 * H])
        gg = jnp.tanh(gates[:, 2 * H:3 * H])
        og = jax.nn.sigmoid(gates[:, 3 * H:4 * H])
        c_new = fg * c_prev + ig * gg
        return og * jnp.tanh(c_new), c_new

    # unrolled chunk of timesteps: amortizes per-grid-step pipeline overhead
    for i in range(Tc):
        hf, cf = lstm_cell(embf_ref[i], hf_scr[...], cf_scr[...],
                           wf_ih_ref, wf_hh_ref, bf_ref)
        hb, cb = lstm_cell(embb_ref[Tc - 1 - i], hb_scr[...], cb_scr[...],
                           wb_ih_ref, wb_hh_ref, bb_ref)
        hf_scr[...] = hf
        cf_scr[...] = cf
        hb_scr[...] = hb
        cb_scr[...] = cb
        encf_ref[i] = hf.astype(encf_ref.dtype)
        encb_ref[Tc - 1 - i] = hb.astype(encb_ref.dtype)

    @pl.when(c == nc - 1)
    def _final():
        # fc_hidden / fc_cell on cat(final fwd, final bwd): weight rows split.
        hf16 = hf_scr[...].astype(jnp.bfloat16)
        hb16 = hb_scr[...].astype(jnp.bfloat16)
        cf16 = cf_scr[...].astype(jnp.bfloat16)
        cb16 = cb_scr[...].astype(jnp.bfloat16)
        h0_ref[...] = (jnp.dot(hf16, fch_wf_ref[...], preferred_element_type=jnp.float32)
                       + jnp.dot(hb16, fch_wb_ref[...], preferred_element_type=jnp.float32)
                       + fch_b_ref[...])
        c0_ref[...] = (jnp.dot(cf16, fcc_wf_ref[...], preferred_element_type=jnp.float32)
                       + jnp.dot(cb16, fcc_wb_ref[...], preferred_element_type=jnp.float32)
                       + fcc_b_ref[...])


def encoder_forward(emb, wf_ih, wf_hh, bf, wb_ih, wb_hh, bb,
                    fch_wf, fch_wb, fch_b, fcc_wf, fcc_wb, fcc_b):
    S, Bp, E = emb.shape
    H = wf_hh.shape[0]
    Tc = _pick_chunk(S)
    nc = S // Tc

    def const2(shape):
        return pl.BlockSpec(shape, lambda c: (0, 0))

    grid_spec = pltpu.PrefetchScalarGridSpec(
        num_scalar_prefetch=0,
        grid=(nc,),
        in_specs=[
            pl.BlockSpec((Tc, Bp, E), lambda c: (c, 0, 0)),            # fwd chunk
            pl.BlockSpec((Tc, Bp, E), lambda c: (nc - 1 - c, 0, 0)),   # bwd chunk
            const2(wf_ih.shape), const2(wf_hh.shape), const2(bf.shape),
            const2(wb_ih.shape), const2(wb_hh.shape), const2(bb.shape),
            const2(fch_wf.shape), const2(fch_wb.shape), const2(fch_b.shape),
            const2(fcc_wf.shape), const2(fcc_wb.shape), const2(fcc_b.shape),
        ],
        out_specs=[
            pl.BlockSpec((Tc, Bp, H), lambda c: (c, 0, 0)),            # fwd states
            pl.BlockSpec((Tc, Bp, H), lambda c: (nc - 1 - c, 0, 0)),   # bwd states
            pl.BlockSpec((Bp, H), lambda c: (0, 0)),                   # hidden0
            pl.BlockSpec((Bp, H), lambda c: (0, 0)),                   # cell0
        ],
        scratch_shapes=[pltpu.VMEM((Bp, H), jnp.float32)] * 4,
    )
    return pl.pallas_call(
        _encoder_kernel,
        grid_spec=grid_spec,
        out_shape=(jax.ShapeDtypeStruct((S, Bp, H), jnp.bfloat16),
                   jax.ShapeDtypeStruct((S, Bp, H), jnp.bfloat16),
                   jax.ShapeDtypeStruct((Bp, H), jnp.float32),
                   jax.ShapeDtypeStruct((Bp, H), jnp.float32)),
        compiler_params=pltpu.CompilerParams(
            dimension_semantics=("arbitrary",),   # sequential recurrence
            vmem_limit_bytes=_vmem_limit(emb, wf_ih, wf_hh, bf, wb_ih, wb_hh,
                                         bb, fch_wf, fch_wb, fch_b,
                                         fcc_wf, fcc_wb, fcc_b)),
    )(emb, emb, wf_ih, wf_hh, bf, wb_ih, wb_hh, bb,
      fch_wf, fch_wb, fch_b, fcc_wf, fcc_wb, fcc_b)


# --------------------------- fused decoder kernel ----------------------------

def _decoder_kernel(use_tgt_ref,                        # scalar-prefetch (SMEM)
                    temb_ref, encf_ref, encb_ref,
                    we_h_ref, we_ef_ref, we_eb_ref, be_ref,
                    demb_ref, w_cf_ref, w_cb_ref, w_ce_ref, w_hh_ref, b_ref,
                    fc_w_ref, fc_b_ref, h0_ref, c0_ref,
                    out_ref,
                    h_scr, c_scr, gemb_scr, epart_scr):
    c = pl.program_id(0)
    Tc = temb_ref.shape[0]
    H = h_scr.shape[1]
    Vp = out_ref.shape[2]

    @pl.when(c == 0)
    def _init():
        h_scr[...] = h0_ref[...]
        c_scr[...] = c0_ref[...]
        gemb_scr[...] = jnp.zeros_like(gemb_scr)
        # encoder half of the attention energy (+ bias): step-invariant,
        # computed once in the lane-dense (Bp, S) layout.
        epart_scr[...] = (
            jnp.sum(encf_ref[...].astype(jnp.float32) * we_ef_ref[...], axis=-1)
            + jnp.sum(encb_ref[...].astype(jnp.float32) * we_eb_ref[...], axis=-1)
            + be_ref[...])

    for i in range(Tc):                        # unrolled chunk of decode steps
        step = c * Tc + i

        # ---- input token: teacher forcing vs. previous greedy argmax --------
        sel = jnp.where(use_tgt_ref[step] != 0, 1.0, 0.0)
        x_emb = (sel * temb_ref[i].astype(jnp.float32)
                 + (1.0 - sel) * gemb_scr[...])                       # (B, E)
        x16 = x_emb.astype(jnp.bfloat16)

        # ---- attention: lane-dense softmax over source positions ------------
        h = h_scr[...]
        h_part = jnp.sum(h * we_h_ref[...], axis=-1, keepdims=True)   # (B, 1)
        energy = jnp.maximum(epart_scr[...] + h_part, 0.0)            # (B, S)
        m = jnp.max(energy, axis=-1, keepdims=True)
        ex = jnp.exp(energy - m)
        attn = ex * pl.reciprocal(jnp.sum(ex, axis=-1, keepdims=True),
                                  approx=True)                        # (B, S)
        a16 = attn.astype(jnp.bfloat16)[:, None, :]                   # (B, 1, S)
        ctx_f = jnp.einsum('bqs,bsh->bqh', a16, encf_ref[...],
                           preferred_element_type=jnp.float32)[:, 0, :]   # (B, H)
        ctx_b = jnp.einsum('bqs,bsh->bqh', a16, encb_ref[...],
                           preferred_element_type=jnp.float32)[:, 0, :]

        # ---- LSTM cell: lane-aligned dots summed in f32 ----------------------
        gates = (jnp.dot(ctx_f.astype(jnp.bfloat16), w_cf_ref[...],
                         preferred_element_type=jnp.float32)
                 + jnp.dot(ctx_b.astype(jnp.bfloat16), w_cb_ref[...],
                           preferred_element_type=jnp.float32)
                 + jnp.dot(x16, w_ce_ref[...], preferred_element_type=jnp.float32)
                 + jnp.dot(h.astype(jnp.bfloat16), w_hh_ref[...],
                           preferred_element_type=jnp.float32)
                 + b_ref[...])
        ig = jax.nn.sigmoid(gates[:, 0 * H:1 * H])
        fg = jax.nn.sigmoid(gates[:, 1 * H:2 * H])
        gg = jnp.tanh(gates[:, 2 * H:3 * H])
        og = jax.nn.sigmoid(gates[:, 3 * H:4 * H])
        c_new = fg * c_scr[...] + ig * gg
        h_new = og * jnp.tanh(c_new)
        h_scr[...] = h_new
        c_scr[...] = c_new

        # ---- output projection (vocab padded to a lane-dense 128 multiple) --
        preds = (jnp.dot(h_new.astype(jnp.bfloat16), fc_w_ref[...],
                         preferred_element_type=jnp.float32)
                 + fc_b_ref[...])                                     # (B, Vp)
        out_ref[i] = preds

        # ---- greedy argmax -> embedding of the next non-teacher input -------
        mx = jnp.max(preds, axis=-1, keepdims=True)
        lane = jax.lax.broadcasted_iota(jnp.int32, preds.shape, 1).astype(jnp.float32)
        best = jnp.min(jnp.where(preds == mx, lane, float(Vp)),
                       axis=-1, keepdims=True)                        # (B, 1)
        onehot = (lane == best).astype(jnp.bfloat16)                  # (B, Vp)
        gemb_scr[...] = jnp.dot(onehot, demb_ref[...],
                                preferred_element_type=jnp.float32)   # (B, E)


def decoder_forward(use_tgt, tgt_emb, enc_f, enc_b, we_h, we_ef, we_eb, be,
                    demb_pad, w_cf, w_cb, w_ce, w_hh, dec_b,
                    fc_w_pad, fc_b_pad, h0, c0):
    Tm1, Bp, E = tgt_emb.shape
    S = enc_f.shape[1]
    H = h0.shape[1]
    Vp = fc_w_pad.shape[1]
    Tc = _pick_chunk(Tm1)
    nc = Tm1 // Tc

    def const(shape):
        nd = len(shape)
        return pl.BlockSpec(shape, lambda c, ut, _n=nd: (0,) * _n)

    grid_spec = pltpu.PrefetchScalarGridSpec(
        num_scalar_prefetch=1,               # teacher-forcing mask lives in SMEM
        grid=(nc,),
        in_specs=[
            pl.BlockSpec((Tc, Bp, E), lambda c, ut: (c, 0, 0)),   # teacher embs
            const(enc_f.shape), const(enc_b.shape),
            const(we_h.shape), const(we_ef.shape), const(we_eb.shape),
            const(be.shape),
            const(demb_pad.shape),
            const(w_cf.shape), const(w_cb.shape), const(w_ce.shape),
            const(w_hh.shape), const(dec_b.shape),
            const(fc_w_pad.shape), const(fc_b_pad.shape),
            const(h0.shape), const(c0.shape),
        ],
        out_specs=pl.BlockSpec((Tc, Bp, Vp), lambda c, ut: (c, 0, 0)),
        scratch_shapes=[
            pltpu.VMEM((Bp, H), jnp.float32),   # hidden
            pltpu.VMEM((Bp, H), jnp.float32),   # cell
            pltpu.VMEM((Bp, E), jnp.float32),   # greedy-token embedding
            pltpu.VMEM((Bp, S), jnp.float32),   # enc part of attention energy
        ],
    )
    return pl.pallas_call(
        _decoder_kernel,
        grid_spec=grid_spec,
        out_shape=jax.ShapeDtypeStruct((Tm1, Bp, Vp), jnp.float32),
        compiler_params=pltpu.CompilerParams(
            dimension_semantics=("arbitrary",),   # sequential recurrence
            vmem_limit_bytes=_vmem_limit(tgt_emb, enc_f, enc_b, demb_pad, w_cf,
                                         w_cb, w_ce, w_hh, fc_w_pad, fc_b_pad,
                                         h0, c0)),
    )(use_tgt, tgt_emb, enc_f, enc_b, we_h, we_ef, we_eb, be, demb_pad,
      w_cf, w_cb, w_ce, w_hh, dec_b, fc_w_pad, fc_b_pad, h0, c0)


# --------------------------- parameters & forward ----------------------------

def init_params(key, src_vocab, trg_vocab, emb_dim, hidden):
    def w(k, shape, scale=0.1):
        return scale * jax.random.normal(k, shape, dtype=jnp.float32)

    keys = jax.random.split(key, 19)
    return {
        # encoder
        "enc_emb":       w(keys[0], (src_vocab, emb_dim)),
        "enc_f_wih_t":   w(keys[1], (emb_dim, 4 * hidden)),
        "enc_f_whh_t":   w(keys[2], (hidden, 4 * hidden)),
        "enc_f_b":       w(keys[3], (1, 4 * hidden)),
        "enc_b_wih_t":   w(keys[4], (emb_dim, 4 * hidden)),
        "enc_b_whh_t":   w(keys[5], (hidden, 4 * hidden)),
        "enc_b_b":       w(keys[6], (1, 4 * hidden)),
        "fc_hidden_w_t": w(keys[7], (2 * hidden, hidden)),
        "fc_hidden_b":   w(keys[8], (1, hidden)),
        "fc_cell_w_t":   w(keys[9], (2 * hidden, hidden)),
        "fc_cell_b":     w(keys[10], (1, hidden)),
        # decoder
        "dec_emb":       w(keys[11], (trg_vocab, emb_dim)),
        "dec_wih_t":     w(keys[12], (2 * hidden + emb_dim, 4 * hidden)),
        "dec_whh_t":     w(keys[13], (hidden, 4 * hidden)),
        "dec_b":         w(keys[14], (1, 4 * hidden)),
        "energy_w_t":    w(keys[15], (3 * hidden, 1)),
        "energy_b":      w(keys[16], (1, 1)),
        "fc_w_t":        w(keys[17], (hidden, trg_vocab)),
        "fc_b":          w(keys[18], (1, trg_vocab)),
    }


@jax.jit
def seq2seq_forward(params, source, target, teacher_mask):
    """Mirrors Seq2Seq.forward; teacher-forcing decisions arrive as a traced
    bernoulli mask (one per decoded word) instead of host random.random()."""
    S, B = source.shape
    T, _ = target.shape
    H = params["enc_f_whh_t"].shape[0]
    Vt = params["dec_emb"].shape[0]
    bf16 = jnp.bfloat16

    Bp = max(8, -(-B // 8) * 8)            # pad batch to the f32 sublane tile
    Vp = -(-Vt // 128) * 128               # pad output vocab to lane-dense 128

    src = jnp.pad(source, ((0, 0), (0, Bp - B)))
    tgt = jnp.pad(target, ((0, 0), (0, Bp - B)))

    # ---- encoder (one fused pallas_call, grid over timestep chunks) ---------
    emb = jnp.take(params["enc_emb"].astype(bf16), src, axis=0)      # (S,Bp,E)
    enc_fwd, enc_bwd, h0, c0 = encoder_forward(
        emb,
        params["enc_f_wih_t"].astype(bf16), params["enc_f_whh_t"].astype(bf16),
        params["enc_f_b"],
        params["enc_b_wih_t"].astype(bf16), params["enc_b_whh_t"].astype(bf16),
        params["enc_b_b"],
        params["fc_hidden_w_t"][:H].astype(bf16),
        params["fc_hidden_w_t"][H:].astype(bf16), params["fc_hidden_b"],
        params["fc_cell_w_t"][:H].astype(bf16),
        params["fc_cell_w_t"][H:].astype(bf16), params["fc_cell_b"])

    # lane-dense (Bp, S, H) layout for attention; fwd/bwd halves stay separate
    # (no full-state concat round-trip through HBM).
    enc_f_t = jnp.transpose(enc_fwd, (1, 0, 2))
    enc_b_t = jnp.transpose(enc_bwd, (1, 0, 2))

    # ---- decoder operands ----------------------------------------------------
    we = params["energy_w_t"]                    # (3H, 1): rows [h; enc_f; enc_b]
    we_h = we[:H, 0].reshape(1, H)
    we_ef = we[H:2 * H, 0].reshape(1, 1, H)
    we_eb = we[2 * H:, 0].reshape(1, 1, H)

    dec_emb16 = params["dec_emb"].astype(bf16)
    demb_pad = jnp.pad(dec_emb16, ((0, Vp - Vt), (0, 0)))
    tgt_emb = jnp.take(dec_emb16, tgt[:T - 1], axis=0)               # (T-1,Bp,E)

    w_cf = params["dec_wih_t"][:H].astype(bf16)          # context (fwd half)
    w_cb = params["dec_wih_t"][H:2 * H].astype(bf16)     # context (bwd half)
    w_ce = params["dec_wih_t"][2 * H:].astype(bf16)      # embedding part
    w_hh = params["dec_whh_t"].astype(bf16)

    fc_w_pad = jnp.pad(params["fc_w_t"], ((0, 0), (0, Vp - Vt))).astype(bf16)
    fc_b_pad = jnp.pad(params["fc_b"], ((0, 0), (0, Vp - Vt)),
                       constant_values=-1e30)   # padded logits never win argmax

    # step 0 always consumes target[0]; step t>=1 uses the word-t decision.
    use_tgt = jnp.concatenate(
        [jnp.ones((1,), jnp.int32), teacher_mask[:T - 2].astype(jnp.int32)])

    preds = decoder_forward(use_tgt, tgt_emb, enc_f_t, enc_b_t, we_h, we_ef,
                            we_eb, params["energy_b"], demb_pad, w_cf, w_cb,
                            w_ce, w_hh, params["dec_b"], fc_w_pad, fc_b_pad,
                            h0, c0)

    outputs = jnp.concatenate(
        [jnp.zeros((1, Bp, Vp), jnp.float32), preds], axis=0)        # row 0 = 0
    return outputs[:, :B, :Vt]                                       # (T, B, V)


# --------------------------- demo --------------------------------------------

if __name__ == "__main__":
    SRC_VOCAB = 50
    TRG_VOCAB = 64
    EMB = 16
    HIDDEN = 32
    SRC_LEN = 8
    TRG_LEN = 7
    BATCH = 2

    key = jax.random.PRNGKey(0)
    kp, ks, kt, kf = jax.random.split(key, 4)
    params = init_params(kp, SRC_VOCAB, TRG_VOCAB, EMB, HIDDEN)

    source = jax.random.randint(ks, (SRC_LEN, BATCH), 0, SRC_VOCAB, dtype=jnp.int32)
    target = jax.random.randint(kt, (TRG_LEN, BATCH), 0, TRG_VOCAB, dtype=jnp.int32)
    # traced teacher-forcing decisions (ratio = 0.5), one per decoded word.
    teacher_mask = jax.random.bernoulli(kf, 0.5, (TRG_LEN - 1,))

    outputs = seq2seq_forward(params, source, target, teacher_mask)
    outputs = jax.block_until_ready(outputs)

    assert outputs.shape == (TRG_LEN, BATCH, TRG_VOCAB)
    assert bool(jnp.all(outputs[0] == 0.0))
    assert bool(jnp.all(jnp.isfinite(outputs)))
    print("KERNEL_OK")
</pallas_src>

<mosaic_0001>
module attributes {stable_mosaic.version = 11 : i64} {
  func.func @_encoder_kernel(%arg0: i32, %arg1: memref<8x8x16xbf16, #tpu.memory_space<vmem>>, %arg2: memref<8x8x16xbf16, #tpu.memory_space<vmem>>, %arg3: memref<16x128xbf16, #tpu.memory_space<vmem>>, %arg4: memref<32x128xbf16, #tpu.memory_space<vmem>>, %arg5: memref<1x128xf32, #tpu.memory_space<vmem>>, %arg6: memref<16x128xbf16, #tpu.memory_space<vmem>>, %arg7: memref<32x128xbf16, #tpu.memory_space<vmem>>, %arg8: memref<1x128xf32, #tpu.memory_space<vmem>>, %arg9: memref<32x32xbf16, #tpu.memory_space<vmem>>, %arg10: memref<32x32xbf16, #tpu.memory_space<vmem>>, %arg11: memref<1x32xf32, #tpu.memory_space<vmem>>, %arg12: memref<32x32xbf16, #tpu.memory_space<vmem>>, %arg13: memref<32x32xbf16, #tpu.memory_space<vmem>>, %arg14: memref<1x32xf32, #tpu.memory_space<vmem>>, %arg15: memref<8x8x32xbf16, #tpu.memory_space<vmem>>, %arg16: memref<8x8x32xbf16, #tpu.memory_space<vmem>>, %arg17: memref<8x32xf32, #tpu.memory_space<vmem>>, %arg18: memref<8x32xf32, #tpu.memory_space<vmem>>, %arg19: memref<8x32xf32, #tpu.memory_space<vmem>>, %arg20: memref<8x32xf32, #tpu.memory_space<vmem>>, %arg21: memref<8x32xf32, #tpu.memory_space<vmem>>, %arg22: memref<8x32xf32, #tpu.memory_space<vmem>>) attributes {dimension_semantics = [#tpu.dimension_semantics<arbitrary>], iteration_bounds = array<i64: 1>, scalar_prefetch = 0 : i64, scratch_operands = 4 : i64, tpu.core_type = #tpu.core_type<tc>, window_params = [{transform_indices = @transform_0, window_bounds = array<i64: 8, 8, 16>}, {transform_indices = @transform_1, window_bounds = array<i64: 8, 8, 16>}, {pipeline_mode = #tpu.pipeline_mode<synchronous>, transform_indices = @transform_2, window_bounds = array<i64: 16, 128>}, {pipeline_mode = #tpu.pipeline_mode<synchronous>, transform_indices = @transform_3, window_bounds = array<i64: 32, 128>}, {pipeline_mode = #tpu.pipeline_mode<synchronous>, transform_indices = @transform_4, window_bounds = array<i64: 1, 128>}, {pipeline_mode = #tpu.pipeline_mode<synchronous>, transform_indices = @transform_5, window_bounds = array<i64: 16, 128>}, {pipeline_mode = #tpu.pipeline_mode<synchronous>, transform_indices = @transform_6, window_bounds = array<i64: 32, 128>}, {pipeline_mode = #tpu.pipeline_mode<synchronous>, transform_indices = @transform_7, window_bounds = array<i64: 1, 128>}, {pipeline_mode = #tpu.pipeline_mode<synchronous>, transform_indices = @transform_8, window_bounds = array<i64: 32, 32>}, {pipeline_mode = #tpu.pipeline_mode<synchronous>, transform_indices = @transform_9, window_bounds = array<i64: 32, 32>}, {pipeline_mode = #tpu.pipeline_mode<synchronous>, transform_indices = @transform_10, window_bounds = array<i64: 1, 32>}, {pipeline_mode = #tpu.pipeline_mode<synchronous>, transform_indices = @transform_11, window_bounds = array<i64: 32, 32>}, {pipeline_mode = #tpu.pipeline_mode<synchronous>, transform_indices = @transform_12, window_bounds = array<i64: 32, 32>}, {pipeline_mode = #tpu.pipeline_mode<synchronous>, transform_indices = @transform_13, window_bounds = array<i64: 1, 32>}, {transform_indices = @transform_14, window_bounds = array<i64: 8, 8, 32>}, {transform_indices = @transform_15, window_bounds = array<i64: 8, 8, 32>}, {pipeline_mode = #tpu.pipeline_mode<synchronous>, transform_indices = @transform_16, window_bounds = array<i64: 8, 32>}, {pipeline_mode = #tpu.pipeline_mode<synchronous>, transform_indices = @transform_17, window_bounds = array<i64: 8, 32>}]} {
    %c0_i32 = arith.constant 0 : i32
    %0 = arith.cmpi eq, %arg0, %c0_i32 : i32
    %1 = arith.extui %0 : i1 to i32
    %c0_i32_0 = arith.constant 0 : i32
    %2 = arith.cmpi ne, %1, %c0_i32_0 : i32
    scf.if %2 {
      %cst_394 = arith.constant 0.000000e+00 : f32
      %710 = vector.broadcast %cst_394 : f32 to vector<8x32xf32>
      %c0_395 = arith.constant 0 : index
      %c0_396 = arith.constant 0 : index
      %711 = vector.load %arg19[%c0_395, %c0_396] : memref<8x32xf32, #tpu.memory_space<vmem>>, vector<8x32xf32>
      tpu.vector_store %arg19[%c0_395, %c0_396], %710 {strides = array<i32>} : memref<8x32xf32, #tpu.memory_space<vmem>>, vector<8x32xf32>,
      %cst_397 = arith.constant 0.000000e+00 : f32
      %712 = vector.broadcast %cst_397 : f32 to vector<8x32xf32>
      %c0_398 = arith.constant 0 : index
      %c0_399 = arith.constant 0 : index
      %713 = vector.load %arg20[%c0_398, %c0_399] : memref<8x32xf32, #tpu.memory_space<vmem>>, vector<8x32xf32>
      tpu.vector_store %arg20[%c0_398, %c0_399], %712 {strides = array<i32>} : memref<8x32xf32, #tpu.memory_space<vmem>>, vector<8x32xf32>,
      %cst_400 = arith.constant 0.000000e+00 : f32
      %714 = vector.broadcast %cst_400 : f32 to vector<8x32xf32>
      %c0_401 = arith.constant 0 : index
      %c0_402 = arith.constant 0 : index
      %715 = vector.load %arg21[%c0_401, %c0_402] : memref<8x32xf32, #tpu.memory_space<vmem>>, vector<8x32xf32>
      tpu.vector_store %arg21[%c0_401, %c0_402], %714 {strides = array<i32>} : memref<8x32xf32, #tpu.memory_space<vmem>>, vector<8x32xf32>,
      %cst_403 = arith.constant 0.000000e+00 : f32
      %716 = vector.broadcast %cst_403 : f32 to vector<8x32xf32>
      %c0_404 = arith.constant 0 : index
      %c0_405 = arith.constant 0 : index
      %717 = vector.load %arg22[%c0_404, %c0_405] : memref<8x32xf32, #tpu.memory_space<vmem>>, vector<8x32xf32>
      tpu.vector_store %arg22[%c0_404, %c0_405], %716 {strides = array<i32>} : memref<8x32xf32, #tpu.memory_space<vmem>>, vector<8x32xf32>,
    } else {
    }
    %c0 = arith.constant 0 : index
    %c0_1 = arith.constant 0 : index
    %c0_2 = arith.constant 0 : index
    %3 = vector.load %arg1[%c0, %c0_1, %c0_2] : memref<8x8x16xbf16, #tpu.memory_space<vmem>>, vector<1x8x16xbf16>
    %4 = vector.shape_cast %3 : vector<1x8x16xbf16> to vector<8x16xbf16>
    %c0_3 = arith.constant 0 : index
    %c0_4 = arith.constant 0 : index
    %5 = vector.load %arg19[%c0_3, %c0_4] : memref<8x32xf32, #tpu.memory_space<vmem>>, vector<8x32xf32>
    %c0_5 = arith.constant 0 : index
    %c0_6 = arith.constant 0 : index
    %6 = vector.load %arg20[%c0_5, %c0_6] : memref<8x32xf32, #tpu.memory_space<vmem>>, vector<8x32xf32>
    %c0_7 = arith.constant 0 : index
    %c0_8 = arith.constant 0 : index
    %7 = vector.load %arg3[%c0_7, %c0_8] : memref<16x128xbf16, #tpu.memory_space<vmem>>, vector<16x128xbf16>
    %cst = arith.constant dense<0.000000e+00> : vector<8x128xf32>
    %8 = tpu.matmul %4, %7, %cst {dimension_numbers = #tpu.dot_dimension_numbers<[1], [0], [0], [1], [0, 0, 1, 1], [], []>} : vector<8x16xbf16>, vector<16x128xbf16>, vector<8x128xf32> -> vector<8x128xf32>
    %9 = arith.truncf %5 : vector<8x32xf32> to vector<8x32xbf16>
    %c0_9 = arith.constant 0 : index
    %c0_10 = arith.constant 0 : index
    %10 = vector.load %arg4[%c0_9, %c0_10] : memref<32x128xbf16, #tpu.memory_space<vmem>>, vector<32x128xbf16>
    %cst_11 = arith.constant dense<0.000000e+00> : vector<8x128xf32>
    %11 = tpu.matmul %9, %10, %cst_11 {dimension_numbers = #tpu.dot_dimension_numbers<[1], [0], [0], [1], [0, 0, 1, 1], [], []>} : vector<8x32xbf16>, vector<32x128xbf16>, vector<8x128xf32> -> vector<8x128xf32>
    %12 = arith.addf %8, %11 : vector<8x128xf32>
    %c0_12 = arith.constant 0 : index
    %c0_13 = arith.constant 0 : index
    %13 = vector.load %arg5[%c0_12, %c0_13] : memref<1x128xf32, #tpu.memory_space<vmem>>, vector<1x128xf32>
    %14 = vector.broadcast %13 : vector<1x128xf32> to vector<8x128xf32>
    %15 = arith.addf %12, %14 : vector<8x128xf32>
    %16 = vector.extract_strided_slice %15 {offsets = [0, 0], sizes = [8, 32], strides = [1, 1]} : vector<8x128xf32> to vector<8x32xf32>
    %17 = arith.negf %16 : vector<8x32xf32>
    %18 = math.exp %17 : vector<8x32xf32>
    %cst_14 = arith.constant 1.000000e+00 : f32
    %19 = vector.broadcast %cst_14 : f32 to vector<8x32xf32>
    %20 = arith.addf %19, %18 : vector<8x32xf32>
    %21 = arith.divf %19, %20 : vector<8x32xf32>
    %22 = vector.extract_strided_slice %15 {offsets = [0, 32], sizes = [8, 32], strides = [1, 1]} : vector<8x128xf32> to vector<8x32xf32>
    %23 = arith.negf %22 : vector<8x32xf32>
    %24 = math.exp %23 : vector<8x32xf32>
    %cst_15 = arith.constant 1.000000e+00 : f32
    %25 = vector.broadcast %cst_15 : f32 to vector<8x32xf32>
    %26 = arith.addf %25, %24 : vector<8x32xf32>
    %27 = arith.divf %25, %26 : vector<8x32xf32>
    %28 = vector.extract_strided_slice %15 {offsets = [0, 64], sizes = [8, 32], strides = [1, 1]} : vector<8x128xf32> to vector<8x32xf32>
    %29 = math.tanh %28 : vector<8x32xf32>
    %30 = vector.extract_strided_slice %15 {offsets = [0, 96], sizes = [8, 32], strides = [1, 1]} : vector<8x128xf32> to vector<8x32xf32>
    %31 = arith.negf %30 : vector<8x32xf32>
    %32 = math.exp %31 : vector<8x32xf32>
    %cst_16 = arith.constant 1.000000e+00 : f32
    %33 = vector.broadcast %cst_16 : f32 to vector<8x32xf32>
    %34 = arith.addf %33, %32 : vector<8x32xf32>
    %35 = arith.divf %33, %34 : vector<8x32xf32>
    %36 = arith.mulf %27, %6 : vector<8x32xf32>
    %37 = arith.mulf %21, %29 : vector<8x32xf32>
    %38 = arith.addf %36, %37 : vector<8x32xf32>
    %39 = math.tanh %38 : vector<8x32xf32>
    %40 = arith.mulf %35, %39 : vector<8x32xf32>
    %c7 = arith.constant 7 : index
    %c0_17 = arith.constant 0 : index
    %c0_18 = arith.constant 0 : index
    %41 = vector.load %arg2[%c7, %c0_17, %c0_18] : memref<8x8x16xbf16, #tpu.memory_space<vmem>>, vector<1x8x16xbf16>
    %42 = vector.shape_cast %41 : vector<1x8x16xbf16> to vector<8x16xbf16>
    %c0_19 = arith.constant 0 : index
    %c0_20 = arith.constant 0 : index
    %43 = vector.load %arg21[%c0_19, %c0_20] : memref<8x32xf32, #tpu.memory_space<vmem>>, vector<8x32xf32>
    %c0_21 = arith.constant 0 : index
    %c0_22 = arith.constant 0 : index
    %44 = vector.load %arg22[%c0_21, %c0_22] : memref<8x32xf32, #tpu.memory_space<vmem>>, vector<8x32xf32>
    %c0_23 = arith.constant 0 : index
    %c0_24 = arith.constant 0 : index
    %45 = vector.load %arg6[%c0_23, %c0_24] : memref<16x128xbf16, #tpu.memory_space<vmem>>, vector<16x128xbf16>
    %cst_25 = arith.constant dense<0.000000e+00> : vector<8x128xf32>
    %46 = tpu.matmul %42, %45, %cst_25 {dimension_numbers = #tpu.dot_dimension_numbers<[1], [0], [0], [1], [0, 0, 1, 1], [], []>} : vector<8x16xbf16>, vector<16x128xbf16>, vector<8x128xf32> -> vector<8x128xf32>
    %47 = arith.truncf %43 : vector<8x32xf32> to vector<8x32xbf16>
    %c0_26 = arith.constant 0 : index
    %c0_27 = arith.constant 0 : index
    %48 = vector.load %arg7[%c0_26, %c0_27] : memref<32x128xbf16, #tpu.memory_space<vmem>>, vector<32x128xbf16>
    %cst_28 = arith.constant dense<0.000000e+00> : vector<8x128xf32>
    %49 = tpu.matmul %47, %48, %cst_28 {dimension_numbers = #tpu.dot_dimension_numbers<[1], [0], [0], [1], [0, 0, 1, 1], [], []>} : vector<8x32xbf16>, vector<32x128xbf16>, vector<8x128xf32> -> vector<8x128xf32>
    %50 = arith.addf %46, %49 : vector<8x128xf32>
    %c0_29 = arith.constant 0 : index
    %c0_30 = arith.constant 0 : index
    %51 = vector.load %arg8[%c0_29, %c0_30] : memref<1x128xf32, #tpu.memory_space<vmem>>, vector<1x128xf32>
    %52 = vector.broadcast %51 : vector<1x128xf32> to vector<8x128xf32>
    %53 = arith.addf %50, %52 : vector<8x128xf32>
    %54 = vector.extract_strided_slice %53 {offsets = [0, 0], sizes = [8, 32], strides = [1, 1]} : vector<8x128xf32> to vector<8x32xf32>
    %55 = arith.negf %54 : vector<8x32xf32>
    %56 = math.exp %55 : vector<8x32xf32>
    %cst_31 = arith.constant 1.000000e+00 : f32
    %57 = vector.broadcast %cst_31 : f32 to vector<8x32xf32>
    %58 = arith.addf %57, %56 : vector<8x32xf32>
    %59 = arith.divf %57, %58 : vector<8x32xf32>
    %60 = vector.extract_strided_slice %53 {offsets = [0, 32], sizes = [8, 32], strides = [1, 1]} : vector<8x128xf32> to vector<8x32xf32>
    %61 = arith.negf %60 : vector<8x32xf32>
    %62 = math.exp %61 : vector<8x32xf32>
    %cst_32 = arith.constant 1.000000e+00 : f32
    %63 = vector.broadcast %cst_32 : f32 to vector<8x32xf32>
    %64 = arith.addf %63, %62 : vector<8x32xf32>
    %65 = arith.divf %63, %64 : vector<8x32xf32>
    %66 = vector.extract_strided_slice %53 {offsets = [0, 64], sizes = [8, 32], strides = [1, 1]} : vector<8x128xf32> to vector<8x32xf32>
    %67 = math.tanh %66 : vector<8x32xf32>
    %68 = vector.extract_strided_slice %53 {offsets = [0, 96], sizes = [8, 32], strides = [1, 1]} : vector<8x128xf32> to vector<8x32xf32>
    %69 = arith.negf %68 : vector<8x32xf32>
    %70 = math.exp %69 : vector<8x32xf32>
    %cst_33 = arith.constant 1.000000e+00 : f32
    %71 = vector.broadcast %cst_33 : f32 to vector<8x32xf32>
    %72 = arith.addf %71, %70 : vector<8x32xf32>
    %73 = arith.divf %71, %72 : vector<8x32xf32>
    %74 = arith.mulf %65, %44 : vector<8x32xf32>
    %75 = arith.mulf %59, %67 : vector<8x32xf32>
    %76 = arith.addf %74, %75 : vector<8x32xf32>
    %77 = math.tanh %76 : vector<8x32xf32>
    %78 = arith.mulf %73, %77 : vector<8x32xf32>
    %c0_34 = arith.constant 0 : index
    %c0_35 = arith.constant 0 : index
    %79 = vector.load %arg19[%c0_34, %c0_35] : memref<8x32xf32, #tpu.memory_space<vmem>>, vector<8x32xf32>
    tpu.vector_store %arg19[%c0_34, %c0_35], %40 {strides = array<i32>} : memref<8x32xf32, #tpu.memory_space<vmem>>, vector<8x32xf32>,
    %c0_36 = arith.constant 0 : index
    %c0_37 = arith.constant 0 : index
    %80 = vector.load %arg20[%c0_36, %c0_37] : memref<8x32xf32, #tpu.memory_space<vmem>>, vector<8x32xf32>
    tpu.vector_store %arg20[%c0_36, %c0_37], %38 {strides = array<i32>} : memref<8x32xf32, #tpu.memory_space<vmem>>, vector<8x32xf32>,
    %c0_38 = arith.constant 0 : index
    %c0_39 = arith.constant 0 : index
    %81 = vector.load %arg21[%c0_38, %c0_39] : memref<8x32xf32, #tpu.memory_space<vmem>>, vector<8x32xf32>
    tpu.vector_store %arg21[%c0_38, %c0_39], %78 {strides = array<i32>} : memref<8x32xf32, #tpu.memory_space<vmem>>, vector<8x32xf32>,
    %c0_40 = arith.constant 0 : index
    %c0_41 = arith.constant 0 : index
    %82 = vector.load %arg22[%c0_40, %c0_41] : memref<8x32xf32, #tpu.memory_space<vmem>>, vector<8x32xf32>
    tpu.vector_store %arg22[%c0_40, %c0_41], %76 {strides = array<i32>} : memref<8x32xf32, #tpu.memory_space<vmem>>, vector<8x32xf32>,
    %83 = arith.truncf %40 : vector<8x32xf32> to vector<8x32xbf16>
    %c0_42 = arith.constant 0 : index
    %c0_43 = arith.constant 0 : index
    %c0_44 = arith.constant 0 : index
    %84 = vector.load %arg15[%c0_42, %c0_43, %c0_44] : memref<8x8x32xbf16, #tpu.memory_space<vmem>>, vector<1x8x32xbf16>
    %85 = vector.shape_cast %84 : vector<1x8x32xbf16> to vector<8x32xbf16>
    %86 = vector.shape_cast %83 : vector<8x32xbf16> to vector<1x8x32xbf16>
    tpu.vector_store %arg15[%c0_42, %c0_43, %c0_44], %86 {strides = array<i32>} : memref<8x8x32xbf16, #tpu.memory_space<vmem>>, vector<1x8x32xbf16>,
    %87 = arith.truncf %78 : vector<8x32xf32> to vector<8x32xbf16>
    %c7_45 = arith.constant 7 : index
    %c0_46 = arith.constant 0 : index
    %c0_47 = arith.constant 0 : index
    %88 = vector.load %arg16[%c7_45, %c0_46, %c0_47] : memref<8x8x32xbf16, #tpu.memory_space<vmem>>, vector<1x8x32xbf16>
    %89 = vector.shape_cast %88 : vector<1x8x32xbf16> to vector<8x32xbf16>
    %90 = vector.shape_cast %87 : vector<8x32xbf16> to vector<1x8x32xbf16>
    tpu.vector_store %arg16[%c7_45, %c0_46, %c0_47], %90 {strides = array<i32>} : memref<8x8x32xbf16, #tpu.memory_space<vmem>>, vector<1x8x32xbf16>,
    %c1 = arith.constant 1 : index
    %c0_48 = arith.constant 0 : index
    %c0_49 = arith.constant 0 : index
    %91 = vector.load %arg1[%c1, %c0_48, %c0_49] : memref<8x8x16xbf16, #tpu.memory_space<vmem>>, vector<1x8x16xbf16>
    %92 = vector.shape_cast %91 : vector<1x8x16xbf16> to vector<8x16xbf16>
    %c0_50 = arith.constant 0 : index
    %c0_51 = arith.constant 0 : index
    %93 = vector.load %arg19[%c0_50, %c0_51] : memref<8x32xf32, #tpu.memory_space<vmem>>, vector<8x32xf32>
    %c0_52 = arith.constant 0 : index
    %c0_53 = arith.constant 0 : index
    %94 = vector.load %arg20[%c0_52, %c0_53] : memref<8x32xf32, #tpu.memory_space<vmem>>, vector<8x32xf32>
    %c0_54 = arith.constant 0 : index
    %c0_55 = arith.constant 0 : index
    %95 = vector.load %arg3[%c0_54, %c0_55] : memref<16x128xbf16, #tpu.memory_space<vmem>>, vector<16x128xbf16>
    %cst_56 = arith.constant dense<0.000000e+00> : vector<8x128xf32>
    %96 = tpu.matmul %92, %95, %cst_56 {dimension_numbers = #tpu.dot_dimension_numbers<[1], [0], [0], [1], [0, 0, 1, 1], [], []>} : vector<8x16xbf16>, vector<16x128xbf16>, vector<8x128xf32> -> vector<8x128xf32>
    %97 = arith.truncf %93 : vector<8x32xf32> to vector<8x32xbf16>
    %c0_57 = arith.constant 0 : index
    %c0_58 = arith.constant 0 : index
    %98 = vector.load %arg4[%c0_57, %c0_58] : memref<32x128xbf16, #tpu.memory_space<vmem>>, vector<32x128xbf16>
    %cst_59 = arith.constant dense<0.000000e+00> : vector<8x128xf32>
    %99 = tpu.matmul %97, %98, %cst_59 {dimension_numbers = #tpu.dot_dimension_numbers<[1], [0], [0], [1], [0, 0, 1, 1], [], []>} : vector<8x32xbf16>, vector<32x128xbf16>, vector<8x128xf32> -> vector<8x128xf32>
    %100 = arith.addf %96, %99 : vector<8x128xf32>
    %c0_60 = arith.constant 0 : index
    %c0_61 = arith.constant 0 : index
    %101 = vector.load %arg5[%c0_60, %c0_61] : memref<1x128xf32, #tpu.memory_space<vmem>>, vector<1x128xf32>
    %102 = vector.broadcast %101 : vector<1x128xf32> to vector<8x128xf32>
    %103 = arith.addf %100, %102 : vector<8x128xf32>
    %104 = vector.extract_strided_slice %103 {offsets = [0, 0], sizes = [8, 32], strides = [1, 1]} : vector<8x128xf32> to vector<8x32xf32>
    %105 = arith.negf %104 : vector<8x32xf32>
    %106 = math.exp %105 : vector<8x32xf32>
    %cst_62 = arith.constant 1.000000e+00 : f32
    %107 = vector.broadcast %cst_62 : f32 to vector<8x32xf32>
    %108 = arith.addf %107, %106 : vector<8x32xf32>
    %109 = arith.divf %107, %108 : vector<8x32xf32>
    %110 = vector.extract_strided_slice %103 {offsets = [0, 32], sizes = [8, 32], strides = [1, 1]} : vector<8x128xf32> to vector<8x32xf32>
    %111 = arith.negf %110 : vector<8x32xf32>
    %112 = math.exp %111 : vector<8x32xf32>
    %cst_63 = arith.constant 1.000000e+00 : f32
    %113 = vector.broadcast %cst_63 : f32 to vector<8x32xf32>
    %114 = arith.addf %113, %112 : vector<8x32xf32>
    %115 = arith.divf %113, %114 : vector<8x32xf32>
    %116 = vector.extract_strided_slice %103 {offsets = [0, 64], sizes = [8, 32], strides = [1, 1]} : vector<8x128xf32> to vector<8x32xf32>
    %117 = math.tanh %116 : vector<8x32xf32>
    %118 = vector.extract_strided_slice %103 {offsets = [0, 96], sizes = [8, 32], strides = [1, 1]} : vector<8x128xf32> to vector<8x32xf32>
    %119 = arith.negf %118 : vector<8x32xf32>
    %120 = math.exp %119 : vector<8x32xf32>
    %cst_64 = arith.constant 1.000000e+00 : f32
    %121 = vector.broadcast %cst_64 : f32 to vector<8x32xf32>
    %122 = arith.addf %121, %120 : vector<8x32xf32>
    %123 = arith.divf %121, %122 : vector<8x32xf32>
    %124 = arith.mulf %115, %94 : vector<8x32xf32>
    %125 = arith.mulf %109, %117 : vector<8x32xf32>
    %126 = arith.addf %124, %125 : vector<8x32xf32>
    %127 = math.tanh %126 : vector<8x32xf32>
    %128 = arith.mulf %123, %127 : vector<8x32xf32>
    %c6 = arith.constant 6 : index
    %c0_65 = arith.constant 0 : index
    %c0_66 = arith.constant 0 : index
    %129 = vector.load %arg2[%c6, %c0_65, %c0_66] : memref<8x8x16xbf16, #tpu.memory_space<vmem>>, vector<1x8x16xbf16>
    %130 = vector.shape_cast %129 : vector<1x8x16xbf16> to vector<8x16xbf16>
    %c0_67 = arith.constant 0 : index
    %c0_68 = arith.constant 0 : index
    %131 = vector.load %arg21[%c0_67, %c0_68] : memref<8x32xf32, #tpu.memory_space<vmem>>, vector<8x32xf32>
    %c0_69 = arith.constant 0 : index
    %c0_70 = arith.constant 0 : index
    %132 = vector.load %arg22[%c0_69, %c0_70] : memref<8x32xf32, #tpu.memory_space<vmem>>, vector<8x32xf32>
    %c0_71 = arith.constant 0 : index
    %c0_72 = arith.constant 0 : index
    %133 = vector.load %arg6[%c0_71, %c0_72] : memref<16x128xbf16, #tpu.memory_space<vmem>>, vector<16x128xbf16>
    %cst_73 = arith.constant dense<0.000000e+00> : vector<8x128xf32>
    %134 = tpu.matmul %130, %133, %cst_73 {dimension_numbers = #tpu.dot_dimension_numbers<[1], [0], [0], [1], [0, 0, 1, 1], [], []>} : vector<8x16xbf16>, vector<16x128xbf16>, vector<8x128xf32> -> vector<8x128xf32>
    %135 = arith.truncf %131 : vector<8x32xf32> to vector<8x32xbf16>
    %c0_74 = arith.constant 0 : index
    %c0_75 = arith.constant 0 : index
    %136 = vector.load %arg7[%c0_74, %c0_75] : memref<32x128xbf16, #tpu.memory_space<vmem>>, vector<32x128xbf16>
    %cst_76 = arith.constant dense<0.000000e+00> : vector<8x128xf32>
    %137 = tpu.matmul %135, %136, %cst_76 {dimension_numbers = #tpu.dot_dimension_numbers<[1], [0], [0], [1], [0, 0, 1, 1], [], []>} : vector<8x32xbf16>, vector<32x128xbf16>, vector<8x128xf32> -> vector<8x128xf32>
    %138 = arith.addf %134, %137 : vector<8x128xf32>
    %c0_77 = arith.constant 0 : index
    %c0_78 = arith.constant 0 : index
    %139 = vector.load %arg8[%c0_77, %c0_78] : memref<1x128xf32, #tpu.memory_space<vmem>>, vector<1x128xf32>
    %140 = vector.broadcast %139 : vector<1x128xf32> to vector<8x128xf32>
    %141 = arith.addf %138, %140 : vector<8x128xf32>
    %142 = vector.extract_strided_slice %141 {offsets = [0, 0], sizes = [8, 32], strides = [1, 1]} : vector<8x128xf32> to vector<8x32xf32>
    %143 = arith.negf %142 : vector<8x32xf32>
    %144 = math.exp %143 : vector<8x32xf32>
    %cst_79 = arith.constant 1.000000e+00 : f32
    %145 = vector.broadcast %cst_79 : f32 to vector<8x32xf32>
    %146 = arith.addf %145, %144 : vector<8x32xf32>
    %147 = arith.divf %145, %146 : vector<8x32xf32>
    %148 = vector.extract_strided_slice %141 {offsets = [0, 32], sizes = [8, 32], strides = [1, 1]} : vector<8x128xf32> to vector<8x32xf32>
    %149 = arith.negf %148 : vector<8x32xf32>
    %150 = math.exp %149 : vector<8x32xf32>
    %cst_80 = arith.constant 1.000000e+00 : f32
    %151 = vector.broadcast %cst_80 : f32 to vector<8x32xf32>
    %152 = arith.addf %151, %150 : vector<8x32xf32>
    %153 = arith.divf %151, %152 : vector<8x32xf32>
    %154 = vector.extract_strided_slice %141 {offsets = [0, 64], sizes = [8, 32], strides = [1, 1]} : vector<8x128xf32> to vector<8x32xf32>
    %155 = math.tanh %154 : vector<8x32xf32>
    %156 = vector.extract_strided_slice %141 {offsets = [0, 96], sizes = [8, 32], strides = [1, 1]} : vector<8x128xf32> to vector<8x32xf32>
    %157 = arith.negf %156 : vector<8x32xf32>
    %158 = math.exp %157 : vector<8x32xf32>
    %cst_81 = arith.constant 1.000000e+00 : f32
    %159 = vector.broadcast %cst_81 : f32 to vector<8x32xf32>
    %160 = arith.addf %159, %158 : vector<8x32xf32>
    %161 = arith.divf %159, %160 : vector<8x32xf32>
    %162 = arith.mulf %153, %132 : vector<8x32xf32>
    %163 = arith.mulf %147, %155 : vector<8x32xf32>
    %164 = arith.addf %162, %163 : vector<8x32xf32>
    %165 = math.tanh %164 : vector<8x32xf32>
    %166 = arith.mulf %161, %165 : vector<8x32xf32>
    %c0_82 = arith.constant 0 : index
    %c0_83 = arith.constant 0 : index
    %167 = vector.load %arg19[%c0_82, %c0_83] : memref<8x32xf32, #tpu.memory_space<vmem>>, vector<8x32xf32>
    tpu.vector_store %arg19[%c0_82, %c0_83], %128 {strides = array<i32>} : memref<8x32xf32, #tpu.memory_space<vmem>>, vector<8x32xf32>,
    %c0_84 = arith.constant 0 : index
    %c0_85 = arith.constant 0 : index
    %168 = vector.load %arg20[%c0_84, %c0_85] : memref<8x32xf32, #tpu.memory_space<vmem>>, vector<8x32xf32>
    tpu.vector_store %arg20[%c0_84, %c0_85], %126 {strides = array<i32>} : memref<8x32xf32, #tpu.memory_space<vmem>>, vector<8x32xf32>,
    %c0_86 = arith.constant 0 : index
    %c0_87 = arith.constant 0 : index
    %169 = vector.load %arg21[%c0_86, %c0_87] : memref<8x32xf32, #tpu.memory_space<vmem>>, vector<8x32xf32>
    tpu.vector_store %arg21[%c0_86, %c0_87], %166 {strides = array<i32>} : memref<8x32xf32, #tpu.memory_space<vmem>>, vector<8x32xf32>,
    %c0_88 = arith.constant 0 : index
    %c0_89 = arith.constant 0 : index
    %170 = vector.load %arg22[%c0_88, %c0_89] : memref<8x32xf32, #tpu.memory_space<vmem>>, vector<8x32xf32>
    tpu.vector_store %arg22[%c0_88, %c0_89], %164 {strides = array<i32>} : memref<8x32xf32, #tpu.memory_space<vmem>>, vector<8x32xf32>,
    %171 = arith.truncf %128 : vector<8x32xf32> to vector<8x32xbf16>
    %c1_90 = arith.constant 1 : index
    %c0_91 = arith.constant 0 : index
    %c0_92 = arith.constant 0 : index
    %172 = vector.load %arg15[%c1_90, %c0_91, %c0_92] : memref<8x8x32xbf16, #tpu.memory_space<vmem>>, vector<1x8x32xbf16>
    %173 = vector.shape_cast %172 : vector<1x8x32xbf16> to vector<8x32xbf16>
    %174 = vector.shape_cast %171 : vector<8x32xbf16> to vector<1x8x32xbf16>
    tpu.vector_store %arg15[%c1_90, %c0_91, %c0_92], %174 {strides = array<i32>} : memref<8x8x32xbf16, #tpu.memory_space<vmem>>, vector<1x8x32xbf16>,
    %175 = arith.truncf %166 : vector<8x32xf32> to vector<8x32xbf16>
    %c6_93 = arith.constant 6 : index
    %c0_94 = arith.constant 0 : index
    %c0_95 = arith.constant 0 : index
    %176 = vector.load %arg16[%c6_93, %c0_94, %c0_95] : memref<8x8x32xbf16, #tpu.memory_space<vmem>>, vector<1x8x32xbf16>
    %177 = vector.shape_cast %176 : vector<1x8x32xbf16> to vector<8x32xbf16>
    %178 = vector.shape_cast %175 : vector<8x32xbf16> to vector<1x8x32xbf16>
    tpu.vector_store %arg16[%c6_93, %c0_94, %c0_95], %178 {strides = array<i32>} : memref<8x8x32xbf16, #tpu.memory_space<vmem>>, vector<1x8x32xbf16>,
    %c2 = arith.constant 2 : index
    %c0_96 = arith.constant 0 : index
    %c0_97 = arith.constant 0 : index
    %179 = vector.load %arg1[%c2, %c0_96, %c0_97] : memref<8x8x16xbf16, #tpu.memory_space<vmem>>, vector<1x8x16xbf16>
    %180 = vector.shape_cast %179 : vector<1x8x16xbf16> to vector<8x16xbf16>
    %c0_98 = arith.constant 0 : index
    %c0_99 = arith.constant 0 : index
    %181 = vector.load %arg19[%c0_98, %c0_99] : memref<8x32xf32, #tpu.memory_space<vmem>>, vector<8x32xf32>
    %c0_100 = arith.constant 0 : index
    %c0_101 = arith.constant 0 : index
    %182 = vector.load %arg20[%c0_100, %c0_101] : memref<8x32xf32, #tpu.memory_space<vmem>>, vector<8x32xf32>
    %c0_102 = arith.constant 0 : index
    %c0_103 = arith.constant 0 : index
    %183 = vector.load %arg3[%c0_102, %c0_103] : memref<16x128xbf16, #tpu.memory_space<vmem>>, vector<16x128xbf16>
    %cst_104 = arith.constant dense<0.000000e+00> : vector<8x128xf32>
    %184 = tpu.matmul %180, %183, %cst_104 {dimension_numbers = #tpu.dot_dimension_numbers<[1], [0], [0], [1], [0, 0, 1, 1], [], []>} : vector<8x16xbf16>, vector<16x128xbf16>, vector<8x128xf32> -> vector<8x128xf32>
    %185 = arith.truncf %181 : vector<8x32xf32> to vector<8x32xbf16>
    %c0_105 = arith.constant 0 : index
    %c0_106 = arith.constant 0 : index
    %186 = vector.load %arg4[%c0_105, %c0_106] : memref<32x128xbf16, #tpu.memory_space<vmem>>, vector<32x128xbf16>
    %cst_107 = arith.constant dense<0.000000e+00> : vector<8x128xf32>
    %187 = tpu.matmul %185, %186, %cst_107 {dimension_numbers = #tpu.dot_dimension_numbers<[1], [0], [0], [1], [0, 0, 1, 1], [], []>} : vector<8x32xbf16>, vector<32x128xbf16>, vector<8x128xf32> -> vector<8x128xf32>
    %188 = arith.addf %184, %187 : vector<8x128xf32>
    %c0_108 = arith.constant 0 : index
    %c0_109 = arith.constant 0 : index
    %189 = vector.load %arg5[%c0_108, %c0_109] : memref<1x128xf32, #tpu.memory_space<vmem>>, vector<1x128xf32>
    %190 = vector.broadcast %189 : vector<1x128xf32> to vector<8x128xf32>
    %191 = arith.addf %188, %190 : vector<8x128xf32>
    %192 = vector.extract_strided_slice %191 {offsets = [0, 0], sizes = [8, 32], strides = [1, 1]} : vector<8x128xf32> to vector<8x32xf32>
    %193 = arith.negf %192 : vector<8x32xf32>
    %194 = math.exp %193 : vector<8x32xf32>
    %cst_110 = arith.constant 1.000000e+00 : f32
    %195 = vector.broadcast %cst_110 : f32 to vector<8x32xf32>
    %196 = arith.addf %195, %194 : vector<8x32xf32>
    %197 = arith.divf %195, %196 : vector<8x32xf32>
    %198 = vector.extract_strided_slice %191 {offsets = [0, 32], sizes = [8, 32], strides = [1, 1]} : vector<8x128xf32> to vector<8x32xf32>
    %199 = arith.negf %198 : vector<8x32xf32>
    %200 = math.exp %199 : vector<8x32xf32>
    %cst_111 = arith.constant 1.000000e+00 : f32
    %201 = vector.broadcast %cst_111 : f32 to vector<8x32xf32>
    %202 = arith.addf %201, %200 : vector<8x32xf32>
    %203 = arith.divf %201, %202 : vector<8x32xf32>
    %204 = vector.extract_strided_slice %191 {offsets = [0, 64], sizes = [8, 32], strides = [1, 1]} : vector<8x128xf32> to vector<8x32xf32>
    %205 = math.tanh %204 : vector<8x32xf32>
    %206 = vector.extract_strided_slice %191 {offsets = [0, 96], sizes = [8, 32], strides = [1, 1]} : vector<8x128xf32> to vector<8x32xf32>
    %207 = arith.negf %206 : vector<8x32xf32>
    %208 = math.exp %207 : vector<8x32xf32>
    %cst_112 = arith.constant 1.000000e+00 : f32
    %209 = vector.broadcast %cst_112 : f32 to vector<8x32xf32>
    %210 = arith.addf %209, %208 : vector<8x32xf32>
    %211 = arith.divf %209, %210 : vector<8x32xf32>
    %212 = arith.mulf %203, %182 : vector<8x32xf32>
    %213 = arith.mulf %197, %205 : vector<8x32xf32>
    %214 = arith.addf %212, %213 : vector<8x32xf32>
    %215 = math.tanh %214 : vector<8x32xf32>
    %216 = arith.mulf %211, %215 : vector<8x32xf32>
    %c5 = arith.constant 5 : index
    %c0_113 = arith.constant 0 : index
    %c0_114 = arith.constant 0 : index
    %217 = vector.load %arg2[%c5, %c0_113, %c0_114] : memref<8x8x16xbf16, #tpu.memory_space<vmem>>, vector<1x8x16xbf16>
    %218 = vector.shape_cast %217 : vector<1x8x16xbf16> to vector<8x16xbf16>
    %c0_115 = arith.constant 0 : index
    %c0_116 = arith.constant 0 : index
    %219 = vector.load %arg21[%c0_115, %c0_116] : memref<8x32xf32, #tpu.memory_space<vmem>>, vector<8x32xf32>
    %c0_117 = arith.constant 0 : index
    %c0_118 = arith.constant 0 : index
    %220 = vector.load %arg22[%c0_117, %c0_118] : memref<8x32xf32, #tpu.memory_space<vmem>>, vector<8x32xf32>
    %c0_119 = arith.constant 0 : index
    %c0_120 = arith.constant 0 : index
    %221 = vector.load %arg6[%c0_119, %c0_120] : memref<16x128xbf16, #tpu.memory_space<vmem>>, vector<16x128xbf16>
    %cst_121 = arith.constant dense<0.000000e+00> : vector<8x128xf32>
    %222 = tpu.matmul %218, %221, %cst_121 {dimension_numbers = #tpu.dot_dimension_numbers<[1], [0], [0], [1], [0, 0, 1, 1], [], []>} : vector<8x16xbf16>, vector<16x128xbf16>, vector<8x128xf32> -> vector<8x128xf32>
    %223 = arith.truncf %219 : vector<8x32xf32> to vector<8x32xbf16>
    %c0_122 = arith.constant 0 : index
    %c0_123 = arith.constant 0 : index
    %224 = vector.load %arg7[%c0_122, %c0_123] : memref<32x128xbf16, #tpu.memory_space<vmem>>, vector<32x128xbf16>
    %cst_124 = arith.constant dense<0.000000e+00> : vector<8x128xf32>
    %225 = tpu.matmul %223, %224, %cst_124 {dimension_numbers = #tpu.dot_dimension_numbers<[1], [0], [0], [1], [0, 0, 1, 1], [], []>} : vector<8x32xbf16>, vector<32x128xbf16>, vector<8x128xf32> -> vector<8x128xf32>
    %226 = arith.addf %222, %225 : vector<8x128xf32>
    %c0_125 = arith.constant 0 : index
    %c0_126 = arith.constant 0 : index
    %227 = vector.load %arg8[%c0_125, %c0_126] : memref<1x128xf32, #tpu.memory_space<vmem>>, vector<1x128xf32>
    %228 = vector.broadcast %227 : vector<1x128xf32> to vector<8x128xf32>
    %229 = arith.addf %226, %228 : vector<8x128xf32>
    %230 = vector.extract_strided_slice %229 {offsets = [0, 0], sizes = [8, 32], strides = [1, 1]} : vector<8x128xf32> to vector<8x32xf32>
    %231 = arith.negf %230 : vector<8x32xf32>
    %232 = math.exp %231 : vector<8x32xf32>
    %cst_127 = arith.constant 1.000000e+00 : f32
    %233 = vector.broadcast %cst_127 : f32 to vector<8x32xf32>
    %234 = arith.addf %233, %232 : vector<8x32xf32>
    %235 = arith.divf %233, %234 : vector<8x32xf32>
    %236 = vector.extract_strided_slice %229 {offsets = [0, 32], sizes = [8, 32], strides = [1, 1]} : vector<8x128xf32> to vector<8x32xf32>
    %237 = arith.negf %236 : vector<8x32xf32>
    %238 = math.exp %237 : vector<8x32xf32>
    %cst_128 = arith.constant 1.000000e+00 : f32
    %239 = vector.broadcast %cst_128 : f32 to vector<8x32xf32>
    %240 = arith.addf %239, %238 : vector<8x32xf32>
    %241 = arith.divf %239, %240 : vector<8x32xf32>
    %242 = vector.extract_strided_slice %229 {offsets = [0, 64], sizes = [8, 32], strides = [1, 1]} : vector<8x128xf32> to vector<8x32xf32>
    %243 = math.tanh %242 : vector<8x32xf32>
    %244 = vector.extract_strided_slice %229 {offsets = [0, 96], sizes = [8, 32], strides = [1, 1]} : vector<8x128xf32> to vector<8x32xf32>
    %245 = arith.negf %244 : vector<8x32xf32>
    %246 = math.exp %245 : vector<8x32xf32>
    %cst_129 = arith.constant 1.000000e+00 : f32
    %247 = vector.broadcast %cst_129 : f32 to vector<8x32xf32>
    %248 = arith.addf %247, %246 : vector<8x32xf32>
    %249 = arith.divf %247, %248 : vector<8x32xf32>
    %250 = arith.mulf %241, %220 : vector<8x32xf32>
    %251 = arith.mulf %235, %243 : vector<8x32xf32>
    %252 = arith.addf %250, %251 : vector<8x32xf32>
    %253 = math.tanh %252 : vector<8x32xf32>
    %254 = arith.mulf %249, %253 : vector<8x32xf32>
    %c0_130 = arith.constant 0 : index
    %c0_131 = arith.constant 0 : index
    %255 = vector.load %arg19[%c0_130, %c0_131] : memref<8x32xf32, #tpu.memory_space<vmem>>, vector<8x32xf32>
    tpu.vector_store %arg19[%c0_130, %c0_131], %216 {strides = array<i32>} : memref<8x32xf32, #tpu.memory_space<vmem>>, vector<8x32xf32>,
    %c0_132 = arith.constant 0 : index
    %c0_133 = arith.constant 0 : index
    %256 = vector.load %arg20[%c0_132, %c0_133] : memref<8x32xf32, #tpu.memory_space<vmem>>, vector<8x32xf32>
    tpu.vector_store %arg20[%c0_132, %c0_133], %214 {strides = array<i32>} : memref<8x32xf32, #tpu.memory_space<vmem>>, vector<8x32xf32>,
    %c0_134 = arith.constant 0 : index
    %c0_135 = arith.constant 0 : index
    %257 = vector.load %arg21[%c0_134, %c0_135] : memref<8x32xf32, #tpu.memory_space<vmem>>, vector<8x32xf32>
    tpu.vector_store %arg21[%c0_134, %c0_135], %254 {strides = array<i32>} : memref<8x32xf32, #tpu.memory_space<vmem>>, vector<8x32xf32>,
    %c0_136 = arith.constant 0 : index
    %c0_137 = arith.constant 0 : index
    %258 = vector.load %arg22[%c0_136, %c0_137] : memref<8x32xf32, #tpu.memory_space<vmem>>, vector<8x32xf32>
    tpu.vector_store %arg22[%c0_136, %c0_137], %252 {strides = array<i32>} : memref<8x32xf32, #tpu.memory_space<vmem>>, vector<8x32xf32>,
    %259 = arith.truncf %216 : vector<8x32xf32> to vector<8x32xbf16>
    %c2_138 = arith.constant 2 : index
    %c0_139 = arith.constant 0 : index
    %c0_140 = arith.constant 0 : index
    %260 = vector.load %arg15[%c2_138, %c0_139, %c0_140] : memref<8x8x32xbf16, #tpu.memory_space<vmem>>, vector<1x8x32xbf16>
    %261 = vector.shape_cast %260 : vector<1x8x32xbf16> to vector<8x32xbf16>
    %262 = vector.shape_cast %259 : vector<8x32xbf16> to vector<1x8x32xbf16>
    tpu.vector_store %arg15[%c2_138, %c0_139, %c0_140], %262 {strides = array<i32>} : memref<8x8x32xbf16, #tpu.memory_space<vmem>>, vector<1x8x32xbf16>,
    %263 = arith.truncf %254 : vector<8x32xf32> to vector<8x32xbf16>
    %c5_141 = arith.constant 5 : index
    %c0_142 = arith.constant 0 : index
    %c0_143 = arith.constant 0 : index
    %264 = vector.load %arg16[%c5_141, %c0_142, %c0_143] : memref<8x8x32xbf16, #tpu.memory_space<vmem>>, vector<1x8x32xbf16>
    %265 = vector.shape_cast %264 : vector<1x8x32xbf16> to vector<8x32xbf16>
    %266 = vector.shape_cast %263 : vector<8x32xbf16> to vector<1x8x32xbf16>
    tpu.vector_store %arg16[%c5_141, %c0_142, %c0_143], %266 {strides = array<i32>} : memref<8x8x32xbf16, #tpu.memory_space<vmem>>, vector<1x8x32xbf16>,
    %c3 = arith.constant 3 : index
    %c0_144 = arith.constant 0 : index
    %c0_145 = arith.constant 0 : index
    %267 = vector.load %arg1[%c3, %c0_144, %c0_145] : memref<8x8x16xbf16, #tpu.memory_space<vmem>>, vector<1x8x16xbf16>
    %268 = vector.shape_cast %267 : vector<1x8x16xbf16> to vector<8x16xbf16>
    %c0_146 = arith.constant 0 : index
    %c0_147 = arith.constant 0 : index
    %269 = vector.load %arg19[%c0_146, %c0_147] : memref<8x32xf32, #tpu.memory_space<vmem>>, vector<8x32xf32>
    %c0_148 = arith.constant 0 : index
    %c0_149 = arith.constant 0 : index
    %270 = vector.load %arg20[%c0_148, %c0_149] : memref<8x32xf32, #tpu.memory_space<vmem>>, vector<8x32xf32>
    %c0_150 = arith.constant 0 : index
    %c0_151 = arith.constant 0 : index
    %271 = vector.load %arg3[%c0_150, %c0_151] : memref<16x128xbf16, #tpu.memory_space<vmem>>, vector<16x128xbf16>
    %cst_152 = arith.constant dense<0.000000e+00> : vector<8x128xf32>
    %272 = tpu.matmul %268, %271, %cst_152 {dimension_numbers = #tpu.dot_dimension_numbers<[1], [0], [0], [1], [0, 0, 1, 1], [], []>} : vector<8x16xbf16>, vector<16x128xbf16>, vector<8x128xf32> -> vector<8x128xf32>
    %273 = arith.truncf %269 : vector<8x32xf32> to vector<8x32xbf16>
    %c0_153 = arith.constant 0 : index
    %c0_154 = arith.constant 0 : index
    %274 = vector.load %arg4[%c0_153, %c0_154] : memref<32x128xbf16, #tpu.memory_space<vmem>>, vector<32x128xbf16>
    %cst_155 = arith.constant dense<0.000000e+00> : vector<8x128xf32>
    %275 = tpu.matmul %273, %274, %cst_155 {dimension_numbers = #tpu.dot_dimension_numbers<[1], [0], [0], [1], [0, 0, 1, 1], [], []>} : vector<8x32xbf16>, vector<32x128xbf16>, vector<8x128xf32> -> vector<8x128xf32>
    %276 = arith.addf %272, %275 : vector<8x128xf32>
    %c0_156 = arith.constant 0 : index
    %c0_157 = arith.constant 0 : index
    %277 = vector.load %arg5[%c0_156, %c0_157] : memref<1x128xf32, #tpu.memory_space<vmem>>, vector<1x128xf32>
    %278 = vector.broadcast %277 : vector<1x128xf32> to vector<8x128xf32>
    %279 = arith.addf %276, %278 : vector<8x128xf32>
    %280 = vector.extract_strided_slice %279 {offsets = [0, 0], sizes = [8, 32], strides = [1, 1]} : vector<8x128xf32> to vector<8x32xf32>
    %281 = arith.negf %280 : vector<8x32xf32>
    %282 = math.exp %281 : vector<8x32xf32>
    %cst_158 = arith.constant 1.000000e+00 : f32
    %283 = vector.broadcast %cst_158 : f32 to vector<8x32xf32>
    %284 = arith.addf %283, %282 : vector<8x32xf32>
    %285 = arith.divf %283, %284 : vector<8x32xf32>
    %286 = vector.extract_strided_slice %279 {offsets = [0, 32], sizes = [8, 32], strides = [1, 1]} : vector<8x128xf32> to vector<8x32xf32>
    %287 = arith.negf %286 : vector<8x32xf32>
    %288 = math.exp %287 : vector<8x32xf32>
    %cst_159 = arith.constant 1.000000e+00 : f32
    %289 = vector.broadcast %cst_159 : f32 to vector<8x32xf32>
    %290 = arith.addf %289, %288 : vector<8x32xf32>
    %291 = arith.divf %289, %290 : vector<8x32xf32>
    %292 = vector.extract_strided_slice %279 {offsets = [0, 64], sizes = [8, 32], strides = [1, 1]} : vector<8x128xf32> to vector<8x32xf32>
    %293 = math.tanh %292 : vector<8x32xf32>
    %294 = vector.extract_strided_slice %279 {offsets = [0, 96], sizes = [8, 32], strides = [1, 1]} : vector<8x128xf32> to vector<8x32xf32>
    %295 = arith.negf %294 : vector<8x32xf32>
    %296 = math.exp %295 : vector<8x32xf32>
    %cst_160 = arith.constant 1.000000e+00 : f32
    %297 = vector.broadcast %cst_160 : f32 to vector<8x32xf32>
    %298 = arith.addf %297, %296 : vector<8x32xf32>
    %299 = arith.divf %297, %298 : vector<8x32xf32>
    %300 = arith.mulf %291, %270 : vector<8x32xf32>
    %301 = arith.mulf %285, %293 : vector<8x32xf32>
    %302 = arith.addf %300, %301 : vector<8x32xf32>
    %303 = math.tanh %302 : vector<8x32xf32>
    %304 = arith.mulf %299, %303 : vector<8x32xf32>
    %c4 = arith.constant 4 : index
    %c0_161 = arith.constant 0 : index
    %c0_162 = arith.constant 0 : index
    %305 = vector.load %arg2[%c4, %c0_161, %c0_162] : memref<8x8x16xbf16, #tpu.memory_space<vmem>>, vector<1x8x16xbf16>
    %306 = vector.shape_cast %305 : vector<1x8x16xbf16> to vector<8x16xbf16>
    %c0_163 = arith.constant 0 : index
    %c0_164 = arith.constant 0 : index
    %307 = vector.load %arg21[%c0_163, %c0_164] : memref<8x32xf32, #tpu.memory_space<vmem>>, vector<8x32xf32>
    %c0_165 = arith.constant 0 : index
    %c0_166 = arith.constant 0 : index
    %308 = vector.load %arg22[%c0_165, %c0_166] : memref<8x32xf32, #tpu.memory_space<vmem>>, vector<8x32xf32>
    %c0_167 = arith.constant 0 : index
    %c0_168 = arith.constant 0 : index
    %309 = vector.load %arg6[%c0_167, %c0_168] : memref<16x128xbf16, #tpu.memory_space<vmem>>, vector<16x128xbf16>
    %cst_169 = arith.constant dense<0.000000e+00> : vector<8x128xf32>
    %310 = tpu.matmul %306, %309, %cst_169 {dimension_numbers = #tpu.dot_dimension_numbers<[1], [0], [0], [1], [0, 0, 1, 1], [], []>} : vector<8x16xbf16>, vector<16x128xbf16>, vector<8x128xf32> -> vector<8x128xf32>
    %311 = arith.truncf %307 : vector<8x32xf32> to vector<8x32xbf16>
    %c0_170 = arith.constant 0 : index
    %c0_171 = arith.constant 0 : index
    %312 = vector.load %arg7[%c0_170, %c0_171] : memref<32x128xbf16, #tpu.memory_space<vmem>>, vector<32x128xbf16>
    %cst_172 = arith.constant dense<0.000000e+00> : vector<8x128xf32>
    %313 = tpu.matmul %311, %312, %cst_172 {dimension_numbers = #tpu.dot_dimension_numbers<[1], [0], [0], [1], [0, 0, 1, 1], [], []>} : vector<8x32xbf16>, vector<32x128xbf16>, vector<8x128xf32> -> vector<8x128xf32>
    %314 = arith.addf %310, %313 : vector<8x128xf32>
    %c0_173 = arith.constant 0 : index
    %c0_174 = arith.constant 0 : index
    %315 = vector.load %arg8[%c0_173, %c0_174] : memref<1x128xf32, #tpu.memory_space<vmem>>, vector<1x128xf32>
    %316 = vector.broadcast %315 : vector<1x128xf32> to vector<8x128xf32>
    %317 = arith.addf %314, %316 : vector<8x128xf32>
    %318 = vector.extract_strided_slice %317 {offsets = [0, 0], sizes = [8, 32], strides = [1, 1]} : vector<8x128xf32> to vector<8x32xf32>
    %319 = arith.negf %318 : vector<8x32xf32>
    %320 = math.exp %319 : vector<8x32xf32>
    %cst_175 = arith.constant 1.000000e+00 : f32
    %321 = vector.broadcast %cst_175 : f32 to vector<8x32xf32>
    %322 = arith.addf %321, %320 : vector<8x32xf32>
    %323 = arith.divf %321, %322 : vector<8x32xf32>
    %324 = vector.extract_strided_slice %317 {offsets = [0, 32], sizes = [8, 32], strides = [1, 1]} : vector<8x128xf32> to vector<8x32xf32>
    %325 = arith.negf %324 : vector<8x32xf32>
    %326 = math.exp %325 : vector<8x32xf32>
    %cst_176 = arith.constant 1.000000e+00 : f32
    %327 = vector.broadcast %cst_176 : f32 to vector<8x32xf32>
    %328 = arith.addf %327, %326 : vector<8x32xf32>
    %329 = arith.divf %327, %328 : vector<8x32xf32>
    %330 = vector.extract_strided_slice %317 {offsets = [0, 64], sizes = [8, 32], strides = [1, 1]} : vector<8x128xf32> to vector<8x32xf32>
    %331 = math.tanh %330 : vector<8x32xf32>
    %332 = vector.extract_strided_slice %317 {offsets = [0, 96], sizes = [8, 32], strides = [1, 1]} : vector<8x128xf32> to vector<8x32xf32>
    %333 = arith.negf %332 : vector<8x32xf32>
    %334 = math.exp %333 : vector<8x32xf32>
    %cst_177 = arith.constant 1.000000e+00 : f32
    %335 = vector.broadcast %cst_177 : f32 to vector<8x32xf32>
    %336 = arith.addf %335, %334 : vector<8x32xf32>
    %337 = arith.divf %335, %336 : vector<8x32xf32>
    %338 = arith.mulf %329, %308 : vector<8x32xf32>
    %339 = arith.mulf %323, %331 : vector<8x32xf32>
    %340 = arith.addf %338, %339 : vector<8x32xf32>
    %341 = math.tanh %340 : vector<8x32xf32>
    %342 = arith.mulf %337, %341 : vector<8x32xf32>
    %c0_178 = arith.constant 0 : index
    %c0_179 = arith.constant 0 : index
    %343 = vector.load %arg19[%c0_178, %c0_179] : memref<8x32xf32, #tpu.memory_space<vmem>>, vector<8x32xf32>
    tpu.vector_store %arg19[%c0_178, %c0_179], %304 {strides = array<i32>} : memref<8x32xf32, #tpu.memory_space<vmem>>, vector<8x32xf32>,
    %c0_180 = arith.constant 0 : index
    %c0_181 = arith.constant 0 : index
    %344 = vector.load %arg20[%c0_180, %c0_181] : memref<8x32xf32, #tpu.memory_space<vmem>>, vector<8x32xf32>
    tpu.vector_store %arg20[%c0_180, %c0_181], %302 {strides = array<i32>} : memref<8x32xf32, #tpu.memory_space<vmem>>, vector<8x32xf32>,
    %c0_182 = arith.constant 0 : index
    %c0_183 = arith.constant 0 : index
    %345 = vector.load %arg21[%c0_182, %c0_183] : memref<8x32xf32, #tpu.memory_space<vmem>>, vector<8x32xf32>
    tpu.vector_store %arg21[%c0_182, %c0_183], %342 {strides = array<i32>} : memref<8x32xf32, #tpu.memory_space<vmem>>, vector<8x32xf32>,
    %c0_184 = arith.constant 0 : index
    %c0_185 = arith.constant 0 : index
    %346 = vector.load %arg22[%c0_184, %c0_185] : memref<8x32xf32, #tpu.memory_space<vmem>>, vector<8x32xf32>
    tpu.vector_store %arg22[%c0_184, %c0_185], %340 {strides = array<i32>} : memref<8x32xf32, #tpu.memory_space<vmem>>, vector<8x32xf32>,
    %347 = arith.truncf %304 : vector<8x32xf32> to vector<8x32xbf16>
    %c3_186 = arith.constant 3 : index
    %c0_187 = arith.constant 0 : index
    %c0_188 = arith.constant 0 : index
    %348 = vector.load %arg15[%c3_186, %c0_187, %c0_188] : memref<8x8x32xbf16, #tpu.memory_space<vmem>>, vector<1x8x32xbf16>
    %349 = vector.shape_cast %348 : vector<1x8x32xbf16> to vector<8x32xbf16>
    %350 = vector.shape_cast %347 : vector<8x32xbf16> to vector<1x8x32xbf16>
    tpu.vector_store %arg15[%c3_186, %c0_187, %c0_188], %350 {strides = array<i32>} : memref<8x8x32xbf16, #tpu.memory_space<vmem>>, vector<1x8x32xbf16>,
    %351 = arith.truncf %342 : vector<8x32xf32> to vector<8x32xbf16>
    %c4_189 = arith.constant 4 : index
    %c0_190 = arith.constant 0 : index
    %c0_191 = arith.constant 0 : index
    %352 = vector.load %arg16[%c4_189, %c0_190, %c0_191] : memref<8x8x32xbf16, #tpu.memory_space<vmem>>, vector<1x8x32xbf16>
    %353 = vector.shape_cast %352 : vector<1x8x32xbf16> to vector<8x32xbf16>
    %354 = vector.shape_cast %351 : vector<8x32xbf16> to vector<1x8x32xbf16>
    tpu.vector_store %arg16[%c4_189, %c0_190, %c0_191], %354 {strides = array<i32>} : memref<8x8x32xbf16, #tpu.memory_space<vmem>>, vector<1x8x32xbf16>,
    %c4_192 = arith.constant 4 : index
    %c0_193 = arith.constant 0 : index
    %c0_194 = arith.constant 0 : index
    %355 = vector.load %arg1[%c4_192, %c0_193, %c0_194] : memref<8x8x16xbf16, #tpu.memory_space<vmem>>, vector<1x8x16xbf16>
    %356 = vector.shape_cast %355 : vector<1x8x16xbf16> to vector<8x16xbf16>
    %c0_195 = arith.constant 0 : index
    %c0_196 = arith.constant 0 : index
    %357 = vector.load %arg19[%c0_195, %c0_196] : memref<8x32xf32, #tpu.memory_space<vmem>>, vector<8x32xf32>
    %c0_197 = arith.constant 0 : index
    %c0_198 = arith.constant 0 : index
    %358 = vector.load %arg20[%c0_197, %c0_198] : memref<8x32xf32, #tpu.memory_space<vmem>>, vector<8x32xf32>
    %c0_199 = arith.constant 0 : index
    %c0_200 = arith.constant 0 : index
    %359 = vector.load %arg3[%c0_199, %c0_200] : memref<16x128xbf16, #tpu.memory_space<vmem>>, vector<16x128xbf16>
    %cst_201 = arith.constant dense<0.000000e+00> : vector<8x128xf32>
    %360 = tpu.matmul %356, %359, %cst_201 {dimension_numbers = #tpu.dot_dimension_numbers<[1], [0], [0], [1], [0, 0, 1, 1], [], []>} : vector<8x16xbf16>, vector<16x128xbf16>, vector<8x128xf32> -> vector<8x128xf32>
    %361 = arith.truncf %357 : vector<8x32xf32> to vector<8x32xbf16>
    %c0_202 = arith.constant 0 : index
    %c0_203 = arith.constant 0 : index
    %362 = vector.load %arg4[%c0_202, %c0_203] : memref<32x128xbf16, #tpu.memory_space<vmem>>, vector<32x128xbf16>
    %cst_204 = arith.constant dense<0.000000e+00> : vector<8x128xf32>
    %363 = tpu.matmul %361, %362, %cst_204 {dimension_numbers = #tpu.dot_dimension_numbers<[1], [0], [0], [1], [0, 0, 1, 1], [], []>} : vector<8x32xbf16>, vector<32x128xbf16>, vector<8x128xf32> -> vector<8x128xf32>
    %364 = arith.addf %360, %363 : vector<8x128xf32>
    %c0_205 = arith.constant 0 : index
    %c0_206 = arith.constant 0 : index
    %365 = vector.load %arg5[%c0_205, %c0_206] : memref<1x128xf32, #tpu.memory_space<vmem>>, vector<1x128xf32>
    %366 = vector.broadcast %365 : vector<1x128xf32> to vector<8x128xf32>
    %367 = arith.addf %364, %366 : vector<8x128xf32>
    %368 = vector.extract_strided_slice %367 {offsets = [0, 0], sizes = [8, 32], strides = [1, 1]} : vector<8x128xf32> to vector<8x32xf32>
    %369 = arith.negf %368 : vector<8x32xf32>
    %370 = math.exp %369 : vector<8x32xf32>
    %cst_207 = arith.constant 1.000000e+00 : f32
    %371 = vector.broadcast %cst_207 : f32 to vector<8x32xf32>
    %372 = arith.addf %371, %370 : vector<8x32xf32>
    %373 = arith.divf %371, %372 : vector<8x32xf32>
    %374 = vector.extract_strided_slice %367 {offsets = [0, 32], sizes = [8, 32], strides = [1, 1]} : vector<8x128xf32> to vector<8x32xf32>
    %375 = arith.negf %374 : vector<8x32xf32>
    %376 = math.exp %375 : vector<8x32xf32>
    %cst_208 = arith.constant 1.000000e+00 : f32
    %377 = vector.broadcast %cst_208 : f32 to vector<8x32xf32>
    %378 = arith.addf %377, %376 : vector<8x32xf32>
    %379 = arith.divf %377, %378 : vector<8x32xf32>
    %380 = vector.extract_strided_slice %367 {offsets = [0, 64], sizes = [8, 32], strides = [1, 1]} : vector<8x128xf32> to vector<8x32xf32>
    %381 = math.tanh %380 : vector<8x32xf32>
    %382 = vector.extract_strided_slice %367 {offsets = [0, 96], sizes = [8, 32], strides = [1, 1]} : vector<8x128xf32> to vector<8x32xf32>
    %383 = arith.negf %382 : vector<8x32xf32>
    %384 = math.exp %383 : vector<8x32xf32>
    %cst_209 = arith.constant 1.000000e+00 : f32
    %385 = vector.broadcast %cst_209 : f32 to vector<8x32xf32>
    %386 = arith.addf %385, %384 : vector<8x32xf32>
    %387 = arith.divf %385, %386 : vector<8x32xf32>
    %388 = arith.mulf %379, %358 : vector<8x32xf32>
    %389 = arith.mulf %373, %381 : vector<8x32xf32>
    %390 = arith.addf %388, %389 : vector<8x32xf32>
    %391 = math.tanh %390 : vector<8x32xf32>
    %392 = arith.mulf %387, %391 : vector<8x32xf32>
    %c3_210 = arith.constant 3 : index
    %c0_211 = arith.constant 0 : index
    %c0_212 = arith.constant 0 : index
    %393 = vector.load %arg2[%c3_210, %c0_211, %c0_212] : memref<8x8x16xbf16, #tpu.memory_space<vmem>>, vector<1x8x16xbf16>
    %394 = vector.shape_cast %393 : vector<1x8x16xbf16> to vector<8x16xbf16>
    %c0_213 = arith.constant 0 : index
    %c0_214 = arith.constant 0 : index
    %395 = vector.load %arg21[%c0_213, %c0_214] : memref<8x32xf32, #tpu.memory_space<vmem>>, vector<8x32xf32>
    %c0_215 = arith.constant 0 : index
    %c0_216 = arith.constant 0 : index
    %396 = vector.load %arg22[%c0_215, %c0_216] : memref<8x32xf32, #tpu.memory_space<vmem>>, vector<8x32xf32>
    %c0_217 = arith.constant 0 : index
    %c0_218 = arith.constant 0 : index
    %397 = vector.load %arg6[%c0_217, %c0_218] : memref<16x128xbf16, #tpu.memory_space<vmem>>, vector<16x128xbf16>
    %cst_219 = arith.constant dense<0.000000e+00> : vector<8x128xf32>
    %398 = tpu.matmul %394, %397, %cst_219 {dimension_numbers = #tpu.dot_dimension_numbers<[1], [0], [0], [1], [0, 0, 1, 1], [], []>} : vector<8x16xbf16>, vector<16x128xbf16>, vector<8x128xf32> -> vector<8x128xf32>
    %399 = arith.truncf %395 : vector<8x32xf32> to vector<8x32xbf16>
    %c0_220 = arith.constant 0 : index
    %c0_221 = arith.constant 0 : index
    %400 = vector.load %arg7[%c0_220, %c0_221] : memref<32x128xbf16, #tpu.memory_space<vmem>>, vector<32x128xbf16>
    %cst_222 = arith.constant dense<0.000000e+00> : vector<8x128xf32>
    %401 = tpu.matmul %399, %400, %cst_222 {dimension_numbers = #tpu.dot_dimension_numbers<[1], [0], [0], [1], [0, 0, 1, 1], [], []>} : vector<8x32xbf16>, vector<32x128xbf16>, vector<8x128xf32> -> vector<8x128xf32>
    %402 = arith.addf %398, %401 : vector<8x128xf32>
    %c0_223 = arith.constant 0 : index
    %c0_224 = arith.constant 0 : index
    %403 = vector.load %arg8[%c0_223, %c0_224] : memref<1x128xf32, #tpu.memory_space<vmem>>, vector<1x128xf32>
    %404 = vector.broadcast %403 : vector<1x128xf32> to vector<8x128xf32>
    %405 = arith.addf %402, %404 : vector<8x128xf32>
    %406 = vector.extract_strided_slice %405 {offsets = [0, 0], sizes = [8, 32], strides = [1, 1]} : vector<8x128xf32> to vector<8x32xf32>
    %407 = arith.negf %406 : vector<8x32xf32>
    %408 = math.exp %407 : vector<8x32xf32>
    %cst_225 = arith.constant 1.000000e+00 : f32
    %409 = vector.broadcast %cst_225 : f32 to vector<8x32xf32>
    %410 = arith.addf %409, %408 : vector<8x32xf32>
    %411 = arith.divf %409, %410 : vector<8x32xf32>
    %412 = vector.extract_strided_slice %405 {offsets = [0, 32], sizes = [8, 32], strides = [1, 1]} : vector<8x128xf32> to vector<8x32xf32>
    %413 = arith.negf %412 : vector<8x32xf32>
    %414 = math.exp %413 : vector<8x32xf32>
    %cst_226 = arith.constant 1.000000e+00 : f32
    %415 = vector.broadcast %cst_226 : f32 to vector<8x32xf32>
    %416 = arith.addf %415, %414 : vector<8x32xf32>
    %417 = arith.divf %415, %416 : vector<8x32xf32>
    %418 = vector.extract_strided_slice %405 {offsets = [0, 64], sizes = [8, 32], strides = [1, 1]} : vector<8x128xf32> to vector<8x32xf32>
    %419 = math.tanh %418 : vector<8x32xf32>
    %420 = vector.extract_strided_slice %405 {offsets = [0, 96], sizes = [8, 32], strides = [1, 1]} : vector<8x128xf32> to vector<8x32xf32>
    %421 = arith.negf %420 : vector<8x32xf32>
    %422 = math.exp %421 : vector<8x32xf32>
    %cst_227 = arith.constant 1.000000e+00 : f32
    %423 = vector.broadcast %cst_227 : f32 to vector<8x32xf32>
    %424 = arith.addf %423, %422 : vector<8x32xf32>
    %425 = arith.divf %423, %424 : vector<8x32xf32>
    %426 = arith.mulf %417, %396 : vector<8x32xf32>
    %427 = arith.mulf %411, %419 : vector<8x32xf32>
    %428 = arith.addf %426, %427 : vector<8x32xf32>
    %429 = math.tanh %428 : vector<8x32xf32>
    %430 = arith.mulf %425, %429 : vector<8x32xf32>
    %c0_228 = arith.constant 0 : index
    %c0_229 = arith.constant 0 : index
    %431 = vector.load %arg19[%c0_228, %c0_229] : memref<8x32xf32, #tpu.memory_space<vmem>>, vector<8x32xf32>
    tpu.vector_store %arg19[%c0_228, %c0_229], %392 {strides = array<i32>} : memref<8x32xf32, #tpu.memory_space<vmem>>, vector<8x32xf32>,
    %c0_230 = arith.constant 0 : index
    %c0_231 = arith.constant 0 : index
    %432 = vector.load %arg20[%c0_230, %c0_231] : memref<8x32xf32, #tpu.memory_space<vmem>>, vector<8x32xf32>
    tpu.vector_store %arg20[%c0_230, %c0_231], %390 {strides = array<i32>} : memref<8x32xf32, #tpu.memory_space<vmem>>, vector<8x32xf32>,
    %c0_232 = arith.constant 0 : index
    %c0_233 = arith.constant 0 : index
    %433 = vector.load %arg21[%c0_232, %c0_233] : memref<8x32xf32, #tpu.memory_space<vmem>>, vector<8x32xf32>
    tpu.vector_store %arg21[%c0_232, %c0_233], %430 {strides = array<i32>} : memref<8x32xf32, #tpu.memory_space<vmem>>, vector<8x32xf32>,
    %c0_234 = arith.constant 0 : index
    %c0_235 = arith.constant 0 : index
    %434 = vector.load %arg22[%c0_234, %c0_235] : memref<8x32xf32, #tpu.memory_space<vmem>>, vector<8x32xf32>
    tpu.vector_store %arg22[%c0_234, %c0_235], %428 {strides = array<i32>} : memref<8x32xf32, #tpu.memory_space<vmem>>, vector<8x32xf32>,
    %435 = arith.truncf %392 : vector<8x32xf32> to vector<8x32xbf16>
    %c4_236 = arith.constant 4 : index
    %c0_237 = arith.constant 0 : index
    %c0_238 = arith.constant 0 : index
    %436 = vector.load %arg15[%c4_236, %c0_237, %c0_238] : memref<8x8x32xbf16, #tpu.memory_space<vmem>>, vector<1x8x32xbf16>
    %437 = vector.shape_cast %436 : vector<1x8x32xbf16> to vector<8x32xbf16>
    %438 = vector.shape_cast %435 : vector<8x32xbf16> to vector<1x8x32xbf16>
    tpu.vector_store %arg15[%c4_236, %c0_237, %c0_238], %438 {strides = array<i32>} : memref<8x8x32xbf16, #tpu.memory_space<vmem>>, vector<1x8x32xbf16>,
    %439 = arith.truncf %430 : vector<8x32xf32> to vector<8x32xbf16>
    %c3_239 = arith.constant 3 : index
    %c0_240 = arith.constant 0 : index
    %c0_241 = arith.constant 0 : index
    %440 = vector.load %arg16[%c3_239, %c0_240, %c0_241] : memref<8x8x32xbf16, #tpu.memory_space<vmem>>, vector<1x8x32xbf16>
    %441 = vector.shape_cast %440 : vector<1x8x32xbf16> to vector<8x32xbf16>
    %442 = vector.shape_cast %439 : vector<8x32xbf16> to vector<1x8x32xbf16>
    tpu.vector_store %arg16[%c3_239, %c0_240, %c0_241], %442 {strides = array<i32>} : memref<8x8x32xbf16, #tpu.memory_space<vmem>>, vector<1x8x32xbf16>,
    %c5_242 = arith.constant 5 : index
    %c0_243 = arith.constant 0 : index
    %c0_244 = arith.constant 0 : index
    %443 = vector.load %arg1[%c5_242, %c0_243, %c0_244] : memref<8x8x16xbf16, #tpu.memory_space<vmem>>, vector<1x8x16xbf16>
    %444 = vector.shape_cast %443 : vector<1x8x16xbf16> to vector<8x16xbf16>
    %c0_245 = arith.constant 0 : index
    %c0_246 = arith.constant 0 : index
    %445 = vector.load %arg19[%c0_245, %c0_246] : memref<8x32xf32, #tpu.memory_space<vmem>>, vector<8x32xf32>
    %c0_247 = arith.constant 0 : index
    %c0_248 = arith.constant 0 : index
    %446 = vector.load %arg20[%c0_247, %c0_248] : memref<8x32xf32, #tpu.memory_space<vmem>>, vector<8x32xf32>
    %c0_249 = arith.constant 0 : index
    %c0_250 = arith.constant 0 : index
    %447 = vector.load %arg3[%c0_249, %c0_250] : memref<16x128xbf16, #tpu.memory_space<vmem>>, vector<16x128xbf16>
    %cst_251 = arith.constant dense<0.000000e+00> : vector<8x128xf32>
    %448 = tpu.matmul %444, %447, %cst_251 {dimension_numbers = #tpu.dot_dimension_numbers<[1], [0], [0], [1], [0, 0, 1, 1], [], []>} : vector<8x16xbf16>, vector<16x128xbf16>, vector<8x128xf32> -> vector<8x128xf32>
    %449 = arith.truncf %445 : vector<8x32xf32> to vector<8x32xbf16>
    %c0_252 = arith.constant 0 : index
    %c0_253 = arith.constant 0 : index
    %450 = vector.load %arg4[%c0_252, %c0_253] : memref<32x128xbf16, #tpu.memory_space<vmem>>, vector<32x128xbf16>
    %cst_254 = arith.constant dense<0.000000e+00> : vector<8x128xf32>
    %451 = tpu.matmul %449, %450, %cst_254 {dimension_numbers = #tpu.dot_dimension_numbers<[1], [0], [0], [1], [0, 0, 1, 1], [], []>} : vector<8x32xbf16>, vector<32x128xbf16>, vector<8x128xf32> -> vector<8x128xf32>
    %452 = arith.addf %448, %451 : vector<8x128xf32>
    %c0_255 = arith.constant 0 : index
    %c0_256 = arith.constant 0 : index
    %453 = vector.load %arg5[%c0_255, %c0_256] : memref<1x128xf32, #tpu.memory_space<vmem>>, vector<1x128xf32>
    %454 = vector.broadcast %453 : vector<1x128xf32> to vector<8x128xf32>
    %455 = arith.addf %452, %454 : vector<8x128xf32>
    %456 = vector.extract_strided_slice %455 {offsets = [0, 0], sizes = [8, 32], strides = [1, 1]} : vector<8x128xf32> to vector<8x32xf32>
    %457 = arith.negf %456 : vector<8x32xf32>
    %458 = math.exp %457 : vector<8x32xf32>
    %cst_257 = arith.constant 1.000000e+00 : f32
    %459 = vector.broadcast %cst_257 : f32 to vector<8x32xf32>
    %460 = arith.addf %459, %458 : vector<8x32xf32>
    %461 = arith.divf %459, %460 : vector<8x32xf32>
    %462 = vector.extract_strided_slice %455 {offsets = [0, 32], sizes = [8, 32], strides = [1, 1]} : vector<8x128xf32> to vector<8x32xf32>
    %463 = arith.negf %462 : vector<8x32xf32>
    %464 = math.exp %463 : vector<8x32xf32>
    %cst_258 = arith.constant 1.000000e+00 : f32
    %465 = vector.broadcast %cst_258 : f32 to vector<8x32xf32>
    %466 = arith.addf %465, %464 : vector<8x32xf32>
    %467 = arith.divf %465, %466 : vector<8x32xf32>
    %468 = vector.extract_strided_slice %455 {offsets = [0, 64], sizes = [8, 32], strides = [1, 1]} : vector<8x128xf32> to vector<8x32xf32>
    %469 = math.tanh %468 : vector<8x32xf32>
    %470 = vector.extract_strided_slice %455 {offsets = [0, 96], sizes = [8, 32], strides = [1, 1]} : vector<8x128xf32> to vector<8x32xf32>
    %471 = arith.negf %470 : vector<8x32xf32>
    %472 = math.exp %471 : vector<8x32xf32>
    %cst_259 = arith.constant 1.000000e+00 : f32
    %473 = vector.broadcast %cst_259 : f32 to vector<8x32xf32>
    %474 = arith.addf %473, %472 : vector<8x32xf32>
    %475 = arith.divf %473, %474 : vector<8x32xf32>
    %476 = arith.mulf %467, %446 : vector<8x32xf32>
    %477 = arith.mulf %461, %469 : vector<8x32xf32>
    %478 = arith.addf %476, %477 : vector<8x32xf32>
    %479 = math.tanh %478 : vector<8x32xf32>
    %480 = arith.mulf %475, %479 : vector<8x32xf32>
    %c2_260 = arith.constant 2 : index
    %c0_261 = arith.constant 0 : index
    %c0_262 = arith.constant 0 : index
    %481 = vector.load %arg2[%c2_260, %c0_261, %c0_262] : memref<8x8x16xbf16, #tpu.memory_space<vmem>>, vector<1x8x16xbf16>
    %482 = vector.shape_cast %481 : vector<1x8x16xbf16> to vector<8x16xbf16>
    %c0_263 = arith.constant 0 : index
    %c0_264 = arith.constant 0 : index
    %483 = vector.load %arg21[%c0_263, %c0_264] : memref<8x32xf32, #tpu.memory_space<vmem>>, vector<8x32xf32>
    %c0_265 = arith.constant 0 : index
    %c0_266 = arith.constant 0 : index
    %484 = vector.load %arg22[%c0_265, %c0_266] : memref<8x32xf32, #tpu.memory_space<vmem>>, vector<8x32xf32>
    %c0_267 = arith.constant 0 : index
    %c0_268 = arith.constant 0 : index
    %485 = vector.load %arg6[%c0_267, %c0_268] : memref<16x128xbf16, #tpu.memory_space<vmem>>, vector<16x128xbf16>
    %cst_269 = arith.constant dense<0.000000e+00> : vector<8x128xf32>
    %486 = tpu.matmul %482, %485, %cst_269 {dimension_numbers = #tpu.dot_dimension_numbers<[1], [0], [0], [1], [0, 0, 1, 1], [], []>} : vector<8x16xbf16>, vector<16x128xbf16>, vector<8x128xf32> -> vector<8x128xf32>
    %487 = arith.truncf %483 : vector<8x32xf32> to vector<8x32xbf16>
    %c0_270 = arith.constant 0 : index
    %c0_271 = arith.constant 0 : index
    %488 = vector.load %arg7[%c0_270, %c0_271] : memref<32x128xbf16, #tpu.memory_space<vmem>>, vector<32x128xbf16>
    %cst_272 = arith.constant dense<0.000000e+00> : vector<8x128xf32>
    %489 = tpu.matmul %487, %488, %cst_272 {dimension_numbers = #tpu.dot_dimension_numbers<[1], [0], [0], [1], [0, 0, 1, 1], [], []>} : vector<8x32xbf16>, vector<32x128xbf16>, vector<8x128xf32> -> vector<8x128xf32>
    %490 = arith.addf %486, %489 : vector<8x128xf32>
    %c0_273 = arith.constant 0 : index
    %c0_274 = arith.constant 0 : index
    %491 = vector.load %arg8[%c0_273, %c0_274] : memref<1x128xf32, #tpu.memory_space<vmem>>, vector<1x128xf32>
    %492 = vector.broadcast %491 : vector<1x128xf32> to vector<8x128xf32>
    %493 = arith.addf %490, %492 : vector<8x128xf32>
    %494 = vector.extract_strided_slice %493 {offsets = [0, 0], sizes = [8, 32], strides = [1, 1]} : vector<8x128xf32> to vector<8x32xf32>
    %495 = arith.negf %494 : vector<8x32xf32>
    %496 = math.exp %495 : vector<8x32xf32>
    %cst_275 = arith.constant 1.000000e+00 : f32
    %497 = vector.broadcast %cst_275 : f32 to vector<8x32xf32>
    %498 = arith.addf %497, %496 : vector<8x32xf32>
    %499 = arith.divf %497, %498 : vector<8x32xf32>
    %500 = vector.extract_strided_slice %493 {offsets = [0, 32], sizes = [8, 32], strides = [1, 1]} : vector<8x128xf32> to vector<8x32xf32>
    %501 = arith.negf %500 : vector<8x32xf32>
    %502 = math.exp %501 : vector<8x32xf32>
    %cst_276 = arith.constant 1.000000e+00 : f32
    %503 = vector.broadcast %cst_276 : f32 to vector<8x32xf32>
    %504 = arith.addf %503, %502 : vector<8x32xf32>
    %505 = arith.divf %503, %504 : vector<8x32xf32>
    %506 = vector.extract_strided_slice %493 {offsets = [0, 64], sizes = [8, 32], strides = [1, 1]} : vector<8x128xf32> to vector<8x32xf32>
    %507 = math.tanh %506 : vector<8x32xf32>
    %508 = vector.extract_strided_slice %493 {offsets = [0, 96], sizes = [8, 32], strides = [1, 1]} : vector<8x128xf32> to vector<8x32xf32>
    %509 = arith.negf %508 : vector<8x32xf32>
    %510 = math.exp %509 : vector<8x32xf32>
    %cst_277 = arith.constant 1.000000e+00 : f32
    %511 = vector.broadcast %cst_277 : f32 to vector<8x32xf32>
    %512 = arith.addf %511, %510 : vector<8x32xf32>
    %513 = arith.divf %511, %512 : vector<8x32xf32>
    %514 = arith.mulf %505, %484 : vector<8x32xf32>
    %515 = arith.mulf %499, %507 : vector<8x32xf32>
    %516 = arith.addf %514, %515 : vector<8x32xf32>
    %517 = math.tanh %516 : vector<8x32xf32>
    %518 = arith.mulf %513, %517 : vector<8x32xf32>
    %c0_278 = arith.constant 0 : index
    %c0_279 = arith.constant 0 : index
    %519 = vector.load %arg19[%c0_278, %c0_279] : memref<8x32xf32, #tpu.memory_space<vmem>>, vector<8x32xf32>
    tpu.vector_store %arg19[%c0_278, %c0_279], %480 {strides = array<i32>} : memref<8x32xf32, #tpu.memory_space<vmem>>, vector<8x32xf32>,
    %c0_280 = arith.constant 0 : index
    %c0_281 = arith.constant 0 : index
    %520 = vector.load %arg20[%c0_280, %c0_281] : memref<8x32xf32, #tpu.memory_space<vmem>>, vector<8x32xf32>
    tpu.vector_store %arg20[%c0_280, %c0_281], %478 {strides = array<i32>} : memref<8x32xf32, #tpu.memory_space<vmem>>, vector<8x32xf32>,
    %c0_282 = arith.constant 0 : index
    %c0_283 = arith.constant 0 : index
    %521 = vector.load %arg21[%c0_282, %c0_283] : memref<8x32xf32, #tpu.memory_space<vmem>>, vector<8x32xf32>
    tpu.vector_store %arg21[%c0_282, %c0_283], %518 {strides = array<i32>} : memref<8x32xf32, #tpu.memory_space<vmem>>, vector<8x32xf32>,
    %c0_284 = arith.constant 0 : index
    %c0_285 = arith.constant 0 : index
    %522 = vector.load %arg22[%c0_284, %c0_285] : memref<8x32xf32, #tpu.memory_space<vmem>>, vector<8x32xf32>
    tpu.vector_store %arg22[%c0_284, %c0_285], %516 {strides = array<i32>} : memref<8x32xf32, #tpu.memory_space<vmem>>, vector<8x32xf32>,
    %523 = arith.truncf %480 : vector<8x32xf32> to vector<8x32xbf16>
    %c5_286 = arith.constant 5 : index
    %c0_287 = arith.constant 0 : index
    %c0_288 = arith.constant 0 : index
    %524 = vector.load %arg15[%c5_286, %c0_287, %c0_288] : memref<8x8x32xbf16, #tpu.memory_space<vmem>>, vector<1x8x32xbf16>
    %525 = vector.shape_cast %524 : vector<1x8x32xbf16> to vector<8x32xbf16>
    %526 = vector.shape_cast %523 : vector<8x32xbf16> to vector<1x8x32xbf16>
    tpu.vector_store %arg15[%c5_286, %c0_287, %c0_288], %526 {strides = array<i32>} : memref<8x8x32xbf16, #tpu.memory_space<vmem>>, vector<1x8x32xbf16>,
    %527 = arith.truncf %518 : vector<8x32xf32> to vector<8x32xbf16>
    %c2_289 = arith.constant 2 : index
    %c0_290 = arith.constant 0 : index
    %c0_291 = arith.constant 0 : index
    %528 = vector.load %arg16[%c2_289, %c0_290, %c0_291] : memref<8x8x32xbf16, #tpu.memory_space<vmem>>, vector<1x8x32xbf16>
    %529 = vector.shape_cast %528 : vector<1x8x32xbf16> to vector<8x32xbf16>
    %530 = vector.shape_cast %527 : vector<8x32xbf16> to vector<1x8x32xbf16>
    tpu.vector_store %arg16[%c2_289, %c0_290, %c0_291], %530 {strides = array<i32>} : memref<8x8x32xbf16, #tpu.memory_space<vmem>>, vector<1x8x32xbf16>,
    %c6_292 = arith.constant 6 : index
    %c0_293 = arith.constant 0 : index
    %c0_294 = arith.constant 0 : index
    %531 = vector.load %arg1[%c6_292, %c0_293, %c0_294] : memref<8x8x16xbf16, #tpu.memory_space<vmem>>, vector<1x8x16xbf16>
    %532 = vector.shape_cast %531 : vector<1x8x16xbf16> to vector<8x16xbf16>
    %c0_295 = arith.constant 0 : index
    %c0_296 = arith.constant 0 : index
    %533 = vector.load %arg19[%c0_295, %c0_296] : memref<8x32xf32, #tpu.memory_space<vmem>>, vector<8x32xf32>
    %c0_297 = arith.constant 0 : index
    %c0_298 = arith.constant 0 : index
    %534 = vector.load %arg20[%c0_297, %c0_298] : memref<8x32xf32, #tpu.memory_space<vmem>>, vector<8x32xf32>
    %c0_299 = arith.constant 0 : index
    %c0_300 = arith.constant 0 : index
    %535 = vector.load %arg3[%c0_299, %c0_300] : memref<16x128xbf16, #tpu.memory_space<vmem>>, vector<16x128xbf16>
    %cst_301 = arith.constant dense<0.000000e+00> : vector<8x128xf32>
    %536 = tpu.matmul %532, %535, %cst_301 {dimension_numbers = #tpu.dot_dimension_numbers<[1], [0], [0], [1], [0, 0, 1, 1], [], []>} : vector<8x16xbf16>, vector<16x128xbf16>, vector<8x128xf32> -> vector<8x128xf32>
    %537 = arith.truncf %533 : vector<8x32xf32> to vector<8x32xbf16>
    %c0_302 = arith.constant 0 : index
    %c0_303 = arith.constant 0 : index
    %538 = vector.load %arg4[%c0_302, %c0_303] : memref<32x128xbf16, #tpu.memory_space<vmem>>, vector<32x128xbf16>
    %cst_304 = arith.constant dense<0.000000e+00> : vector<8x128xf32>
    %539 = tpu.matmul %537, %538, %cst_304 {dimension_numbers = #tpu.dot_dimension_numbers<[1], [0], [0], [1], [0, 0, 1, 1], [], []>} : vector<8x32xbf16>, vector<32x128xbf16>, vector<8x128xf32> -> vector<8x128xf32>
    %540 = arith.addf %536, %539 : vector<8x128xf32>
    %c0_305 = arith.constant 0 : index
    %c0_306 = arith.constant 0 : index
    %541 = vector.load %arg5[%c0_305, %c0_306] : memref<1x128xf32, #tpu.memory_space<vmem>>, vector<1x128xf32>
    %542 = vector.broadcast %541 : vector<1x128xf32> to vector<8x128xf32>
    %543 = arith.addf %540, %542 : vector<8x128xf32>
    %544 = vector.extract_strided_slice %543 {offsets = [0, 0], sizes = [8, 32], strides = [1, 1]} : vector<8x128xf32> to vector<8x32xf32>
    %545 = arith.negf %544 : vector<8x32xf32>
    %546 = math.exp %545 : vector<8x32xf32>
    %cst_307 = arith.constant 1.000000e+00 : f32
    %547 = vector.broadcast %cst_307 : f32 to vector<8x32xf32>
    %548 = arith.addf %547, %546 : vector<8x32xf32>
    %549 = arith.divf %547, %548 : vector<8x32xf32>
    %550 = vector.extract_strided_slice %543 {offsets = [0, 32], sizes = [8, 32], strides = [1, 1]} : vector<8x128xf32> to vector<8x32xf32>
    %551 = arith.negf %550 : vector<8x32xf32>
    %552 = math.exp %551 : vector<8x32xf32>
    %cst_308 = arith.constant 1.000000e+00 : f32
    %553 = vector.broadcast %cst_308 : f32 to vector<8x32xf32>
    %554 = arith.addf %553, %552 : vector<8x32xf32>
    %555 = arith.divf %553, %554 : vector<8x32xf32>
    %556 = vector.extract_strided_slice %543 {offsets = [0, 64], sizes = [8, 32], strides = [1, 1]} : vector<8x128xf32> to vector<8x32xf32>
    %557 = math.tanh %556 : vector<8x32xf32>
    %558 = vector.extract_strided_slice %543 {offsets = [0, 96], sizes = [8, 32], strides = [1, 1]} : vector<8x128xf32> to vector<8x32xf32>
    %559 = arith.negf %558 : vector<8x32xf32>
    %560 = math.exp %559 : vector<8x32xf32>
    %cst_309 = arith.constant 1.000000e+00 : f32
    %561 = vector.broadcast %cst_309 : f32 to vector<8x32xf32>
    %562 = arith.addf %561, %560 : vector<8x32xf32>
    %563 = arith.divf %561, %562 : vector<8x32xf32>
    %564 = arith.mulf %555, %534 : vector<8x32xf32>
    %565 = arith.mulf %549, %557 : vector<8x32xf32>
    %566 = arith.addf %564, %565 : vector<8x32xf32>
    %567 = math.tanh %566 : vector<8x32xf32>
    %568 = arith.mulf %563, %567 : vector<8x32xf32>
    %c1_310 = arith.constant 1 : index
    %c0_311 = arith.constant 0 : index
    %c0_312 = arith.constant 0 : index
    %569 = vector.load %arg2[%c1_310, %c0_311, %c0_312] : memref<8x8x16xbf16, #tpu.memory_space<vmem>>, vector<1x8x16xbf16>
    %570 = vector.shape_cast %569 : vector<1x8x16xbf16> to vector<8x16xbf16>
    %c0_313 = arith.constant 0 : index
    %c0_314 = arith.constant 0 : index
    %571 = vector.load %arg21[%c0_313, %c0_314] : memref<8x32xf32, #tpu.memory_space<vmem>>, vector<8x32xf32>
    %c0_315 = arith.constant 0 : index
    %c0_316 = arith.constant 0 : index
    %572 = vector.load %arg22[%c0_315, %c0_316] : memref<8x32xf32, #tpu.memory_space<vmem>>, vector<8x32xf32>
    %c0_317 = arith.constant 0 : index
    %c0_318 = arith.constant 0 : index
    %573 = vector.load %arg6[%c0_317, %c0_318] : memref<16x128xbf16, #tpu.memory_space<vmem>>, vector<16x128xbf16>
    %cst_319 = arith.constant dense<0.000000e+00> : vector<8x128xf32>
    %574 = tpu.matmul %570, %573, %cst_319 {dimension_numbers = #tpu.dot_dimension_numbers<[1], [0], [0], [1], [0, 0, 1, 1], [], []>} : vector<8x16xbf16>, vector<16x128xbf16>, vector<8x128xf32> -> vector<8x128xf32>
    %575 = arith.truncf %571 : vector<8x32xf32> to vector<8x32xbf16>
    %c0_320 = arith.constant 0 : index
    %c0_321 = arith.constant 0 : index
    %576 = vector.load %arg7[%c0_320, %c0_321] : memref<32x128xbf16, #tpu.memory_space<vmem>>, vector<32x128xbf16>
    %cst_322 = arith.constant dense<0.000000e+00> : vector<8x128xf32>
    %577 = tpu.matmul %575, %576, %cst_322 {dimension_numbers = #tpu.dot_dimension_numbers<[1], [0], [0], [1], [0, 0, 1, 1], [], []>} : vector<8x32xbf16>, vector<32x128xbf16>, vector<8x128xf32> -> vector<8x128xf32>
    %578 = arith.addf %574, %577 : vector<8x128xf32>
    %c0_323 = arith.constant 0 : index
    %c0_324 = arith.constant 0 : index
    %579 = vector.load %arg8[%c0_323, %c0_324] : memref<1x128xf32, #tpu.memory_space<vmem>>, vector<1x128xf32>
    %580 = vector.broadcast %579 : vector<1x128xf32> to vector<8x128xf32>
    %581 = arith.addf %578, %580 : vector<8x128xf32>
    %582 = vector.extract_strided_slice %581 {offsets = [0, 0], sizes = [8, 32], strides = [1, 1]} : vector<8x128xf32> to vector<8x32xf32>
    %583 = arith.negf %582 : vector<8x32xf32>
    %584 = math.exp %583 : vector<8x32xf32>
    %cst_325 = arith.constant 1.000000e+00 : f32
    %585 = vector.broadcast %cst_325 : f32 to vector<8x32xf32>
    %586 = arith.addf %585, %584 : vector<8x32xf32>
    %587 = arith.divf %585, %586 : vector<8x32xf32>
    %588 = vector.extract_strided_slice %581 {offsets = [0, 32], sizes = [8, 32], strides = [1, 1]} : vector<8x128xf32> to vector<8x32xf32>
    %589 = arith.negf %588 : vector<8x32xf32>
    %590 = math.exp %589 : vector<8x32xf32>
    %cst_326 = arith.constant 1.000000e+00 : f32
    %591 = vector.broadcast %cst_326 : f32 to vector<8x32xf32>
    %592 = arith.addf %591, %590 : vector<8x32xf32>
    %593 = arith.divf %591, %592 : vector<8x32xf32>
    %594 = vector.extract_strided_slice %581 {offsets = [0, 64], sizes = [8, 32], strides = [1, 1]} : vector<8x128xf32> to vector<8x32xf32>
    %595 = math.tanh %594 : vector<8x32xf32>
    %596 = vector.extract_strided_slice %581 {offsets = [0, 96], sizes = [8, 32], strides = [1, 1]} : vector<8x128xf32> to vector<8x32xf32>
    %597 = arith.negf %596 : vector<8x32xf32>
    %598 = math.exp %597 : vector<8x32xf32>
    %cst_327 = arith.constant 1.000000e+00 : f32
    %599 = vector.broadcast %cst_327 : f32 to vector<8x32xf32>
    %600 = arith.addf %599, %598 : vector<8x32xf32>
    %601 = arith.divf %599, %600 : vector<8x32xf32>
    %602 = arith.mulf %593, %572 : vector<8x32xf32>
    %603 = arith.mulf %587, %595 : vector<8x32xf32>
    %604 = arith.addf %602, %603 : vector<8x32xf32>
    %605 = math.tanh %604 : vector<8x32xf32>
    %606 = arith.mulf %601, %605 : vector<8x32xf32>
    %c0_328 = arith.constant 0 : index
    %c0_329 = arith.constant 0 : index
    %607 = vector.load %arg19[%c0_328, %c0_329] : memref<8x32xf32, #tpu.memory_space<vmem>>, vector<8x32xf32>
    tpu.vector_store %arg19[%c0_328, %c0_329], %568 {strides = array<i32>} : memref<8x32xf32, #tpu.memory_space<vmem>>, vector<8x32xf32>,
    %c0_330 = arith.constant 0 : index
    %c0_331 = arith.constant 0 : index
    %608 = vector.load %arg20[%c0_330, %c0_331] : memref<8x32xf32, #tpu.memory_space<vmem>>, vector<8x32xf32>
    tpu.vector_store %arg20[%c0_330, %c0_331], %566 {strides = array<i32>} : memref<8x32xf32, #tpu.memory_space<vmem>>, vector<8x32xf32>,
    %c0_332 = arith.constant 0 : index
    %c0_333 = arith.constant 0 : index
    %609 = vector.load %arg21[%c0_332, %c0_333] : memref<8x32xf32, #tpu.memory_space<vmem>>, vector<8x32xf32>
    tpu.vector_store %arg21[%c0_332, %c0_333], %606 {strides = array<i32>} : memref<8x32xf32, #tpu.memory_space<vmem>>, vector<8x32xf32>,
    %c0_334 = arith.constant 0 : index
    %c0_335 = arith.constant 0 : index
    %610 = vector.load %arg22[%c0_334, %c0_335] : memref<8x32xf32, #tpu.memory_space<vmem>>, vector<8x32xf32>
    tpu.vector_store %arg22[%c0_334, %c0_335], %604 {strides = array<i32>} : memref<8x32xf32, #tpu.memory_space<vmem>>, vector<8x32xf32>,
    %611 = arith.truncf %568 : vector<8x32xf32> to vector<8x32xbf16>
    %c6_336 = arith.constant 6 : index
    %c0_337 = arith.constant 0 : index
    %c0_338 = arith.constant 0 : index
    %612 = vector.load %arg15[%c6_336, %c0_337, %c0_338] : memref<8x8x32xbf16, #tpu.memory_space<vmem>>, vector<1x8x32xbf16>
    %613 = vector.shape_cast %612 : vector<1x8x32xbf16> to vector<8x32xbf16>
    %614 = vector.shape_cast %611 : vector<8x32xbf16> to vector<1x8x32xbf16>
    tpu.vector_store %arg15[%c6_336, %c0_337, %c0_338], %614 {strides = array<i32>} : memref<8x8x32xbf16, #tpu.memory_space<vmem>>, vector<1x8x32xbf16>,
    %615 = arith.truncf %606 : vector<8x32xf32> to vector<8x32xbf16>
    %c1_339 = arith.constant 1 : index
    %c0_340 = arith.constant 0 : index
    %c0_341 = arith.constant 0 : index
    %616 = vector.load %arg16[%c1_339, %c0_340, %c0_341] : memref<8x8x32xbf16, #tpu.memory_space<vmem>>, vector<1x8x32xbf16>
    %617 = vector.shape_cast %616 : vector<1x8x32xbf16> to vector<8x32xbf16>
    %618 = vector.shape_cast %615 : vector<8x32xbf16> to vector<1x8x32xbf16>
    tpu.vector_store %arg16[%c1_339, %c0_340, %c0_341], %618 {strides = array<i32>} : memref<8x8x32xbf16, #tpu.memory_space<vmem>>, vector<1x8x32xbf16>,
    %c7_342 = arith.constant 7 : index
    %c0_343 = arith.constant 0 : index
    %c0_344 = arith.constant 0 : index
    %619 = vector.load %arg1[%c7_342, %c0_343, %c0_344] : memref<8x8x16xbf16, #tpu.memory_space<vmem>>, vector<1x8x16xbf16>
    %620 = vector.shape_cast %619 : vector<1x8x16xbf16> to vector<8x16xbf16>
    %c0_345 = arith.constant 0 : index
    %c0_346 = arith.constant 0 : index
    %621 = vector.load %arg19[%c0_345, %c0_346] : memref<8x32xf32, #tpu.memory_space<vmem>>, vector<8x32xf32>
    %c0_347 = arith.constant 0 : index
    %c0_348 = arith.constant 0 : index
    %622 = vector.load %arg20[%c0_347, %c0_348] : memref<8x32xf32, #tpu.memory_space<vmem>>, vector<8x32xf32>
    %c0_349 = arith.constant 0 : index
    %c0_350 = arith.constant 0 : index
    %623 = vector.load %arg3[%c0_349, %c0_350] : memref<16x128xbf16, #tpu.memory_space<vmem>>, vector<16x128xbf16>
    %cst_351 = arith.constant dense<0.000000e+00> : vector<8x128xf32>
    %624 = tpu.matmul %620, %623, %cst_351 {dimension_numbers = #tpu.dot_dimension_numbers<[1], [0], [0], [1], [0, 0, 1, 1], [], []>} : vector<8x16xbf16>, vector<16x128xbf16>, vector<8x128xf32> -> vector<8x128xf32>
    %625 = arith.truncf %621 : vector<8x32xf32> to vector<8x32xbf16>
    %c0_352 = arith.constant 0 : index
    %c0_353 = arith.constant 0 : index
    %626 = vector.load %arg4[%c0_352, %c0_353] : memref<32x128xbf16, #tpu.memory_space<vmem>>, vector<32x128xbf16>
    %cst_354 = arith.constant dense<0.000000e+00> : vector<8x128xf32>
    %627 = tpu.matmul %625, %626, %cst_354 {dimension_numbers = #tpu.dot_dimension_numbers<[1], [0], [0], [1], [0, 0, 1, 1], [], []>} : vector<8x32xbf16>, vector<32x128xbf16>, vector<8x128xf32> -> vector<8x128xf32>
    %628 = arith.addf %624, %627 : vector<8x128xf32>
    %c0_355 = arith.constant 0 : index
    %c0_356 = arith.constant 0 : index
    %629 = vector.load %arg5[%c0_355, %c0_356] : memref<1x128xf32, #tpu.memory_space<vmem>>, vector<1x128xf32>
    %630 = vector.broadcast %629 : vector<1x128xf32> to vector<8x128xf32>
    %631 = arith.addf %628, %630 : vector<8x128xf32>
    %632 = vector.extract_strided_slice %631 {offsets = [0, 0], sizes = [8, 32], strides = [1, 1]} : vector<8x128xf32> to vector<8x32xf32>
    %633 = arith.negf %632 : vector<8x32xf32>
    %634 = math.exp %633 : vector<8x32xf32>
    %cst_357 = arith.constant 1.000000e+00 : f32
    %635 = vector.broadcast %cst_357 : f32 to vector<8x32xf32>
    %636 = arith.addf %635, %634 : vector<8x32xf32>
    %637 = arith.divf %635, %636 : vector<8x32xf32>
    %638 = vector.extract_strided_slice %631 {offsets = [0, 32], sizes = [8, 32], strides = [1, 1]} : vector<8x128xf32> to vector<8x32xf32>
    %639 = arith.negf %638 : vector<8x32xf32>
    %640 = math.exp %639 : vector<8x32xf32>
    %cst_358 = arith.constant 1.000000e+00 : f32
    %641 = vector.broadcast %cst_358 : f32 to vector<8x32xf32>
    %642 = arith.addf %641, %640 : vector<8x32xf32>
    %643 = arith.divf %641, %642 : vector<8x32xf32>
    %644 = vector.extract_strided_slice %631 {offsets = [0, 64], sizes = [8, 32], strides = [1, 1]} : vector<8x128xf32> to vector<8x32xf32>
    %645 = math.tanh %644 : vector<8x32xf32>
    %646 = vector.extract_strided_slice %631 {offsets = [0, 96], sizes = [8, 32], strides = [1, 1]} : vector<8x128xf32> to vector<8x32xf32>
    %647 = arith.negf %646 : vector<8x32xf32>
    %648 = math.exp %647 : vector<8x32xf32>
    %cst_359 = arith.constant 1.000000e+00 : f32
    %649 = vector.broadcast %cst_359 : f32 to vector<8x32xf32>
    %650 = arith.addf %649, %648 : vector<8x32xf32>
    %651 = arith.divf %649, %650 : vector<8x32xf32>
    %652 = arith.mulf %643, %622 : vector<8x32xf32>
    %653 = arith.mulf %637, %645 : vector<8x32xf32>
    %654 = arith.addf %652, %653 : vector<8x32xf32>
    %655 = math.tanh %654 : vector<8x32xf32>
    %656 = arith.mulf %651, %655 : vector<8x32xf32>
    %c0_360 = arith.constant 0 : index
    %c0_361 = arith.constant 0 : index
    %c0_362 = arith.constant 0 : index
    %657 = vector.load %arg2[%c0_360, %c0_361, %c0_362] : memref<8x8x16xbf16, #tpu.memory_space<vmem>>, vector<1x8x16xbf16>
    %658 = vector.shape_cast %657 : vector<1x8x16xbf16> to vector<8x16xbf16>
    %c0_363 = arith.constant 0 : index
    %c0_364 = arith.constant 0 : index
    %659 = vector.load %arg21[%c0_363, %c0_364] : memref<8x32xf32, #tpu.memory_space<vmem>>, vector<8x32xf32>
    %c0_365 = arith.constant 0 : index
    %c0_366 = arith.constant 0 : index
    %660 = vector.load %arg22[%c0_365, %c0_366] : memref<8x32xf32, #tpu.memory_space<vmem>>, vector<8x32xf32>
    %c0_367 = arith.constant 0 : index
    %c0_368 = arith.constant 0 : index
    %661 = vector.load %arg6[%c0_367, %c0_368] : memref<16x128xbf16, #tpu.memory_space<vmem>>, vector<16x128xbf16>
    %cst_369 = arith.constant dense<0.000000e+00> : vector<8x128xf32>
    %662 = tpu.matmul %658, %661, %cst_369 {dimension_numbers = #tpu.dot_dimension_numbers<[1], [0], [0], [1], [0, 0, 1, 1], [], []>} : vector<8x16xbf16>, vector<16x128xbf16>, vector<8x128xf32> -> vector<8x128xf32>
    %663 = arith.truncf %659 : vector<8x32xf32> to vector<8x32xbf16>
    %c0_370 = arith.constant 0 : index
    %c0_371 = arith.constant 0 : index
    %664 = vector.load %arg7[%c0_370, %c0_371] : memref<32x128xbf16, #tpu.memory_space<vmem>>, vector<32x128xbf16>
    %cst_372 = arith.constant dense<0.000000e+00> : vector<8x128xf32>
    %665 = tpu.matmul %663, %664, %cst_372 {dimension_numbers = #tpu.dot_dimension_numbers<[1], [0], [0], [1], [0, 0, 1, 1], [], []>} : vector<8x32xbf16>, vector<32x128xbf16>, vector<8x128xf32> -> vector<8x128xf32>
    %666 = arith.addf %662, %665 : vector<8x128xf32>
    %c0_373 = arith.constant 0 : index
    %c0_374 = arith.constant 0 : index
    %667 = vector.load %arg8[%c0_373, %c0_374] : memref<1x128xf32, #tpu.memory_space<vmem>>, vector<1x128xf32>
    %668 = vector.broadcast %667 : vector<1x128xf32> to vector<8x128xf32>
    %669 = arith.addf %666, %668 : vector<8x128xf32>
    %670 = vector.extract_strided_slice %669 {offsets = [0, 0], sizes = [8, 32], strides = [1, 1]} : vector<8x128xf32> to vector<8x32xf32>
    %671 = arith.negf %670 : vector<8x32xf32>
    %672 = math.exp %671 : vector<8x32xf32>
    %cst_375 = arith.constant 1.000000e+00 : f32
    %673 = vector.broadcast %cst_375 : f32 to vector<8x32xf32>
    %674 = arith.addf %673, %672 : vector<8x32xf32>
    %675 = arith.divf %673, %674 : vector<8x32xf32>
    %676 = vector.extract_strided_slice %669 {offsets = [0, 32], sizes = [8, 32], strides = [1, 1]} : vector<8x128xf32> to vector<8x32xf32>
    %677 = arith.negf %676 : vector<8x32xf32>
    %678 = math.exp %677 : vector<8x32xf32>
    %cst_376 = arith.constant 1.000000e+00 : f32
    %679 = vector.broadcast %cst_376 : f32 to vector<8x32xf32>
    %680 = arith.addf %679, %678 : vector<8x32xf32>
    %681 = arith.divf %679, %680 : vector<8x32xf32>
    %682 = vector.extract_strided_slice %669 {offsets = [0, 64], sizes = [8, 32], strides = [1, 1]} : vector<8x128xf32> to vector<8x32xf32>
    %683 = math.tanh %682 : vector<8x32xf32>
    %684 = vector.extract_strided_slice %669 {offsets = [0, 96], sizes = [8, 32], strides = [1, 1]} : vector<8x128xf32> to vector<8x32xf32>
    %685 = arith.negf %684 : vector<8x32xf32>
    %686 = math.exp %685 : vector<8x32xf32>
    %cst_377 = arith.constant 1.000000e+00 : f32
    %687 = vector.broadcast %cst_377 : f32 to vector<8x32xf32>
    %688 = arith.addf %687, %686 : vector<8x32xf32>
    %689 = arith.divf %687, %688 : vector<8x32xf32>
    %690 = arith.mulf %681, %660 : vector<8x32xf32>
    %691 = arith.mulf %675, %683 : vector<8x32xf32>
    %692 = arith.addf %690, %691 : vector<8x32xf32>
    %693 = math.tanh %692 : vector<8x32xf32>
    %694 = arith.mulf %689, %693 : vector<8x32xf32>
    %c0_378 = arith.constant 0 : index
    %c0_379 = arith.constant 0 : index
    %695 = vector.load %arg19[%c0_378, %c0_379] : memref<8x32xf32, #tpu.memory_space<vmem>>, vector<8x32xf32>
    tpu.vector_store %arg19[%c0_378, %c0_379], %656 {strides = array<i32>} : memref<8x32xf32, #tpu.memory_space<vmem>>, vector<8x32xf32>,
    %c0_380 = arith.constant 0 : index
    %c0_381 = arith.constant 0 : index
    %696 = vector.load %arg20[%c0_380, %c0_381] : memref<8x32xf32, #tpu.memory_space<vmem>>, vector<8x32xf32>
    tpu.vector_store %arg20[%c0_380, %c0_381], %654 {strides = array<i32>} : memref<8x32xf32, #tpu.memory_space<vmem>>, vector<8x32xf32>,
    %c0_382 = arith.constant 0 : index
    %c0_383 = arith.constant 0 : index
    %697 = vector.load %arg21[%c0_382, %c0_383] : memref<8x32xf32, #tpu.memory_space<vmem>>, vector<8x32xf32>
    tpu.vector_store %arg21[%c0_382, %c0_383], %694 {strides = array<i32>} : memref<8x32xf32, #tpu.memory_space<vmem>>, vector<8x32xf32>,
    %c0_384 = arith.constant 0 : index
    %c0_385 = arith.constant 0 : index
    %698 = vector.load %arg22[%c0_384, %c0_385] : memref<8x32xf32, #tpu.memory_space<vmem>>, vector<8x32xf32>
    tpu.vector_store %arg22[%c0_384, %c0_385], %692 {strides = array<i32>} : memref<8x32xf32, #tpu.memory_space<vmem>>, vector<8x32xf32>,
    %699 = arith.truncf %656 : vector<8x32xf32> to vector<8x32xbf16>
    %c7_386 = arith.constant 7 : index
    %c0_387 = arith.constant 0 : index
    %c0_388 = arith.constant 0 : index
    %700 = vector.load %arg15[%c7_386, %c0_387, %c0_388] : memref<8x8x32xbf16, #tpu.memory_space<vmem>>, vector<1x8x32xbf16>
    %701 = vector.shape_cast %700 : vector<1x8x32xbf16> to vector<8x32xbf16>
    %702 = vector.shape_cast %699 : vector<8x32xbf16> to vector<1x8x32xbf16>
    tpu.vector_store %arg15[%c7_386, %c0_387, %c0_388], %702 {strides = array<i32>} : memref<8x8x32xbf16, #tpu.memory_space<vmem>>, vector<1x8x32xbf16>,
    %703 = arith.truncf %694 : vector<8x32xf32> to vector<8x32xbf16>
    %c0_389 = arith.constant 0 : index
    %c0_390 = arith.constant 0 : index
    %c0_391 = arith.constant 0 : index
    %704 = vector.load %arg16[%c0_389, %c0_390, %c0_391] : memref<8x8x32xbf16, #tpu.memory_space<vmem>>, vector<1x8x32xbf16>
    %705 = vector.shape_cast %704 : vector<1x8x32xbf16> to vector<8x32xbf16>
    %706 = vector.shape_cast %703 : vector<8x32xbf16> to vector<1x8x32xbf16>
    tpu.vector_store %arg16[%c0_389, %c0_390, %c0_391], %706 {strides = array<i32>} : memref<8x8x32xbf16, #tpu.memory_space<vmem>>, vector<1x8x32xbf16>,
    %c0_i32_392 = arith.constant 0 : i32
    %707 = arith.cmpi eq, %arg0, %c0_i32_392 : i32
    %708 = arith.extui %707 : i1 to i32
    %c0_i32_393 = arith.constant 0 : i32
    %709 = arith.cmpi ne, %708, %c0_i32_393 : i32
    scf.if %709 {
      %c0_394 = arith.constant 0 : index
      %c0_395 = arith.constant 0 : index
      %710 = vector.load %arg19[%c0_394, %c0_395] : memref<8x32xf32, #tpu.memory_space<vmem>>, vector<8x32xf32>
      %711 = arith.truncf %710 : vector<8x32xf32> to vector<8x32xbf16>
      %c0_396 = arith.constant 0 : index
      %c0_397 = arith.constant 0 : index
      %712 = vector.load %arg21[%c0_396, %c0_397] : memref<8x32xf32, #tpu.memory_space<vmem>>, vector<8x32xf32>
      %713 = arith.truncf %712 : vector<8x32xf32> to vector<8x32xbf16>
      %c0_398 = arith.constant 0 : index
      %c0_399 = arith.constant 0 : index
      %714 = vector.load %arg20[%c0_398, %c0_399] : memref<8x32xf32, #tpu.memory_space<vmem>>, vector<8x32xf32>
      %715 = arith.truncf %714 : vector<8x32xf32> to vector<8x32xbf16>
      %c0_400 = arith.constant 0 : index
      %c0_401 = arith.constant 0 : index
      %716 = vector.load %arg22[%c0_400, %c0_401] : memref<8x32xf32, #tpu.memory_space<vmem>>, vector<8x32xf32>
      %717 = arith.truncf %716 : vector<8x32xf32> to vector<8x32xbf16>
      %c0_402 = arith.constant 0 : index
      %c0_403 = arith.constant 0 : index
      %718 = vector.load %arg9[%c0_402, %c0_403] : memref<32x32xbf16, #tpu.memory_space<vmem>>, vector<32x32xbf16>
      %cst_404 = arith.constant dense<0.000000e+00> : vector<8x32xf32>
      %719 = tpu.matmul %711, %718, %cst_404 {dimension_numbers = #tpu.dot_dimension_numbers<[1], [0], [0], [1], [0, 0, 1, 1], [], []>} : vector<8x32xbf16>, vector<32x32xbf16>, vector<8x32xf32> -> vector<8x32xf32>
      %c0_405 = arith.constant 0 : index
      %c0_406 = arith.constant 0 : index
      %720 = vector.load %arg10[%c0_405, %c0_406] : memref<32x32xbf16, #tpu.memory_space<vmem>>, vector<32x32xbf16>
      %cst_407 = arith.constant dense<0.000000e+00> : vector<8x32xf32>
      %721 = tpu.matmul %713, %720, %cst_407 {dimension_numbers = #tpu.dot_dimension_numbers<[1], [0], [0], [1], [0, 0, 1, 1], [], []>} : vector<8x32xbf16>, vector<32x32xbf16>, vector<8x32xf32> -> vector<8x32xf32>
      %722 = arith.addf %719, %721 : vector<8x32xf32>
      %c0_408 = arith.constant 0 : index
      %c0_409 = arith.constant 0 : index
      %723 = vector.load %arg11[%c0_408, %c0_409] : memref<1x32xf32, #tpu.memory_space<vmem>>, vector<1x32xf32>
      %724 = vector.broadcast %723 : vector<1x32xf32> to vector<8x32xf32>
      %725 = arith.addf %722, %724 : vector<8x32xf32>
      %c0_410 = arith.constant 0 : index
      %c0_411 = arith.constant 0 : index
      %726 = vector.load %arg17[%c0_410, %c0_411] : memref<8x32xf32, #tpu.memory_space<vmem>>, vector<8x32xf32>
      tpu.vector_store %arg17[%c0_410, %c0_411], %725 {strides = array<i32>} : memref<8x32xf32, #tpu.memory_space<vmem>>, vector<8x32xf32>,
      %c0_412 = arith.constant 0 : index
      %c0_413 = arith.constant 0 : index
      %727 = vector.load %arg12[%c0_412, %c0_413] : memref<32x32xbf16, #tpu.memory_space<vmem>>, vector<32x32xbf16>
      %cst_414 = arith.constant dense<0.000000e+00> : vector<8x32xf32>
      %728 = tpu.matmul %715, %727, %cst_414 {dimension_numbers = #tpu.dot_dimension_numbers<[1], [0], [0], [1], [0, 0, 1, 1], [], []>} : vector<8x32xbf16>, vector<32x32xbf16>, vector<8x32xf32> -> vector<8x32xf32>
      %c0_415 = arith.constant 0 : index
      %c0_416 = arith.constant 0 : index
      %729 = vector.load %arg13[%c0_415, %c0_416] : memref<32x32xbf16, #tpu.memory_space<vmem>>, vector<32x32xbf16>
      %cst_417 = arith.constant dense<0.000000e+00> : vector<8x32xf32>
      %730 = tpu.matmul %717, %729, %cst_417 {dimension_numbers = #tpu.dot_dimension_numbers<[1], [0], [0], [1], [0, 0, 1, 1], [], []>} : vector<8x32xbf16>, vector<32x32xbf16>, vector<8x32xf32> -> vector<8x32xf32>
      %731 = arith.addf %728, %730 : vector<8x32xf32>
      %c0_418 = arith.constant 0 : index
      %c0_419 = arith.constant 0 : index
      %732 = vector.load %arg14[%c0_418, %c0_419] : memref<1x32xf32, #tpu.memory_space<vmem>>, vector<1x32xf32>
      %733 = vector.broadcast %732 : vector<1x32xf32> to vector<8x32xf32>
      %734 = arith.addf %731, %733 : vector<8x32xf32>
      %c0_420 = arith.constant 0 : index
      %c0_421 = arith.constant 0 : index
      %735 = vector.load %arg18[%c0_420, %c0_421] : memref<8x32xf32, #tpu.memory_space<vmem>>, vector<8x32xf32>
      tpu.vector_store %arg18[%c0_420, %c0_421], %734 {strides = array<i32>} : memref<8x32xf32, #tpu.memory_space<vmem>>, vector<8x32xf32>,
    } else {
    }
    return
  }
  func.func @transform_0(%arg0: i32) -> (i32, i32, i32) {
    %c0_i32 = arith.constant 0 : i32
    %c0_i32_0 = arith.constant 0 : i32
    %c0_i32_1 = arith.constant 0 : i32
    return %arg0, %c0_i32, %c0_i32_0 : i32, i32, i32
  }
  func.func @transform_1(%arg0: i32) -> (i32, i32, i32) {
    %c0_i32 = arith.constant 0 : i32
    %0 = arith.subi %c0_i32, %arg0 : i32
    %c0_i32_0 = arith.constant 0 : i32
    %c0_i32_1 = arith.constant 0 : i32
    %c0_i32_2 = arith.constant 0 : i32
    return %0, %c0_i32_0, %c0_i32_1 : i32, i32, i32
  }
  func.func @transform_2(%arg0: i32) -> (i32, i32) {
    %c0_i32 = arith.constant 0 : i32
    %c0_i32_0 = arith.constant 0 : i32
    %c0_i32_1 = arith.constant 0 : i32
    return %c0_i32, %c0_i32_0 : i32, i32
  }
  func.func @transform_3(%arg0: i32) -> (i32, i32) {
    %c0_i32 = arith.constant 0 : i32
    %c0_i32_0 = arith.constant 0 : i32
    %c0_i32_1 = arith.constant 0 : i32
    return %c0_i32, %c0_i32_0 : i32, i32
  }
  func.func @transform_4(%arg0: i32) -> (i32, i32) {
    %c0_i32 = arith.constant 0 : i32
    %c0_i32_0 = arith.constant 0 : i32
    %c0_i32_1 = arith.constant 0 : i32
    return %c0_i32, %c0_i32_0 : i32, i32
  }
  func.func @transform_5(%arg0: i32) -> (i32, i32) {
    %c0_i32 = arith.constant 0 : i32
    %c0_i32_0 = arith.constant 0 : i32
    %c0_i32_1 = arith.constant 0 : i32
    return %c0_i32, %c0_i32_0 : i32, i32
  }
  func.func @transform_6(%arg0: i32) -> (i32, i32) {
    %c0_i32 = arith.constant 0 : i32
    %c0_i32_0 = arith.constant 0 : i32
    %c0_i32_1 = arith.constant 0 : i32
    return %c0_i32, %c0_i32_0 : i32, i32
  }
  func.func @transform_7(%arg0: i32) -> (i32, i32) {
    %c0_i32 = arith.constant 0 : i32
    %c0_i32_0 = arith.constant 0 : i32
    %c0_i32_1 = arith.constant 0 : i32
    return %c0_i32, %c0_i32_0 : i32, i32
  }
  func.func @transform_8(%arg0: i32) -> (i32, i32) {
    %c0_i32 = arith.constant 0 : i32
    %c0_i32_0 = arith.constant 0 : i32
    %c0_i32_1 = arith.constant 0 : i32
    return %c0_i32, %c0_i32_0 : i32, i32
  }
  func.func @transform_9(%arg0: i32) -> (i32, i32) {
    %c0_i32 = arith.constant 0 : i32
    %c0_i32_0 = arith.constant 0 : i32
    %c0_i32_1 = arith.constant 0 : i32
    return %c0_i32, %c0_i32_0 : i32, i32
  }
  func.func @transform_10(%arg0: i32) -> (i32, i32) {
    %c0_i32 = arith.constant 0 : i32
    %c0_i32_0 = arith.constant 0 : i32
    %c0_i32_1 = arith.constant 0 : i32
    return %c0_i32, %c0_i32_0 : i32, i32
  }
  func.func @transform_11(%arg0: i32) -> (i32, i32) {
    %c0_i32 = arith.constant 0 : i32
    %c0_i32_0 = arith.constant 0 : i32
    %c0_i32_1 = arith.constant 0 : i32
    return %c0_i32, %c0_i32_0 : i32, i32
  }
  func.func @transform_12(%arg0: i32) -> (i32, i32) {
    %c0_i32 = arith.constant 0 : i32
    %c0_i32_0 = arith.constant 0 : i32
    %c0_i32_1 = arith.constant 0 : i32
    return %c0_i32, %c0_i32_0 : i32, i32
  }
  func.func @transform_13(%arg0: i32) -> (i32, i32) {
    %c0_i32 = arith.constant 0 : i32
    %c0_i32_0 = arith.constant 0 : i32
    %c0_i32_1 = arith.constant 0 : i32
    return %c0_i32, %c0_i32_0 : i32, i32
  }
  func.func @transform_14(%arg0: i32) -> (i32, i32, i32) {
    %c0_i32 = arith.constant 0 : i32
    %c0_i32_0 = arith.constant 0 : i32
    %c0_i32_1 = arith.constant 0 : i32
    return %arg0, %c0_i32, %c0_i32_0 : i32, i32, i32
  }
  func.func @transform_15(%arg0: i32) -> (i32, i32, i32) {
    %c0_i32 = arith.constant 0 : i32
    %0 = arith.subi %c0_i32, %arg0 : i32
    %c0_i32_0 = arith.constant 0 : i32
    %c0_i32_1 = arith.constant 0 : i32
    %c0_i32_2 = arith.constant 0 : i32
    return %0, %c0_i32_0, %c0_i32_1 : i32, i32, i32
  }
  func.func @transform_16(%arg0: i32) -> (i32, i32) {
    %c0_i32 = arith.constant 0 : i32
    %c0_i32_0 = arith.constant 0 : i32
    %c0_i32_1 = arith.constant 0 : i32
    return %c0_i32, %c0_i32_0 : i32, i32
  }
  func.func @transform_17(%arg0: i32) -> (i32, i32) {
    %c0_i32 = arith.constant 0 : i32
    %c0_i32_0 = arith.constant 0 : i32
    %c0_i32_1 = arith.constant 0 : i32
    return %c0_i32, %c0_i32_0 : i32, i32
  }
}

module attributes {stable_mosaic.version = 11 : i64} {
  func.func @_decoder_kernel(%arg0: i32, %arg1: memref<6xi32, #tpu.memory_space<smem>>, %arg2: memref<6x8x16xbf16, #tpu.memory_space<vmem>>, %arg3: memref<8x8x32xbf16, #tpu.memory_space<vmem>>, %arg4: memref<8x8x32xbf16, #tpu.memory_space<vmem>>, %arg5: memref<1x32xf32, #tpu.memory_space<vmem>>, %arg6: memref<1x1x32xf32, #tpu.memory_space<vmem>>, %arg7: memref<1x1x32xf32, #tpu.memory_space<vmem>>, %arg8: memref<1x1xf32, #tpu.memory_space<vmem>>, %arg9: memref<128x16xbf16, #tpu.memory_space<vmem>>, %arg10: memref<32x128xbf16, #tpu.memory_space<vmem>>, %arg11: memref<32x128xbf16, #tpu.memory_space<vmem>>, %arg12: memref<16x128xbf16, #tpu.memory_space<vmem>>, %arg13: memref<32x128xbf16, #tpu.memory_space<vmem>>, %arg14: memref<1x128xf32, #tpu.memory_space<vmem>>, %arg15: memref<32x128xbf16, #tpu.memory_space<vmem>>, %arg16: memref<1x128xf32, #tpu.memory_space<vmem>>, %arg17: memref<8x32xf32, #tpu.memory_space<vmem>>, %arg18: memref<8x32xf32, #tpu.memory_space<vmem>>, %arg19: memref<6x8x128xf32, #tpu.memory_space<vmem>>, %arg20: memref<8x32xf32, #tpu.memory_space<vmem>>, %arg21: memref<8x32xf32, #tpu.memory_space<vmem>>, %arg22: memref<8x16xf32, #tpu.memory_space<vmem>>, %arg23: memref<8x8xf32, #tpu.memory_space<vmem>>) attributes {dimension_semantics = [#tpu.dimension_semantics<arbitrary>], iteration_bounds = array<i64: 1>, scalar_prefetch = 1 : i64, scratch_operands = 4 : i64, tpu.core_type = #tpu.core_type<tc>, window_params = [{transform_indices = @transform_0, window_bounds = array<i64: 6, 8, 16>}, {pipeline_mode = #tpu.pipeline_mode<synchronous>, transform_indices = @transform_1, window_bounds = array<i64: 8, 8, 32>}, {pipeline_mode = #tpu.pipeline_mode<synchronous>, transform_indices = @transform_2, window_bounds = array<i64: 8, 8, 32>}, {pipeline_mode = #tpu.pipeline_mode<synchronous>, transform_indices = @transform_3, window_bounds = array<i64: 1, 32>}, {pipeline_mode = #tpu.pipeline_mode<synchronous>, transform_indices = @transform_4, window_bounds = array<i64: 1, 1, 32>}, {pipeline_mode = #tpu.pipeline_mode<synchronous>, transform_indices = @transform_5, window_bounds = array<i64: 1, 1, 32>}, {pipeline_mode = #tpu.pipeline_mode<synchronous>, transform_indices = @transform_6, window_bounds = array<i64: 1, 1>}, {pipeline_mode = #tpu.pipeline_mode<synchronous>, transform_indices = @transform_7, window_bounds = array<i64: 128, 16>}, {pipeline_mode = #tpu.pipeline_mode<synchronous>, transform_indices = @transform_8, window_bounds = array<i64: 32, 128>}, {pipeline_mode = #tpu.pipeline_mode<synchronous>, transform_indices = @transform_9, window_bounds = array<i64: 32, 128>}, {pipeline_mode = #tpu.pipeline_mode<synchronous>, transform_indices = @transform_10, window_bounds = array<i64: 16, 128>}, {pipeline_mode = #tpu.pipeline_mode<synchronous>, transform_indices = @transform_11, window_bounds = array<i64: 32, 128>}, {pipeline_mode = #tpu.pipeline_mode<synchronous>, transform_indices = @transform_12, window_bounds = array<i64: 1, 128>}, {pipeline_mode = #tpu.pipeline_mode<synchronous>, transform_indices = @transform_13, window_bounds = array<i64: 32, 128>}, {pipeline_mode = #tpu.pipeline_mode<synchronous>, transform_indices = @transform_14, window_bounds = array<i64: 1, 128>}, {pipeline_mode = #tpu.pipeline_mode<synchronous>, transform_indices = @transform_15, window_bounds = array<i64: 8, 32>}, {pipeline_mode = #tpu.pipeline_mode<synchronous>, transform_indices = @transform_16, window_bounds = array<i64: 8, 32>}, {transform_indices = @transform_17, window_bounds = array<i64: 6, 8, 128>}]} {
    %c0_i32 = arith.constant 0 : i32
    %0 = arith.cmpi eq, %arg0, %c0_i32 : i32
    %1 = arith.extui %0 : i1 to i32
    %c0_i32_0 = arith.constant 0 : i32
    %2 = arith.cmpi ne, %1, %c0_i32_0 : i32
    scf.if %2 {
      %c0_396 = arith.constant 0 : index
      %c0_397 = arith.constant 0 : index
      %711 = vector.load %arg17[%c0_396, %c0_397] : memref<8x32xf32, #tpu.memory_space<vmem>>, vector<8x32xf32>
      %c0_398 = arith.constant 0 : index
      %c0_399 = arith.constant 0 : index
      %712 = vector.load %arg20[%c0_398, %c0_399] : memref<8x32xf32, #tpu.memory_space<vmem>>, vector<8x32xf32>
      tpu.vector_store %arg20[%c0_398, %c0_399], %711 {strides = array<i32>} : memref<8x32xf32, #tpu.memory_space<vmem>>, vector<8x32xf32>,
      %c0_400 = arith.constant 0 : index
      %c0_401 = arith.constant 0 : index
      %713 = vector.load %arg18[%c0_400, %c0_401] : memref<8x32xf32, #tpu.memory_space<vmem>>, vector<8x32xf32>
      %c0_402 = arith.constant 0 : index
      %c0_403 = arith.constant 0 : index
      %714 = vector.load %arg21[%c0_402, %c0_403] : memref<8x32xf32, #tpu.memory_space<vmem>>, vector<8x32xf32>
      tpu.vector_store %arg21[%c0_402, %c0_403], %713 {strides = array<i32>} : memref<8x32xf32, #tpu.memory_space<vmem>>, vector<8x32xf32>,
      %cst_404 = arith.constant 0.000000e+00 : f32
      %715 = vector.broadcast %cst_404 : f32 to vector<8x16xf32>
      %c0_405 = arith.constant 0 : index
      %c0_406 = arith.constant 0 : index
      %716 = vector.load %arg22[%c0_405, %c0_406] : memref<8x16xf32, #tpu.memory_space<vmem>>, vector<8x16xf32>
      tpu.vector_store %arg22[%c0_405, %c0_406], %715 {strides = array<i32>} : memref<8x16xf32, #tpu.memory_space<vmem>>, vector<8x16xf32>,
      %c0_407 = arith.constant 0 : index
      %c0_408 = arith.constant 0 : index
      %c0_409 = arith.constant 0 : index
      %717 = vector.load %arg3[%c0_407, %c0_408, %c0_409] : memref<8x8x32xbf16, #tpu.memory_space<vmem>>, vector<8x8x32xbf16>
      %718 = arith.extf %717 : vector<8x8x32xbf16> to vector<8x8x32xf32>
      %c0_410 = arith.constant 0 : index
      %c0_411 = arith.constant 0 : index
      %c0_412 = arith.constant 0 : index
      %719 = vector.load %arg6[%c0_410, %c0_411, %c0_412] : memref<1x1x32xf32, #tpu.memory_space<vmem>>, vector<1x1x32xf32>
      %720 = vector.broadcast %719 : vector<1x1x32xf32> to vector<8x8x32xf32>
      %721 = arith.mulf %718, %720 : vector<8x8x32xf32>
      %cst_413 = arith.constant dense<0.000000e+00> : vector<8x8xf32>
      %722 = vector.multi_reduction <add>, %721, %cst_413 [2] : vector<8x8x32xf32> to vector<8x8xf32>
      %c0_414 = arith.constant 0 : index
      %c0_415 = arith.constant 0 : index
      %c0_416 = arith.constant 0 : index
      %723 = vector.load %arg4[%c0_414, %c0_415, %c0_416] : memref<8x8x32xbf16, #tpu.memory_space<vmem>>, vector<8x8x32xbf16>
      %724 = arith.extf %723 : vector<8x8x32xbf16> to vector<8x8x32xf32>
      %c0_417 = arith.constant 0 : index
      %c0_418 = arith.constant 0 : index
      %c0_419 = arith.constant 0 : index
      %725 = vector.load %arg7[%c0_417, %c0_418, %c0_419] : memref<1x1x32xf32, #tpu.memory_space<vmem>>, vector<1x1x32xf32>
      %726 = vector.broadcast %725 : vector<1x1x32xf32> to vector<8x8x32xf32>
      %727 = arith.mulf %724, %726 : vector<8x8x32xf32>
      %cst_420 = arith.constant dense<0.000000e+00> : vector<8x8xf32>
      %728 = vector.multi_reduction <add>, %727, %cst_420 [2] : vector<8x8x32xf32> to vector<8x8xf32>
      %729 = arith.addf %722, %728 : vector<8x8xf32>
      %c0_421 = arith.constant 0 : index
      %c0_422 = arith.constant 0 : index
      %730 = vector.load %arg8[%c0_421, %c0_422] : memref<1x1xf32, #tpu.memory_space<vmem>>, vector<1x1xf32>
      %731 = vector.broadcast %730 : vector<1x1xf32> to vector<8x8xf32>
      %732 = arith.addf %729, %731 : vector<8x8xf32>
      %c0_423 = arith.constant 0 : index
      %c0_424 = arith.constant 0 : index
      %733 = vector.load %arg23[%c0_423, %c0_424] : memref<8x8xf32, #tpu.memory_space<vmem>>, vector<8x8xf32>
      tpu.vector_store %arg23[%c0_423, %c0_424], %732 {strides = array<i32>} : memref<8x8xf32, #tpu.memory_space<vmem>>, vector<8x8xf32>,
    } else {
    }
    %c6_i32 = arith.constant 6 : i32
    %3 = arith.muli %arg0, %c6_i32 : i32
    %c0_i32_1 = arith.constant 0 : i32
    %4 = arith.addi %3, %c0_i32_1 : i32
    %5 = arith.index_cast %4 : i32 to index
    %6 = memref.load %arg1[%5] : memref<6xi32, #tpu.memory_space<smem>>
    %c0_i32_2 = arith.constant 0 : i32
    %7 = arith.cmpi ne, %6, %c0_i32_2 : i32
    %cst = arith.constant 1.000000e+00 : f32
    %cst_3 = arith.constant 0.000000e+00 : f32
    %8 = arith.select %7, %cst, %cst_3 : f32
    %c0 = arith.constant 0 : index
    %c0_4 = arith.constant 0 : index
    %c0_5 = arith.constant 0 : index
    %9 = vector.load %arg2[%c0, %c0_4, %c0_5] : memref<6x8x16xbf16, #tpu.memory_space<vmem>>, vector<1x8x16xbf16>
    %10 = vector.shape_cast %9 : vector<1x8x16xbf16> to vector<8x16xbf16>
    %11 = arith.extf %10 : vector<8x16xbf16> to vector<8x16xf32>
    %12 = vector.broadcast %8 : f32 to vector<8x16xf32>
    %13 = arith.mulf %12, %11 : vector<8x16xf32>
    %cst_6 = arith.constant 1.000000e+00 : f32
    %14 = arith.subf %cst_6, %8 : f32
    %c0_7 = arith.constant 0 : index
    %c0_8 = arith.constant 0 : index
    %15 = vector.load %arg22[%c0_7, %c0_8] : memref<8x16xf32, #tpu.memory_space<vmem>>, vector<8x16xf32>
    %16 = vector.broadcast %14 : f32 to vector<8x16xf32>
    %17 = arith.mulf %16, %15 : vector<8x16xf32>
    %18 = arith.addf %13, %17 : vector<8x16xf32>
    %19 = arith.truncf %18 : vector<8x16xf32> to vector<8x16xbf16>
    %c0_9 = arith.constant 0 : index
    %c0_10 = arith.constant 0 : index
    %20 = vector.load %arg20[%c0_9, %c0_10] : memref<8x32xf32, #tpu.memory_space<vmem>>, vector<8x32xf32>
    %c0_11 = arith.constant 0 : index
    %c0_12 = arith.constant 0 : index
    %21 = vector.load %arg5[%c0_11, %c0_12] : memref<1x32xf32, #tpu.memory_space<vmem>>, vector<1x32xf32>
    %22 = vector.broadcast %21 : vector<1x32xf32> to vector<8x32xf32>
    %23 = arith.mulf %20, %22 : vector<8x32xf32>
    %cst_13 = arith.constant dense<0.000000e+00> : vector<8xf32>
    %24 = vector.multi_reduction <add>, %23, %cst_13 [1] : vector<8x32xf32> to vector<8xf32>
    %25 = vector.shape_cast %24 : vector<8xf32> to vector<8x1xf32>
    %c0_14 = arith.constant 0 : index
    %c0_15 = arith.constant 0 : index
    %26 = vector.load %arg23[%c0_14, %c0_15] : memref<8x8xf32, #tpu.memory_space<vmem>>, vector<8x8xf32>
    %27 = vector.broadcast %25 : vector<8x1xf32> to vector<8x8xf32>
    %28 = arith.addf %26, %27 : vector<8x8xf32>
    %cst_16 = arith.constant 0.000000e+00 : f32
    %29 = vector.broadcast %cst_16 : f32 to vector<8x8xf32>
    %30 = arith.maximumf %28, %29 : vector<8x8xf32>
    %cst_17 = arith.constant dense<0xFF800000> : vector<8xf32>
    %31 = vector.multi_reduction <maximumf>, %30, %cst_17 [1] : vector<8x8xf32> to vector<8xf32>
    %32 = vector.shape_cast %31 : vector<8xf32> to vector<8x1xf32>
    %33 = vector.broadcast %32 : vector<8x1xf32> to vector<8x8xf32>
    %34 = arith.subf %30, %33 : vector<8x8xf32>
    %35 = math.exp %34 : vector<8x8xf32>
    %cst_18 = arith.constant dense<0.000000e+00> : vector<8xf32>
    %36 = vector.multi_reduction <add>, %35, %cst_18 [1] : vector<8x8xf32> to vector<8xf32>
    %37 = vector.shape_cast %36 : vector<8xf32> to vector<8x1xf32>
    %38 = tpu.reciprocal %37 {approx = true} : vector<8x1xf32> -> vector<8x1xf32>
    %39 = vector.broadcast %38 : vector<8x1xf32> to vector<8x8xf32>
    %40 = arith.mulf %35, %39 : vector<8x8xf32>
    %41 = arith.truncf %40 : vector<8x8xf32> to vector<8x8xbf16>
    %42 = vector.shape_cast %41 : vector<8x8xbf16> to vector<8x1x8xbf16>
    %c0_19 = arith.constant 0 : index
    %c0_20 = arith.constant 0 : index
    %c0_21 = arith.constant 0 : index
    %43 = vector.load %arg3[%c0_19, %c0_20, %c0_21] : memref<8x8x32xbf16, #tpu.memory_space<vmem>>, vector<8x8x32xbf16>
    "tpu.trace_start"() <{level = 10 : i32, message = "bqs,bsh->bqh"}> : () -> ()
    %cst_22 = arith.constant dense<0.000000e+00> : vector<8x1x32xf32>
    %44 = tpu.matmul %42, %43, %cst_22 {dimension_numbers = #tpu.dot_dimension_numbers<[2], [1], [1], [2], [0, 0, 0, 1, 1, 2], [0], [0]>} : vector<8x1x8xbf16>, vector<8x8x32xbf16>, vector<8x1x32xf32> -> vector<8x1x32xf32>
    "tpu.trace_stop"() : () -> ()
    %45 = vector.shape_cast %44 : vector<8x1x32xf32> to vector<8x32xf32>
    %c0_23 = arith.constant 0 : index
    %c0_24 = arith.constant 0 : index
    %c0_25 = arith.constant 0 : index
    %46 = vector.load %arg4[%c0_23, %c0_24, %c0_25] : memref<8x8x32xbf16, #tpu.memory_space<vmem>>, vector<8x8x32xbf16>
    "tpu.trace_start"() <{level = 10 : i32, message = "bqs,bsh->bqh"}> : () -> ()
    %cst_26 = arith.constant dense<0.000000e+00> : vector<8x1x32xf32>
    %47 = tpu.matmul %42, %46, %cst_26 {dimension_numbers = #tpu.dot_dimension_numbers<[2], [1], [1], [2], [0, 0, 0, 1, 1, 2], [0], [0]>} : vector<8x1x8xbf16>, vector<8x8x32xbf16>, vector<8x1x32xf32> -> vector<8x1x32xf32>
    "tpu.trace_stop"() : () -> ()
    %48 = vector.shape_cast %47 : vector<8x1x32xf32> to vector<8x32xf32>
    %49 = arith.truncf %45 : vector<8x32xf32> to vector<8x32xbf16>
    %c0_27 = arith.constant 0 : index
    %c0_28 = arith.constant 0 : index
    %50 = vector.load %arg10[%c0_27, %c0_28] : memref<32x128xbf16, #tpu.memory_space<vmem>>, vector<32x128xbf16>
    %cst_29 = arith.constant dense<0.000000e+00> : vector<8x128xf32>
    %51 = tpu.matmul %49, %50, %cst_29 {dimension_numbers = #tpu.dot_dimension_numbers<[1], [0], [0], [1], [0, 0, 1, 1], [], []>} : vector<8x32xbf16>, vector<32x128xbf16>, vector<8x128xf32> -> vector<8x128xf32>
    %52 = arith.truncf %48 : vector<8x32xf32> to vector<8x32xbf16>
    %c0_30 = arith.constant 0 : index
    %c0_31 = arith.constant 0 : index
    %53 = vector.load %arg11[%c0_30, %c0_31] : memref<32x128xbf16, #tpu.memory_space<vmem>>, vector<32x128xbf16>
    %cst_32 = arith.constant dense<0.000000e+00> : vector<8x128xf32>
    %54 = tpu.matmul %52, %53, %cst_32 {dimension_numbers = #tpu.dot_dimension_numbers<[1], [0], [0], [1], [0, 0, 1, 1], [], []>} : vector<8x32xbf16>, vector<32x128xbf16>, vector<8x128xf32> -> vector<8x128xf32>
    %55 = arith.addf %51, %54 : vector<8x128xf32>
    %c0_33 = arith.constant 0 : index
    %c0_34 = arith.constant 0 : index
    %56 = vector.load %arg12[%c0_33, %c0_34] : memref<16x128xbf16, #tpu.memory_space<vmem>>, vector<16x128xbf16>
    %cst_35 = arith.constant dense<0.000000e+00> : vector<8x128xf32>
    %57 = tpu.matmul %19, %56, %cst_35 {dimension_numbers = #tpu.dot_dimension_numbers<[1], [0], [0], [1], [0, 0, 1, 1], [], []>} : vector<8x16xbf16>, vector<16x128xbf16>, vector<8x128xf32> -> vector<8x128xf32>
    %58 = arith.addf %55, %57 : vector<8x128xf32>
    %59 = arith.truncf %20 : vector<8x32xf32> to vector<8x32xbf16>
    %c0_36 = arith.constant 0 : index
    %c0_37 = arith.constant 0 : index
    %60 = vector.load %arg13[%c0_36, %c0_37] : memref<32x128xbf16, #tpu.memory_space<vmem>>, vector<32x128xbf16>
    %cst_38 = arith.constant dense<0.000000e+00> : vector<8x128xf32>
    %61 = tpu.matmul %59, %60, %cst_38 {dimension_numbers = #tpu.dot_dimension_numbers<[1], [0], [0], [1], [0, 0, 1, 1], [], []>} : vector<8x32xbf16>, vector<32x128xbf16>, vector<8x128xf32> -> vector<8x128xf32>
    %62 = arith.addf %58, %61 : vector<8x128xf32>
    %c0_39 = arith.constant 0 : index
    %c0_40 = arith.constant 0 : index
    %63 = vector.load %arg14[%c0_39, %c0_40] : memref<1x128xf32, #tpu.memory_space<vmem>>, vector<1x128xf32>
    %64 = vector.broadcast %63 : vector<1x128xf32> to vector<8x128xf32>
    %65 = arith.addf %62, %64 : vector<8x128xf32>
    %66 = vector.extract_strided_slice %65 {offsets = [0, 0], sizes = [8, 32], strides = [1, 1]} : vector<8x128xf32> to vector<8x32xf32>
    %67 = arith.negf %66 : vector<8x32xf32>
    %68 = math.exp %67 : vector<8x32xf32>
    %cst_41 = arith.constant 1.000000e+00 : f32
    %69 = vector.broadcast %cst_41 : f32 to vector<8x32xf32>
    %70 = arith.addf %69, %68 : vector<8x32xf32>
    %71 = arith.divf %69, %70 : vector<8x32xf32>
    %72 = vector.extract_strided_slice %65 {offsets = [0, 32], sizes = [8, 32], strides = [1, 1]} : vector<8x128xf32> to vector<8x32xf32>
    %73 = arith.negf %72 : vector<8x32xf32>
    %74 = math.exp %73 : vector<8x32xf32>
    %cst_42 = arith.constant 1.000000e+00 : f32
    %75 = vector.broadcast %cst_42 : f32 to vector<8x32xf32>
    %76 = arith.addf %75, %74 : vector<8x32xf32>
    %77 = arith.divf %75, %76 : vector<8x32xf32>
    %78 = vector.extract_strided_slice %65 {offsets = [0, 64], sizes = [8, 32], strides = [1, 1]} : vector<8x128xf32> to vector<8x32xf32>
    %79 = math.tanh %78 : vector<8x32xf32>
    %80 = vector.extract_strided_slice %65 {offsets = [0, 96], sizes = [8, 32], strides = [1, 1]} : vector<8x128xf32> to vector<8x32xf32>
    %81 = arith.negf %80 : vector<8x32xf32>
    %82 = math.exp %81 : vector<8x32xf32>
    %cst_43 = arith.constant 1.000000e+00 : f32
    %83 = vector.broadcast %cst_43 : f32 to vector<8x32xf32>
    %84 = arith.addf %83, %82 : vector<8x32xf32>
    %85 = arith.divf %83, %84 : vector<8x32xf32>
    %c0_44 = arith.constant 0 : index
    %c0_45 = arith.constant 0 : index
    %86 = vector.load %arg21[%c0_44, %c0_45] : memref<8x32xf32, #tpu.memory_space<vmem>>, vector<8x32xf32>
    %87 = arith.mulf %77, %86 : vector<8x32xf32>
    %88 = arith.mulf %71, %79 : vector<8x32xf32>
    %89 = arith.addf %87, %88 : vector<8x32xf32>
    %90 = math.tanh %89 : vector<8x32xf32>
    %91 = arith.mulf %85, %90 : vector<8x32xf32>
    %c0_46 = arith.constant 0 : index
    %c0_47 = arith.constant 0 : index
    %92 = vector.load %arg20[%c0_46, %c0_47] : memref<8x32xf32, #tpu.memory_space<vmem>>, vector<8x32xf32>
    tpu.vector_store %arg20[%c0_46, %c0_47], %91 {strides = array<i32>} : memref<8x32xf32, #tpu.memory_space<vmem>>, vector<8x32xf32>,
    %c0_48 = arith.constant 0 : index
    %c0_49 = arith.constant 0 : index
    %93 = vector.load %arg21[%c0_48, %c0_49] : memref<8x32xf32, #tpu.memory_space<vmem>>, vector<8x32xf32>
    tpu.vector_store %arg21[%c0_48, %c0_49], %89 {strides = array<i32>} : memref<8x32xf32, #tpu.memory_space<vmem>>, vector<8x32xf32>,
    %94 = arith.truncf %91 : vector<8x32xf32> to vector<8x32xbf16>
    %c0_50 = arith.constant 0 : index
    %c0_51 = arith.constant 0 : index
    %95 = vector.load %arg15[%c0_50, %c0_51] : memref<32x128xbf16, #tpu.memory_space<vmem>>, vector<32x128xbf16>
    %cst_52 = arith.constant dense<0.000000e+00> : vector<8x128xf32>
    %96 = tpu.matmul %94, %95, %cst_52 {dimension_numbers = #tpu.dot_dimension_numbers<[1], [0], [0], [1], [0, 0, 1, 1], [], []>} : vector<8x32xbf16>, vector<32x128xbf16>, vector<8x128xf32> -> vector<8x128xf32>
    %c0_53 = arith.constant 0 : index
    %c0_54 = arith.constant 0 : index
    %97 = vector.load %arg16[%c0_53, %c0_54] : memref<1x128xf32, #tpu.memory_space<vmem>>, vector<1x128xf32>
    %98 = vector.broadcast %97 : vector<1x128xf32> to vector<8x128xf32>
    %99 = arith.addf %96, %98 : vector<8x128xf32>
    %c0_55 = arith.constant 0 : index
    %c0_56 = arith.constant 0 : index
    %c0_57 = arith.constant 0 : index
    %100 = vector.load %arg19[%c0_55, %c0_56, %c0_57] : memref<6x8x128xf32, #tpu.memory_space<vmem>>, vector<1x8x128xf32>
    %101 = vector.shape_cast %100 : vector<1x8x128xf32> to vector<8x128xf32>
    %102 = vector.shape_cast %99 : vector<8x128xf32> to vector<1x8x128xf32>
    tpu.vector_store %arg19[%c0_55, %c0_56, %c0_57], %102 {strides = array<i32>} : memref<6x8x128xf32, #tpu.memory_space<vmem>>, vector<1x8x128xf32>,
    %cst_58 = arith.constant dense<0xFF800000> : vector<8xf32>
    %103 = vector.multi_reduction <maximumf>, %99, %cst_58 [1] : vector<8x128xf32> to vector<8xf32>
    %104 = vector.shape_cast %103 : vector<8xf32> to vector<8x1xf32>
    %105 = tpu.iota {dimensions = array<i32: 1>} : vector<8x128xi32>
    %106 = arith.sitofp %105 : vector<8x128xi32> to vector<8x128xf32>
    %107 = vector.broadcast %104 : vector<8x1xf32> to vector<8x128xf32>
    %108 = arith.cmpf oeq, %99, %107 : vector<8x128xf32>
    %cst_59 = arith.constant 1.280000e+02 : f32
    %109 = vector.broadcast %cst_59 : f32 to vector<8x128xf32>
    %110 = arith.select %108, %106, %109 : vector<8x128xi1>, vector<8x128xf32>
    %cst_60 = arith.constant dense<0x7F800000> : vector<8xf32>
    %111 = vector.multi_reduction <minimumf>, %110, %cst_60 [1] : vector<8x128xf32> to vector<8xf32>
    %112 = vector.shape_cast %111 : vector<8xf32> to vector<8x1xf32>
    %113 = vector.broadcast %112 : vector<8x1xf32> to vector<8x128xf32>
    %114 = arith.cmpf oeq, %106, %113 : vector<8x128xf32>
    %115 = arith.extui %114 : vector<8x128xi1> to vector<8x128xi32>
    %116 = arith.sitofp %115 : vector<8x128xi32> to vector<8x128xf32>
    %117 = arith.truncf %116 : vector<8x128xf32> to vector<8x128xbf16>
    %c0_61 = arith.constant 0 : index
    %c0_62 = arith.constant 0 : index
    %118 = vector.load %arg9[%c0_61, %c0_62] : memref<128x16xbf16, #tpu.memory_space<vmem>>, vector<128x16xbf16>
    %cst_63 = arith.constant dense<0.000000e+00> : vector<8x16xf32>
    %119 = tpu.matmul %117, %118, %cst_63 {dimension_numbers = #tpu.dot_dimension_numbers<[1], [0], [0], [1], [0, 0, 1, 1], [], []>} : vector<8x128xbf16>, vector<128x16xbf16>, vector<8x16xf32> -> vector<8x16xf32>
    %c0_64 = arith.constant 0 : index
    %c0_65 = arith.constant 0 : index
    %120 = vector.load %arg22[%c0_64, %c0_65] : memref<8x16xf32, #tpu.memory_space<vmem>>, vector<8x16xf32>
    tpu.vector_store %arg22[%c0_64, %c0_65], %119 {strides = array<i32>} : memref<8x16xf32, #tpu.memory_space<vmem>>, vector<8x16xf32>,
    %c6_i32_66 = arith.constant 6 : i32
    %121 = arith.muli %arg0, %c6_i32_66 : i32
    %c1_i32 = arith.constant 1 : i32
    %122 = arith.addi %121, %c1_i32 : i32
    %123 = arith.index_cast %122 : i32 to index
    %124 = memref.load %arg1[%123] : memref<6xi32, #tpu.memory_space<smem>>
    %c0_i32_67 = arith.constant 0 : i32
    %125 = arith.cmpi ne, %124, %c0_i32_67 : i32
    %cst_68 = arith.constant 1.000000e+00 : f32
    %cst_69 = arith.constant 0.000000e+00 : f32
    %126 = arith.select %125, %cst_68, %cst_69 : f32
    %c1 = arith.constant 1 : index
    %c0_70 = arith.constant 0 : index
    %c0_71 = arith.constant 0 : index
    %127 = vector.load %arg2[%c1, %c0_70, %c0_71] : memref<6x8x16xbf16, #tpu.memory_space<vmem>>, vector<1x8x16xbf16>
    %128 = vector.shape_cast %127 : vector<1x8x16xbf16> to vector<8x16xbf16>
    %129 = arith.extf %128 : vector<8x16xbf16> to vector<8x16xf32>
    %130 = vector.broadcast %126 : f32 to vector<8x16xf32>
    %131 = arith.mulf %130, %129 : vector<8x16xf32>
    %cst_72 = arith.constant 1.000000e+00 : f32
    %132 = arith.subf %cst_72, %126 : f32
    %c0_73 = arith.constant 0 : index
    %c0_74 = arith.constant 0 : index
    %133 = vector.load %arg22[%c0_73, %c0_74] : memref<8x16xf32, #tpu.memory_space<vmem>>, vector<8x16xf32>
    %134 = vector.broadcast %132 : f32 to vector<8x16xf32>
    %135 = arith.mulf %134, %133 : vector<8x16xf32>
    %136 = arith.addf %131, %135 : vector<8x16xf32>
    %137 = arith.truncf %136 : vector<8x16xf32> to vector<8x16xbf16>
    %c0_75 = arith.constant 0 : index
    %c0_76 = arith.constant 0 : index
    %138 = vector.load %arg20[%c0_75, %c0_76] : memref<8x32xf32, #tpu.memory_space<vmem>>, vector<8x32xf32>
    %c0_77 = arith.constant 0 : index
    %c0_78 = arith.constant 0 : index
    %139 = vector.load %arg5[%c0_77, %c0_78] : memref<1x32xf32, #tpu.memory_space<vmem>>, vector<1x32xf32>
    %140 = vector.broadcast %139 : vector<1x32xf32> to vector<8x32xf32>
    %141 = arith.mulf %138, %140 : vector<8x32xf32>
    %cst_79 = arith.constant dense<0.000000e+00> : vector<8xf32>
    %142 = vector.multi_reduction <add>, %141, %cst_79 [1] : vector<8x32xf32> to vector<8xf32>
    %143 = vector.shape_cast %142 : vector<8xf32> to vector<8x1xf32>
    %c0_80 = arith.constant 0 : index
    %c0_81 = arith.constant 0 : index
    %144 = vector.load %arg23[%c0_80, %c0_81] : memref<8x8xf32, #tpu.memory_space<vmem>>, vector<8x8xf32>
    %145 = vector.broadcast %143 : vector<8x1xf32> to vector<8x8xf32>
    %146 = arith.addf %144, %145 : vector<8x8xf32>
    %cst_82 = arith.constant 0.000000e+00 : f32
    %147 = vector.broadcast %cst_82 : f32 to vector<8x8xf32>
    %148 = arith.maximumf %146, %147 : vector<8x8xf32>
    %cst_83 = arith.constant dense<0xFF800000> : vector<8xf32>
    %149 = vector.multi_reduction <maximumf>, %148, %cst_83 [1] : vector<8x8xf32> to vector<8xf32>
    %150 = vector.shape_cast %149 : vector<8xf32> to vector<8x1xf32>
    %151 = vector.broadcast %150 : vector<8x1xf32> to vector<8x8xf32>
    %152 = arith.subf %148, %151 : vector<8x8xf32>
    %153 = math.exp %152 : vector<8x8xf32>
    %cst_84 = arith.constant dense<0.000000e+00> : vector<8xf32>
    %154 = vector.multi_reduction <add>, %153, %cst_84 [1] : vector<8x8xf32> to vector<8xf32>
    %155 = vector.shape_cast %154 : vector<8xf32> to vector<8x1xf32>
    %156 = tpu.reciprocal %155 {approx = true} : vector<8x1xf32> -> vector<8x1xf32>
    %157 = vector.broadcast %156 : vector<8x1xf32> to vector<8x8xf32>
    %158 = arith.mulf %153, %157 : vector<8x8xf32>
    %159 = arith.truncf %158 : vector<8x8xf32> to vector<8x8xbf16>
    %160 = vector.shape_cast %159 : vector<8x8xbf16> to vector<8x1x8xbf16>
    %c0_85 = arith.constant 0 : index
    %c0_86 = arith.constant 0 : index
    %c0_87 = arith.constant 0 : index
    %161 = vector.load %arg3[%c0_85, %c0_86, %c0_87] : memref<8x8x32xbf16, #tpu.memory_space<vmem>>, vector<8x8x32xbf16>
    "tpu.trace_start"() <{level = 10 : i32, message = "bqs,bsh->bqh"}> : () -> ()
    %cst_88 = arith.constant dense<0.000000e+00> : vector<8x1x32xf32>
    %162 = tpu.matmul %160, %161, %cst_88 {dimension_numbers = #tpu.dot_dimension_numbers<[2], [1], [1], [2], [0, 0, 0, 1, 1, 2], [0], [0]>} : vector<8x1x8xbf16>, vector<8x8x32xbf16>, vector<8x1x32xf32> -> vector<8x1x32xf32>
    "tpu.trace_stop"() : () -> ()
    %163 = vector.shape_cast %162 : vector<8x1x32xf32> to vector<8x32xf32>
    %c0_89 = arith.constant 0 : index
    %c0_90 = arith.constant 0 : index
    %c0_91 = arith.constant 0 : index
    %164 = vector.load %arg4[%c0_89, %c0_90, %c0_91] : memref<8x8x32xbf16, #tpu.memory_space<vmem>>, vector<8x8x32xbf16>
    "tpu.trace_start"() <{level = 10 : i32, message = "bqs,bsh->bqh"}> : () -> ()
    %cst_92 = arith.constant dense<0.000000e+00> : vector<8x1x32xf32>
    %165 = tpu.matmul %160, %164, %cst_92 {dimension_numbers = #tpu.dot_dimension_numbers<[2], [1], [1], [2], [0, 0, 0, 1, 1, 2], [0], [0]>} : vector<8x1x8xbf16>, vector<8x8x32xbf16>, vector<8x1x32xf32> -> vector<8x1x32xf32>
    "tpu.trace_stop"() : () -> ()
    %166 = vector.shape_cast %165 : vector<8x1x32xf32> to vector<8x32xf32>
    %167 = arith.truncf %163 : vector<8x32xf32> to vector<8x32xbf16>
    %c0_93 = arith.constant 0 : index
    %c0_94 = arith.constant 0 : index
    %168 = vector.load %arg10[%c0_93, %c0_94] : memref<32x128xbf16, #tpu.memory_space<vmem>>, vector<32x128xbf16>
    %cst_95 = arith.constant dense<0.000000e+00> : vector<8x128xf32>
    %169 = tpu.matmul %167, %168, %cst_95 {dimension_numbers = #tpu.dot_dimension_numbers<[1], [0], [0], [1], [0, 0, 1, 1], [], []>} : vector<8x32xbf16>, vector<32x128xbf16>, vector<8x128xf32> -> vector<8x128xf32>
    %170 = arith.truncf %166 : vector<8x32xf32> to vector<8x32xbf16>
    %c0_96 = arith.constant 0 : index
    %c0_97 = arith.constant 0 : index
    %171 = vector.load %arg11[%c0_96, %c0_97] : memref<32x128xbf16, #tpu.memory_space<vmem>>, vector<32x128xbf16>
    %cst_98 = arith.constant dense<0.000000e+00> : vector<8x128xf32>
    %172 = tpu.matmul %170, %171, %cst_98 {dimension_numbers = #tpu.dot_dimension_numbers<[1], [0], [0], [1], [0, 0, 1, 1], [], []>} : vector<8x32xbf16>, vector<32x128xbf16>, vector<8x128xf32> -> vector<8x128xf32>
    %173 = arith.addf %169, %172 : vector<8x128xf32>
    %c0_99 = arith.constant 0 : index
    %c0_100 = arith.constant 0 : index
    %174 = vector.load %arg12[%c0_99, %c0_100] : memref<16x128xbf16, #tpu.memory_space<vmem>>, vector<16x128xbf16>
    %cst_101 = arith.constant dense<0.000000e+00> : vector<8x128xf32>
    %175 = tpu.matmul %137, %174, %cst_101 {dimension_numbers = #tpu.dot_dimension_numbers<[1], [0], [0], [1], [0, 0, 1, 1], [], []>} : vector<8x16xbf16>, vector<16x128xbf16>, vector<8x128xf32> -> vector<8x128xf32>
    %176 = arith.addf %173, %175 : vector<8x128xf32>
    %177 = arith.truncf %138 : vector<8x32xf32> to vector<8x32xbf16>
    %c0_102 = arith.constant 0 : index
    %c0_103 = arith.constant 0 : index
    %178 = vector.load %arg13[%c0_102, %c0_103] : memref<32x128xbf16, #tpu.memory_space<vmem>>, vector<32x128xbf16>
    %cst_104 = arith.constant dense<0.000000e+00> : vector<8x128xf32>
    %179 = tpu.matmul %177, %178, %cst_104 {dimension_numbers = #tpu.dot_dimension_numbers<[1], [0], [0], [1], [0, 0, 1, 1], [], []>} : vector<8x32xbf16>, vector<32x128xbf16>, vector<8x128xf32> -> vector<8x128xf32>
    %180 = arith.addf %176, %179 : vector<8x128xf32>
    %c0_105 = arith.constant 0 : index
    %c0_106 = arith.constant 0 : index
    %181 = vector.load %arg14[%c0_105, %c0_106] : memref<1x128xf32, #tpu.memory_space<vmem>>, vector<1x128xf32>
    %182 = vector.broadcast %181 : vector<1x128xf32> to vector<8x128xf32>
    %183 = arith.addf %180, %182 : vector<8x128xf32>
    %184 = vector.extract_strided_slice %183 {offsets = [0, 0], sizes = [8, 32], strides = [1, 1]} : vector<8x128xf32> to vector<8x32xf32>
    %185 = arith.negf %184 : vector<8x32xf32>
    %186 = math.exp %185 : vector<8x32xf32>
    %cst_107 = arith.constant 1.000000e+00 : f32
    %187 = vector.broadcast %cst_107 : f32 to vector<8x32xf32>
    %188 = arith.addf %187, %186 : vector<8x32xf32>
    %189 = arith.divf %187, %188 : vector<8x32xf32>
    %190 = vector.extract_strided_slice %183 {offsets = [0, 32], sizes = [8, 32], strides = [1, 1]} : vector<8x128xf32> to vector<8x32xf32>
    %191 = arith.negf %190 : vector<8x32xf32>
    %192 = math.exp %191 : vector<8x32xf32>
    %cst_108 = arith.constant 1.000000e+00 : f32
    %193 = vector.broadcast %cst_108 : f32 to vector<8x32xf32>
    %194 = arith.addf %193, %192 : vector<8x32xf32>
    %195 = arith.divf %193, %194 : vector<8x32xf32>
    %196 = vector.extract_strided_slice %183 {offsets = [0, 64], sizes = [8, 32], strides = [1, 1]} : vector<8x128xf32> to vector<8x32xf32>
    %197 = math.tanh %196 : vector<8x32xf32>
    %198 = vector.extract_strided_slice %183 {offsets = [0, 96], sizes = [8, 32], strides = [1, 1]} : vector<8x128xf32> to vector<8x32xf32>
    %199 = arith.negf %198 : vector<8x32xf32>
    %200 = math.exp %199 : vector<8x32xf32>
    %cst_109 = arith.constant 1.000000e+00 : f32
    %201 = vector.broadcast %cst_109 : f32 to vector<8x32xf32>
    %202 = arith.addf %201, %200 : vector<8x32xf32>
    %203 = arith.divf %201, %202 : vector<8x32xf32>
    %c0_110 = arith.constant 0 : index
    %c0_111 = arith.constant 0 : index
    %204 = vector.load %arg21[%c0_110, %c0_111] : memref<8x32xf32, #tpu.memory_space<vmem>>, vector<8x32xf32>
    %205 = arith.mulf %195, %204 : vector<8x32xf32>
    %206 = arith.mulf %189, %197 : vector<8x32xf32>
    %207 = arith.addf %205, %206 : vector<8x32xf32>
    %208 = math.tanh %207 : vector<8x32xf32>
    %209 = arith.mulf %203, %208 : vector<8x32xf32>
    %c0_112 = arith.constant 0 : index
    %c0_113 = arith.constant 0 : index
    %210 = vector.load %arg20[%c0_112, %c0_113] : memref<8x32xf32, #tpu.memory_space<vmem>>, vector<8x32xf32>
    tpu.vector_store %arg20[%c0_112, %c0_113], %209 {strides = array<i32>} : memref<8x32xf32, #tpu.memory_space<vmem>>, vector<8x32xf32>,
    %c0_114 = arith.constant 0 : index
    %c0_115 = arith.constant 0 : index
    %211 = vector.load %arg21[%c0_114, %c0_115] : memref<8x32xf32, #tpu.memory_space<vmem>>, vector<8x32xf32>
    tpu.vector_store %arg21[%c0_114, %c0_115], %207 {strides = array<i32>} : memref<8x32xf32, #tpu.memory_space<vmem>>, vector<8x32xf32>,
    %212 = arith.truncf %209 : vector<8x32xf32> to vector<8x32xbf16>
    %c0_116 = arith.constant 0 : index
    %c0_117 = arith.constant 0 : index
    %213 = vector.load %arg15[%c0_116, %c0_117] : memref<32x128xbf16, #tpu.memory_space<vmem>>, vector<32x128xbf16>
    %cst_118 = arith.constant dense<0.000000e+00> : vector<8x128xf32>
    %214 = tpu.matmul %212, %213, %cst_118 {dimension_numbers = #tpu.dot_dimension_numbers<[1], [0], [0], [1], [0, 0, 1, 1], [], []>} : vector<8x32xbf16>, vector<32x128xbf16>, vector<8x128xf32> -> vector<8x128xf32>
    %c0_119 = arith.constant 0 : index
    %c0_120 = arith.constant 0 : index
    %215 = vector.load %arg16[%c0_119, %c0_120] : memref<1x128xf32, #tpu.memory_space<vmem>>, vector<1x128xf32>
    %216 = vector.broadcast %215 : vector<1x128xf32> to vector<8x128xf32>
    %217 = arith.addf %214, %216 : vector<8x128xf32>
    %c1_121 = arith.constant 1 : index
    %c0_122 = arith.constant 0 : index
    %c0_123 = arith.constant 0 : index
    %218 = vector.load %arg19[%c1_121, %c0_122, %c0_123] : memref<6x8x128xf32, #tpu.memory_space<vmem>>, vector<1x8x128xf32>
    %219 = vector.shape_cast %218 : vector<1x8x128xf32> to vector<8x128xf32>
    %220 = vector.shape_cast %217 : vector<8x128xf32> to vector<1x8x128xf32>
    tpu.vector_store %arg19[%c1_121, %c0_122, %c0_123], %220 {strides = array<i32>} : memref<6x8x128xf32, #tpu.memory_space<vmem>>, vector<1x8x128xf32>,
    %cst_124 = arith.constant dense<0xFF800000> : vector<8xf32>
    %221 = vector.multi_reduction <maximumf>, %217, %cst_124 [1] : vector<8x128xf32> to vector<8xf32>
    %222 = vector.shape_cast %221 : vector<8xf32> to vector<8x1xf32>
    %223 = tpu.iota {dimensions = array<i32: 1>} : vector<8x128xi32>
    %224 = arith.sitofp %223 : vector<8x128xi32> to vector<8x128xf32>
    %225 = vector.broadcast %222 : vector<8x1xf32> to vector<8x128xf32>
    %226 = arith.cmpf oeq, %217, %225 : vector<8x128xf32>
    %cst_125 = arith.constant 1.280000e+02 : f32
    %227 = vector.broadcast %cst_125 : f32 to vector<8x128xf32>
    %228 = arith.select %226, %224, %227 : vector<8x128xi1>, vector<8x128xf32>
    %cst_126 = arith.constant dense<0x7F800000> : vector<8xf32>
    %229 = vector.multi_reduction <minimumf>, %228, %cst_126 [1] : vector<8x128xf32> to vector<8xf32>
    %230 = vector.shape_cast %229 : vector<8xf32> to vector<8x1xf32>
    %231 = vector.broadcast %230 : vector<8x1xf32> to vector<8x128xf32>
    %232 = arith.cmpf oeq, %224, %231 : vector<8x128xf32>
    %233 = arith.extui %232 : vector<8x128xi1> to vector<8x128xi32>
    %234 = arith.sitofp %233 : vector<8x128xi32> to vector<8x128xf32>
    %235 = arith.truncf %234 : vector<8x128xf32> to vector<8x128xbf16>
    %c0_127 = arith.constant 0 : index
    %c0_128 = arith.constant 0 : index
    %236 = vector.load %arg9[%c0_127, %c0_128] : memref<128x16xbf16, #tpu.memory_space<vmem>>, vector<128x16xbf16>
    %cst_129 = arith.constant dense<0.000000e+00> : vector<8x16xf32>
    %237 = tpu.matmul %235, %236, %cst_129 {dimension_numbers = #tpu.dot_dimension_numbers<[1], [0], [0], [1], [0, 0, 1, 1], [], []>} : vector<8x128xbf16>, vector<128x16xbf16>, vector<8x16xf32> -> vector<8x16xf32>
    %c0_130 = arith.constant 0 : index
    %c0_131 = arith.constant 0 : index
    %238 = vector.load %arg22[%c0_130, %c0_131] : memref<8x16xf32, #tpu.memory_space<vmem>>, vector<8x16xf32>
    tpu.vector_store %arg22[%c0_130, %c0_131], %237 {strides = array<i32>} : memref<8x16xf32, #tpu.memory_space<vmem>>, vector<8x16xf32>,
    %c6_i32_132 = arith.constant 6 : i32
    %239 = arith.muli %arg0, %c6_i32_132 : i32
    %c2_i32 = arith.constant 2 : i32
    %240 = arith.addi %239, %c2_i32 : i32
    %241 = arith.index_cast %240 : i32 to index
    %242 = memref.load %arg1[%241] : memref<6xi32, #tpu.memory_space<smem>>
    %c0_i32_133 = arith.constant 0 : i32
    %243 = arith.cmpi ne, %242, %c0_i32_133 : i32
    %cst_134 = arith.constant 1.000000e+00 : f32
    %cst_135 = arith.constant 0.000000e+00 : f32
    %244 = arith.select %243, %cst_134, %cst_135 : f32
    %c2 = arith.constant 2 : index
    %c0_136 = arith.constant 0 : index
    %c0_137 = arith.constant 0 : index
    %245 = vector.load %arg2[%c2, %c0_136, %c0_137] : memref<6x8x16xbf16, #tpu.memory_space<vmem>>, vector<1x8x16xbf16>
    %246 = vector.shape_cast %245 : vector<1x8x16xbf16> to vector<8x16xbf16>
    %247 = arith.extf %246 : vector<8x16xbf16> to vector<8x16xf32>
    %248 = vector.broadcast %244 : f32 to vector<8x16xf32>
    %249 = arith.mulf %248, %247 : vector<8x16xf32>
    %cst_138 = arith.constant 1.000000e+00 : f32
    %250 = arith.subf %cst_138, %244 : f32
    %c0_139 = arith.constant 0 : index
    %c0_140 = arith.constant 0 : index
    %251 = vector.load %arg22[%c0_139, %c0_140] : memref<8x16xf32, #tpu.memory_space<vmem>>, vector<8x16xf32>
    %252 = vector.broadcast %250 : f32 to vector<8x16xf32>
    %253 = arith.mulf %252, %251 : vector<8x16xf32>
    %254 = arith.addf %249, %253 : vector<8x16xf32>
    %255 = arith.truncf %254 : vector<8x16xf32> to vector<8x16xbf16>
    %c0_141 = arith.constant 0 : index
    %c0_142 = arith.constant 0 : index
    %256 = vector.load %arg20[%c0_141, %c0_142] : memref<8x32xf32, #tpu.memory_space<vmem>>, vector<8x32xf32>
    %c0_143 = arith.constant 0 : index
    %c0_144 = arith.constant 0 : index
    %257 = vector.load %arg5[%c0_143, %c0_144] : memref<1x32xf32, #tpu.memory_space<vmem>>, vector<1x32xf32>
    %258 = vector.broadcast %257 : vector<1x32xf32> to vector<8x32xf32>
    %259 = arith.mulf %256, %258 : vector<8x32xf32>
    %cst_145 = arith.constant dense<0.000000e+00> : vector<8xf32>
    %260 = vector.multi_reduction <add>, %259, %cst_145 [1] : vector<8x32xf32> to vector<8xf32>
    %261 = vector.shape_cast %260 : vector<8xf32> to vector<8x1xf32>
    %c0_146 = arith.constant 0 : index
    %c0_147 = arith.constant 0 : index
    %262 = vector.load %arg23[%c0_146, %c0_147] : memref<8x8xf32, #tpu.memory_space<vmem>>, vector<8x8xf32>
    %263 = vector.broadcast %261 : vector<8x1xf32> to vector<8x8xf32>
    %264 = arith.addf %262, %263 : vector<8x8xf32>
    %cst_148 = arith.constant 0.000000e+00 : f32
    %265 = vector.broadcast %cst_148 : f32 to vector<8x8xf32>
    %266 = arith.maximumf %264, %265 : vector<8x8xf32>
    %cst_149 = arith.constant dense<0xFF800000> : vector<8xf32>
    %267 = vector.multi_reduction <maximumf>, %266, %cst_149 [1] : vector<8x8xf32> to vector<8xf32>
    %268 = vector.shape_cast %267 : vector<8xf32> to vector<8x1xf32>
    %269 = vector.broadcast %268 : vector<8x1xf32> to vector<8x8xf32>
    %270 = arith.subf %266, %269 : vector<8x8xf32>
    %271 = math.exp %270 : vector<8x8xf32>
    %cst_150 = arith.constant dense<0.000000e+00> : vector<8xf32>
    %272 = vector.multi_reduction <add>, %271, %cst_150 [1] : vector<8x8xf32> to vector<8xf32>
    %273 = vector.shape_cast %272 : vector<8xf32> to vector<8x1xf32>
    %274 = tpu.reciprocal %273 {approx = true} : vector<8x1xf32> -> vector<8x1xf32>
    %275 = vector.broadcast %274 : vector<8x1xf32> to vector<8x8xf32>
    %276 = arith.mulf %271, %275 : vector<8x8xf32>
    %277 = arith.truncf %276 : vector<8x8xf32> to vector<8x8xbf16>
    %278 = vector.shape_cast %277 : vector<8x8xbf16> to vector<8x1x8xbf16>
    %c0_151 = arith.constant 0 : index
    %c0_152 = arith.constant 0 : index
    %c0_153 = arith.constant 0 : index
    %279 = vector.load %arg3[%c0_151, %c0_152, %c0_153] : memref<8x8x32xbf16, #tpu.memory_space<vmem>>, vector<8x8x32xbf16>
    "tpu.trace_start"() <{level = 10 : i32, message = "bqs,bsh->bqh"}> : () -> ()
    %cst_154 = arith.constant dense<0.000000e+00> : vector<8x1x32xf32>
    %280 = tpu.matmul %278, %279, %cst_154 {dimension_numbers = #tpu.dot_dimension_numbers<[2], [1], [1], [2], [0, 0, 0, 1, 1, 2], [0], [0]>} : vector<8x1x8xbf16>, vector<8x8x32xbf16>, vector<8x1x32xf32> -> vector<8x1x32xf32>
    "tpu.trace_stop"() : () -> ()
    %281 = vector.shape_cast %280 : vector<8x1x32xf32> to vector<8x32xf32>
    %c0_155 = arith.constant 0 : index
    %c0_156 = arith.constant 0 : index
    %c0_157 = arith.constant 0 : index
    %282 = vector.load %arg4[%c0_155, %c0_156, %c0_157] : memref<8x8x32xbf16, #tpu.memory_space<vmem>>, vector<8x8x32xbf16>
    "tpu.trace_start"() <{level = 10 : i32, message = "bqs,bsh->bqh"}> : () -> ()
    %cst_158 = arith.constant dense<0.000000e+00> : vector<8x1x32xf32>
    %283 = tpu.matmul %278, %282, %cst_158 {dimension_numbers = #tpu.dot_dimension_numbers<[2], [1], [1], [2], [0, 0, 0, 1, 1, 2], [0], [0]>} : vector<8x1x8xbf16>, vector<8x8x32xbf16>, vector<8x1x32xf32> -> vector<8x1x32xf32>
    "tpu.trace_stop"() : () -> ()
    %284 = vector.shape_cast %283 : vector<8x1x32xf32> to vector<8x32xf32>
    %285 = arith.truncf %281 : vector<8x32xf32> to vector<8x32xbf16>
    %c0_159 = arith.constant 0 : index
    %c0_160 = arith.constant 0 : index
    %286 = vector.load %arg10[%c0_159, %c0_160] : memref<32x128xbf16, #tpu.memory_space<vmem>>, vector<32x128xbf16>
    %cst_161 = arith.constant dense<0.000000e+00> : vector<8x128xf32>
    %287 = tpu.matmul %285, %286, %cst_161 {dimension_numbers = #tpu.dot_dimension_numbers<[1], [0], [0], [1], [0, 0, 1, 1], [], []>} : vector<8x32xbf16>, vector<32x128xbf16>, vector<8x128xf32> -> vector<8x128xf32>
    %288 = arith.truncf %284 : vector<8x32xf32> to vector<8x32xbf16>
    %c0_162 = arith.constant 0 : index
    %c0_163 = arith.constant 0 : index
    %289 = vector.load %arg11[%c0_162, %c0_163] : memref<32x128xbf16, #tpu.memory_space<vmem>>, vector<32x128xbf16>
    %cst_164 = arith.constant dense<0.000000e+00> : vector<8x128xf32>
    %290 = tpu.matmul %288, %289, %cst_164 {dimension_numbers = #tpu.dot_dimension_numbers<[1], [0], [0], [1], [0, 0, 1, 1], [], []>} : vector<8x32xbf16>, vector<32x128xbf16>, vector<8x128xf32> -> vector<8x128xf32>
    %291 = arith.addf %287, %290 : vector<8x128xf32>
    %c0_165 = arith.constant 0 : index
    %c0_166 = arith.constant 0 : index
    %292 = vector.load %arg12[%c0_165, %c0_166] : memref<16x128xbf16, #tpu.memory_space<vmem>>, vector<16x128xbf16>
    %cst_167 = arith.constant dense<0.000000e+00> : vector<8x128xf32>
    %293 = tpu.matmul %255, %292, %cst_167 {dimension_numbers = #tpu.dot_dimension_numbers<[1], [0], [0], [1], [0, 0, 1, 1], [], []>} : vector<8x16xbf16>, vector<16x128xbf16>, vector<8x128xf32> -> vector<8x128xf32>
    %294 = arith.addf %291, %293 : vector<8x128xf32>
    %295 = arith.truncf %256 : vector<8x32xf32> to vector<8x32xbf16>
    %c0_168 = arith.constant 0 : index
    %c0_169 = arith.constant 0 : index
    %296 = vector.load %arg13[%c0_168, %c0_169] : memref<32x128xbf16, #tpu.memory_space<vmem>>, vector<32x128xbf16>
    %cst_170 = arith.constant dense<0.000000e+00> : vector<8x128xf32>
    %297 = tpu.matmul %295, %296, %cst_170 {dimension_numbers = #tpu.dot_dimension_numbers<[1], [0], [0], [1], [0, 0, 1, 1], [], []>} : vector<8x32xbf16>, vector<32x128xbf16>, vector<8x128xf32> -> vector<8x128xf32>
    %298 = arith.addf %294, %297 : vector<8x128xf32>
    %c0_171 = arith.constant 0 : index
    %c0_172 = arith.constant 0 : index
    %299 = vector.load %arg14[%c0_171, %c0_172] : memref<1x128xf32, #tpu.memory_space<vmem>>, vector<1x128xf32>
    %300 = vector.broadcast %299 : vector<1x128xf32> to vector<8x128xf32>
    %301 = arith.addf %298, %300 : vector<8x128xf32>
    %302 = vector.extract_strided_slice %301 {offsets = [0, 0], sizes = [8, 32], strides = [1, 1]} : vector<8x128xf32> to vector<8x32xf32>
    %303 = arith.negf %302 : vector<8x32xf32>
    %304 = math.exp %303 : vector<8x32xf32>
    %cst_173 = arith.constant 1.000000e+00 : f32
    %305 = vector.broadcast %cst_173 : f32 to vector<8x32xf32>
    %306 = arith.addf %305, %304 : vector<8x32xf32>
    %307 = arith.divf %305, %306 : vector<8x32xf32>
    %308 = vector.extract_strided_slice %301 {offsets = [0, 32], sizes = [8, 32], strides = [1, 1]} : vector<8x128xf32> to vector<8x32xf32>
    %309 = arith.negf %308 : vector<8x32xf32>
    %310 = math.exp %309 : vector<8x32xf32>
    %cst_174 = arith.constant 1.000000e+00 : f32
    %311 = vector.broadcast %cst_174 : f32 to vector<8x32xf32>
    %312 = arith.addf %311, %310 : vector<8x32xf32>
    %313 = arith.divf %311, %312 : vector<8x32xf32>
    %314 = vector.extract_strided_slice %301 {offsets = [0, 64], sizes = [8, 32], strides = [1, 1]} : vector<8x128xf32> to vector<8x32xf32>
    %315 = math.tanh %314 : vector<8x32xf32>
    %316 = vector.extract_strided_slice %301 {offsets = [0, 96], sizes = [8, 32], strides = [1, 1]} : vector<8x128xf32> to vector<8x32xf32>
    %317 = arith.negf %316 : vector<8x32xf32>
    %318 = math.exp %317 : vector<8x32xf32>
    %cst_175 = arith.constant 1.000000e+00 : f32
    %319 = vector.broadcast %cst_175 : f32 to vector<8x32xf32>
    %320 = arith.addf %319, %318 : vector<8x32xf32>
    %321 = arith.divf %319, %320 : vector<8x32xf32>
    %c0_176 = arith.constant 0 : index
    %c0_177 = arith.constant 0 : index
    %322 = vector.load %arg21[%c0_176, %c0_177] : memref<8x32xf32, #tpu.memory_space<vmem>>, vector<8x32xf32>
    %323 = arith.mulf %313, %322 : vector<8x32xf32>
    %324 = arith.mulf %307, %315 : vector<8x32xf32>
    %325 = arith.addf %323, %324 : vector<8x32xf32>
    %326 = math.tanh %325 : vector<8x32xf32>
    %327 = arith.mulf %321, %326 : vector<8x32xf32>
    %c0_178 = arith.constant 0 : index
    %c0_179 = arith.constant 0 : index
    %328 = vector.load %arg20[%c0_178, %c0_179] : memref<8x32xf32, #tpu.memory_space<vmem>>, vector<8x32xf32>
    tpu.vector_store %arg20[%c0_178, %c0_179], %327 {strides = array<i32>} : memref<8x32xf32, #tpu.memory_space<vmem>>, vector<8x32xf32>,
    %c0_180 = arith.constant 0 : index
    %c0_181 = arith.constant 0 : index
    %329 = vector.load %arg21[%c0_180, %c0_181] : memref<8x32xf32, #tpu.memory_space<vmem>>, vector<8x32xf32>
    tpu.vector_store %arg21[%c0_180, %c0_181], %325 {strides = array<i32>} : memref<8x32xf32, #tpu.memory_space<vmem>>, vector<8x32xf32>,
    %330 = arith.truncf %327 : vector<8x32xf32> to vector<8x32xbf16>
    %c0_182 = arith.constant 0 : index
    %c0_183 = arith.constant 0 : index
    %331 = vector.load %arg15[%c0_182, %c0_183] : memref<32x128xbf16, #tpu.memory_space<vmem>>, vector<32x128xbf16>
    %cst_184 = arith.constant dense<0.000000e+00> : vector<8x128xf32>
    %332 = tpu.matmul %330, %331, %cst_184 {dimension_numbers = #tpu.dot_dimension_numbers<[1], [0], [0], [1], [0, 0, 1, 1], [], []>} : vector<8x32xbf16>, vector<32x128xbf16>, vector<8x128xf32> -> vector<8x128xf32>
    %c0_185 = arith.constant 0 : index
    %c0_186 = arith.constant 0 : index
    %333 = vector.load %arg16[%c0_185, %c0_186] : memref<1x128xf32, #tpu.memory_space<vmem>>, vector<1x128xf32>
    %334 = vector.broadcast %333 : vector<1x128xf32> to vector<8x128xf32>
    %335 = arith.addf %332, %334 : vector<8x128xf32>
    %c2_187 = arith.constant 2 : index
    %c0_188 = arith.constant 0 : index
    %c0_189 = arith.constant 0 : index
    %336 = vector.load %arg19[%c2_187, %c0_188, %c0_189] : memref<6x8x128xf32, #tpu.memory_space<vmem>>, vector<1x8x128xf32>
    %337 = vector.shape_cast %336 : vector<1x8x128xf32> to vector<8x128xf32>
    %338 = vector.shape_cast %335 : vector<8x128xf32> to vector<1x8x128xf32>
    tpu.vector_store %arg19[%c2_187, %c0_188, %c0_189], %338 {strides = array<i32>} : memref<6x8x128xf32, #tpu.memory_space<vmem>>, vector<1x8x128xf32>,
    %cst_190 = arith.constant dense<0xFF800000> : vector<8xf32>
    %339 = vector.multi_reduction <maximumf>, %335, %cst_190 [1] : vector<8x128xf32> to vector<8xf32>
    %340 = vector.shape_cast %339 : vector<8xf32> to vector<8x1xf32>
    %341 = tpu.iota {dimensions = array<i32: 1>} : vector<8x128xi32>
    %342 = arith.sitofp %341 : vector<8x128xi32> to vector<8x128xf32>
    %343 = vector.broadcast %340 : vector<8x1xf32> to vector<8x128xf32>
    %344 = arith.cmpf oeq, %335, %343 : vector<8x128xf32>
    %cst_191 = arith.constant 1.280000e+02 : f32
    %345 = vector.broadcast %cst_191 : f32 to vector<8x128xf32>
    %346 = arith.select %344, %342, %345 : vector<8x128xi1>, vector<8x128xf32>
    %cst_192 = arith.constant dense<0x7F800000> : vector<8xf32>
    %347 = vector.multi_reduction <minimumf>, %346, %cst_192 [1] : vector<8x128xf32> to vector<8xf32>
    %348 = vector.shape_cast %347 : vector<8xf32> to vector<8x1xf32>
    %349 = vector.broadcast %348 : vector<8x1xf32> to vector<8x128xf32>
    %350 = arith.cmpf oeq, %342, %349 : vector<8x128xf32>
    %351 = arith.extui %350 : vector<8x128xi1> to vector<8x128xi32>
    %352 = arith.sitofp %351 : vector<8x128xi32> to vector<8x128xf32>
    %353 = arith.truncf %352 : vector<8x128xf32> to vector<8x128xbf16>
    %c0_193 = arith.constant 0 : index
    %c0_194 = arith.constant 0 : index
    %354 = vector.load %arg9[%c0_193, %c0_194] : memref<128x16xbf16, #tpu.memory_space<vmem>>, vector<128x16xbf16>
    %cst_195 = arith.constant dense<0.000000e+00> : vector<8x16xf32>
    %355 = tpu.matmul %353, %354, %cst_195 {dimension_numbers = #tpu.dot_dimension_numbers<[1], [0], [0], [1], [0, 0, 1, 1], [], []>} : vector<8x128xbf16>, vector<128x16xbf16>, vector<8x16xf32> -> vector<8x16xf32>
    %c0_196 = arith.constant 0 : index
    %c0_197 = arith.constant 0 : index
    %356 = vector.load %arg22[%c0_196, %c0_197] : memref<8x16xf32, #tpu.memory_space<vmem>>, vector<8x16xf32>
    tpu.vector_store %arg22[%c0_196, %c0_197], %355 {strides = array<i32>} : memref<8x16xf32, #tpu.memory_space<vmem>>, vector<8x16xf32>,
    %c6_i32_198 = arith.constant 6 : i32
    %357 = arith.muli %arg0, %c6_i32_198 : i32
    %c3_i32 = arith.constant 3 : i32
    %358 = arith.addi %357, %c3_i32 : i32
    %359 = arith.index_cast %358 : i32 to index
    %360 = memref.load %arg1[%359] : memref<6xi32, #tpu.memory_space<smem>>
    %c0_i32_199 = arith.constant 0 : i32
    %361 = arith.cmpi ne, %360, %c0_i32_199 : i32
    %cst_200 = arith.constant 1.000000e+00 : f32
    %cst_201 = arith.constant 0.000000e+00 : f32
    %362 = arith.select %361, %cst_200, %cst_201 : f32
    %c3 = arith.constant 3 : index
    %c0_202 = arith.constant 0 : index
    %c0_203 = arith.constant 0 : index
    %363 = vector.load %arg2[%c3, %c0_202, %c0_203] : memref<6x8x16xbf16, #tpu.memory_space<vmem>>, vector<1x8x16xbf16>
    %364 = vector.shape_cast %363 : vector<1x8x16xbf16> to vector<8x16xbf16>
    %365 = arith.extf %364 : vector<8x16xbf16> to vector<8x16xf32>
    %366 = vector.broadcast %362 : f32 to vector<8x16xf32>
    %367 = arith.mulf %366, %365 : vector<8x16xf32>
    %cst_204 = arith.constant 1.000000e+00 : f32
    %368 = arith.subf %cst_204, %362 : f32
    %c0_205 = arith.constant 0 : index
    %c0_206 = arith.constant 0 : index
    %369 = vector.load %arg22[%c0_205, %c0_206] : memref<8x16xf32, #tpu.memory_space<vmem>>, vector<8x16xf32>
    %370 = vector.broadcast %368 : f32 to vector<8x16xf32>
    %371 = arith.mulf %370, %369 : vector<8x16xf32>
    %372 = arith.addf %367, %371 : vector<8x16xf32>
    %373 = arith.truncf %372 : vector<8x16xf32> to vector<8x16xbf16>
    %c0_207 = arith.constant 0 : index
    %c0_208 = arith.constant 0 : index
    %374 = vector.load %arg20[%c0_207, %c0_208] : memref<8x32xf32, #tpu.memory_space<vmem>>, vector<8x32xf32>
    %c0_209 = arith.constant 0 : index
    %c0_210 = arith.constant 0 : index
    %375 = vector.load %arg5[%c0_209, %c0_210] : memref<1x32xf32, #tpu.memory_space<vmem>>, vector<1x32xf32>
    %376 = vector.broadcast %375 : vector<1x32xf32> to vector<8x32xf32>
    %377 = arith.mulf %374, %376 : vector<8x32xf32>
    %cst_211 = arith.constant dense<0.000000e+00> : vector<8xf32>
    %378 = vector.multi_reduction <add>, %377, %cst_211 [1] : vector<8x32xf32> to vector<8xf32>
    %379 = vector.shape_cast %378 : vector<8xf32> to vector<8x1xf32>
    %c0_212 = arith.constant 0 : index
    %c0_213 = arith.constant 0 : index
    %380 = vector.load %arg23[%c0_212, %c0_213] : memref<8x8xf32, #tpu.memory_space<vmem>>, vector<8x8xf32>
    %381 = vector.broadcast %379 : vector<8x1xf32> to vector<8x8xf32>
    %382 = arith.addf %380, %381 : vector<8x8xf32>
    %cst_214 = arith.constant 0.000000e+00 : f32
    %383 = vector.broadcast %cst_214 : f32 to vector<8x8xf32>
    %384 = arith.maximumf %382, %383 : vector<8x8xf32>
    %cst_215 = arith.constant dense<0xFF800000> : vector<8xf32>
    %385 = vector.multi_reduction <maximumf>, %384, %cst_215 [1] : vector<8x8xf32> to vector<8xf32>
    %386 = vector.shape_cast %385 : vector<8xf32> to vector<8x1xf32>
    %387 = vector.broadcast %386 : vector<8x1xf32> to vector<8x8xf32>
    %388 = arith.subf %384, %387 : vector<8x8xf32>
    %389 = math.exp %388 : vector<8x8xf32>
    %cst_216 = arith.constant dense<0.000000e+00> : vector<8xf32>
    %390 = vector.multi_reduction <add>, %389, %cst_216 [1] : vector<8x8xf32> to vector<8xf32>
    %391 = vector.shape_cast %390 : vector<8xf32> to vector<8x1xf32>
    %392 = tpu.reciprocal %391 {approx = true} : vector<8x1xf32> -> vector<8x1xf32>
    %393 = vector.broadcast %392 : vector<8x1xf32> to vector<8x8xf32>
    %394 = arith.mulf %389, %393 : vector<8x8xf32>
    %395 = arith.truncf %394 : vector<8x8xf32> to vector<8x8xbf16>
    %396 = vector.shape_cast %395 : vector<8x8xbf16> to vector<8x1x8xbf16>
    %c0_217 = arith.constant 0 : index
    %c0_218 = arith.constant 0 : index
    %c0_219 = arith.constant 0 : index
    %397 = vector.load %arg3[%c0_217, %c0_218, %c0_219] : memref<8x8x32xbf16, #tpu.memory_space<vmem>>, vector<8x8x32xbf16>
    "tpu.trace_start"() <{level = 10 : i32, message = "bqs,bsh->bqh"}> : () -> ()
    %cst_220 = arith.constant dense<0.000000e+00> : vector<8x1x32xf32>
    %398 = tpu.matmul %396, %397, %cst_220 {dimension_numbers = #tpu.dot_dimension_numbers<[2], [1], [1], [2], [0, 0, 0, 1, 1, 2], [0], [0]>} : vector<8x1x8xbf16>, vector<8x8x32xbf16>, vector<8x1x32xf32> -> vector<8x1x32xf32>
    "tpu.trace_stop"() : () -> ()
    %399 = vector.shape_cast %398 : vector<8x1x32xf32> to vector<8x32xf32>
    %c0_221 = arith.constant 0 : index
    %c0_222 = arith.constant 0 : index
    %c0_223 = arith.constant 0 : index
    %400 = vector.load %arg4[%c0_221, %c0_222, %c0_223] : memref<8x8x32xbf16, #tpu.memory_space<vmem>>, vector<8x8x32xbf16>
    "tpu.trace_start"() <{level = 10 : i32, message = "bqs,bsh->bqh"}> : () -> ()
    %cst_224 = arith.constant dense<0.000000e+00> : vector<8x1x32xf32>
    %401 = tpu.matmul %396, %400, %cst_224 {dimension_numbers = #tpu.dot_dimension_numbers<[2], [1], [1], [2], [0, 0, 0, 1, 1, 2], [0], [0]>} : vector<8x1x8xbf16>, vector<8x8x32xbf16>, vector<8x1x32xf32> -> vector<8x1x32xf32>
    "tpu.trace_stop"() : () -> ()
    %402 = vector.shape_cast %401 : vector<8x1x32xf32> to vector<8x32xf32>
    %403 = arith.truncf %399 : vector<8x32xf32> to vector<8x32xbf16>
    %c0_225 = arith.constant 0 : index
    %c0_226 = arith.constant 0 : index
    %404 = vector.load %arg10[%c0_225, %c0_226] : memref<32x128xbf16, #tpu.memory_space<vmem>>, vector<32x128xbf16>
    %cst_227 = arith.constant dense<0.000000e+00> : vector<8x128xf32>
    %405 = tpu.matmul %403, %404, %cst_227 {dimension_numbers = #tpu.dot_dimension_numbers<[1], [0], [0], [1], [0, 0, 1, 1], [], []>} : vector<8x32xbf16>, vector<32x128xbf16>, vector<8x128xf32> -> vector<8x128xf32>
    %406 = arith.truncf %402 : vector<8x32xf32> to vector<8x32xbf16>
    %c0_228 = arith.constant 0 : index
    %c0_229 = arith.constant 0 : index
    %407 = vector.load %arg11[%c0_228, %c0_229] : memref<32x128xbf16, #tpu.memory_space<vmem>>, vector<32x128xbf16>
    %cst_230 = arith.constant dense<0.000000e+00> : vector<8x128xf32>
    %408 = tpu.matmul %406, %407, %cst_230 {dimension_numbers = #tpu.dot_dimension_numbers<[1], [0], [0], [1], [0, 0, 1, 1], [], []>} : vector<8x32xbf16>, vector<32x128xbf16>, vector<8x128xf32> -> vector<8x128xf32>
    %409 = arith.addf %405, %408 : vector<8x128xf32>
    %c0_231 = arith.constant 0 : index
    %c0_232 = arith.constant 0 : index
    %410 = vector.load %arg12[%c0_231, %c0_232] : memref<16x128xbf16, #tpu.memory_space<vmem>>, vector<16x128xbf16>
    %cst_233 = arith.constant dense<0.000000e+00> : vector<8x128xf32>
    %411 = tpu.matmul %373, %410, %cst_233 {dimension_numbers = #tpu.dot_dimension_numbers<[1], [0], [0], [1], [0, 0, 1, 1], [], []>} : vector<8x16xbf16>, vector<16x128xbf16>, vector<8x128xf32> -> vector<8x128xf32>
    %412 = arith.addf %409, %411 : vector<8x128xf32>
    %413 = arith.truncf %374 : vector<8x32xf32> to vector<8x32xbf16>
    %c0_234 = arith.constant 0 : index
    %c0_235 = arith.constant 0 : index
    %414 = vector.load %arg13[%c0_234, %c0_235] : memref<32x128xbf16, #tpu.memory_space<vmem>>, vector<32x128xbf16>
    %cst_236 = arith.constant dense<0.000000e+00> : vector<8x128xf32>
    %415 = tpu.matmul %413, %414, %cst_236 {dimension_numbers = #tpu.dot_dimension_numbers<[1], [0], [0], [1], [0, 0, 1, 1], [], []>} : vector<8x32xbf16>, vector<32x128xbf16>, vector<8x128xf32> -> vector<8x128xf32>
    %416 = arith.addf %412, %415 : vector<8x128xf32>
    %c0_237 = arith.constant 0 : index
    %c0_238 = arith.constant 0 : index
    %417 = vector.load %arg14[%c0_237, %c0_238] : memref<1x128xf32, #tpu.memory_space<vmem>>, vector<1x128xf32>
    %418 = vector.broadcast %417 : vector<1x128xf32> to vector<8x128xf32>
    %419 = arith.addf %416, %418 : vector<8x128xf32>
    %420 = vector.extract_strided_slice %419 {offsets = [0, 0], sizes = [8, 32], strides = [1, 1]} : vector<8x128xf32> to vector<8x32xf32>
    %421 = arith.negf %420 : vector<8x32xf32>
    %422 = math.exp %421 : vector<8x32xf32>
    %cst_239 = arith.constant 1.000000e+00 : f32
    %423 = vector.broadcast %cst_239 : f32 to vector<8x32xf32>
    %424 = arith.addf %423, %422 : vector<8x32xf32>
    %425 = arith.divf %423, %424 : vector<8x32xf32>
    %426 = vector.extract_strided_slice %419 {offsets = [0, 32], sizes = [8, 32], strides = [1, 1]} : vector<8x128xf32> to vector<8x32xf32>
    %427 = arith.negf %426 : vector<8x32xf32>
    %428 = math.exp %427 : vector<8x32xf32>
    %cst_240 = arith.constant 1.000000e+00 : f32
    %429 = vector.broadcast %cst_240 : f32 to vector<8x32xf32>
    %430 = arith.addf %429, %428 : vector<8x32xf32>
    %431 = arith.divf %429, %430 : vector<8x32xf32>
    %432 = vector.extract_strided_slice %419 {offsets = [0, 64], sizes = [8, 32], strides = [1, 1]} : vector<8x128xf32> to vector<8x32xf32>
    %433 = math.tanh %432 : vector<8x32xf32>
    %434 = vector.extract_strided_slice %419 {offsets = [0, 96], sizes = [8, 32], strides = [1, 1]} : vector<8x128xf32> to vector<8x32xf32>
    %435 = arith.negf %434 : vector<8x32xf32>
    %436 = math.exp %435 : vector<8x32xf32>
    %cst_241 = arith.constant 1.000000e+00 : f32
    %437 = vector.broadcast %cst_241 : f32 to vector<8x32xf32>
    %438 = arith.addf %437, %436 : vector<8x32xf32>
    %439 = arith.divf %437, %438 : vector<8x32xf32>
    %c0_242 = arith.constant 0 : index
    %c0_243 = arith.constant 0 : index
    %440 = vector.load %arg21[%c0_242, %c0_243] : memref<8x32xf32, #tpu.memory_space<vmem>>, vector<8x32xf32>
    %441 = arith.mulf %431, %440 : vector<8x32xf32>
    %442 = arith.mulf %425, %433 : vector<8x32xf32>
    %443 = arith.addf %441, %442 : vector<8x32xf32>
    %444 = math.tanh %443 : vector<8x32xf32>
    %445 = arith.mulf %439, %444 : vector<8x32xf32>
    %c0_244 = arith.constant 0 : index
    %c0_245 = arith.constant 0 : index
    %446 = vector.load %arg20[%c0_244, %c0_245] : memref<8x32xf32, #tpu.memory_space<vmem>>, vector<8x32xf32>
    tpu.vector_store %arg20[%c0_244, %c0_245], %445 {strides = array<i32>} : memref<8x32xf32, #tpu.memory_space<vmem>>, vector<8x32xf32>,
    %c0_246 = arith.constant 0 : index
    %c0_247 = arith.constant 0 : index
    %447 = vector.load %arg21[%c0_246, %c0_247] : memref<8x32xf32, #tpu.memory_space<vmem>>, vector<8x32xf32>
    tpu.vector_store %arg21[%c0_246, %c0_247], %443 {strides = array<i32>} : memref<8x32xf32, #tpu.memory_space<vmem>>, vector<8x32xf32>,
    %448 = arith.truncf %445 : vector<8x32xf32> to vector<8x32xbf16>
    %c0_248 = arith.constant 0 : index
    %c0_249 = arith.constant 0 : index
    %449 = vector.load %arg15[%c0_248, %c0_249] : memref<32x128xbf16, #tpu.memory_space<vmem>>, vector<32x128xbf16>
    %cst_250 = arith.constant dense<0.000000e+00> : vector<8x128xf32>
    %450 = tpu.matmul %448, %449, %cst_250 {dimension_numbers = #tpu.dot_dimension_numbers<[1], [0], [0], [1], [0, 0, 1, 1], [], []>} : vector<8x32xbf16>, vector<32x128xbf16>, vector<8x128xf32> -> vector<8x128xf32>
    %c0_251 = arith.constant 0 : index
    %c0_252 = arith.constant 0 : index
    %451 = vector.load %arg16[%c0_251, %c0_252] : memref<1x128xf32, #tpu.memory_space<vmem>>, vector<1x128xf32>
    %452 = vector.broadcast %451 : vector<1x128xf32> to vector<8x128xf32>
    %453 = arith.addf %450, %452 : vector<8x128xf32>
    %c3_253 = arith.constant 3 : index
    %c0_254 = arith.constant 0 : index
    %c0_255 = arith.constant 0 : index
    %454 = vector.load %arg19[%c3_253, %c0_254, %c0_255] : memref<6x8x128xf32, #tpu.memory_space<vmem>>, vector<1x8x128xf32>
    %455 = vector.shape_cast %454 : vector<1x8x128xf32> to vector<8x128xf32>
    %456 = vector.shape_cast %453 : vector<8x128xf32> to vector<1x8x128xf32>
    tpu.vector_store %arg19[%c3_253, %c0_254, %c0_255], %456 {strides = array<i32>} : memref<6x8x128xf32, #tpu.memory_space<vmem>>, vector<1x8x128xf32>,
    %cst_256 = arith.constant dense<0xFF800000> : vector<8xf32>
    %457 = vector.multi_reduction <maximumf>, %453, %cst_256 [1] : vector<8x128xf32> to vector<8xf32>
    %458 = vector.shape_cast %457 : vector<8xf32> to vector<8x1xf32>
    %459 = tpu.iota {dimensions = array<i32: 1>} : vector<8x128xi32>
    %460 = arith.sitofp %459 : vector<8x128xi32> to vector<8x128xf32>
    %461 = vector.broadcast %458 : vector<8x1xf32> to vector<8x128xf32>
    %462 = arith.cmpf oeq, %453, %461 : vector<8x128xf32>
    %cst_257 = arith.constant 1.280000e+02 : f32
    %463 = vector.broadcast %cst_257 : f32 to vector<8x128xf32>
    %464 = arith.select %462, %460, %463 : vector<8x128xi1>, vector<8x128xf32>
    %cst_258 = arith.constant dense<0x7F800000> : vector<8xf32>
    %465 = vector.multi_reduction <minimumf>, %464, %cst_258 [1] : vector<8x128xf32> to vector<8xf32>
    %466 = vector.shape_cast %465 : vector<8xf32> to vector<8x1xf32>
    %467 = vector.broadcast %466 : vector<8x1xf32> to vector<8x128xf32>
    %468 = arith.cmpf oeq, %460, %467 : vector<8x128xf32>
    %469 = arith.extui %468 : vector<8x128xi1> to vector<8x128xi32>
    %470 = arith.sitofp %469 : vector<8x128xi32> to vector<8x128xf32>
    %471 = arith.truncf %470 : vector<8x128xf32> to vector<8x128xbf16>
    %c0_259 = arith.constant 0 : index
    %c0_260 = arith.constant 0 : index
    %472 = vector.load %arg9[%c0_259, %c0_260] : memref<128x16xbf16, #tpu.memory_space<vmem>>, vector<128x16xbf16>
    %cst_261 = arith.constant dense<0.000000e+00> : vector<8x16xf32>
    %473 = tpu.matmul %471, %472, %cst_261 {dimension_numbers = #tpu.dot_dimension_numbers<[1], [0], [0], [1], [0, 0, 1, 1], [], []>} : vector<8x128xbf16>, vector<128x16xbf16>, vector<8x16xf32> -> vector<8x16xf32>
    %c0_262 = arith.constant 0 : index
    %c0_263 = arith.constant 0 : index
    %474 = vector.load %arg22[%c0_262, %c0_263] : memref<8x16xf32, #tpu.memory_space<vmem>>, vector<8x16xf32>
    tpu.vector_store %arg22[%c0_262, %c0_263], %473 {strides = array<i32>} : memref<8x16xf32, #tpu.memory_space<vmem>>, vector<8x16xf32>,
    %c6_i32_264 = arith.constant 6 : i32
    %475 = arith.muli %arg0, %c6_i32_264 : i32
    %c4_i32 = arith.constant 4 : i32
    %476 = arith.addi %475, %c4_i32 : i32
    %477 = arith.index_cast %476 : i32 to index
    %478 = memref.load %arg1[%477] : memref<6xi32, #tpu.memory_space<smem>>
    %c0_i32_265 = arith.constant 0 : i32
    %479 = arith.cmpi ne, %478, %c0_i32_265 : i32
    %cst_266 = arith.constant 1.000000e+00 : f32
    %cst_267 = arith.constant 0.000000e+00 : f32
    %480 = arith.select %479, %cst_266, %cst_267 : f32
    %c4 = arith.constant 4 : index
    %c0_268 = arith.constant 0 : index
    %c0_269 = arith.constant 0 : index
    %481 = vector.load %arg2[%c4, %c0_268, %c0_269] : memref<6x8x16xbf16, #tpu.memory_space<vmem>>, vector<1x8x16xbf16>
    %482 = vector.shape_cast %481 : vector<1x8x16xbf16> to vector<8x16xbf16>
    %483 = arith.extf %482 : vector<8x16xbf16> to vector<8x16xf32>
    %484 = vector.broadcast %480 : f32 to vector<8x16xf32>
    %485 = arith.mulf %484, %483 : vector<8x16xf32>
    %cst_270 = arith.constant 1.000000e+00 : f32
    %486 = arith.subf %cst_270, %480 : f32
    %c0_271 = arith.constant 0 : index
    %c0_272 = arith.constant 0 : index
    %487 = vector.load %arg22[%c0_271, %c0_272] : memref<8x16xf32, #tpu.memory_space<vmem>>, vector<8x16xf32>
    %488 = vector.broadcast %486 : f32 to vector<8x16xf32>
    %489 = arith.mulf %488, %487 : vector<8x16xf32>
    %490 = arith.addf %485, %489 : vector<8x16xf32>
    %491 = arith.truncf %490 : vector<8x16xf32> to vector<8x16xbf16>
    %c0_273 = arith.constant 0 : index
    %c0_274 = arith.constant 0 : index
    %492 = vector.load %arg20[%c0_273, %c0_274] : memref<8x32xf32, #tpu.memory_space<vmem>>, vector<8x32xf32>
    %c0_275 = arith.constant 0 : index
    %c0_276 = arith.constant 0 : index
    %493 = vector.load %arg5[%c0_275, %c0_276] : memref<1x32xf32, #tpu.memory_space<vmem>>, vector<1x32xf32>
    %494 = vector.broadcast %493 : vector<1x32xf32> to vector<8x32xf32>
    %495 = arith.mulf %492, %494 : vector<8x32xf32>
    %cst_277 = arith.constant dense<0.000000e+00> : vector<8xf32>
    %496 = vector.multi_reduction <add>, %495, %cst_277 [1] : vector<8x32xf32> to vector<8xf32>
    %497 = vector.shape_cast %496 : vector<8xf32> to vector<8x1xf32>
    %c0_278 = arith.constant 0 : index
    %c0_279 = arith.constant 0 : index
    %498 = vector.load %arg23[%c0_278, %c0_279] : memref<8x8xf32, #tpu.memory_space<vmem>>, vector<8x8xf32>
    %499 = vector.broadcast %497 : vector<8x1xf32> to vector<8x8xf32>
    %500 = arith.addf %498, %499 : vector<8x8xf32>
    %cst_280 = arith.constant 0.000000e+00 : f32
    %501 = vector.broadcast %cst_280 : f32 to vector<8x8xf32>
    %502 = arith.maximumf %500, %501 : vector<8x8xf32>
    %cst_281 = arith.constant dense<0xFF800000> : vector<8xf32>
    %503 = vector.multi_reduction <maximumf>, %502, %cst_281 [1] : vector<8x8xf32> to vector<8xf32>
    %504 = vector.shape_cast %503 : vector<8xf32> to vector<8x1xf32>
    %505 = vector.broadcast %504 : vector<8x1xf32> to vector<8x8xf32>
    %506 = arith.subf %502, %505 : vector<8x8xf32>
    %507 = math.exp %506 : vector<8x8xf32>
    %cst_282 = arith.constant dense<0.000000e+00> : vector<8xf32>
    %508 = vector.multi_reduction <add>, %507, %cst_282 [1] : vector<8x8xf32> to vector<8xf32>
    %509 = vector.shape_cast %508 : vector<8xf32> to vector<8x1xf32>
    %510 = tpu.reciprocal %509 {approx = true} : vector<8x1xf32> -> vector<8x1xf32>
    %511 = vector.broadcast %510 : vector<8x1xf32> to vector<8x8xf32>
    %512 = arith.mulf %507, %511 : vector<8x8xf32>
    %513 = arith.truncf %512 : vector<8x8xf32> to vector<8x8xbf16>
    %514 = vector.shape_cast %513 : vector<8x8xbf16> to vector<8x1x8xbf16>
    %c0_283 = arith.constant 0 : index
    %c0_284 = arith.constant 0 : index
    %c0_285 = arith.constant 0 : index
    %515 = vector.load %arg3[%c0_283, %c0_284, %c0_285] : memref<8x8x32xbf16, #tpu.memory_space<vmem>>, vector<8x8x32xbf16>
    "tpu.trace_start"() <{level = 10 : i32, message = "bqs,bsh->bqh"}> : () -> ()
    %cst_286 = arith.constant dense<0.000000e+00> : vector<8x1x32xf32>
    %516 = tpu.matmul %514, %515, %cst_286 {dimension_numbers = #tpu.dot_dimension_numbers<[2], [1], [1], [2], [0, 0, 0, 1, 1, 2], [0], [0]>} : vector<8x1x8xbf16>, vector<8x8x32xbf16>, vector<8x1x32xf32> -> vector<8x1x32xf32>
    "tpu.trace_stop"() : () -> ()
    %517 = vector.shape_cast %516 : vector<8x1x32xf32> to vector<8x32xf32>
    %c0_287 = arith.constant 0 : index
    %c0_288 = arith.constant 0 : index
    %c0_289 = arith.constant 0 : index
    %518 = vector.load %arg4[%c0_287, %c0_288, %c0_289] : memref<8x8x32xbf16, #tpu.memory_space<vmem>>, vector<8x8x32xbf16>
    "tpu.trace_start"() <{level = 10 : i32, message = "bqs,bsh->bqh"}> : () -> ()
    %cst_290 = arith.constant dense<0.000000e+00> : vector<8x1x32xf32>
    %519 = tpu.matmul %514, %518, %cst_290 {dimension_numbers = #tpu.dot_dimension_numbers<[2], [1], [1], [2], [0, 0, 0, 1, 1, 2], [0], [0]>} : vector<8x1x8xbf16>, vector<8x8x32xbf16>, vector<8x1x32xf32> -> vector<8x1x32xf32>
    "tpu.trace_stop"() : () -> ()
    %520 = vector.shape_cast %519 : vector<8x1x32xf32> to vector<8x32xf32>
    %521 = arith.truncf %517 : vector<8x32xf32> to vector<8x32xbf16>
    %c0_291 = arith.constant 0 : index
    %c0_292 = arith.constant 0 : index
    %522 = vector.load %arg10[%c0_291, %c0_292] : memref<32x128xbf16, #tpu.memory_space<vmem>>, vector<32x128xbf16>
    %cst_293 = arith.constant dense<0.000000e+00> : vector<8x128xf32>
    %523 = tpu.matmul %521, %522, %cst_293 {dimension_numbers = #tpu.dot_dimension_numbers<[1], [0], [0], [1], [0, 0, 1, 1], [], []>} : vector<8x32xbf16>, vector<32x128xbf16>, vector<8x128xf32> -> vector<8x128xf32>
    %524 = arith.truncf %520 : vector<8x32xf32> to vector<8x32xbf16>
    %c0_294 = arith.constant 0 : index
    %c0_295 = arith.constant 0 : index
    %525 = vector.load %arg11[%c0_294, %c0_295] : memref<32x128xbf16, #tpu.memory_space<vmem>>, vector<32x128xbf16>
    %cst_296 = arith.constant dense<0.000000e+00> : vector<8x128xf32>
    %526 = tpu.matmul %524, %525, %cst_296 {dimension_numbers = #tpu.dot_dimension_numbers<[1], [0], [0], [1], [0, 0, 1, 1], [], []>} : vector<8x32xbf16>, vector<32x128xbf16>, vector<8x128xf32> -> vector<8x128xf32>
    %527 = arith.addf %523, %526 : vector<8x128xf32>
    %c0_297 = arith.constant 0 : index
    %c0_298 = arith.constant 0 : index
    %528 = vector.load %arg12[%c0_297, %c0_298] : memref<16x128xbf16, #tpu.memory_space<vmem>>, vector<16x128xbf16>
    %cst_299 = arith.constant dense<0.000000e+00> : vector<8x128xf32>
    %529 = tpu.matmul %491, %528, %cst_299 {dimension_numbers = #tpu.dot_dimension_numbers<[1], [0], [0], [1], [0, 0, 1, 1], [], []>} : vector<8x16xbf16>, vector<16x128xbf16>, vector<8x128xf32> -> vector<8x128xf32>
    %530 = arith.addf %527, %529 : vector<8x128xf32>
    %531 = arith.truncf %492 : vector<8x32xf32> to vector<8x32xbf16>
    %c0_300 = arith.constant 0 : index
    %c0_301 = arith.constant 0 : index
    %532 = vector.load %arg13[%c0_300, %c0_301] : memref<32x128xbf16, #tpu.memory_space<vmem>>, vector<32x128xbf16>
    %cst_302 = arith.constant dense<0.000000e+00> : vector<8x128xf32>
    %533 = tpu.matmul %531, %532, %cst_302 {dimension_numbers = #tpu.dot_dimension_numbers<[1], [0], [0], [1], [0, 0, 1, 1], [], []>} : vector<8x32xbf16>, vector<32x128xbf16>, vector<8x128xf32> -> vector<8x128xf32>
    %534 = arith.addf %530, %533 : vector<8x128xf32>
    %c0_303 = arith.constant 0 : index
    %c0_304 = arith.constant 0 : index
    %535 = vector.load %arg14[%c0_303, %c0_304] : memref<1x128xf32, #tpu.memory_space<vmem>>, vector<1x128xf32>
    %536 = vector.broadcast %535 : vector<1x128xf32> to vector<8x128xf32>
    %537 = arith.addf %534, %536 : vector<8x128xf32>
    %538 = vector.extract_strided_slice %537 {offsets = [0, 0], sizes = [8, 32], strides = [1, 1]} : vector<8x128xf32> to vector<8x32xf32>
    %539 = arith.negf %538 : vector<8x32xf32>
    %540 = math.exp %539 : vector<8x32xf32>
    %cst_305 = arith.constant 1.000000e+00 : f32
    %541 = vector.broadcast %cst_305 : f32 to vector<8x32xf32>
    %542 = arith.addf %541, %540 : vector<8x32xf32>
    %543 = arith.divf %541, %542 : vector<8x32xf32>
    %544 = vector.extract_strided_slice %537 {offsets = [0, 32], sizes = [8, 32], strides = [1, 1]} : vector<8x128xf32> to vector<8x32xf32>
    %545 = arith.negf %544 : vector<8x32xf32>
    %546 = math.exp %545 : vector<8x32xf32>
    %cst_306 = arith.constant 1.000000e+00 : f32
    %547 = vector.broadcast %cst_306 : f32 to vector<8x32xf32>
    %548 = arith.addf %547, %546 : vector<8x32xf32>
    %549 = arith.divf %547, %548 : vector<8x32xf32>
    %550 = vector.extract_strided_slice %537 {offsets = [0, 64], sizes = [8, 32], strides = [1, 1]} : vector<8x128xf32> to vector<8x32xf32>
    %551 = math.tanh %550 : vector<8x32xf32>
    %552 = vector.extract_strided_slice %537 {offsets = [0, 96], sizes = [8, 32], strides = [1, 1]} : vector<8x128xf32> to vector<8x32xf32>
    %553 = arith.negf %552 : vector<8x32xf32>
    %554 = math.exp %553 : vector<8x32xf32>
    %cst_307 = arith.constant 1.000000e+00 : f32
    %555 = vector.broadcast %cst_307 : f32 to vector<8x32xf32>
    %556 = arith.addf %555, %554 : vector<8x32xf32>
    %557 = arith.divf %555, %556 : vector<8x32xf32>
    %c0_308 = arith.constant 0 : index
    %c0_309 = arith.constant 0 : index
    %558 = vector.load %arg21[%c0_308, %c0_309] : memref<8x32xf32, #tpu.memory_space<vmem>>, vector<8x32xf32>
    %559 = arith.mulf %549, %558 : vector<8x32xf32>
    %560 = arith.mulf %543, %551 : vector<8x32xf32>
    %561 = arith.addf %559, %560 : vector<8x32xf32>
    %562 = math.tanh %561 : vector<8x32xf32>
    %563 = arith.mulf %557, %562 : vector<8x32xf32>
    %c0_310 = arith.constant 0 : index
    %c0_311 = arith.constant 0 : index
    %564 = vector.load %arg20[%c0_310, %c0_311] : memref<8x32xf32, #tpu.memory_space<vmem>>, vector<8x32xf32>
    tpu.vector_store %arg20[%c0_310, %c0_311], %563 {strides = array<i32>} : memref<8x32xf32, #tpu.memory_space<vmem>>, vector<8x32xf32>,
    %c0_312 = arith.constant 0 : index
    %c0_313 = arith.constant 0 : index
    %565 = vector.load %arg21[%c0_312, %c0_313] : memref<8x32xf32, #tpu.memory_space<vmem>>, vector<8x32xf32>
    tpu.vector_store %arg21[%c0_312, %c0_313], %561 {strides = array<i32>} : memref<8x32xf32, #tpu.memory_space<vmem>>, vector<8x32xf32>,
    %566 = arith.truncf %563 : vector<8x32xf32> to vector<8x32xbf16>
    %c0_314 = arith.constant 0 : index
    %c0_315 = arith.constant 0 : index
    %567 = vector.load %arg15[%c0_314, %c0_315] : memref<32x128xbf16, #tpu.memory_space<vmem>>, vector<32x128xbf16>
    %cst_316 = arith.constant dense<0.000000e+00> : vector<8x128xf32>
    %568 = tpu.matmul %566, %567, %cst_316 {dimension_numbers = #tpu.dot_dimension_numbers<[1], [0], [0], [1], [0, 0, 1, 1], [], []>} : vector<8x32xbf16>, vector<32x128xbf16>, vector<8x128xf32> -> vector<8x128xf32>
    %c0_317 = arith.constant 0 : index
    %c0_318 = arith.constant 0 : index
    %569 = vector.load %arg16[%c0_317, %c0_318] : memref<1x128xf32, #tpu.memory_space<vmem>>, vector<1x128xf32>
    %570 = vector.broadcast %569 : vector<1x128xf32> to vector<8x128xf32>
    %571 = arith.addf %568, %570 : vector<8x128xf32>
    %c4_319 = arith.constant 4 : index
    %c0_320 = arith.constant 0 : index
    %c0_321 = arith.constant 0 : index
    %572 = vector.load %arg19[%c4_319, %c0_320, %c0_321] : memref<6x8x128xf32, #tpu.memory_space<vmem>>, vector<1x8x128xf32>
    %573 = vector.shape_cast %572 : vector<1x8x128xf32> to vector<8x128xf32>
    %574 = vector.shape_cast %571 : vector<8x128xf32> to vector<1x8x128xf32>
    tpu.vector_store %arg19[%c4_319, %c0_320, %c0_321], %574 {strides = array<i32>} : memref<6x8x128xf32, #tpu.memory_space<vmem>>, vector<1x8x128xf32>,
    %cst_322 = arith.constant dense<0xFF800000> : vector<8xf32>
    %575 = vector.multi_reduction <maximumf>, %571, %cst_322 [1] : vector<8x128xf32> to vector<8xf32>
    %576 = vector.shape_cast %575 : vector<8xf32> to vector<8x1xf32>
    %577 = tpu.iota {dimensions = array<i32: 1>} : vector<8x128xi32>
    %578 = arith.sitofp %577 : vector<8x128xi32> to vector<8x128xf32>
    %579 = vector.broadcast %576 : vector<8x1xf32> to vector<8x128xf32>
    %580 = arith.cmpf oeq, %571, %579 : vector<8x128xf32>
    %cst_323 = arith.constant 1.280000e+02 : f32
    %581 = vector.broadcast %cst_323 : f32 to vector<8x128xf32>
    %582 = arith.select %580, %578, %581 : vector<8x128xi1>, vector<8x128xf32>
    %cst_324 = arith.constant dense<0x7F800000> : vector<8xf32>
    %583 = vector.multi_reduction <minimumf>, %582, %cst_324 [1] : vector<8x128xf32> to vector<8xf32>
    %584 = vector.shape_cast %583 : vector<8xf32> to vector<8x1xf32>
    %585 = vector.broadcast %584 : vector<8x1xf32> to vector<8x128xf32>
    %586 = arith.cmpf oeq, %578, %585 : vector<8x128xf32>
    %587 = arith.extui %586 : vector<8x128xi1> to vector<8x128xi32>
    %588 = arith.sitofp %587 : vector<8x128xi32> to vector<8x128xf32>
    %589 = arith.truncf %588 : vector<8x128xf32> to vector<8x128xbf16>
    %c0_325 = arith.constant 0 : index
    %c0_326 = arith.constant 0 : index
    %590 = vector.load %arg9[%c0_325, %c0_326] : memref<128x16xbf16, #tpu.memory_space<vmem>>, vector<128x16xbf16>
    %cst_327 = arith.constant dense<0.000000e+00> : vector<8x16xf32>
    %591 = tpu.matmul %589, %590, %cst_327 {dimension_numbers = #tpu.dot_dimension_numbers<[1], [0], [0], [1], [0, 0, 1, 1], [], []>} : vector<8x128xbf16>, vector<128x16xbf16>, vector<8x16xf32> -> vector<8x16xf32>
    %c0_328 = arith.constant 0 : index
    %c0_329 = arith.constant 0 : index
    %592 = vector.load %arg22[%c0_328, %c0_329] : memref<8x16xf32, #tpu.memory_space<vmem>>, vector<8x16xf32>
    tpu.vector_store %arg22[%c0_328, %c0_329], %591 {strides = array<i32>} : memref<8x16xf32, #tpu.memory_space<vmem>>, vector<8x16xf32>,
    %c6_i32_330 = arith.constant 6 : i32
    %593 = arith.muli %arg0, %c6_i32_330 : i32
    %c5_i32 = arith.constant 5 : i32
    %594 = arith.addi %593, %c5_i32 : i32
    %595 = arith.index_cast %594 : i32 to index
    %596 = memref.load %arg1[%595] : memref<6xi32, #tpu.memory_space<smem>>
    %c0_i32_331 = arith.constant 0 : i32
    %597 = arith.cmpi ne, %596, %c0_i32_331 : i32
    %cst_332 = arith.constant 1.000000e+00 : f32
    %cst_333 = arith.constant 0.000000e+00 : f32
    %598 = arith.select %597, %cst_332, %cst_333 : f32
    %c5 = arith.constant 5 : index
    %c0_334 = arith.constant 0 : index
    %c0_335 = arith.constant 0 : index
    %599 = vector.load %arg2[%c5, %c0_334, %c0_335] : memref<6x8x16xbf16, #tpu.memory_space<vmem>>, vector<1x8x16xbf16>
    %600 = vector.shape_cast %599 : vector<1x8x16xbf16> to vector<8x16xbf16>
    %601 = arith.extf %600 : vector<8x16xbf16> to vector<8x16xf32>
    %602 = vector.broadcast %598 : f32 to vector<8x16xf32>
    %603 = arith.mulf %602, %601 : vector<8x16xf32>
    %cst_336 = arith.constant 1.000000e+00 : f32
    %604 = arith.subf %cst_336, %598 : f32
    %c0_337 = arith.constant 0 : index
    %c0_338 = arith.constant 0 : index
    %605 = vector.load %arg22[%c0_337, %c0_338] : memref<8x16xf32, #tpu.memory_space<vmem>>, vector<8x16xf32>
    %606 = vector.broadcast %604 : f32 to vector<8x16xf32>
    %607 = arith.mulf %606, %605 : vector<8x16xf32>
    %608 = arith.addf %603, %607 : vector<8x16xf32>
    %609 = arith.truncf %608 : vector<8x16xf32> to vector<8x16xbf16>
    %c0_339 = arith.constant 0 : index
    %c0_340 = arith.constant 0 : index
    %610 = vector.load %arg20[%c0_339, %c0_340] : memref<8x32xf32, #tpu.memory_space<vmem>>, vector<8x32xf32>
    %c0_341 = arith.constant 0 : index
    %c0_342 = arith.constant 0 : index
    %611 = vector.load %arg5[%c0_341, %c0_342] : memref<1x32xf32, #tpu.memory_space<vmem>>, vector<1x32xf32>
    %612 = vector.broadcast %611 : vector<1x32xf32> to vector<8x32xf32>
    %613 = arith.mulf %610, %612 : vector<8x32xf32>
    %cst_343 = arith.constant dense<0.000000e+00> : vector<8xf32>
    %614 = vector.multi_reduction <add>, %613, %cst_343 [1] : vector<8x32xf32> to vector<8xf32>
    %615 = vector.shape_cast %614 : vector<8xf32> to vector<8x1xf32>
    %c0_344 = arith.constant 0 : index
    %c0_345 = arith.constant 0 : index
    %616 = vector.load %arg23[%c0_344, %c0_345] : memref<8x8xf32, #tpu.memory_space<vmem>>, vector<8x8xf32>
    %617 = vector.broadcast %615 : vector<8x1xf32> to vector<8x8xf32>
    %618 = arith.addf %616, %617 : vector<8x8xf32>
    %cst_346 = arith.constant 0.000000e+00 : f32
    %619 = vector.broadcast %cst_346 : f32 to vector<8x8xf32>
    %620 = arith.maximumf %618, %619 : vector<8x8xf32>
    %cst_347 = arith.constant dense<0xFF800000> : vector<8xf32>
    %621 = vector.multi_reduction <maximumf>, %620, %cst_347 [1] : vector<8x8xf32> to vector<8xf32>
    %622 = vector.shape_cast %621 : vector<8xf32> to vector<8x1xf32>
    %623 = vector.broadcast %622 : vector<8x1xf32> to vector<8x8xf32>
    %624 = arith.subf %620, %623 : vector<8x8xf32>
    %625 = math.exp %624 : vector<8x8xf32>
    %cst_348 = arith.constant dense<0.000000e+00> : vector<8xf32>
    %626 = vector.multi_reduction <add>, %625, %cst_348 [1] : vector<8x8xf32> to vector<8xf32>
    %627 = vector.shape_cast %626 : vector<8xf32> to vector<8x1xf32>
    %628 = tpu.reciprocal %627 {approx = true} : vector<8x1xf32> -> vector<8x1xf32>
    %629 = vector.broadcast %628 : vector<8x1xf32> to vector<8x8xf32>
    %630 = arith.mulf %625, %629 : vector<8x8xf32>
    %631 = arith.truncf %630 : vector<8x8xf32> to vector<8x8xbf16>
    %632 = vector.shape_cast %631 : vector<8x8xbf16> to vector<8x1x8xbf16>
    %c0_349 = arith.constant 0 : index
    %c0_350 = arith.constant 0 : index
    %c0_351 = arith.constant 0 : index
    %633 = vector.load %arg3[%c0_349, %c0_350, %c0_351] : memref<8x8x32xbf16, #tpu.memory_space<vmem>>, vector<8x8x32xbf16>
    "tpu.trace_start"() <{level = 10 : i32, message = "bqs,bsh->bqh"}> : () -> ()
    %cst_352 = arith.constant dense<0.000000e+00> : vector<8x1x32xf32>
    %634 = tpu.matmul %632, %633, %cst_352 {dimension_numbers = #tpu.dot_dimension_numbers<[2], [1], [1], [2], [0, 0, 0, 1, 1, 2], [0], [0]>} : vector<8x1x8xbf16>, vector<8x8x32xbf16>, vector<8x1x32xf32> -> vector<8x1x32xf32>
    "tpu.trace_stop"() : () -> ()
    %635 = vector.shape_cast %634 : vector<8x1x32xf32> to vector<8x32xf32>
    %c0_353 = arith.constant 0 : index
    %c0_354 = arith.constant 0 : index
    %c0_355 = arith.constant 0 : index
    %636 = vector.load %arg4[%c0_353, %c0_354, %c0_355] : memref<8x8x32xbf16, #tpu.memory_space<vmem>>, vector<8x8x32xbf16>
    "tpu.trace_start"() <{level = 10 : i32, message = "bqs,bsh->bqh"}> : () -> ()
    %cst_356 = arith.constant dense<0.000000e+00> : vector<8x1x32xf32>
    %637 = tpu.matmul %632, %636, %cst_356 {dimension_numbers = #tpu.dot_dimension_numbers<[2], [1], [1], [2], [0, 0, 0, 1, 1, 2], [0], [0]>} : vector<8x1x8xbf16>, vector<8x8x32xbf16>, vector<8x1x32xf32> -> vector<8x1x32xf32>
    "tpu.trace_stop"() : () -> ()
    %638 = vector.shape_cast %637 : vector<8x1x32xf32> to vector<8x32xf32>
    %639 = arith.truncf %635 : vector<8x32xf32> to vector<8x32xbf16>
    %c0_357 = arith.constant 0 : index
    %c0_358 = arith.constant 0 : index
    %640 = vector.load %arg10[%c0_357, %c0_358] : memref<32x128xbf16, #tpu.memory_space<vmem>>, vector<32x128xbf16>
    %cst_359 = arith.constant dense<0.000000e+00> : vector<8x128xf32>
    %641 = tpu.matmul %639, %640, %cst_359 {dimension_numbers = #tpu.dot_dimension_numbers<[1], [0], [0], [1], [0, 0, 1, 1], [], []>} : vector<8x32xbf16>, vector<32x128xbf16>, vector<8x128xf32> -> vector<8x128xf32>
    %642 = arith.truncf %638 : vector<8x32xf32> to vector<8x32xbf16>
    %c0_360 = arith.constant 0 : index
    %c0_361 = arith.constant 0 : index
    %643 = vector.load %arg11[%c0_360, %c0_361] : memref<32x128xbf16, #tpu.memory_space<vmem>>, vector<32x128xbf16>
    %cst_362 = arith.constant dense<0.000000e+00> : vector<8x128xf32>
    %644 = tpu.matmul %642, %643, %cst_362 {dimension_numbers = #tpu.dot_dimension_numbers<[1], [0], [0], [1], [0, 0, 1, 1], [], []>} : vector<8x32xbf16>, vector<32x128xbf16>, vector<8x128xf32> -> vector<8x128xf32>
    %645 = arith.addf %641, %644 : vector<8x128xf32>
    %c0_363 = arith.constant 0 : index
    %c0_364 = arith.constant 0 : index
    %646 = vector.load %arg12[%c0_363, %c0_364] : memref<16x128xbf16, #tpu.memory_space<vmem>>, vector<16x128xbf16>
    %cst_365 = arith.constant dense<0.000000e+00> : vector<8x128xf32>
    %647 = tpu.matmul %609, %646, %cst_365 {dimension_numbers = #tpu.dot_dimension_numbers<[1], [0], [0], [1], [0, 0, 1, 1], [], []>} : vector<8x16xbf16>, vector<16x128xbf16>, vector<8x128xf32> -> vector<8x128xf32>
    %648 = arith.addf %645, %647 : vector<8x128xf32>
    %649 = arith.truncf %610 : vector<8x32xf32> to vector<8x32xbf16>
    %c0_366 = arith.constant 0 : index
    %c0_367 = arith.constant 0 : index
    %650 = vector.load %arg13[%c0_366, %c0_367] : memref<32x128xbf16, #tpu.memory_space<vmem>>, vector<32x128xbf16>
    %cst_368 = arith.constant dense<0.000000e+00> : vector<8x128xf32>
    %651 = tpu.matmul %649, %650, %cst_368 {dimension_numbers = #tpu.dot_dimension_numbers<[1], [0], [0], [1], [0, 0, 1, 1], [], []>} : vector<8x32xbf16>, vector<32x128xbf16>, vector<8x128xf32> -> vector<8x128xf32>
    %652 = arith.addf %648, %651 : vector<8x128xf32>
    %c0_369 = arith.constant 0 : index
    %c0_370 = arith.constant 0 : index
    %653 = vector.load %arg14[%c0_369, %c0_370] : memref<1x128xf32, #tpu.memory_space<vmem>>, vector<1x128xf32>
    %654 = vector.broadcast %653 : vector<1x128xf32> to vector<8x128xf32>
    %655 = arith.addf %652, %654 : vector<8x128xf32>
    %656 = vector.extract_strided_slice %655 {offsets = [0, 0], sizes = [8, 32], strides = [1, 1]} : vector<8x128xf32> to vector<8x32xf32>
    %657 = arith.negf %656 : vector<8x32xf32>
    %658 = math.exp %657 : vector<8x32xf32>
    %cst_371 = arith.constant 1.000000e+00 : f32
    %659 = vector.broadcast %cst_371 : f32 to vector<8x32xf32>
    %660 = arith.addf %659, %658 : vector<8x32xf32>
    %661 = arith.divf %659, %660 : vector<8x32xf32>
    %662 = vector.extract_strided_slice %655 {offsets = [0, 32], sizes = [8, 32], strides = [1, 1]} : vector<8x128xf32> to vector<8x32xf32>
    %663 = arith.negf %662 : vector<8x32xf32>
    %664 = math.exp %663 : vector<8x32xf32>
    %cst_372 = arith.constant 1.000000e+00 : f32
    %665 = vector.broadcast %cst_372 : f32 to vector<8x32xf32>
    %666 = arith.addf %665, %664 : vector<8x32xf32>
    %667 = arith.divf %665, %666 : vector<8x32xf32>
    %668 = vector.extract_strided_slice %655 {offsets = [0, 64], sizes = [8, 32], strides = [1, 1]} : vector<8x128xf32> to vector<8x32xf32>
    %669 = math.tanh %668 : vector<8x32xf32>
    %670 = vector.extract_strided_slice %655 {offsets = [0, 96], sizes = [8, 32], strides = [1, 1]} : vector<8x128xf32> to vector<8x32xf32>
    %671 = arith.negf %670 : vector<8x32xf32>
    %672 = math.exp %671 : vector<8x32xf32>
    %cst_373 = arith.constant 1.000000e+00 : f32
    %673 = vector.broadcast %cst_373 : f32 to vector<8x32xf32>
    %674 = arith.addf %673, %672 : vector<8x32xf32>
    %675 = arith.divf %673, %674 : vector<8x32xf32>
    %c0_374 = arith.constant 0 : index
    %c0_375 = arith.constant 0 : index
    %676 = vector.load %arg21[%c0_374, %c0_375] : memref<8x32xf32, #tpu.memory_space<vmem>>, vector<8x32xf32>
    %677 = arith.mulf %667, %676 : vector<8x32xf32>
    %678 = arith.mulf %661, %669 : vector<8x32xf32>
    %679 = arith.addf %677, %678 : vector<8x32xf32>
    %680 = math.tanh %679 : vector<8x32xf32>
    %681 = arith.mulf %675, %680 : vector<8x32xf32>
    %c0_376 = arith.constant 0 : index
    %c0_377 = arith.constant 0 : index
    %682 = vector.load %arg20[%c0_376, %c0_377] : memref<8x32xf32, #tpu.memory_space<vmem>>, vector<8x32xf32>
    tpu.vector_store %arg20[%c0_376, %c0_377], %681 {strides = array<i32>} : memref<8x32xf32, #tpu.memory_space<vmem>>, vector<8x32xf32>,
    %c0_378 = arith.constant 0 : index
    %c0_379 = arith.constant 0 : index
    %683 = vector.load %arg21[%c0_378, %c0_379] : memref<8x32xf32, #tpu.memory_space<vmem>>, vector<8x32xf32>
    tpu.vector_store %arg21[%c0_378, %c0_379], %679 {strides = array<i32>} : memref<8x32xf32, #tpu.memory_space<vmem>>, vector<8x32xf32>,
    %684 = arith.truncf %681 : vector<8x32xf32> to vector<8x32xbf16>
    %c0_380 = arith.constant 0 : index
    %c0_381 = arith.constant 0 : index
    %685 = vector.load %arg15[%c0_380, %c0_381] : memref<32x128xbf16, #tpu.memory_space<vmem>>, vector<32x128xbf16>
    %cst_382 = arith.constant dense<0.000000e+00> : vector<8x128xf32>
    %686 = tpu.matmul %684, %685, %cst_382 {dimension_numbers = #tpu.dot_dimension_numbers<[1], [0], [0], [1], [0, 0, 1, 1], [], []>} : vector<8x32xbf16>, vector<32x128xbf16>, vector<8x128xf32> -> vector<8x128xf32>
    %c0_383 = arith.constant 0 : index
    %c0_384 = arith.constant 0 : index
    %687 = vector.load %arg16[%c0_383, %c0_384] : memref<1x128xf32, #tpu.memory_space<vmem>>, vector<1x128xf32>
    %688 = vector.broadcast %687 : vector<1x128xf32> to vector<8x128xf32>
    %689 = arith.addf %686, %688 : vector<8x128xf32>
    %c5_385 = arith.constant 5 : index
    %c0_386 = arith.constant 0 : index
    %c0_387 = arith.constant 0 : index
    %690 = vector.load %arg19[%c5_385, %c0_386, %c0_387] : memref<6x8x128xf32, #tpu.memory_space<vmem>>, vector<1x8x128xf32>
    %691 = vector.shape_cast %690 : vector<1x8x128xf32> to vector<8x128xf32>
    %692 = vector.shape_cast %689 : vector<8x128xf32> to vector<1x8x128xf32>
    tpu.vector_store %arg19[%c5_385, %c0_386, %c0_387], %692 {strides = array<i32>} : memref<6x8x128xf32, #tpu.memory_space<vmem>>, vector<1x8x128xf32>,
    %cst_388 = arith.constant dense<0xFF800000> : vector<8xf32>
    %693 = vector.multi_reduction <maximumf>, %689, %cst_388 [1] : vector<8x128xf32> to vector<8xf32>
    %694 = vector.shape_cast %693 : vector<8xf32> to vector<8x1xf32>
    %695 = tpu.iota {dimensions = array<i32: 1>} : vector<8x128xi32>
    %696 = arith.sitofp %695 : vector<8x128xi32> to vector<8x128xf32>
    %697 = vector.broadcast %694 : vector<8x1xf32> to vector<8x128xf32>
    %698 = arith.cmpf oeq, %689, %697 : vector<8x128xf32>
    %cst_389 = arith.constant 1.280000e+02 : f32
    %699 = vector.broadcast %cst_389 : f32 to vector<8x128xf32>
    %700 = arith.select %698, %696, %699 : vector<8x128xi1>, vector<8x128xf32>
    %cst_390 = arith.constant dense<0x7F800000> : vector<8xf32>
    %701 = vector.multi_reduction <minimumf>, %700, %cst_390 [1] : vector<8x128xf32> to vector<8xf32>
    %702 = vector.shape_cast %701 : vector<8xf32> to vector<8x1xf32>
    %703 = vector.broadcast %702 : vector<8x1xf32> to vector<8x128xf32>
    %704 = arith.cmpf oeq, %696, %703 : vector<8x128xf32>
    %705 = arith.extui %704 : vector<8x128xi1> to vector<8x128xi32>
    %706 = arith.sitofp %705 : vector<8x128xi32> to vector<8x128xf32>
    %707 = arith.truncf %706 : vector<8x128xf32> to vector<8x128xbf16>
    %c0_391 = arith.constant 0 : index
    %c0_392 = arith.constant 0 : index
    %708 = vector.load %arg9[%c0_391, %c0_392] : memref<128x16xbf16, #tpu.memory_space<vmem>>, vector<128x16xbf16>
    %cst_393 = arith.constant dense<0.000000e+00> : vector<8x16xf32>
    %709 = tpu.matmul %707, %708, %cst_393 {dimension_numbers = #tpu.dot_dimension_numbers<[1], [0], [0], [1], [0, 0, 1, 1], [], []>} : vector<8x128xbf16>, vector<128x16xbf16>, vector<8x16xf32> -> vector<8x16xf32>
    %c0_394 = arith.constant 0 : index
    %c0_395 = arith.constant 0 : index
    %710 = vector.load %arg22[%c0_394, %c0_395] : memref<8x16xf32, #tpu.memory_space<vmem>>, vector<8x16xf32>
    tpu.vector_store %arg22[%c0_394, %c0_395], %709 {strides = array<i32>} : memref<8x16xf32, #tpu.memory_space<vmem>>, vector<8x16xf32>,
    return
  }
  func.func @transform_0(%arg0: i32, %arg1: memref<6xi32, #tpu.memory_space<smem>>) -> (i32, i32, i32) {
    %c0_i32 = arith.constant 0 : i32
    %c0_i32_0 = arith.constant 0 : i32
    %c0_i32_1 = arith.constant 0 : i32
    return %arg0, %c0_i32, %c0_i32_0 : i32, i32, i32
  }
  func.func @transform_1(%arg0: i32, %arg1: memref<6xi32, #tpu.memory_space<smem>>) -> (i32, i32, i32) {
    %c0_i32 = arith.constant 0 : i32
    %c0_i32_0 = arith.constant 0 : i32
    %c0_i32_1 = arith.constant 0 : i32
    %c0_i32_2 = arith.constant 0 : i32
    return %c0_i32, %c0_i32_0, %c0_i32_1 : i32, i32, i32
  }
  func.func @transform_2(%arg0: i32, %arg1: memref<6xi32, #tpu.memory_space<smem>>) -> (i32, i32, i32) {
    %c0_i32 = arith.constant 0 : i32
    %c0_i32_0 = arith.constant 0 : i32
    %c0_i32_1 = arith.constant 0 : i32
    %c0_i32_2 = arith.constant 0 : i32
    return %c0_i32, %c0_i32_0, %c0_i32_1 : i32, i32, i32
  }
  func.func @transform_3(%arg0: i32, %arg1: memref<6xi32, #tpu.memory_space<smem>>) -> (i32, i32) {
    %c0_i32 = arith.constant 0 : i32
    %c0_i32_0 = arith.constant 0 : i32
    %c0_i32_1 = arith.constant 0 : i32
    return %c0_i32, %c0_i32_0 : i32, i32
  }
  func.func @transform_4(%arg0: i32, %arg1: memref<6xi32, #tpu.memory_space<smem>>) -> (i32, i32, i32) {
    %c0_i32 = arith.constant 0 : i32
    %c0_i32_0 = arith.constant 0 : i32
    %c0_i32_1 = arith.constant 0 : i32
    %c0_i32_2 = arith.constant 0 : i32
    return %c0_i32, %c0_i32_0, %c0_i32_1 : i32, i32, i32
  }
  func.func @transform_5(%arg0: i32, %arg1: memref<6xi32, #tpu.memory_space<smem>>) -> (i32, i32, i32) {
    %c0_i32 = arith.constant 0 : i32
    %c0_i32_0 = arith.constant 0 : i32
    %c0_i32_1 = arith.constant 0 : i32
    %c0_i32_2 = arith.constant 0 : i32
    return %c0_i32, %c0_i32_0, %c0_i32_1 : i32, i32, i32
  }
  func.func @transform_6(%arg0: i32, %arg1: memref<6xi32, #tpu.memory_space<smem>>) -> (i32, i32) {
    %c0_i32 = arith.constant 0 : i32
    %c0_i32_0 = arith.constant 0 : i32
    %c0_i32_1 = arith.constant 0 : i32
    return %c0_i32, %c0_i32_0 : i32, i32
  }
  func.func @transform_7(%arg0: i32, %arg1: memref<6xi32, #tpu.memory_space<smem>>) -> (i32, i32) {
    %c0_i32 = arith.constant 0 : i32
    %c0_i32_0 = arith.constant 0 : i32
    %c0_i32_1 = arith.constant 0 : i32
    return %c0_i32, %c0_i32_0 : i32, i32
  }
  func.func @transform_8(%arg0: i32, %arg1: memref<6xi32, #tpu.memory_space<smem>>) -> (i32, i32) {
    %c0_i32 = arith.constant 0 : i32
    %c0_i32_0 = arith.constant 0 : i32
    %c0_i32_1 = arith.constant 0 : i32
    return %c0_i32, %c0_i32_0 : i32, i32
  }
  func.func @transform_9(%arg0: i32, %arg1: memref<6xi32, #tpu.memory_space<smem>>) -> (i32, i32) {
    %c0_i32 = arith.constant 0 : i32
    %c0_i32_0 = arith.constant 0 : i32
    %c0_i32_1 = arith.constant 0 : i32
    return %c0_i32, %c0_i32_0 : i32, i32
  }
  func.func @transform_10(%arg0: i32, %arg1: memref<6xi32, #tpu.memory_space<smem>>) -> (i32, i32) {
    %c0_i32 = arith.constant 0 : i32
    %c0_i32_0 = arith.constant 0 : i32
    %c0_i32_1 = arith.constant 0 : i32
    return %c0_i32, %c0_i32_0 : i32, i32
  }
  func.func @transform_11(%arg0: i32, %arg1: memref<6xi32, #tpu.memory_space<smem>>) -> (i32, i32) {
    %c0_i32 = arith.constant 0 : i32
    %c0_i32_0 = arith.constant 0 : i32
    %c0_i32_1 = arith.constant 0 : i32
    return %c0_i32, %c0_i32_0 : i32, i32
  }
  func.func @transform_12(%arg0: i32, %arg1: memref<6xi32, #tpu.memory_space<smem>>) -> (i32, i32) {
    %c0_i32 = arith.constant 0 : i32
    %c0_i32_0 = arith.constant 0 : i32
    %c0_i32_1 = arith.constant 0 : i32
    return %c0_i32, %c0_i32_0 : i32, i32
  }
  func.func @transform_13(%arg0: i32, %arg1: memref<6xi32, #tpu.memory_space<smem>>) -> (i32, i32) {
    %c0_i32 = arith.constant 0 : i32
    %c0_i32_0 = arith.constant 0 : i32
    %c0_i32_1 = arith.constant 0 : i32
    return %c0_i32, %c0_i32_0 : i32, i32
  }
  func.func @transform_14(%arg0: i32, %arg1: memref<6xi32, #tpu.memory_space<smem>>) -> (i32, i32) {
    %c0_i32 = arith.constant 0 : i32
    %c0_i32_0 = arith.constant 0 : i32
    %c0_i32_1 = arith.constant 0 : i32
    return %c0_i32, %c0_i32_0 : i32, i32
  }
  func.func @transform_15(%arg0: i32, %arg1: memref<6xi32, #tpu.memory_space<smem>>) -> (i32, i32) {
    %c0_i32 = arith.constant 0 : i32
    %c0_i32_0 = arith.constant 0 : i32
    %c0_i32_1 = arith.constant 0 : i32
    return %c0_i32, %c0_i32_0 : i32, i32
  }
  func.func @transform_16(%arg0: i32, %arg1: memref<6xi32, #tpu.memory_space<smem>>) -> (i32, i32) {
    %c0_i32 = arith.constant 0 : i32
    %c0_i32_0 = arith.constant 0 : i32
    %c0_i32_1 = arith.constant 0 : i32
    return %c0_i32, %c0_i32_0 : i32, i32
  }
  func.func @transform_17(%arg0: i32, %arg1: memref<6xi32, #tpu.memory_space<smem>>) -> (i32, i32, i32) {
    %c0_i32 = arith.constant 0 : i32
    %c0_i32_0 = arith.constant 0 : i32
    %c0_i32_1 = arith.constant 0 : i32
    return %arg0, %c0_i32, %c0_i32_0 : i32, i32, i32
  }
}

</mosaic_0001>

<bundles_post_ra>
// kernel: seq2seq_forward.2
= control target key start
LH: loop header
LB: loop body
LE: loop exit
PB: predicated region body
PF: predicated region fallthrough
CT: control target
= control target key end

     0   :  { %vm92_vm0 = vcmask 261120   ;;  %v2785_v3 = vmov 0.0   ;;  %vm142_vm1 = vcmask 130048   ;;  %s2786_s28 = smov 32   ;;  %s2788_s20 = smov 96   ;;  %s3475_s3 = inlined_call_operand.vmem [shape: bf16[32,128], index: 3, kind: input, shape index: {}]   ;;  %s3476_s2 = inlined_call_operand.vmem [shape: bf16[16,128], index: 2, kind: input, shape index: {}]   ;;  %s3477_s6 = inlined_call_operand.vmem [shape: bf16[32,128], index: 6, kind: input, shape index: {}]   ;;  %s3478_s5 = inlined_call_operand.vmem [shape: bf16[16,128], index: 5, kind: input, shape index: {}]   ;;  %s3479_s0 = inlined_call_operand.vmem [shape: bf16[8,8,16], index: 0, kind: input, shape index: {}, may-alias: {0,1}]   ;;  %s3480_s1 = inlined_call_operand.vmem [shape: bf16[8,8,16], index: 1, kind: input, shape index: {}, may-alias: {0,1}]   ;;  %s3481_s4 = inlined_call_operand.vmem [shape: f32[1,128], index: 4, kind: input, shape index: {}]   ;;  %s3482_s7 = inlined_call_operand.vmem [shape: f32[1,128], index: 7, kind: input, shape index: {}]   ;;  %s3483_s11 = inlined_call_operand.vmem [shape: bf16[32,32], index: 11, kind: input, shape index: {}]   ;;  %s3484_s14 = inlined_call_operand.vmem [shape: bf16[8,8,32], index: 14, kind: output, shape index: {0}]   ;;  %s3485_s8 = inlined_call_operand.vmem [shape: bf16[32,32], index: 8, kind: input, shape index: {}]   ;;  %s3486_s15 = inlined_call_operand.vmem [shape: bf16[8,8,32], index: 15, kind: output, shape index: {1}]   ;;  %s3487_s9 = inlined_call_operand.vmem [shape: bf16[32,32], index: 9, kind: input, shape index: {}]   ;;  %s3488_s12 = inlined_call_operand.vmem [shape: bf16[32,32], index: 12, kind: input, shape index: {}]   ;;  %s3489_s10 = inlined_call_operand.vmem [shape: f32[1,32], index: 10, kind: input, shape index: {}]   ;;  %s3490_s13 = inlined_call_operand.vmem [shape: f32[1,32], index: 13, kind: input, shape index: {}]   ;;  %s3491_s17 = inlined_call_operand.vmem [shape: f32[8,32], index: 17, kind: output, shape index: {3}]   ;;  %s3492_s16 = inlined_call_operand.vmem [shape: f32[8,32], index: 16, kind: output, shape index: {2}]  }
   0x1   :  { %3495 = sst [smem:[#allocation6_spill]] %s3475_s3  ;;  %v2584_v2 = vld [vmem:[%s3477_s6 + $0x8] sm:$0xff]  ;;  %93 = vst.msk [vmem:[#allocation2] sm:$0xff] %vm92_vm0, %v2785_v3  ;;  %v2582_v4 = vld [vmem:[%s3478_s5] sm:$0xff]  ;;  %v2290_v6 = vld [vmem:[%s3480_s1 + $0x1c] sm:$0xf] }
   0x2   :  { %3496 = sst [smem:[#allocation7_spill]] %s3476_s2  ;;  %94 = vst.msk [vmem:[#allocation3] sm:$0xff] %vm92_vm0, %v2785_v3  ;;  %v97_v5 = vld [vmem:[%s3479_s0] sm:$0xf]  ;;  %237 = vmatpush.bf16.msra.mxu2 %v2584_v2  ;;  %260 = vmatpush.bf16.msra.mxu3 %v2582_v4  ;;  %s2787_s2 = smov 64  }
   0x3   :  { %s3497_s26 = sld [smem:[#allocation6_spill]]  ;;  %95 = vst.msk [vmem:[#allocation4] sm:$0xff] %vm92_vm0, %v2785_v3  ;;  %v2583_v8 = vld [vmem:[%s3477_s6] sm:$0xff] }
   0x4   :  { %s3498_s29 = sld [smem:[#allocation7_spill]]  ;;  %96 = vst.msk [vmem:[#allocation5] sm:$0xff] %vm92_vm0, %v2785_v3  ;;  %v2639_v16 = vld [vmem:[%s3481_s4] ss:$0 sm:$0xff] }
   0x5   :  { %2304 = vmatmul.msk.bf16.vlgmr.msra.gmra.mxu3 %vm142_vm1, %v2290_v6  ;;  %v2640_v22 = vld [vmem:[%s3482_s7] ss:$0 sm:$0xff] }
   0x6   :  { %238 = vmatpush.bf16.msra.mxu2 %v2583_v8 }
   0x8   :  { %v98_v9 = vld [vmem:[#allocation2] sm:$0xff] }
   0x9   :  { %v2581_v0 = vld [vmem:[%s3497_s26 + $0x8] sm:$0xff]  ;;  %v2580_v7 = vld [vmem:[%s3497_s26] sm:$0xff]  ;;  %v102_v10 = vpack.c.bf16 %v98_v9, %v98_v9 }
   0xa   :  { %v2579_v1 = vld [vmem:[%s3498_s29] sm:$0xff]  ;;  %129 = vmatpush.bf16.msra.mxu0 %v2581_v0  ;;  %v99_v11 = vld [vmem:[#allocation3] sm:$0xff]  ;;  %v207_v12 = vld [vmem:[#allocation4] sm:$0xff] }
   0xb   :  { %153 = vmatpush.bf16.msra.mxu1 %v2579_v1  ;;  %185 = vrot.lane.b32.xlu1 %v99_v11, %s2786_s28  ;;  %v211_v13 = vpack.c.bf16 %v207_v12, %v207_v12  ;;  %v208_v14 = vld [vmem:[#allocation5] sm:$0xff]  ;;  %v2585_v9 = vld [vmem:[%s3498_s29] sm:$0xff] }
   0xc   :  { %292 = vrot.lane.b32.xlu2 %v208_v14, %s2786_s28  ;;  %v2588_v11 = vld [vmem:[%s3478_s5] sm:$0xff]  ;;  %401 = vmatpush.bf16.msrb.mxu3 %v2585_v9 }
   0xd   :  { %2299 = vmatmul.msk.bf16.vlgmr.msra.gmra.mxu2 %vm92_vm0, %v211_v13  ;;  %v2307_v12 = vld [vmem:[%s3479_s0 + $0x4] sm:$0xf] }
   0xe   :  { %2288 = vmatmul.msk.bf16.vlgmr.msra.gmra.mxu1 %vm142_vm1, %v97_v5  ;;  %130 = vmatpush.bf16.msra.mxu0 %v2580_v7 }
   0xf   :  { %508 = vmatpush.bf16.msrb.mxu2 %v2588_v11 }
  0x11   :  { %2283 = vmatmul.msk.bf16.vlgmr.msra.gmra.mxu0 %vm92_vm0, %v102_v10  ;;  %v2587_v10 = vld [vmem:[%s3497_s26 + $0x8] sm:$0xff] }
  0x12   :  { %378 = vmatpush.bf16.msrb.mxu1 %v2587_v10 }
  0x15   :  { %2321 = vmatmul.msk.bf16.vlgmr.msrb.gmra.mxu3 %vm142_vm1, %v2307_v12 }
  0x66   :  { %v293_v61 = vpop.permute.xlu2 %292 }
  0x7d   :  { %v186_v1 = vpop.permute.xlu1 %185 }
  0x88   :  { %v262_v19 = vpop.f32.mrf.mxu3 }
  0x8b   :  { %v155_v15 = vpop.f32.mrf.mxu1 }
  0x8e   :  { %v132_v17 = vpop.f32.mrf.mxu0 }
  0x8f   :  { %v156_v18 = vadd.f32 %v155_v15, %v132_v17  ;;  %v2586_v17 = vld [vmem:[%s3497_s26] sm:$0xff] }
  0x90   :  { %v240_v23 = vpop.f32.mrf.mxu2  ;;  %v264_v26 = vpop.f32.mrf.mxu3  ;;  %379 = vmatpush.bf16.msrb.mxu1 %v2586_v17 }
  0x91   :  { %v163_v20 = vadd.f32 %v2639_v16, %v156_v18  ;;  %v263_v25 = vadd.f32 %v262_v19, %v240_v23  ;;  %v2590_v18 = vld [vmem:[%s3477_s6 + $0x8] sm:$0xff]  ;;  %v2323_v19 = vld [vmem:[%s3480_s1 + $0x18] sm:$0xf] }
  0x92   :  { %2337 = vmatmul.msk.bf16.vlgmr.msrb.gmra.mxu2 %vm142_vm1, %v2323_v19  ;;  %485 = vmatpush.bf16.msrb.mxu0 %v2590_v18 }
  0x93   :  { %v157_v21 = vpop.f32.mrf.mxu1  ;;  %2657 = vtanh.f32 %v163_v20  ;;  %v270_v28 = vadd.f32 %v2640_v22, %v263_v25  ;;  %v2289_v31 = vmul.f32 -1.442695, %v163_v20  ;;  %v2589_v20 = vld [vmem:[%s3477_s6] sm:$0xff] }
  0x95   :  { %2659 = vtanh.f32 %v270_v28  ;;  %v2305_v32 = vmul.f32 -1.442695, %v270_v28 }
  0x96   :  { %v134_v24 = vpop.f32.mrf.mxu0  ;;  %2661 = vpow2.f32 %v2289_v31  ;;  %486 = vmatpush.bf16.msrb.mxu0 %v2589_v20 }
  0x97   :  { %2663 = vpow2.f32 %v2305_v32  ;;  %v2641_v32 = vld [vmem:[%s3481_s4] ss:$0 sm:$0xff] }
  0x98   :  { %v242_v29 = vpop.f32.mrf.mxu2  ;;  %v403_v28 = vpop.f32.mrf.mxu3 }
  0x99   :  { %v2658_v27 = vpop.eup %2657 }
  0x9a   :  { %190 = vrot.lane.b32.xlu0 %v2658_v27, %s2787_s2 }
  0x9b   :  { %v2660_v30 = vpop.eup %2659 }
  0x9c   :  { %v2662_v33 = vpop.eup %2661 }
  0x9d   :  { %v167_v34 = vadd.f32 1.0, %v2662_v33  ;;  %v2664_v35 = vpop.eup %2663 }
  0x9e   :  { %v274_v36 = vadd.f32 1.0, %v2664_v35 }
  0x9f   :  { %2665 = vrcp.f32 %v167_v34  ;;  %v179_v45 = vand.u32 2147483648, %v167_v34  ;;  %vm173_vm3 = vweird.f32 %v167_v34  ;;  %v177_v46 = vand.u32 2147483647, %v167_v34 }
  0xa0   :  { %2667 = vrcp.f32 %v274_v36  ;;  %v286_v54 = vand.u32 2147483648, %v274_v36  ;;  %vm280_vm7 = vweird.f32 %v274_v36  ;;  %v284_v55 = vand.u32 2147483647, %v274_v36  ;;  %v405_v29 = vpop.f32.mrf.mxu3 }
  0xa1   :  { %v180_v49 = vor.u32 1.1754944e-38, %v179_v45  ;;  %vm178_vm5 = vcmp.eq.f32.partialorder %v177_v46, 8.507059e+37 }
  0xa2   :  { %297 = vrot.lane.b32.xlu0 %v2660_v30, %s2787_s2  ;;  %v287_v57 = vor.u32 1.1754944e-38, %v286_v54  ;;  %vm285_vm9 = vcmp.eq.f32.partialorder %v284_v55, 8.507059e+37 }
  0xa5   :  { %v2666_v37 = vpop.eup %2665 }
  0xa6   :  { %v169_v38 = vmul.f32 %v2666_v37, %v167_v34  ;;  %v2668_v40 = vpop.eup %2667  ;;  %vm174_vm2 = vweird.f32 %v2666_v37 }
  0xa7   :  { %v276_v42 = vmul.f32 %v2668_v40, %v274_v36  ;;  %vm175_vm4 = vmor %vm173_vm3, %vm174_vm2  ;;  %vm281_vm6 = vweird.f32 %v2668_v40 }
  0xa8   :  { %v170_v39 = vsub.f32 1.0, %v169_v38  ;;  %vm282_vm8 = vmor %vm280_vm7, %vm281_vm6 }
  0xa9   :  { %v277_v44 = vsub.f32 1.0, %v276_v42 }
  0xaa   :  { %v171_v41 = vmul.f32 %v2666_v37, %v170_v39 }
  0xab   :  { %v278_v48 = vmul.f32 %v2668_v40, %v277_v44 }
  0xac   :  { %v172_v43 = vadd.f32 %v2666_v37, %v171_v41 }
  0xad   :  { %v279_v52 = vadd.f32 %v2668_v40, %v278_v48 }
  0xae   :  { %v176_v47 = vsel %vm175_vm4, %v2666_v37, %v172_v43  ;;  %v2642_v37 = vld [vmem:[%s3482_s7] ss:$0 sm:$0xff] }
  0xaf   :  { %v181_v50 = vsel %vm178_vm5, %v180_v49, %v176_v47  ;;  %v283_v56 = vsel %vm282_vm8, %v2668_v40, %v279_v52 }
  0xb0   :  { %v288_v58 = vsel %vm285_vm9, %v287_v57, %v283_v56  ;;  %v188_v3 = vmul.f32 %v186_v1, %v181_v50 }
  0xb1   :  { %v295_v62 = vmul.f32 %v293_v61, %v288_v58 }
 0x10c   :  { %v191_v51 = vpop.permute.xlu0 %190 }
 0x10d   :  { %v193_v53 = vmul.f32 %v191_v51, %v181_v50 }
 0x10f   :  { %195 = vrot.lane.b32.xlu1 %v193_v53, %s2786_s28 }
 0x114   :  { %v298_v59 = vpop.permute.xlu0 %297 }
 0x115   :  { %v300_v60 = vmul.f32 %v298_v59, %v288_v58  ;;  %v510_v30 = vpop.f32.mrf.mxu2 }
 0x117   :  { %302 = vrot.lane.b32.xlu2 %v300_v60, %s2786_s28 }
 0x11d   :  { %v512_v31 = vpop.f32.mrf.mxu2 }
 0x171   :  { %v303_v63 = vpop.permute.xlu2 %302 }
 0x172   :  { %v305_v0 = vadd.f32 %v303_v63, %v295_v62 }
 0x174   :  { %2669 = vtanh.f32 %v305_v0 }
 0x17a   :  { %v2670_v2 = vpop.eup %2669 }
 0x17b   :  { %308 = vrot.lane.b32.xlu1 %v2670_v2, %s2787_s2 }
 0x181   :  { %v196_v4 = vpop.permute.xlu1 %195 }
 0x182   :  { %v198_v5 = vadd.f32 %v196_v4, %v188_v3 }
 0x184   :  { %2671 = vtanh.f32 %v198_v5  ;;  %318 = vrot.lane.b32.xlu1 %v198_v5, %s2788_s20 }
 0x18a   :  { %v2672_v6 = vpop.eup %2671 }
 0x18b   :  { %201 = vrot.lane.b32.xlu0 %v2672_v6, %s2787_s2 }
 0x1ed   :  { %v309_v7 = vpop.permute.xlu1 %308 }
 0x1ee   :  { %v2926_v8 = vmul.f32 %v309_v7, %v288_v58 }
 0x1f0   :  { %323 = vrot.lane.b32.xlu0 %v2926_v8, %s2786_s28 }
 0x1f6   :  { %v319_v13 = vpop.permute.xlu1 %318 }
 0x1f7   :  { %321 = vst.msk [vmem:[#allocation3] sm:$0xff] %vm92_vm0, %v319_v13 }
 0x1fd   :  { %v202_v14 = vpop.permute.xlu0 %201 }
 0x1fe   :  { %v2944_v15 = vmul.f32 %v202_v14, %v181_v50  ;;  %v349_v16 = vld [vmem:[#allocation3] sm:$0xff] }
 0x200   :  { %313 = vrot.lane.b32.xlu2 %v2944_v15, %s2786_s28 }
 0x208   :  { %328 = vrot.lane.b32.xlu2 %v305_v0, %s2788_s20 }
 0x210   :  { %433 = vrot.lane.b32.xlu2 %v349_v16, %s2786_s28 }
 0x25a   :  { %v314_v21 = vpop.permute.xlu2 %313 }
 0x25b   :  { %316 = vst.msk [vmem:[#allocation2] sm:$0xff] %vm92_vm0, %v314_v21 }
 0x262   :  { %v329_v22 = vpop.permute.xlu2 %328  ;;  %v324_v23 = vpop.permute.xlu0 %323  ;;  %v348_v24 = vld [vmem:[#allocation2] sm:$0xff] }
 0x263   :  { %331 = vst.msk [vmem:[#allocation5] sm:$0xff] %vm92_vm0, %v329_v22  ;;  %v352_v25 = vpack.c.bf16 %v348_v24, %v348_v24 }
 0x264   :  { %326 = vst.msk [vmem:[#allocation4] sm:$0xff] %vm92_vm0, %v324_v23 }
 0x265   :  { %2316 = vmatmul.msk.bf16.vlgmr.msrb.gmra.mxu1 %vm92_vm0, %v352_v25  ;;  %v2591_v25 = vld [vmem:[%s3498_s29] sm:$0xff] }
 0x266   :  { %649 = vmatpush.bf16.msra.mxu3 %v2591_v25 }
 0x26a   :  { %v456_v44 = vld [vmem:[#allocation5] sm:$0xff]  ;;  %v434_v12 = vpop.permute.xlu2 %433 }
 0x26b   :  { %v455_v26 = vld [vmem:[#allocation4] sm:$0xff] }
 0x26c   :  { %v459_v27 = vpack.c.bf16 %v455_v26, %v455_v26  ;;  %v2593_v26 = vld [vmem:[%s3497_s26 + $0x8] sm:$0xff] }
 0x26d   :  { %626 = vmatpush.bf16.msra.mxu1 %v2593_v26 }
 0x26e   :  { %2332 = vmatmul.msk.bf16.vlgmr.msrb.gmra.mxu0 %vm92_vm0, %v459_v27  ;;  %v2594_v27 = vld [vmem:[%s3478_s5] sm:$0xff] }
 0x26f   :  { %756 = vmatpush.bf16.msra.mxu2 %v2594_v27 }
 0x2e2   :  { %v381_v33 = vpop.f32.mrf.mxu1 }
 0x2e3   :  { %v404_v34 = vadd.f32 %v403_v28, %v381_v33  ;;  %v2341_v28 = vld [vmem:[%s3479_s0 + $0x8] sm:$0xf]  ;;  %v2592_v33 = vld [vmem:[%s3497_s26] sm:$0xff] }
 0x2e4   :  { %2355 = vmatmul.msk.bf16.vlgmr.msra.gmra.mxu3 %vm142_vm1, %v2341_v28  ;;  %627 = vmatpush.bf16.msra.mxu1 %v2592_v33 }
 0x2e5   :  { %v411_v35 = vadd.f32 %v2641_v32, %v404_v34  ;;  %v2596_v34 = vld [vmem:[%s3477_s6 + $0x8] sm:$0xff] }
 0x2e6   :  { %733 = vmatpush.bf16.msra.mxu0 %v2596_v34 }
 0x2e7   :  { %2673 = vtanh.f32 %v411_v35  ;;  %v2322_v45 = vmul.f32 -1.442695, %v411_v35  ;;  %v2357_v35 = vld [vmem:[%s3480_s1 + $0x14] sm:$0xf] }
 0x2e8   :  { %2371 = vmatmul.msk.bf16.vlgmr.msra.gmra.mxu2 %vm142_vm1, %v2357_v35 }
 0x2ea   :  { %v383_v36 = vpop.f32.mrf.mxu1 }
 0x2eb   :  { %v488_v38 = vpop.f32.mrf.mxu0  ;;  %v2595_v36 = vld [vmem:[%s3477_s6] sm:$0xff] }
 0x2ec   :  { %v511_v39 = vadd.f32 %v510_v30, %v488_v38  ;;  %734 = vmatpush.bf16.msra.mxu0 %v2595_v36 }
 0x2ed   :  { %v2674_v40 = vpop.eup %2673 }
 0x2ee   :  { %v518_v41 = vadd.f32 %v2642_v37, %v511_v39  ;;  %438 = vrot.lane.b32.xlu0 %v2674_v40, %s2787_s2 }
 0x2f0   :  { %2675 = vtanh.f32 %v518_v41  ;;  %v2338_v46 = vmul.f32 -1.442695, %v518_v41 }
 0x2f1   :  { %2677 = vpow2.f32 %v2322_v45 }
 0x2f2   :  { %2679 = vpow2.f32 %v2338_v46 }
 0x2f3   :  { %v490_v42 = vpop.f32.mrf.mxu0 }
 0x2f6   :  { %v2676_v43 = vpop.eup %2675 }
 0x2f7   :  { %545 = vrot.lane.b32.xlu1 %v2676_v43, %s2787_s2  ;;  %v2678_v47 = vpop.eup %2677 }
 0x2f8   :  { %v415_v48 = vadd.f32 1.0, %v2678_v47  ;;  %v2680_v49 = vpop.eup %2679 }
 0x2f9   :  { %v522_v50 = vadd.f32 1.0, %v2680_v49 }
 0x2fa   :  { %2681 = vrcp.f32 %v415_v48  ;;  %v427_v58 = vand.u32 2147483648, %v415_v48  ;;  %vm421_vm11 = vweird.f32 %v415_v48  ;;  %v425_v60 = vand.u32 2147483647, %v415_v48 }
 0x2fb   :  { %2683 = vrcp.f32 %v522_v50  ;;  %v534_v4 = vand.u32 2147483648, %v522_v50  ;;  %vm528_vm15 = vweird.f32 %v522_v50  ;;  %v532_v5 = vand.u32 2147483647, %v522_v50 }
 0x2fc   :  { %v428_v62 = vor.u32 1.1754944e-38, %v427_v58  ;;  %vm426_vm13 = vcmp.eq.f32.partialorder %v425_v60, 8.507059e+37 }
 0x2fd   :  { %v535_v7 = vor.u32 1.1754944e-38, %v534_v4  ;;  %vm533_vm3 = vcmp.eq.f32.partialorder %v532_v5, 8.507059e+37 }
 0x2ff   :  { %540 = vrot.lane.b32.xlu1 %v456_v44, %s2786_s28 }
 0x300   :  { %v2682_v51 = vpop.eup %2681 }
 0x301   :  { %v417_v52 = vmul.f32 %v2682_v51, %v415_v48  ;;  %v2684_v54 = vpop.eup %2683  ;;  %vm422_vm10 = vweird.f32 %v2682_v51  ;;  %v2643_v48 = vld [vmem:[%s3481_s4] ss:$0 sm:$0xff] }
 0x302   :  { %v524_v56 = vmul.f32 %v2684_v54, %v522_v50  ;;  %vm423_vm12 = vmor %vm421_vm11, %vm422_vm10  ;;  %vm529_vm14 = vweird.f32 %v2684_v54 }
 0x303   :  { %v418_v53 = vsub.f32 1.0, %v417_v52  ;;  %vm530_vm2 = vmor %vm528_vm15, %vm529_vm14 }
 0x304   :  { %v525_v59 = vsub.f32 1.0, %v524_v56 }
 0x305   :  { %v419_v55 = vmul.f32 %v2682_v51, %v418_v53  ;;  %v2644_v53 = vld [vmem:[%s3482_s7] ss:$0 sm:$0xff] }
 0x306   :  { %v526_v63 = vmul.f32 %v2684_v54, %v525_v59 }
 0x307   :  { %v420_v57 = vadd.f32 %v2682_v51, %v419_v55 }
 0x308   :  { %v527_v3 = vadd.f32 %v2684_v54, %v526_v63 }
 0x309   :  { %v424_v61 = vsel %vm423_vm12, %v2682_v51, %v420_v57 }
 0x30a   :  { %v429_v0 = vsel %vm426_vm13, %v428_v62, %v424_v61  ;;  %v531_v6 = vsel %vm530_vm2, %v2684_v54, %v527_v3 }
 0x30b   :  { %v536_v10 = vsel %vm533_vm3, %v535_v7, %v531_v6  ;;  %v436_v19 = vmul.f32 %v434_v12, %v429_v0 }
 0x360   :  { %v439_v1 = vpop.permute.xlu0 %438 }
 0x361   :  { %v441_v2 = vmul.f32 %v439_v1, %v429_v0 }
 0x363   :  { %443 = vrot.lane.b32.xlu0 %v441_v2, %s2786_s28 }
 0x367   :  { %v651_v44 = vpop.f32.mrf.mxu3 }
 0x369   :  { %v546_v9 = vpop.permute.xlu1 %545 }
 0x36a   :  { %v548_v11 = vmul.f32 %v546_v9, %v536_v10 }
 0x36b   :  { %v758_v46 = vpop.f32.mrf.mxu2 }
 0x36c   :  { %550 = vrot.lane.b32.xlu2 %v548_v11, %s2786_s28 }
 0x36f   :  { %v653_v45 = vpop.f32.mrf.mxu3 }
 0x370   :  { %v2600_v45 = vld [vmem:[%s3478_s5] sm:$0xff] }
 0x371   :  { %v541_v13 = vpop.permute.xlu1 %540  ;;  %1004 = vmatpush.bf16.msrb.mxu2 %v2600_v45 }
 0x372   :  { %v543_v14 = vmul.f32 %v541_v13, %v536_v10 }
 0x373   :  { %v760_v47 = vpop.f32.mrf.mxu2 }
 0x3c6   :  { %v551_v16 = vpop.permute.xlu2 %550 }
 0x3c7   :  { %v553_v17 = vadd.f32 %v551_v16, %v543_v14 }
 0x3c9   :  { %2685 = vtanh.f32 %v553_v17 }
 0x3cf   :  { %v2686_v18 = vpop.eup %2685 }
 0x3d0   :  { %556 = vrot.lane.b32.xlu1 %v2686_v18, %s2787_s2 }
 0x3d5   :  { %v444_v20 = vpop.permute.xlu0 %443 }
 0x3d6   :  { %v446_v21 = vadd.f32 %v444_v20, %v436_v19 }
 0x3d8   :  { %2687 = vtanh.f32 %v446_v21  ;;  %566 = vrot.lane.b32.xlu1 %v446_v21, %s2788_s20 }
 0x3de   :  { %v2688_v22 = vpop.eup %2687 }
 0x3df   :  { %449 = vrot.lane.b32.xlu0 %v2688_v22, %s2787_s2 }
 0x442   :  { %v557_v23 = vpop.permute.xlu1 %556 }
 0x443   :  { %v2982_v24 = vmul.f32 %v557_v23, %v536_v10 }
 0x445   :  { %571 = vrot.lane.b32.xlu0 %v2982_v24, %s2786_s28 }
 0x44a   :  { %v567_v29 = vpop.permute.xlu1 %566 }
 0x44b   :  { %569 = vst.msk [vmem:[#allocation3] sm:$0xff] %vm92_vm0, %v567_v29 }
 0x451   :  { %v450_v30 = vpop.permute.xlu0 %449 }
 0x452   :  { %v3000_v31 = vmul.f32 %v450_v30, %v429_v0  ;;  %v597_v32 = vld [vmem:[#allocation3] sm:$0xff] }
 0x454   :  { %561 = vrot.lane.b32.xlu2 %v3000_v31, %s2786_s28 }
 0x45c   :  { %576 = vrot.lane.b32.xlu2 %v553_v17, %s2788_s20 }
 0x464   :  { %681 = vrot.lane.b32.xlu2 %v597_v32, %s2786_s28 }
 0x4ae   :  { %v562_v37 = vpop.permute.xlu2 %561 }
 0x4af   :  { %564 = vst.msk [vmem:[#allocation2] sm:$0xff] %vm92_vm0, %v562_v37 }
 0x4b6   :  { %v577_v38 = vpop.permute.xlu2 %576  ;;  %v596_v39 = vld [vmem:[#allocation2] sm:$0xff] }
 0x4b7   :  { %579 = vst.msk [vmem:[#allocation5] sm:$0xff] %vm92_vm0, %v577_v38  ;;  %v572_v40 = vpop.permute.xlu0 %571  ;;  %v600_v41 = vpack.c.bf16 %v596_v39, %v596_v39 }
 0x4b8   :  { %574 = vst.msk [vmem:[#allocation4] sm:$0xff] %vm92_vm0, %v572_v40 }
 0x4b9   :  { %2350 = vmatmul.msk.bf16.vlgmr.msra.gmra.mxu1 %vm92_vm0, %v600_v41 }
 0x4be   :  { %v704_v60 = vld [vmem:[#allocation5] sm:$0xff]  ;;  %v682_v30 = vpop.permute.xlu2 %681 }
 0x4bf   :  { %v703_v42 = vld [vmem:[#allocation4] sm:$0xff] }
 0x4c0   :  { %v707_v43 = vpack.c.bf16 %v703_v42, %v703_v42 }
 0x4c2   :  { %2366 = vmatmul.msk.bf16.vlgmr.msra.gmra.mxu0 %vm92_vm0, %v707_v43  ;;  %v2597_v43 = vld [vmem:[%s3498_s29] sm:$0xff] }
 0x4c3   :  { %897 = vmatpush.bf16.msrb.mxu3 %v2597_v43 }
 0x536   :  { %v629_v49 = vpop.f32.mrf.mxu1 }
 0x537   :  { %v652_v50 = vadd.f32 %v651_v44, %v629_v49  ;;  %v2599_v44 = vld [vmem:[%s3497_s26 + $0x8] sm:$0xff] }
 0x538   :  { %874 = vmatpush.bf16.msrb.mxu1 %v2599_v44 }
 0x539   :  { %v659_v51 = vadd.f32 %v2643_v48, %v652_v50 }
 0x53b   :  { %2689 = vtanh.f32 %v659_v51  ;;  %v2356_v61 = vmul.f32 -1.442695, %v659_v51  ;;  %v2598_v51 = vld [vmem:[%s3497_s26] sm:$0xff] }
 0x53c   :  { %875 = vmatpush.bf16.msrb.mxu1 %v2598_v51 }
 0x53e   :  { %v631_v52 = vpop.f32.mrf.mxu1 }
 0x53f   :  { %v736_v54 = vpop.f32.mrf.mxu0  ;;  %v2602_v52 = vld [vmem:[%s3477_s6 + $0x8] sm:$0xff] }
 0x540   :  { %v759_v55 = vadd.f32 %v758_v46, %v736_v54  ;;  %v2375_v46 = vld [vmem:[%s3479_s0 + $0xc] sm:$0xf]  ;;  %981 = vmatpush.bf16.msrb.mxu0 %v2602_v52  ;;  %v2601_v54 = vld [vmem:[%s3477_s6] sm:$0xff] }
 0x541   :  { %v2690_v56 = vpop.eup %2689  ;;  %2389 = vmatmul.msk.bf16.vlgmr.msrb.gmra.mxu3 %vm142_vm1, %v2375_v46 }
 0x542   :  { %v766_v57 = vadd.f32 %v2644_v53, %v759_v55  ;;  %686 = vrot.lane.b32.xlu0 %v2690_v56, %s2787_s2  ;;  %v2391_v53 = vld [vmem:[%s3480_s1 + $0x10] sm:$0xf] }
 0x543   :  { %2405 = vmatmul.msk.bf16.vlgmr.msrb.gmra.mxu2 %vm142_vm1, %v2391_v53 }
 0x544   :  { %2691 = vtanh.f32 %v766_v57  ;;  %v2372_v62 = vmul.f32 -1.442695, %v766_v57  ;;  %982 = vmatpush.bf16.msrb.mxu0 %v2601_v54 }
 0x545   :  { %2693 = vpow2.f32 %v2356_v61 }
 0x546   :  { %2695 = vpow2.f32 %v2372_v62 }
 0x547   :  { %v738_v58 = vpop.f32.mrf.mxu0 }
 0x54a   :  { %v2692_v59 = vpop.eup %2691 }
 0x54b   :  { %793 = vrot.lane.b32.xlu1 %v2692_v59, %s2787_s2  ;;  %v2694_v63 = vpop.eup %2693 }
 0x54c   :  { %v663_v0 = vadd.f32 1.0, %v2694_v63  ;;  %v2696_v1 = vpop.eup %2695 }
 0x54d   :  { %v770_v2 = vadd.f32 1.0, %v2696_v1 }
 0x54e   :  { %2697 = vrcp.f32 %v663_v0  ;;  %v675_v11 = vand.u32 2147483648, %v663_v0  ;;  %vm669_vm5 = vweird.f32 %v663_v0  ;;  %v673_v13 = vand.u32 2147483647, %v663_v0 }
 0x54f   :  { %2699 = vrcp.f32 %v770_v2  ;;  %v782_v22 = vand.u32 2147483648, %v770_v2  ;;  %vm776_vm9 = vweird.f32 %v770_v2  ;;  %v780_v23 = vand.u32 2147483647, %v770_v2 }
 0x550   :  { %v676_v16 = vor.u32 1.1754944e-38, %v675_v11  ;;  %vm674_vm7 = vcmp.eq.f32.partialorder %v673_v13, 8.507059e+37 }
 0x551   :  { %v783_v26 = vor.u32 1.1754944e-38, %v782_v22  ;;  %vm781_vm11 = vcmp.eq.f32.partialorder %v780_v23, 8.507059e+37 }
 0x553   :  { %788 = vrot.lane.b32.xlu1 %v704_v60, %s2786_s28 }
 0x554   :  { %v2698_v3 = vpop.eup %2697 }
 0x555   :  { %v665_v4 = vmul.f32 %v2698_v3, %v663_v0  ;;  %v2700_v6 = vpop.eup %2699  ;;  %vm670_vm4 = vweird.f32 %v2698_v3 }
 0x556   :  { %v772_v9 = vmul.f32 %v2700_v6, %v770_v2  ;;  %vm671_vm6 = vmor %vm669_vm5, %vm670_vm4  ;;  %vm777_vm8 = vweird.f32 %v2700_v6  ;;  %v2645_v2 = vld [vmem:[%s3481_s4] ss:$0 sm:$0xff] }
 0x557   :  { %v666_v5 = vsub.f32 1.0, %v665_v4  ;;  %vm778_vm10 = vmor %vm776_vm9, %vm777_vm8 }
 0x558   :  { %v773_v12 = vsub.f32 1.0, %v772_v9 }
 0x559   :  { %v667_v7 = vmul.f32 %v2698_v3, %v666_v5 }
 0x55a   :  { %v774_v17 = vmul.f32 %v2700_v6, %v773_v12 }
 0x55b   :  { %v668_v10 = vadd.f32 %v2698_v3, %v667_v7  ;;  %v2646_v7 = vld [vmem:[%s3482_s7] ss:$0 sm:$0xff] }
 0x55c   :  { %v775_v21 = vadd.f32 %v2700_v6, %v774_v17 }
 0x55d   :  { %v672_v14 = vsel %vm671_vm6, %v2698_v3, %v668_v10 }
 0x55e   :  { %v677_v18 = vsel %vm674_vm7, %v676_v16, %v672_v14  ;;  %v779_v25 = vsel %vm778_vm10, %v2700_v6, %v775_v21 }
 0x55f   :  { %v784_v28 = vsel %vm781_vm11, %v783_v26, %v779_v25  ;;  %v684_v37 = vmul.f32 %v682_v30, %v677_v18 }
 0x5b4   :  { %v687_v19 = vpop.permute.xlu0 %686 }
 0x5b5   :  { %v689_v20 = vmul.f32 %v687_v19, %v677_v18 }
 0x5b7   :  { %691 = vrot.lane.b32.xlu0 %v689_v20, %s2786_s28 }
 0x5bd   :  { %v794_v27 = vpop.permute.xlu1 %793 }
 0x5be   :  { %v796_v29 = vmul.f32 %v794_v27, %v784_v28 }
 0x5c0   :  { %798 = vrot.lane.b32.xlu2 %v796_v29, %s2786_s28 }
 0x5c4   :  { %v899_v62 = vpop.f32.mrf.mxu3 }
 0x5c5   :  { %v789_v32 = vpop.permute.xlu1 %788 }
 0x5c6   :  { %v791_v33 = vmul.f32 %v789_v32, %v784_v28  ;;  %v1006_v0 = vpop.f32.mrf.mxu2 }
 0x5cc   :  { %v901_v63 = vpop.f32.mrf.mxu3 }
 0x5cd   :  { %v2603_v63 = vld [vmem:[%s3498_s29] sm:$0xff] }
 0x5ce   :  { %v1008_v1 = vpop.f32.mrf.mxu2  ;;  %1145 = vmatpush.bf16.msra.mxu3 %v2603_v63 }
 0x5cf   :  { %v2606_v1 = vld [vmem:[%s3478_s5] sm:$0xff] }
 0x5d0   :  { %1252 = vmatpush.bf16.msra.mxu2 %v2606_v1 }
 0x61a   :  { %v799_v34 = vpop.permute.xlu2 %798 }
 0x61b   :  { %v801_v35 = vadd.f32 %v799_v34, %v791_v33 }
 0x61d   :  { %2701 = vtanh.f32 %v801_v35 }
 0x623   :  { %v2702_v36 = vpop.eup %2701 }
 0x624   :  { %804 = vrot.lane.b32.xlu1 %v2702_v36, %s2787_s2 }
 0x629   :  { %v692_v38 = vpop.permute.xlu0 %691 }
 0x62a   :  { %v694_v39 = vadd.f32 %v692_v38, %v684_v37 }
 0x62c   :  { %2703 = vtanh.f32 %v694_v39  ;;  %814 = vrot.lane.b32.xlu1 %v694_v39, %s2788_s20 }
 0x632   :  { %v2704_v40 = vpop.eup %2703 }
 0x633   :  { %697 = vrot.lane.b32.xlu0 %v2704_v40, %s2787_s2 }
 0x696   :  { %v805_v41 = vpop.permute.xlu1 %804 }
 0x697   :  { %v3038_v42 = vmul.f32 %v805_v41, %v784_v28 }
 0x699   :  { %819 = vrot.lane.b32.xlu0 %v3038_v42, %s2786_s28 }
 0x69e   :  { %v815_v47 = vpop.permute.xlu1 %814 }
 0x69f   :  { %817 = vst.msk [vmem:[#allocation3] sm:$0xff] %vm92_vm0, %v815_v47 }
 0x6a5   :  { %v698_v48 = vpop.permute.xlu0 %697 }
 0x6a6   :  { %v3056_v49 = vmul.f32 %v698_v48, %v677_v18  ;;  %v845_v50 = vld [vmem:[#allocation3] sm:$0xff] }
 0x6a8   :  { %809 = vrot.lane.b32.xlu2 %v3056_v49, %s2786_s28 }
 0x6b0   :  { %824 = vrot.lane.b32.xlu2 %v801_v35, %s2788_s20 }
 0x6b8   :  { %929 = vrot.lane.b32.xlu2 %v845_v50, %s2786_s28 }
 0x702   :  { %v810_v55 = vpop.permute.xlu2 %809 }
 0x703   :  { %812 = vst.msk [vmem:[#allocation2] sm:$0xff] %vm92_vm0, %v810_v55 }
 0x70a   :  { %v825_v56 = vpop.permute.xlu2 %824  ;;  %v844_v57 = vld [vmem:[#allocation2] sm:$0xff] }
 0x70b   :  { %827 = vst.msk [vmem:[#allocation5] sm:$0xff] %vm92_vm0, %v825_v56  ;;  %v820_v58 = vpop.permute.xlu0 %819  ;;  %v848_v59 = vpack.c.bf16 %v844_v57, %v844_v57 }
 0x70c   :  { %822 = vst.msk [vmem:[#allocation4] sm:$0xff] %vm92_vm0, %v820_v58 }
 0x70d   :  { %2384 = vmatmul.msk.bf16.vlgmr.msrb.gmra.mxu1 %vm92_vm0, %v848_v59 }
 0x712   :  { %v952_v16 = vld [vmem:[#allocation5] sm:$0xff]  ;;  %v930_v51 = vpop.permute.xlu2 %929 }
 0x713   :  { %v951_v60 = vld [vmem:[#allocation4] sm:$0xff] }
 0x714   :  { %v955_v61 = vpack.c.bf16 %v951_v60, %v951_v60 }
 0x716   :  { %2400 = vmatmul.msk.bf16.vlgmr.msrb.gmra.mxu0 %vm92_vm0, %v955_v61 }
 0x78a   :  { %v877_v3 = vpop.f32.mrf.mxu1 }
 0x78b   :  { %v900_v4 = vadd.f32 %v899_v62, %v877_v3 }
 0x78d   :  { %v907_v5 = vadd.f32 %v2645_v2, %v900_v4  ;;  %v2409_v2 = vld [vmem:[%s3479_s0 + $0x10] sm:$0xf] }
 0x78e   :  { %2423 = vmatmul.msk.bf16.vlgmr.msra.gmra.mxu3 %vm142_vm1, %v2409_v2 }
 0x78f   :  { %2705 = vtanh.f32 %v907_v5  ;;  %v2390_v17 = vmul.f32 -1.442695, %v907_v5 }
 0x792   :  { %v879_v6 = vpop.f32.mrf.mxu1 }
 0x793   :  { %v984_v9 = vpop.f32.mrf.mxu0 }
 0x794   :  { %v1007_v10 = vadd.f32 %v1006_v0, %v984_v9  ;;  %v2605_v0 = vld [vmem:[%s3497_s26 + $0x8] sm:$0xff] }
 0x795   :  { %v2706_v11 = vpop.eup %2705  ;;  %1122 = vmatpush.bf16.msra.mxu1 %v2605_v0  ;;  %v2608_v9 = vld [vmem:[%s3477_s6 + $0x8] sm:$0xff] }
 0x796   :  { %v1014_v12 = vadd.f32 %v2646_v7, %v1007_v10  ;;  %934 = vrot.lane.b32.xlu0 %v2706_v11, %s2787_s2  ;;  %v2604_v7 = vld [vmem:[%s3497_s26] sm:$0xff]  ;;  %v2425_v10 = vld [vmem:[%s3480_s1 + $0xc] sm:$0xf]  ;;  %1229 = vmatpush.bf16.msra.mxu0 %v2608_v9 }
 0x797   :  { %2439 = vmatmul.msk.bf16.vlgmr.msra.gmra.mxu2 %vm142_vm1, %v2425_v10  ;;  %v2607_v11 = vld [vmem:[%s3477_s6] sm:$0xff] }
 0x798   :  { %2707 = vtanh.f32 %v1014_v12  ;;  %v2406_v18 = vmul.f32 -1.442695, %v1014_v12 }
 0x799   :  { %2709 = vpow2.f32 %v2390_v17  ;;  %1123 = vmatpush.bf16.msra.mxu1 %v2604_v7 }
 0x79a   :  { %2711 = vpow2.f32 %v2406_v18  ;;  %1230 = vmatpush.bf16.msra.mxu0 %v2607_v11 }
 0x79b   :  { %v986_v13 = vpop.f32.mrf.mxu0 }
 0x79e   :  { %v2708_v14 = vpop.eup %2707 }
 0x79f   :  { %1041 = vrot.lane.b32.xlu1 %v2708_v14, %s2787_s2  ;;  %v2710_v19 = vpop.eup %2709 }
 0x7a0   :  { %v911_v20 = vadd.f32 1.0, %v2710_v19  ;;  %v2712_v21 = vpop.eup %2711 }
 0x7a1   :  { %v1018_v22 = vadd.f32 1.0, %v2712_v21 }
 0x7a2   :  { %2713 = vrcp.f32 %v911_v20  ;;  %v923_v32 = vand.u32 2147483648, %v911_v20  ;;  %vm917_vm13 = vweird.f32 %v911_v20  ;;  %v921_v34 = vand.u32 2147483647, %v911_v20 }
 0x7a3   :  { %2715 = vrcp.f32 %v1018_v22  ;;  %v1030_v43 = vand.u32 2147483648, %v1018_v22  ;;  %vm1024_vm3 = vweird.f32 %v1018_v22  ;;  %v1028_v44 = vand.u32 2147483647, %v1018_v22 }
 0x7a4   :  { %v924_v36 = vor.u32 1.1754944e-38, %v923_v32  ;;  %vm922_vm15 = vcmp.eq.f32.partialorder %v921_v34, 8.507059e+37 }
 0x7a5   :  { %v1031_v46 = vor.u32 1.1754944e-38, %v1030_v43  ;;  %vm1029_vm5 = vcmp.eq.f32.partialorder %v1028_v44, 8.507059e+37 }
 0x7a7   :  { %1036 = vrot.lane.b32.xlu1 %v952_v16, %s2786_s28 }
 0x7a8   :  { %v2714_v23 = vpop.eup %2713 }
 0x7a9   :  { %v913_v25 = vmul.f32 %v2714_v23, %v911_v20  ;;  %v2716_v27 = vpop.eup %2715  ;;  %vm918_vm12 = vweird.f32 %v2714_v23 }
 0x7aa   :  { %v1020_v29 = vmul.f32 %v2716_v27, %v1018_v22  ;;  %vm919_vm14 = vmor %vm917_vm13, %vm918_vm12  ;;  %vm1025_vm2 = vweird.f32 %v2716_v27 }
 0x7ab   :  { %v914_v26 = vsub.f32 1.0, %v913_v25  ;;  %vm1026_vm4 = vmor %vm1024_vm3, %vm1025_vm2  ;;  %v2647_v25 = vld [vmem:[%s3481_s4] ss:$0 sm:$0xff] }
 0x7ac   :  { %v1021_v33 = vsub.f32 1.0, %v1020_v29 }
 0x7ad   :  { %v915_v28 = vmul.f32 %v2714_v23, %v914_v26 }
 0x7ae   :  { %v1022_v37 = vmul.f32 %v2716_v27, %v1021_v33 }
 0x7af   :  { %v916_v30 = vadd.f32 %v2714_v23, %v915_v28 }
 0x7b0   :  { %v1023_v41 = vadd.f32 %v2716_v27, %v1022_v37 }
 0x7b1   :  { %v920_v35 = vsel %vm919_vm14, %v2714_v23, %v916_v30  ;;  %v2648_v30 = vld [vmem:[%s3482_s7] ss:$0 sm:$0xff] }
 0x7b2   :  { %v925_v38 = vsel %vm922_vm15, %v924_v36, %v920_v35  ;;  %v1027_v45 = vsel %vm1026_vm4, %v2716_v27, %v1023_v41 }
 0x7b3   :  { %v1032_v48 = vsel %vm1029_vm5, %v1031_v46, %v1027_v45  ;;  %v932_v57 = vmul.f32 %v930_v51, %v925_v38 }
 0x808   :  { %v935_v39 = vpop.permute.xlu0 %934 }
 0x809   :  { %v937_v40 = vmul.f32 %v935_v39, %v925_v38 }
 0x80b   :  { %939 = vrot.lane.b32.xlu0 %v937_v40, %s2786_s28 }
 0x811   :  { %v1042_v47 = vpop.permute.xlu1 %1041  ;;  %v1147_v20 = vpop.f32.mrf.mxu3 }
 0x812   :  { %v1044_v50 = vmul.f32 %v1042_v47, %v1032_v48 }
 0x814   :  { %1046 = vrot.lane.b32.xlu2 %v1044_v50, %s2786_s28 }
 0x819   :  { %v1037_v52 = vpop.permute.xlu1 %1036  ;;  %v1149_v21 = vpop.f32.mrf.mxu3 }
 0x81a   :  { %v1039_v53 = vmul.f32 %v1037_v52, %v1032_v48  ;;  %v1254_v22 = vpop.f32.mrf.mxu2 }
 0x822   :  { %v1256_v23 = vpop.f32.mrf.mxu2 }
 0x823   :  { %v2609_v23 = vld [vmem:[%s3498_s29] sm:$0xff] }
 0x824   :  { %1393 = vmatpush.bf16.msrb.mxu3 %v2609_v23 }
 0x86e   :  { %v1047_v54 = vpop.permute.xlu2 %1046 }
 0x86f   :  { %v1049_v55 = vadd.f32 %v1047_v54, %v1039_v53 }
 0x871   :  { %2717 = vtanh.f32 %v1049_v55 }
 0x877   :  { %v2718_v56 = vpop.eup %2717 }
 0x878   :  { %1052 = vrot.lane.b32.xlu1 %v2718_v56, %s2787_s2 }
 0x87d   :  { %v940_v58 = vpop.permute.xlu0 %939 }
 0x87e   :  { %v942_v59 = vadd.f32 %v940_v58, %v932_v57 }
 0x880   :  { %2719 = vtanh.f32 %v942_v59  ;;  %1062 = vrot.lane.b32.xlu1 %v942_v59, %s2788_s20 }
 0x886   :  { %v2720_v60 = vpop.eup %2719 }
 0x887   :  { %945 = vrot.lane.b32.xlu0 %v2720_v60, %s2787_s2 }
 0x8ea   :  { %v1053_v61 = vpop.permute.xlu1 %1052 }
 0x8eb   :  { %v3094_v62 = vmul.f32 %v1053_v61, %v1032_v48 }
 0x8ed   :  { %1067 = vrot.lane.b32.xlu0 %v3094_v62, %s2786_s28 }
 0x8f2   :  { %v1063_v3 = vpop.permute.xlu1 %1062 }
 0x8f3   :  { %1065 = vst.msk [vmem:[#allocation3] sm:$0xff] %vm92_vm0, %v1063_v3 }
 0x8f9   :  { %v946_v4 = vpop.permute.xlu0 %945 }
 0x8fa   :  { %v3112_v5 = vmul.f32 %v946_v4, %v925_v38  ;;  %v1093_v6 = vld [vmem:[#allocation3] sm:$0xff] }
 0x8fc   :  { %1057 = vrot.lane.b32.xlu2 %v3112_v5, %s2786_s28 }
 0x904   :  { %1072 = vrot.lane.b32.xlu2 %v1049_v55, %s2788_s20 }
 0x90c   :  { %1177 = vrot.lane.b32.xlu2 %v1093_v6, %s2786_s28 }
 0x956   :  { %v1058_v12 = vpop.permute.xlu2 %1057 }
 0x957   :  { %1060 = vst.msk [vmem:[#allocation2] sm:$0xff] %vm92_vm0, %v1058_v12 }
 0x95e   :  { %v1073_v13 = vpop.permute.xlu2 %1072  ;;  %v1092_v14 = vld [vmem:[#allocation2] sm:$0xff] }
 0x95f   :  { %1075 = vst.msk [vmem:[#allocation5] sm:$0xff] %vm92_vm0, %v1073_v13  ;;  %v1068_v16 = vpop.permute.xlu0 %1067  ;;  %v1096_v17 = vpack.c.bf16 %v1092_v14, %v1092_v14 }
 0x960   :  { %1070 = vst.msk [vmem:[#allocation4] sm:$0xff] %vm92_vm0, %v1068_v16 }
 0x961   :  { %2418 = vmatmul.msk.bf16.vlgmr.msra.gmra.mxu1 %vm92_vm0, %v1096_v17 }
 0x966   :  { %v1200_v38 = vld [vmem:[#allocation5] sm:$0xff]  ;;  %v1178_v10 = vpop.permute.xlu2 %1177 }
 0x967   :  { %v1199_v18 = vld [vmem:[#allocation4] sm:$0xff] }
 0x968   :  { %v1203_v19 = vpack.c.bf16 %v1199_v18, %v1199_v18 }
 0x96a   :  { %2434 = vmatmul.msk.bf16.vlgmr.msra.gmra.mxu0 %vm92_vm0, %v1203_v19 }
 0x9de   :  { %v1125_v26 = vpop.f32.mrf.mxu1 }
 0x9df   :  { %v1148_v27 = vadd.f32 %v1147_v20, %v1125_v26  ;;  %v2612_v26 = vld [vmem:[%s3478_s5] sm:$0xff] }
 0x9e0   :  { %1500 = vmatpush.bf16.msrb.mxu2 %v2612_v26 }
 0x9e1   :  { %v1155_v28 = vadd.f32 %v2647_v25, %v1148_v27  ;;  %v2611_v25 = vld [vmem:[%s3497_s26 + $0x8] sm:$0xff]  ;;  %v2443_v27 = vld [vmem:[%s3479_s0 + $0x14] sm:$0xf] }
 0x9e2   :  { %1370 = vmatpush.bf16.msrb.mxu1 %v2611_v25  ;;  %2457 = vmatmul.msk.bf16.vlgmr.msrb.gmra.mxu3 %vm142_vm1, %v2443_v27 }
 0x9e3   :  { %2721 = vtanh.f32 %v1155_v28  ;;  %v2424_v39 = vmul.f32 -1.442695, %v1155_v28 }
 0x9e6   :  { %v1127_v29 = vpop.f32.mrf.mxu1 }
 0x9e7   :  { %v1232_v32 = vpop.f32.mrf.mxu0 }
 0x9e8   :  { %v1255_v33 = vadd.f32 %v1254_v22, %v1232_v32 }
 0x9e9   :  { %v2722_v34 = vpop.eup %2721 }
 0x9ea   :  { %v1262_v35 = vadd.f32 %v2648_v30, %v1255_v33  ;;  %1182 = vrot.lane.b32.xlu0 %v2722_v34, %s2787_s2  ;;  %v2610_v33 = vld [vmem:[%s3497_s26] sm:$0xff]  ;;  %v2614_v34 = vld [vmem:[%s3477_s6 + $0x8] sm:$0xff] }
 0x9eb   :  { %1371 = vmatpush.bf16.msrb.mxu1 %v2610_v33  ;;  %1477 = vmatpush.bf16.msrb.mxu0 %v2614_v34 }
 0x9ec   :  { %2723 = vtanh.f32 %v1262_v35  ;;  %v2440_v40 = vmul.f32 -1.442695, %v1262_v35  ;;  %v2459_v35 = vld [vmem:[%s3480_s1 + $0x8] sm:$0xf] }
 0x9ed   :  { %2725 = vpow2.f32 %v2424_v39  ;;  %2473 = vmatmul.msk.bf16.vlgmr.msrb.gmra.mxu2 %vm142_vm1, %v2459_v35 }
 0x9ee   :  { %2727 = vpow2.f32 %v2440_v40 }
 0x9ef   :  { %v1234_v36 = vpop.f32.mrf.mxu0 }
 0x9f0   :  { %v2613_v36 = vld [vmem:[%s3477_s6] sm:$0xff] }
 0x9f1   :  { %1478 = vmatpush.bf16.msrb.mxu0 %v2613_v36 }
 0x9f2   :  { %v2724_v37 = vpop.eup %2723 }
 0x9f3   :  { %1289 = vrot.lane.b32.xlu1 %v2724_v37, %s2787_s2  ;;  %v2726_v41 = vpop.eup %2725 }
 0x9f4   :  { %v1159_v43 = vadd.f32 1.0, %v2726_v41  ;;  %v2728_v44 = vpop.eup %2727 }
 0x9f5   :  { %v1266_v45 = vadd.f32 1.0, %v2728_v44 }
 0x9f6   :  { %2729 = vrcp.f32 %v1159_v43  ;;  %v1171_v54 = vand.u32 2147483648, %v1159_v43  ;;  %vm1165_vm7 = vweird.f32 %v1159_v43  ;;  %v1169_v56 = vand.u32 2147483647, %v1159_v43 }
 0x9f7   :  { %2731 = vrcp.f32 %v1266_v45  ;;  %v1278_v1 = vand.u32 2147483648, %v1266_v45  ;;  %vm1272_vm11 = vweird.f32 %v1266_v45  ;;  %v1276_v2 = vand.u32 2147483647, %v1266_v45 }
 0x9f8   :  { %v1172_v58 = vor.u32 1.1754944e-38, %v1171_v54  ;;  %vm1170_vm9 = vcmp.eq.f32.partialorder %v1169_v56, 8.507059e+37 }
 0x9f9   :  { %v1279_v4 = vor.u32 1.1754944e-38, %v1278_v1  ;;  %vm1277_vm13 = vcmp.eq.f32.partialorder %v1276_v2, 8.507059e+37 }
 0x9fb   :  { %1284 = vrot.lane.b32.xlu1 %v1200_v38, %s2786_s28 }
 0x9fc   :  { %v2730_v46 = vpop.eup %2729 }
 0x9fd   :  { %v1161_v47 = vmul.f32 %v2730_v46, %v1159_v43  ;;  %v2732_v50 = vpop.eup %2731  ;;  %vm1166_vm6 = vweird.f32 %v2730_v46 }
 0x9fe   :  { %v1268_v52 = vmul.f32 %v2732_v50, %v1266_v45  ;;  %vm1167_vm8 = vmor %vm1165_vm7, %vm1166_vm6  ;;  %vm1273_vm10 = vweird.f32 %v2732_v50 }
 0x9ff   :  { %v1162_v48 = vsub.f32 1.0, %v1161_v47  ;;  %vm1274_vm12 = vmor %vm1272_vm11, %vm1273_vm10 }
 0xa00   :  { %v1269_v55 = vsub.f32 1.0, %v1268_v52 }
 0xa01   :  { %v1163_v51 = vmul.f32 %v2730_v46, %v1162_v48 }
 0xa02   :  { %v1270_v59 = vmul.f32 %v2732_v50, %v1269_v55  ;;  %v2650_v55 = vld [vmem:[%s3482_s7] ss:$0 sm:$0xff] }
 0xa03   :  { %v1164_v53 = vadd.f32 %v2730_v46, %v1163_v51 }
 0xa04   :  { %v1271_v0 = vadd.f32 %v2732_v50, %v1270_v59 }
 0xa05   :  { %v1168_v57 = vsel %vm1167_vm8, %v2730_v46, %v1164_v53 }
 0xa06   :  { %v1173_v60 = vsel %vm1170_vm9, %v1172_v58, %v1168_v57  ;;  %v1275_v3 = vsel %vm1274_vm12, %v2732_v50, %v1271_v0  ;;  %v2649_v50 = vld [vmem:[%s3481_s4] ss:$0 sm:$0xff] }
 0xa07   :  { %v1280_v7 = vsel %vm1277_vm13, %v1279_v4, %v1275_v3  ;;  %v1180_v17 = vmul.f32 %v1178_v10, %v1173_v60 }
 0xa5c   :  { %v1183_v61 = vpop.permute.xlu0 %1182 }
 0xa5d   :  { %v1185_v63 = vmul.f32 %v1183_v61, %v1173_v60 }
 0xa5f   :  { %1187 = vrot.lane.b32.xlu0 %v1185_v63, %s2786_s28 }
 0xa65   :  { %v1290_v6 = vpop.permute.xlu1 %1289  ;;  %v1395_v45 = vpop.f32.mrf.mxu3 }
 0xa66   :  { %v1292_v9 = vmul.f32 %v1290_v6, %v1280_v7 }
 0xa68   :  { %1294 = vrot.lane.b32.xlu2 %v1292_v9, %s2786_s28 }
 0xa6d   :  { %v1285_v11 = vpop.permute.xlu1 %1284  ;;  %v1397_v46 = vpop.f32.mrf.mxu3 }
 0xa6e   :  { %v1287_v12 = vmul.f32 %v1285_v11, %v1280_v7 }
 0xa70   :  { %v1502_v47 = vpop.f32.mrf.mxu2 }
 0xa78   :  { %v1504_v48 = vpop.f32.mrf.mxu2 }
 0xac2   :  { %v1295_v13 = vpop.permute.xlu2 %1294 }
 0xac3   :  { %v1297_v14 = vadd.f32 %v1295_v13, %v1287_v12 }
 0xac5   :  { %2733 = vtanh.f32 %v1297_v14 }
 0xacb   :  { %v2734_v16 = vpop.eup %2733 }
 0xacc   :  { %1300 = vrot.lane.b32.xlu1 %v2734_v16, %s2787_s2 }
 0xad1   :  { %v1188_v18 = vpop.permute.xlu0 %1187 }
 0xad2   :  { %v1190_v19 = vadd.f32 %v1188_v18, %v1180_v17 }
 0xad4   :  { %2735 = vtanh.f32 %v1190_v19  ;;  %1310 = vrot.lane.b32.xlu1 %v1190_v19, %s2788_s20 }
 0xada   :  { %v2736_v20 = vpop.eup %2735 }
 0xadb   :  { %1193 = vrot.lane.b32.xlu0 %v2736_v20, %s2787_s2 }
 0xb3e   :  { %v1301_v21 = vpop.permute.xlu1 %1300 }
 0xb3f   :  { %v3150_v22 = vmul.f32 %v1301_v21, %v1280_v7 }
 0xb41   :  { %1315 = vrot.lane.b32.xlu0 %v3150_v22, %s2786_s28 }
 0xb46   :  { %v1311_v28 = vpop.permute.xlu1 %1310 }
 0xb47   :  { %1313 = vst.msk [vmem:[#allocation3] sm:$0xff] %vm92_vm0, %v1311_v28 }
 0xb4d   :  { %v1194_v29 = vpop.permute.xlu0 %1193 }
 0xb4e   :  { %v3168_v30 = vmul.f32 %v1194_v29, %v1173_v60  ;;  %v1341_v32 = vld [vmem:[#allocation3] sm:$0xff] }
 0xb50   :  { %1305 = vrot.lane.b32.xlu2 %v3168_v30, %s2786_s28 }
 0xb58   :  { %1320 = vrot.lane.b32.xlu2 %v1297_v14, %s2788_s20 }
 0xb60   :  { %1425 = vrot.lane.b32.xlu2 %v1341_v32, %s2786_s28 }
 0xbaa   :  { %v1306_v37 = vpop.permute.xlu2 %1305 }
 0xbab   :  { %1308 = vst.msk [vmem:[#allocation2] sm:$0xff] %vm92_vm0, %v1306_v37 }
 0xbb2   :  { %v1321_v38 = vpop.permute.xlu2 %1320  ;;  %v1340_v39 = vld [vmem:[#allocation2] sm:$0xff] }
 0xbb3   :  { %1323 = vst.msk [vmem:[#allocation5] sm:$0xff] %vm92_vm0, %v1321_v38  ;;  %v1316_v40 = vpop.permute.xlu0 %1315  ;;  %v1344_v41 = vpack.c.bf16 %v1340_v39, %v1340_v39 }
 0xbb4   :  { %1318 = vst.msk [vmem:[#allocation4] sm:$0xff] %vm92_vm0, %v1316_v40 }
 0xbb5   :  { %2452 = vmatmul.msk.bf16.vlgmr.msrb.gmra.mxu1 %vm92_vm0, %v1344_v41 }
 0xbba   :  { %v1448_v63 = vld [vmem:[#allocation5] sm:$0xff]  ;;  %v1426_v37 = vpop.permute.xlu2 %1425 }
 0xbbb   :  { %v1447_v43 = vld [vmem:[#allocation4] sm:$0xff] }
 0xbbc   :  { %v1451_v44 = vpack.c.bf16 %v1447_v43, %v1447_v43 }
 0xbbe   :  { %2468 = vmatmul.msk.bf16.vlgmr.msrb.gmra.mxu0 %vm92_vm0, %v1451_v44 }
 0xc32   :  { %v1373_v51 = vpop.f32.mrf.mxu1 }
 0xc33   :  { %v1396_v52 = vadd.f32 %v1395_v45, %v1373_v51  ;;  %v2615_v51 = vld [vmem:[%s3498_s29] sm:$0xff] }
 0xc34   :  { %1641 = vmatpush.bf16.msra.mxu3 %v2615_v51 }
 0xc35   :  { %v1403_v53 = vadd.f32 %v2649_v50, %v1396_v52  ;;  %v2617_v52 = vld [vmem:[%s3497_s26 + $0x8] sm:$0xff] }
 0xc36   :  { %1618 = vmatpush.bf16.msra.mxu1 %v2617_v52 }
 0xc37   :  { %2737 = vtanh.f32 %v1403_v53  ;;  %v2458_v0 = vmul.f32 -1.442695, %v1403_v53  ;;  %v2618_v53 = vld [vmem:[%s3478_s5] sm:$0xff] }
 0xc38   :  { %1748 = vmatpush.bf16.msra.mxu2 %v2618_v53 }
 0xc3a   :  { %v1375_v54 = vpop.f32.mrf.mxu1 }
 0xc3b   :  { %v1480_v56 = vpop.f32.mrf.mxu0  ;;  %v2477_v54 = vld [vmem:[%s3479_s0 + $0x18] sm:$0xf] }
 0xc3c   :  { %v1503_v57 = vadd.f32 %v1502_v47, %v1480_v56  ;;  %2491 = vmatmul.msk.bf16.vlgmr.msra.gmra.mxu3 %vm142_vm1, %v2477_v54 }
 0xc3d   :  { %v2738_v58 = vpop.eup %2737 }
 0xc3e   :  { %v1510_v59 = vadd.f32 %v2650_v55, %v1503_v57  ;;  %1430 = vrot.lane.b32.xlu0 %v2738_v58, %s2787_s2 }
 0xc40   :  { %2739 = vtanh.f32 %v1510_v59  ;;  %v2474_v1 = vmul.f32 -1.442695, %v1510_v59  ;;  %v2616_v59 = vld [vmem:[%s3497_s26] sm:$0xff] }
 0xc41   :  { %2741 = vpow2.f32 %v2458_v0  ;;  %1619 = vmatpush.bf16.msra.mxu1 %v2616_v59 }
 0xc42   :  { %2743 = vpow2.f32 %v2474_v1 }
 0xc43   :  { %v1482_v60 = vpop.f32.mrf.mxu0 }
 0xc44   :  { %v2620_v60 = vld [vmem:[%s3477_s6 + $0x8] sm:$0xff] }
 0xc45   :  { %1725 = vmatpush.bf16.msra.mxu0 %v2620_v60 }
 0xc46   :  { %v2740_v61 = vpop.eup %2739 }
 0xc47   :  { %1537 = vrot.lane.b32.xlu1 %v2740_v61, %s2787_s2  ;;  %v2742_v2 = vpop.eup %2741  ;;  %v2493_v61 = vld [vmem:[%s3480_s1 + $0x4] sm:$0xf] }
 0xc48   :  { %v1407_v3 = vadd.f32 1.0, %v2742_v2  ;;  %v2744_v4 = vpop.eup %2743  ;;  %2507 = vmatmul.msk.bf16.vlgmr.msra.gmra.mxu2 %vm142_vm1, %v2493_v61 }
 0xc49   :  { %v1514_v6 = vadd.f32 1.0, %v2744_v4 }
 0xc4a   :  { %2745 = vrcp.f32 %v1407_v3  ;;  %v1419_v16 = vand.u32 2147483648, %v1407_v3  ;;  %vm1413_vm15 = vweird.f32 %v1407_v3  ;;  %v1417_v18 = vand.u32 2147483647, %v1407_v3 }
 0xc4b   :  { %2747 = vrcp.f32 %v1514_v6  ;;  %v1526_v28 = vand.u32 2147483648, %v1514_v6  ;;  %vm1520_vm5 = vweird.f32 %v1514_v6  ;;  %v1524_v29 = vand.u32 2147483647, %v1514_v6 }
 0xc4c   :  { %v1420_v20 = vor.u32 1.1754944e-38, %v1419_v16  ;;  %vm1418_vm3 = vcmp.eq.f32.partialorder %v1417_v18, 8.507059e+37 }
 0xc4d   :  { %v1527_v33 = vor.u32 1.1754944e-38, %v1526_v28  ;;  %vm1525_vm7 = vcmp.eq.f32.partialorder %v1524_v29, 8.507059e+37 }
 0xc4f   :  { %1532 = vrot.lane.b32.xlu1 %v1448_v63, %s2786_s28  ;;  %v2619_v63 = vld [vmem:[%s3477_s6] sm:$0xff] }
 0xc50   :  { %v2746_v7 = vpop.eup %2745  ;;  %1726 = vmatpush.bf16.msra.mxu0 %v2619_v63 }
 0xc51   :  { %v1409_v9 = vmul.f32 %v2746_v7, %v1407_v3  ;;  %v2748_v11 = vpop.eup %2747  ;;  %vm1414_vm14 = vweird.f32 %v2746_v7 }
 0xc52   :  { %v1516_v13 = vmul.f32 %v2748_v11, %v1514_v6  ;;  %vm1415_vm2 = vmor %vm1413_vm15, %vm1414_vm14  ;;  %vm1521_vm4 = vweird.f32 %v2748_v11 }
 0xc53   :  { %v1410_v10 = vsub.f32 1.0, %v1409_v9  ;;  %vm1522_vm6 = vmor %vm1520_vm5, %vm1521_vm4 }
 0xc54   :  { %v1517_v17 = vsub.f32 1.0, %v1516_v13  ;;  %v2651_v13 = vld [vmem:[%s3481_s4] ss:$0 sm:$0xff] }
 0xc55   :  { %v1411_v12 = vmul.f32 %v2746_v7, %v1410_v10 }
 0xc56   :  { %v1518_v21 = vmul.f32 %v2748_v11, %v1517_v17 }
 0xc57   :  { %v1412_v14 = vadd.f32 %v2746_v7, %v1411_v12 }
 0xc58   :  { %v1519_v27 = vadd.f32 %v2748_v11, %v1518_v21 }
 0xc59   :  { %v1416_v19 = vsel %vm1415_vm2, %v2746_v7, %v1412_v14 }
 0xc5a   :  { %v1421_v23 = vsel %vm1418_vm3, %v1420_v20, %v1416_v19  ;;  %v1523_v32 = vsel %vm1522_vm6, %v2748_v11, %v1519_v27  ;;  %v2652_v19 = vld [vmem:[%s3482_s7] ss:$0 sm:$0xff] }
 0xc5b   :  { %v1528_v35 = vsel %vm1525_vm7, %v1527_v33, %v1523_v32  ;;  %v1428_v44 = vmul.f32 %v1426_v37, %v1421_v23 }
 0xcb0   :  { %v1431_v25 = vpop.permute.xlu0 %1430 }
 0xcb1   :  { %v1433_v26 = vmul.f32 %v1431_v25, %v1421_v23 }
 0xcb3   :  { %1435 = vrot.lane.b32.xlu0 %v1433_v26, %s2786_s28 }
 0xcb9   :  { %v1538_v34 = vpop.permute.xlu1 %1537 }
 0xcba   :  { %v1540_v36 = vmul.f32 %v1538_v34, %v1528_v35 }
 0xcbc   :  { %1542 = vrot.lane.b32.xlu2 %v1540_v36, %s2786_s28 }
 0xcbf   :  { %v1643_v9 = vpop.f32.mrf.mxu3 }
 0xcc1   :  { %v1533_v38 = vpop.permute.xlu1 %1532 }
 0xcc2   :  { %v1535_v39 = vmul.f32 %v1533_v38, %v1528_v35 }
 0xcc7   :  { %v1645_v10 = vpop.f32.mrf.mxu3 }
 0xccb   :  { %v1750_v11 = vpop.f32.mrf.mxu2 }
 0xcd3   :  { %v1752_v12 = vpop.f32.mrf.mxu2 }
 0xd16   :  { %v1543_v40 = vpop.permute.xlu2 %1542 }
 0xd17   :  { %v1545_v41 = vadd.f32 %v1543_v40, %v1535_v39 }
 0xd19   :  { %2749 = vtanh.f32 %v1545_v41 }
 0xd1f   :  { %v2750_v43 = vpop.eup %2749 }
 0xd20   :  { %1548 = vrot.lane.b32.xlu1 %v2750_v43, %s2787_s2 }
 0xd25   :  { %v1436_v45 = vpop.permute.xlu0 %1435 }
 0xd26   :  { %v1438_v46 = vadd.f32 %v1436_v45, %v1428_v44 }
 0xd28   :  { %2751 = vtanh.f32 %v1438_v46  ;;  %1558 = vrot.lane.b32.xlu1 %v1438_v46, %s2788_s20 }
 0xd2e   :  { %v2752_v47 = vpop.eup %2751 }
 0xd2f   :  { %1441 = vrot.lane.b32.xlu0 %v2752_v47, %s2787_s2 }
 0xd92   :  { %v1549_v48 = vpop.permute.xlu1 %1548 }
 0xd93   :  { %v3206_v50 = vmul.f32 %v1549_v48, %v1528_v35 }
 0xd95   :  { %1563 = vrot.lane.b32.xlu0 %v3206_v50, %s2786_s28 }
 0xd9a   :  { %v1559_v55 = vpop.permute.xlu1 %1558 }
 0xd9b   :  { %1561 = vst.msk [vmem:[#allocation3] sm:$0xff] %vm92_vm0, %v1559_v55 }
 0xda1   :  { %v1442_v56 = vpop.permute.xlu0 %1441 }
 0xda2   :  { %v3224_v57 = vmul.f32 %v1442_v56, %v1421_v23  ;;  %v1589_v58 = vld [vmem:[#allocation3] sm:$0xff] }
 0xda4   :  { %1553 = vrot.lane.b32.xlu2 %v3224_v57, %s2786_s28 }
 0xdac   :  { %1568 = vrot.lane.b32.xlu2 %v1545_v41, %s2788_s20 }
 0xdb4   :  { %1673 = vrot.lane.b32.xlu2 %v1589_v58, %s2786_s28 }
 0xdfe   :  { %v1554_v0 = vpop.permute.xlu2 %1553 }
 0xdff   :  { %1556 = vst.msk [vmem:[#allocation2] sm:$0xff] %vm92_vm0, %v1554_v0 }
 0xe06   :  { %v1569_v1 = vpop.permute.xlu2 %1568  ;;  %v1588_v2 = vld [vmem:[#allocation2] sm:$0xff] }
 0xe07   :  { %1571 = vst.msk [vmem:[#allocation5] sm:$0xff] %vm92_vm0, %v1569_v1  ;;  %v1564_v3 = vpop.permute.xlu0 %1563  ;;  %v1592_v4 = vpack.c.bf16 %v1588_v2, %v1588_v2 }
 0xe08   :  { %1566 = vst.msk [vmem:[#allocation4] sm:$0xff] %vm92_vm0, %v1564_v3 }
 0xe09   :  { %2486 = vmatmul.msk.bf16.vlgmr.msra.gmra.mxu1 %vm92_vm0, %v1592_v4 }
 0xe0e   :  { %v1696_v28 = vld [vmem:[#allocation5] sm:$0xff]  ;;  %v1674_v2 = vpop.permute.xlu2 %1673 }
 0xe0f   :  { %v1695_v6 = vld [vmem:[#allocation4] sm:$0xff] }
 0xe10   :  { %v1699_v7 = vpack.c.bf16 %v1695_v6, %v1695_v6 }
 0xe12   :  { %2502 = vmatmul.msk.bf16.vlgmr.msra.gmra.mxu0 %vm92_vm0, %v1699_v7 }
 0xe86   :  { %v1621_v14 = vpop.f32.mrf.mxu1 }
 0xe87   :  { %v1644_v16 = vadd.f32 %v1643_v9, %v1621_v14 }
 0xe89   :  { %v1651_v17 = vadd.f32 %v2651_v13, %v1644_v16 }
 0xe8b   :  { %2753 = vtanh.f32 %v1651_v17  ;;  %v2492_v29 = vmul.f32 -1.442695, %v1651_v17  ;;  %v2621_v17 = vld [vmem:[%s3498_s29] sm:$0xff] }
 0xe8c   :  { %1889 = vmatpush.bf16.msrb.mxu3 %v2621_v17 }
 0xe8e   :  { %v1623_v18 = vpop.f32.mrf.mxu1 }
 0xe8f   :  { %v1728_v20 = vpop.f32.mrf.mxu0  ;;  %v2623_v18 = vld [vmem:[%s3497_s26 + $0x8] sm:$0xff] }
 0xe90   :  { %v1751_v21 = vadd.f32 %v1750_v11, %v1728_v20  ;;  %1866 = vmatpush.bf16.msrb.mxu1 %v2623_v18  ;;  %v2511_v20 = vld [vmem:[%s3479_s0 + $0x1c] sm:$0xf] }
 0xe91   :  { %v2754_v23 = vpop.eup %2753  ;;  %2525 = vmatmul.msk.bf16.vlgmr.msrb.gmra.mxu3 %vm142_vm1, %v2511_v20 }
 0xe92   :  { %v1758_v25 = vadd.f32 %v2652_v19, %v1751_v21  ;;  %1678 = vrot.lane.b32.xlu0 %v2754_v23, %s2787_s2  ;;  %v2624_v19 = vld [vmem:[%s3478_s5] sm:$0xff] }
 0xe93   :  { %1995 = vmatpush.bf16.msrb.mxu2 %v2624_v19 }
 0xe94   :  { %2755 = vtanh.f32 %v1758_v25  ;;  %v2508_v32 = vmul.f32 -1.442695, %v1758_v25 }
 0xe95   :  { %2757 = vpow2.f32 %v2492_v29  ;;  %v1941_v29 = vld [vmem:[%s3480_s1] sm:$0xf] }
 0xe96   :  { %2759 = vpow2.f32 %v2508_v32  ;;  %2540 = vmatmul.msk.bf16.vlgmr.msrb.gmra.mxu2 %vm142_vm1, %v1941_v29  ;;  %v2625_v32 = vld [vmem:[%s3477_s6] sm:$0xff] }
 0xe97   :  { %v1730_v26 = vpop.f32.mrf.mxu0 }
 0xe9a   :  { %v2756_v27 = vpop.eup %2755 }
 0xe9b   :  { %1785 = vrot.lane.b32.xlu1 %v2756_v27, %s2787_s2  ;;  %v2758_v33 = vpop.eup %2757  ;;  %v2622_v27 = vld [vmem:[%s3497_s26] sm:$0xff] }
 0xe9c   :  { %v1655_v34 = vadd.f32 1.0, %v2758_v33  ;;  %v2760_v35 = vpop.eup %2759  ;;  %1867 = vmatpush.bf16.msrb.mxu1 %v2622_v27 }
 0xe9d   :  { %v1762_v36 = vadd.f32 1.0, %v2760_v35 }
 0xe9e   :  { %2761 = vrcp.f32 %v1655_v34  ;;  %v1667_v45 = vand.u32 2147483648, %v1655_v34  ;;  %vm1661_vm9 = vweird.f32 %v1655_v34  ;;  %v1665_v47 = vand.u32 2147483647, %v1655_v34 }
 0xe9f   :  { %2763 = vrcp.f32 %v1762_v36  ;;  %v1774_v58 = vand.u32 2147483648, %v1762_v36  ;;  %vm1768_vm13 = vweird.f32 %v1762_v36  ;;  %v1772_v59 = vand.u32 2147483647, %v1762_v36 }
 0xea0   :  { %v1668_v51 = vor.u32 1.1754944e-38, %v1667_v45  ;;  %vm1666_vm11 = vcmp.eq.f32.partialorder %v1665_v47, 8.507059e+37  ;;  %v2653_v45 = vld [vmem:[%s3481_s4] ss:$0 sm:$0xff] }
 0xea1   :  { %v1775_v61 = vor.u32 1.1754944e-38, %v1774_v58  ;;  %vm1773_vm15 = vcmp.eq.f32.partialorder %v1772_v59, 8.507059e+37 }
 0xea3   :  { %1780 = vrot.lane.b32.xlu1 %v1696_v28, %s2786_s28  ;;  %v2626_v28 = vld [vmem:[%s3477_s6 + $0x8] sm:$0xff] }
 0xea4   :  { %v2762_v37 = vpop.eup %2761  ;;  %1972 = vmatpush.bf16.msrb.mxu0 %v2626_v28 }
 0xea5   :  { %v1657_v38 = vmul.f32 %v2762_v37, %v1655_v34  ;;  %v2764_v40 = vpop.eup %2763  ;;  %vm1662_vm8 = vweird.f32 %v2762_v37 }
 0xea6   :  { %v1764_v43 = vmul.f32 %v2764_v40, %v1762_v36  ;;  %vm1663_vm10 = vmor %vm1661_vm9, %vm1662_vm8  ;;  %vm1769_vm12 = vweird.f32 %v2764_v40  ;;  %vm337_vm9 = vcmask 257024  }
 0xea7   :  { %v1658_v39 = vsub.f32 1.0, %v1657_v38  ;;  %vm1770_vm14 = vmor %vm1768_vm13, %vm1769_vm12 }
 0xea8   :  { %v1765_v46 = vsub.f32 1.0, %v1764_v43  ;;  %1973 = vmatpush.bf16.msrb.mxu0 %v2625_v32 }
 0xea9   :  { %v1659_v41 = vmul.f32 %v2762_v37, %v1658_v39 }
 0xeaa   :  { %v1766_v52 = vmul.f32 %v2764_v40, %v1765_v46 }
 0xeab   :  { %v1660_v44 = vadd.f32 %v2762_v37, %v1659_v41 }
 0xeac   :  { %v1767_v56 = vadd.f32 %v2764_v40, %v1766_v52  ;;  %v2654_v52 = vld [vmem:[%s3482_s7] ss:$0 sm:$0xff] }
 0xead   :  { %v1664_v48 = vsel %vm1663_vm10, %v2762_v37, %v1660_v44 }
 0xeae   :  { %v1669_v53 = vsel %vm1666_vm11, %v1668_v51, %v1664_v48  ;;  %v1771_v60 = vsel %vm1770_vm14, %v2764_v40, %v1767_v56 }
 0xeaf   :  { %v1776_v0 = vsel %vm1773_vm15, %v1775_v61, %v1771_v60  ;;  %v1676_v10 = vmul.f32 %v1674_v2, %v1669_v53 }
 0xf04   :  { %v1679_v54 = vpop.permute.xlu0 %1678 }
 0xf05   :  { %v1681_v55 = vmul.f32 %v1679_v54, %v1669_v53 }
 0xf07   :  { %1683 = vrot.lane.b32.xlu0 %v1681_v55, %s2786_s28 }
 0xf0d   :  { %v1786_v63 = vpop.permute.xlu1 %1785 }
 0xf0e   :  { %v1788_v1 = vmul.f32 %v1786_v63, %v1776_v0 }
 0xf10   :  { %1790 = vrot.lane.b32.xlu2 %v1788_v1, %s2786_s28 }
 0xf14   :  { %v1891_v40 = vpop.f32.mrf.mxu3 }
 0xf15   :  { %v1781_v3 = vpop.permute.xlu1 %1780 }
 0xf16   :  { %v1783_v4 = vmul.f32 %v1781_v3, %v1776_v0 }
 0xf19   :  { %v1997_v43 = vpop.f32.mrf.mxu2 }
 0xf1c   :  { %v1893_v41 = vpop.f32.mrf.mxu3 }
 0xf21   :  { %v1999_v44 = vpop.f32.mrf.mxu2 }
 0xf6a   :  { %v1791_v6 = vpop.permute.xlu2 %1790 }
 0xf6b   :  { %v1793_v7 = vadd.f32 %v1791_v6, %v1783_v4 }
 0xf6d   :  { %2765 = vtanh.f32 %v1793_v7 }
 0xf73   :  { %v2766_v9 = vpop.eup %2765 }
 0xf74   :  { %1796 = vrot.lane.b32.xlu1 %v2766_v9, %s2787_s2 }
 0xf79   :  { %v1684_v11 = vpop.permute.xlu0 %1683 }
 0xf7a   :  { %v1686_v12 = vadd.f32 %v1684_v11, %v1676_v10 }
 0xf7c   :  { %2767 = vtanh.f32 %v1686_v12  ;;  %1806 = vrot.lane.b32.xlu1 %v1686_v12, %s2788_s20 }
 0xf82   :  { %v2768_v13 = vpop.eup %2767 }
 0xf83   :  { %1689 = vrot.lane.b32.xlu0 %v2768_v13, %s2787_s2 }
 0xfe6   :  { %v1797_v14 = vpop.permute.xlu1 %1796 }
 0xfe7   :  { %v3262_v16 = vmul.f32 %v1797_v14, %v1776_v0 }
 0xfe9   :  { %1811 = vrot.lane.b32.xlu0 %v3262_v16, %s2786_s28 }
 0xfee   :  { %v1807_v21 = vpop.permute.xlu1 %1806 }
 0xfef   :  { %1809 = vst.msk [vmem:[#allocation3] sm:$0xff] %vm92_vm0, %v1807_v21 }
 0xff5   :  { %v1690_v23 = vpop.permute.xlu0 %1689 }
 0xff6   :  { %v3280_v25 = vmul.f32 %v1690_v23, %v1669_v53  ;;  %v1837_v26 = vld [vmem:[#allocation3] sm:$0xff] }
 0xff8   :  { %1801 = vrot.lane.b32.xlu2 %v3280_v25, %s2786_s28 }
0x1000   :  { %1816 = vrot.lane.b32.xlu2 %v1793_v7, %s2788_s20 }
0x1008   :  { %1921 = vrot.lane.b32.xlu2 %v1837_v26, %s2786_s28 }
0x1052   :  { %v1802_v33 = vpop.permute.xlu2 %1801 }
0x1053   :  { %1804 = vst.msk [vmem:[#allocation2] sm:$0xff] %vm92_vm0, %v1802_v33 }
0x105a   :  { %v1817_v34 = vpop.permute.xlu2 %1816  ;;  %v1836_v35 = vld [vmem:[#allocation2] sm:$0xff] }
0x105b   :  { %1819 = vst.msk [vmem:[#allocation5] sm:$0xff] %vm92_vm0, %v1817_v34  ;;  %v1812_v36 = vpop.permute.xlu0 %1811  ;;  %v1840_v37 = vpack.c.bf16 %v1836_v35, %v1836_v35 }
0x105c   :  { %1814 = vst.msk [vmem:[#allocation4] sm:$0xff] %vm92_vm0, %v1812_v36 }
0x105d   :  { %2520 = vmatmul.msk.bf16.vlgmr.msrb.gmra.mxu1 %vm92_vm0, %v1840_v37 }
0x1062   :  { %v1943_v60 = vld [vmem:[#allocation5] sm:$0xff]  ;;  %v1922_v37 = vpop.permute.xlu2 %1921 }
0x1063   :  { %v1942_v38 = vld [vmem:[#allocation4] sm:$0xff] }
0x1064   :  { %v1946_v39 = vpack.c.bf16 %v1942_v38, %v1942_v38 }
0x1066   :  { %2535 = vmatmul.msk.bf16.vlgmr.msrb.gmra.mxu0 %vm92_vm0, %v1946_v39 }
0x10da   :  { %v1869_v46 = vpop.f32.mrf.mxu1 }
0x10db   :  { %v1892_v47 = vadd.f32 %v1891_v40, %v1869_v46 }
0x10dd   :  { %v1899_v48 = vadd.f32 %v2653_v45, %v1892_v47 }
0x10df   :  { %2769 = vtanh.f32 %v1899_v48  ;;  %v2526_v61 = vmul.f32 -1.442695, %v1899_v48  ;;  %v332_v48 = vpack.c.bf16 %v2944_v15, %v2944_v15  ;;  %v1820_v15 = vpack.c.bf16 %v3280_v25, %v3280_v25 }
0x10e0   :  { %v339_v25 = vpack.c.bf16 %v2926_v8, %v2926_v8 }
0x10e2   :  { %v1871_v51 = vpop.f32.mrf.mxu1 }
0x10e3   :  { %v1975_v53 = vpop.f32.mrf.mxu0  ;;  %v587_v51 = vpack.c.bf16 %v2982_v24, %v2982_v24  ;;  %v2632_v24 = vld [vmem:[%s3483_s11 + $0x8] sm:$0xff] }
0x10e4   :  { %v1998_v54 = vadd.f32 %v1997_v43, %v1975_v53  ;;  %v1331_v53 = vpack.c.bf16 %v3150_v22, %v3150_v22  ;;  %2218 = vmatpush.bf16.msra.mxu2 %v2632_v24 }
0x10e5   :  { %v2770_v55 = vpop.eup %2769 }
0x10e6   :  { %v2005_v56 = vadd.f32 %v2654_v52, %v1998_v54  ;;  %1926 = vrot.lane.b32.xlu0 %v2770_v55, %s2787_s2  ;;  %v1076_v52 = vpack.c.bf16 %v3112_v5, %v3112_v5  ;;  %v2631_v5 = vld [vmem:[%s3483_s11] sm:$0xff] }
0x10e8   :  { %2771 = vtanh.f32 %v2005_v56  ;;  %v2541_v63 = vmul.f32 -1.442695, %v2005_v56  ;;  %2219 = vmatpush.bf16.msra.mxu2 %v2631_v5 }
0x10e9   :  { %2773 = vpow2.f32 %v2526_v61  ;;  %v1083_v61 = vpack.c.bf16 %v3094_v62, %v3094_v62  ;;  %v2628_v62 = vld [vmem:[%s3485_s8 + $0x8] sm:$0xff] }
0x10ea   :  { %2775 = vpow2.f32 %v2541_v63  ;;  %2148 = vmatpush.bf16.msra.mxu3 %v2628_v62 }
0x10eb   :  { %v1977_v58 = vpop.f32.mrf.mxu0 }
0x10ee   :  { %v2772_v59 = vpop.eup %2771 }
0x10ef   :  { %2032 = vrot.lane.b32.xlu1 %v2772_v59, %s2787_s2  ;;  %v2774_v0 = vpop.eup %2773  ;;  %v828_v59 = vpack.c.bf16 %v3056_v49, %v3056_v49  ;;  %v580_v49 = vpack.c.bf16 %v3000_v31, %v3000_v31 }
0x10f0   :  { %v1903_v1 = vadd.f32 1.0, %v2774_v0  ;;  %v2776_v2 = vpop.eup %2775 }
0x10f1   :  { %v2009_v3 = vadd.f32 1.0, %v2776_v2  ;;  %v835_v2 = vpack.c.bf16 %v3038_v42, %v3038_v42 }
0x10f2   :  { %2777 = vrcp.f32 %v1903_v1  ;;  %v1915_v13 = vand.u32 2147483648, %v1903_v1  ;;  %vm1909_vm2 = vweird.f32 %v1903_v1  ;;  %v1913_v17 = vand.u32 2147483647, %v1903_v1 }
0x10f3   :  { %2779 = vrcp.f32 %v2009_v3  ;;  %v2021_v28 = vand.u32 2147483648, %v2009_v3  ;;  %vm2015_vm6 = vweird.f32 %v2009_v3  ;;  %v2019_v29 = vand.u32 2147483647, %v2009_v3 }
0x10f4   :  { %v1916_v19 = vor.u32 1.1754944e-38, %v1915_v13  ;;  %vm1914_vm4 = vcmp.eq.f32.partialorder %v1913_v17, 8.507059e+37 }
0x10f5   :  { %v2022_v33 = vor.u32 1.1754944e-38, %v2021_v28  ;;  %vm2020_vm8 = vcmp.eq.f32.partialorder %v2019_v29, 8.507059e+37 }
0x10f7   :  { %2027 = vrot.lane.b32.xlu1 %v1943_v60, %s2786_s28 }
0x10f8   :  { %v2778_v4 = vpop.eup %2777 }
0x10f9   :  { %v1905_v6 = vmul.f32 %v2778_v4, %v1903_v1  ;;  %v2780_v9 = vpop.eup %2779  ;;  %vm1910_vm1 = vweird.f32 %v2778_v4  ;;  %v1572_v1 = vpack.c.bf16 %v3224_v57, %v3224_v57  ;;  %v1827_v57 = vpack.c.bf16 %v3262_v16, %v3262_v16 }
0x10fa   :  { %v2011_v11 = vmul.f32 %v2780_v9, %v2009_v3  ;;  %vm1911_vm3 = vmor %vm1909_vm2, %vm1910_vm1  ;;  %vm2016_vm5 = vweird.f32 %v2780_v9 }
0x10fb   :  { %v1906_v7 = vsub.f32 1.0, %v1905_v6  ;;  %vm2017_vm7 = vmor %vm2015_vm6, %vm2016_vm5  ;;  %v1579_v6 = vpack.c.bf16 %v3206_v50, %v3206_v50  ;;  %v2630_v50 = vld [vmem:[%s3487_s9 + $0x8] sm:$0xff] }
0x10fc   :  { %v2012_v14 = vsub.f32 1.0, %v2011_v11  ;;  %2120 = vmatpush.bf16.msra.mxu1 %v2630_v50  ;;  %v2633_v11 = vld [vmem:[%s3488_s12] sm:$0xff] }
0x10fd   :  { %v1907_v10 = vmul.f32 %v2778_v4, %v1906_v7  ;;  %v2634_v7 = vld [vmem:[%s3488_s12 + $0x8] sm:$0xff] }
0x10fe   :  { %v2013_v20 = vmul.f32 %v2780_v9, %v2012_v14  ;;  %2190 = vmatpush.bf16.msra.mxu0 %v2634_v7 }
0x10ff   :  { %v1908_v12 = vadd.f32 %v2778_v4, %v1907_v10  ;;  %v2629_v10 = vld [vmem:[%s3487_s9] sm:$0xff] }
0x1100   :  { %v2014_v27 = vadd.f32 %v2780_v9, %v2013_v20  ;;  %2121 = vmatpush.bf16.msra.mxu1 %v2629_v10 }
0x1101   :  { %v1912_v18 = vsel %vm1911_vm3, %v2778_v4, %v1908_v12  ;;  %v1324_v4 = vpack.c.bf16 %v3168_v30, %v3168_v30 }
0x1102   :  { %v1917_v21 = vsel %vm1914_vm4, %v1916_v19, %v1912_v18  ;;  %v2018_v32 = vsel %vm2017_vm7, %v2780_v9, %v2014_v27  ;;  %v2627_v9 = vld [vmem:[%s3485_s8] sm:$0xff]  ;;  %2191 = vmatpush.bf16.msra.mxu0 %v2633_v11 }
0x1103   :  { %v2023_v35 = vsel %vm2020_vm8, %v2022_v33, %v2018_v32  ;;  %v1924_v44 = vmul.f32 %v1922_v37, %v1917_v21  ;;  %2149 = vmatpush.bf16.msra.mxu3 %v2627_v9 }
0x1158   :  { %v1927_v23 = vpop.permute.xlu0 %1926 }
0x1159   :  { %v1929_v26 = vmul.f32 %v1927_v23, %v1917_v21 }
0x115b   :  { %1931 = vrot.lane.b32.xlu0 %v1929_v26, %s2786_s28 }
0x1161   :  { %v2033_v34 = vpop.permute.xlu1 %2032 }
0x1162   :  { %v2035_v36 = vmul.f32 %v2033_v34, %v2023_v35 }
0x1164   :  { %2037 = vrot.lane.b32.xlu2 %v2035_v36, %s2786_s28 }
0x1169   :  { %v2028_v38 = vpop.permute.xlu1 %2027 }
0x116a   :  { %v2030_v39 = vmul.f32 %v2028_v38, %v2023_v35 }
0x11be   :  { %v2038_v40 = vpop.permute.xlu2 %2037 }
0x11bf   :  { %v2040_v41 = vadd.f32 %v2038_v40, %v2030_v39 }
0x11c1   :  { %2781 = vtanh.f32 %v2040_v41 }
0x11c7   :  { %v2782_v43 = vpop.eup %2781 }
0x11c8   :  { %2043 = vrot.lane.b32.xlu1 %v2782_v43, %s2787_s2  ;;  %v2656_v43 = vld [vmem:[%s3490_s13] ss:$0 sm:$0xff] }
0x11cd   :  { %v1932_v45 = vpop.permute.xlu0 %1931 }
0x11ce   :  { %v1934_v46 = vadd.f32 %v1932_v45, %v1924_v44  ;;  %v2655_v44 = vld [vmem:[%s3489_s10] ss:$0 sm:$0xff] }
0x11d0   :  { %2783 = vtanh.f32 %v1934_v46 }
0x11d6   :  { %v2784_v47 = vpop.eup %2783 }
0x11d7   :  { %1937 = vrot.lane.b32.xlu0 %v2784_v47, %s2787_s2 }
0x11df   :  { %2053 = vrot.lane.b32.xlu0 %v1934_v46, %s2788_s20 }
0x11e7   :  { %334 = vrot.lane.b32.xlu0 %v332_v48, %s2786_s28 }
0x11ef   :  { %589 = vrot.lane.b32.xlu0 %v587_v51, %s2786_s28 }
0x11f7   :  { %1078 = vrot.lane.b32.xlu0 %v1076_v52, %s2786_s28 }
0x11ff   :  { %1333 = vrot.lane.b32.xlu0 %v1331_v53, %s2786_s28 }
0x1207   :  { %1822 = vrot.lane.b32.xlu0 %v1820_v15, %s2786_s28 }
0x123a   :  { %v2044_v54 = vpop.permute.xlu1 %2043 }
0x123b   :  { %v2046_v55 = vmul.f32 %v2044_v54, %v2023_v35 }
0x123d   :  { %v2074_v22 = vpack.c.bf16 %v2046_v55, %v2046_v55  ;;  %2058 = vrot.lane.b32.xlu1 %v2046_v55, %s2786_s28 }
0x123f   :  { %2076 = vrot.lane.b32.xlu0 %v2074_v22, %s2786_s28 }
0x1245   :  { %341 = vrot.lane.b32.xlu1 %v339_v25, %s2786_s28 }
0x1249   :  { %v1938_v56 = vpop.permute.xlu0 %1937 }
0x124a   :  { %v1940_v58 = vmul.f32 %v1938_v56, %v1917_v21 }
0x124c   :  { %2048 = vrot.lane.b32.xlu2 %v1940_v58, %s2786_s28  ;;  %v2067_v30 = vpack.c.bf16 %v1940_v58, %v1940_v58 }
0x124d   :  { %830 = vrot.lane.b32.xlu1 %v828_v59, %s2786_s28 }
0x1251   :  { %v2054_v60 = vpop.permute.xlu0 %2053 }
0x1252   :  { %2056 = vst.msk [vmem:[#allocation3] sm:$0xff] %vm92_vm0, %v2054_v60 }
0x1254   :  { %2063 = vrot.lane.b32.xlu2 %v2040_v41, %s2788_s20 }
0x1255   :  { %1085 = vrot.lane.b32.xlu1 %v1083_v61, %s2786_s28 }
0x1259   :  { %v335_v8 = vpop.permute.xlu0 %334  ;;  %v2087_v63 = vld [vmem:[#allocation3] sm:$0xff] }
0x125a   :  { %338 = vst.msk [vmem:[%s3484_s14] sm:$0xf] %vm337_vm9, %v335_v8  ;;  %v2088_v0 = vpack.c.bf16 %v2087_v63, %v2087_v63 }
0x125c   :  { %582 = vrot.lane.b32.xlu2 %v580_v49, %s2786_s28  ;;  %2578 = vmatmul.msk.bf16.vlgmr.msra.gmra.mxu2 %vm92_vm0, %v2088_v0 }
0x125d   :  { %1574 = vrot.lane.b32.xlu1 %v1572_v1, %s2786_s28 }
0x1261   :  { %v590_v31 = vpop.permute.xlu0 %589 }
0x1262   :  { %2340 = vst.msk [vmem:[%s3486_s15 + $0x18] sm:$0xf] %vm337_vm9, %v590_v31 }
0x1264   :  { %837 = vrot.lane.b32.xlu2 %v835_v2, %s2786_s28 }
0x1265   :  { %1829 = vrot.lane.b32.xlu1 %v1827_v57, %s2786_s28 }
0x1269   :  { %v1079_v3 = vpop.permute.xlu0 %1078 }
0x126a   :  { %2407 = vst.msk [vmem:[%s3484_s14 + $0xc] sm:$0xf] %vm337_vm9, %v1079_v3 }
0x126c   :  { %1326 = vrot.lane.b32.xlu2 %v1324_v4, %s2786_s28 }
0x1271   :  { %v1334_v42 = vpop.permute.xlu0 %1333 }
0x1272   :  { %2442 = vst.msk [vmem:[%s3486_s15 + $0xc] sm:$0xf] %vm337_vm9, %v1334_v42 }
0x1274   :  { %1581 = vrot.lane.b32.xlu2 %v1579_v6, %s2786_s28 }
0x1279   :  { %v1823_v16 = vpop.permute.xlu0 %1822 }
0x127a   :  { %2509 = vst.msk [vmem:[%s3484_s14 + $0x18] sm:$0xf] %vm337_vm9, %v1823_v16 }
0x127c   :  { %2069 = vrot.lane.b32.xlu2 %v2067_v30, %s2786_s28 }
0x12a6   :  { %v2049_v12 = vpop.permute.xlu2 %2048 }
0x12a7   :  { %2051 = vst.msk [vmem:[#allocation2] sm:$0xff] %vm92_vm0, %v2049_v12 }
0x12ae   :  { %v2064_v13 = vpop.permute.xlu2 %2063  ;;  %v2083_v14 = vld [vmem:[#allocation2] sm:$0xff] }
0x12af   :  { %v2059_v17 = vpop.permute.xlu1 %2058  ;;  %2066 = vst.msk [vmem:[#allocation5] sm:$0xff] %vm92_vm0, %v2064_v13  ;;  %v2084_v18 = vpack.c.bf16 %v2083_v14, %v2083_v14 }
0x12b0   :  { %2061 = vst.msk [vmem:[#allocation4] sm:$0xff] %vm92_vm0, %v2059_v17 }
0x12b1   :  { %v2077_v19 = vpop.permute.xlu0 %2076  ;;  %2560 = vmatmul.msk.bf16.vlgmr.msra.gmra.mxu3 %vm92_vm0, %v2084_v18 }
0x12b2   :  { %2079 = vst.msk [vmem:[%s3486_s15] sm:$0xf] %vm337_vm9, %v2077_v19 }
0x12b6   :  { %v583_v20 = vpop.permute.xlu2 %582  ;;  %v2089_v21 = vld [vmem:[#allocation5] sm:$0xff] }
0x12b7   :  { %v342_v23 = vpop.permute.xlu1 %341  ;;  %2339 = vst.msk [vmem:[%s3484_s14 + $0x4] sm:$0xf] %vm337_vm9, %v583_v20  ;;  %v2085_v26 = vld [vmem:[#allocation4] sm:$0xff]  ;;  %v2090_v27 = vpack.c.bf16 %v2089_v21, %v2089_v21 }
0x12b8   :  { %2306 = vst.msk [vmem:[%s3486_s15 + $0x1c] sm:$0xf] %vm337_vm9, %v342_v23  ;;  %v2086_v28 = vpack.c.bf16 %v2085_v26, %v2085_v26 }
0x12b9   :  { %2569 = vmatmul.msk.bf16.vlgmr.msra.gmra.mxu0 %vm92_vm0, %v2090_v27 }
0x12ba   :  { %2551 = vmatmul.msk.bf16.vlgmr.msra.gmra.mxu1 %vm92_vm0, %v2086_v28 }
0x12be   :  { %v838_v29 = vpop.permute.xlu2 %837 }
0x12bf   :  { %v831_v32 = vpop.permute.xlu1 %830  ;;  %2374 = vst.msk [vmem:[%s3486_s15 + $0x14] sm:$0xf] %vm337_vm9, %v838_v29 }
0x12c0   :  { %2373 = vst.msk [vmem:[%s3484_s14 + $0x8] sm:$0xf] %vm337_vm9, %v831_v32 }
0x12c6   :  { %v1327_v33 = vpop.permute.xlu2 %1326 }
0x12c7   :  { %v1086_v34 = vpop.permute.xlu1 %1085  ;;  %2441 = vst.msk [vmem:[%s3484_s14 + $0x10] sm:$0xf] %vm337_vm9, %v1327_v33 }
0x12c8   :  { %2408 = vst.msk [vmem:[%s3486_s15 + $0x10] sm:$0xf] %vm337_vm9, %v1086_v34 }
0x12ce   :  { %v1582_v35 = vpop.permute.xlu2 %1581 }
0x12cf   :  { %v1575_v36 = vpop.permute.xlu1 %1574  ;;  %2476 = vst.msk [vmem:[%s3486_s15 + $0x8] sm:$0xf] %vm337_vm9, %v1582_v35 }
0x12d0   :  { %2475 = vst.msk [vmem:[%s3484_s14 + $0x14] sm:$0xf] %vm337_vm9, %v1575_v36 }
0x12d6   :  { %v2070_v37 = vpop.permute.xlu2 %2069 }
0x12d7   :  { %v1830_v38 = vpop.permute.xlu1 %1829  ;;  %2542 = vst.msk [vmem:[%s3484_s14 + $0x1c] sm:$0xf] %vm337_vm9, %v2070_v37 }
0x12d8   :  { %2510 = vst.msk [vmem:[%s3486_s15 + $0x4] sm:$0xf] %vm337_vm9, %v1830_v38 }
0x12df   :  { %v2221_v39 = vpop.f32.mrf.mxu2 }
0x12e7   :  { %v2223_v40 = vpop.f32.mrf.mxu2 }
0x1334   :  { %v2151_v41 = vpop.f32.mrf.mxu3 }
0x1336   :  { %v2193_v45 = vpop.f32.mrf.mxu0 }
0x1337   :  { %v2123_v46 = vpop.f32.mrf.mxu1  ;;  %v2222_v47 = vadd.f32 %v2221_v39, %v2193_v45 }
0x1338   :  { %v2152_v48 = vadd.f32 %v2151_v41, %v2123_v46 }
0x1339   :  { %v2229_v51 = vadd.f32 %v2656_v43, %v2222_v47 }
0x133a   :  { %v2159_v52 = vadd.f32 %v2655_v44, %v2152_v48 }
0x133b   :  { %2230 = vst.msk [vmem:[%s3491_s17] sm:$0xff] %vm92_vm0, %v2229_v51 }
0x133c   :  { %2160 = vst.msk [vmem:[%s3492_s16] sm:$0xff] %vm92_vm0, %v2159_v52  ;;  %v2153_v53 = vpop.f32.mrf.mxu3 }
0x133e   :  { %v2195_v15 = vpop.f32.mrf.mxu0 }
0x133f   :  { %v2125_v24 = vpop.f32.mrf.mxu1 }

// kernel: seq2seq_forward.3
= control target key start
LH: loop header
LB: loop body
LE: loop exit
PB: predicated region body
PF: predicated region fallthrough
CT: control target
= control target key end

     0   :  { %s5683_s19 = smov [#allocation7]   ;;  %s7044_s0 = inlined_call_operand.vmem [shape: s32[6], index: 0, kind: input, shape index: {}]   ;;  %s7045_s1 = inlined_call_operand.vmem [shape: bf16[6,8,16], index: 1, kind: input, shape index: {}]   ;;  %s7046_s2 = inlined_call_operand.vmem [shape: bf16[8,8,32], index: 2, kind: input, shape index: {}]   ;;  %s7047_s3 = inlined_call_operand.vmem [shape: bf16[8,8,32], index: 3, kind: input, shape index: {}]   ;;  %s7048_s4 = inlined_call_operand.vmem [shape: f32[1,32], index: 4, kind: input, shape index: {}]   ;;  %s7049_s5 = inlined_call_operand.vmem [shape: f32[1,1,32], index: 5, kind: input, shape index: {}]   ;;  %s7050_s6 = inlined_call_operand.vmem [shape: f32[1,1,32], index: 6, kind: input, shape index: {}]   ;;  %s7051_s8 = inlined_call_operand.vmem [shape: bf16[128,16], index: 8, kind: input, shape index: {}]   ;;  %s7052_s9 = inlined_call_operand.vmem [shape: bf16[32,128], index: 9, kind: input, shape index: {}]   ;;  %s7053_s10 = inlined_call_operand.vmem [shape: bf16[32,128], index: 10, kind: input, shape index: {}]   ;;  %s7054_s11 = inlined_call_operand.vmem [shape: bf16[16,128], index: 11, kind: input, shape index: {}]   ;;  %s7055_s12 = inlined_call_operand.vmem [shape: bf16[32,128], index: 12, kind: input, shape index: {}]   ;;  %s7056_s13 = inlined_call_operand.vmem [shape: f32[1,128], index: 13, kind: input, shape index: {}]   ;;  %s7057_s14 = inlined_call_operand.vmem [shape: bf16[32,128], index: 14, kind: input, shape index: {}]   ;;  %s7058_s15 = inlined_call_operand.vmem [shape: f32[1,128], index: 15, kind: input, shape index: {}]   ;;  %s7059_s16 = inlined_call_operand.vmem [shape: f32[8,32], index: 16, kind: input, shape index: {}]   ;;  %s7060_s17 = inlined_call_operand.vmem [shape: f32[8,32], index: 17, kind: input, shape index: {}]   ;;  %s7061_s18 = inlined_call_operand.vmem [shape: f32[6,8,128], index: 18, kind: output, shape index: {}]   ;;  %s7062_s7 = inlined_call_operand.<no memory space> [shape: f32[1,1], index: 7, kind: input, shape index: {}]  }
   0x1   :  { %7066 = sst [smem:[#allocation10_spill]] %s7044_s0  ;;  %v28_v0 = vstv %s7062_s7 }
   0x2   :  { %7067 = sst [smem:[#allocation11_spill]] %s7045_s1  ;;  %29 = vst [vmem:[#allocation8] sm:$0x1] %v28_v0 }
   0x3   :  { %7068 = sst [smem:[#allocation12_spill]] %s7046_s2 }
   0x4   :  { %7069 = sst [smem:[#allocation13_spill]] %s7051_s8 }
   0x5   :  { %s7070_s29 = sld [smem:[#allocation10_spill]] }
   0xb   :  { %s24_s8 = sshll.u32 %s7070_s29, 4  ;;  %s25_s8 = int_to_ptr.vmem [resolvable:$true] %s24_s8 }
   0xc   :  { %27 = dma.vmem_to_smem %s25_s8, 16, %s5683_s19, [#allocation6] }
   0xd   :  { %5681 = dma.done.wait [#allocation6], 16 }
   0xe   :  { %5682 = vsyncadd [#allocation6], 4294967280 }
   0xf   :  { %32 = sfence }
  0x10   :  { %v5546_v1 = vld [vmem:[%s7047_s3] sm:$0xff]   ;;  %s7071_s7 = sld [smem:[#allocation12_spill]]  ;;  %vm73_vm0 = vcmask 261120   ;;  %v5564_v8 = vld [vmem:[%s7047_s3 + $0x8] sm:$0xff]   ;;  %v5684_v23 = vmov 0   ;;  %v5565_v33 = vld [vmem:[%s7047_s3 + $0x10] sm:$0xff]  }
  0x11   :  { %v5797_v2 = vld [vmem:[%s7050_s6] ss:$0 sm:$0xff]  ;;  %v5547_v3 = vunpack.c.l.bf16 %v5546_v1  ;;  %v5548_v11 = vunpack.c.h.bf16 %v5546_v1  ;;  %v5551_v13 = vunpack.c.l.bf16 %v5564_v8  ;;  %5574 = vset.pattern.permute.xlu1 %v5684_v23  ;;  %5575 = vset.pattern.permute.xlu0 %v5684_v23  ;;  %v5552_v25 = vunpack.c.h.bf16 %v5564_v8  ;;  %v5566_v49 = vld [vmem:[%s7047_s3 + $0x18] sm:$0xff]   ;;  %s7072_s8 = sld [smem:[#allocation11_spill]]  ;;  %s5686_s21 = smov 32  }
  0x12   :  { %v5805_v5 = vld [vmem:[%s7049_s5] ss:$0 sm:$0xff]  ;;  %v5555_v38 = vunpack.c.l.bf16 %v5565_v33  ;;  %v5556_v46 = vunpack.c.h.bf16 %v5565_v33  ;;  %v5559_v53 = vunpack.c.l.bf16 %v5566_v49  ;;  %v5560_v60 = vunpack.c.h.bf16 %v5566_v49  ;;  %s7073_s1 = sld [smem:[#allocation13_spill]]  ;;  %s5688_s0 = smov 96  }
  0x13   :  { %v151_v9 = vmul.f32 %v5797_v2, %v5547_v3  ;;  %v152_v19 = vmul.f32 %v5797_v2, %v5548_v11  ;;  %v153_v20 = vmul.f32 %v5797_v2, %v5551_v13  ;;  %v154_v30 = vmul.f32 %v5797_v2, %v5552_v25  ;;  %v72_v40 = vld [vmem:[%s7059_s16] sm:$0xff]  ;;  %s242_s16 = sld [smem:[#allocation7]] }
  0x14   :  { %v155_v41 = vmul.f32 %v5797_v2, %v5555_v38  ;;  %74 = vst.msk [vmem:[#allocation2] sm:$0xff] %vm73_vm0, %v72_v40  ;;  %v156_v48 = vmul.f32 %v5797_v2, %v5556_v46  ;;  %v157_v55 = vmul.f32 %v5797_v2, %v5559_v53  ;;  %v5578_v56 = vld [vmem:[#allocation8] ss:$0 sm:$0xff]  ;;  %v158_v63 = vmul.f32 %v5797_v2, %v5560_v60  ;;  %s4927_s26 = sld [smem:[#allocation7 + $0x1]] }
  0x15   :  { %v159_v14 = vsel %vm73_vm0, %v151_v9, 0.0  ;;  %v162_v24 = vsel %vm73_vm0, %v152_v19, 0.0  ;;  %v165_v26 = vsel %vm73_vm0, %v153_v20, 0.0  ;;  %v168_v34 = vsel %vm73_vm0, %v154_v30, 0.0  ;;  %v5579_v58 = vld [vmem:[%s7048_s4] ss:$0 sm:$0xff] }
  0x16   :  { %v5561_v4 = vld [vmem:[%s7071_s7 + $0x8] sm:$0xff]   ;;  %v5530_v7 = vld [vmem:[%s7071_s7] sm:$0xff]   ;;  %160 = vadd.xlane.f32.xlu1 %v159_v14  ;;  %v5562_v22 = vld [vmem:[%s7071_s7 + $0x10] sm:$0xff]   ;;  %v171_v45 = vsel %vm73_vm0, %v155_v41, 0.0  ;;  %v174_v52 = vsel %vm73_vm0, %v156_v48, 0.0  ;;  %v177_v59 = vsel %vm73_vm0, %v157_v55, 0.0 }
  0x17   :  { %v5535_v6 = vunpack.c.l.bf16 %v5561_v4  ;;  %v5531_v10 = vunpack.c.l.bf16 %v5530_v7  ;;  %v5532_v16 = vunpack.c.h.bf16 %v5530_v7  ;;  %v5539_v27 = vunpack.c.l.bf16 %v5562_v22  ;;  %v5563_v42 = vld [vmem:[%s7071_s7 + $0x18] sm:$0xff]   ;;  %s5127_s30 = sld [smem:[#allocation7 + $0x3]] }
  0x18   :  { %v5536_v29 = vunpack.c.h.bf16 %v5561_v4  ;;  %v5540_v36 = vunpack.c.h.bf16 %v5562_v22  ;;  %v5543_v44 = vunpack.c.l.bf16 %v5563_v42  ;;  %v5544_v51 = vunpack.c.h.bf16 %v5563_v42 }
  0x19   :  { %v101_v12 = vmul.f32 %v5805_v5, %v5535_v6  ;;  %v99_v15 = vmul.f32 %v5805_v5, %v5531_v10  ;;  %v100_v21 = vmul.f32 %v5805_v5, %v5532_v16  ;;  %v103_v31 = vmul.f32 %v5805_v5, %v5539_v27  ;;  %p243_p0 = scmp.ne.s32.totalorder %s242_s16, 0 }
  0x1a   :  { %v102_v32 = vmul.f32 %v5805_v5, %v5536_v29  ;;  %v104_v39 = vmul.f32 %v5805_v5, %v5540_v36  ;;  %v105_v47 = vmul.f32 %v5805_v5, %v5543_v44  ;;  %v106_v54 = vmul.f32 %v5805_v5, %v5544_v51  ;;  %p1018_p1 = scmp.ne.s32.totalorder %s4927_s26, 0 }
  0x1b   :  { %v113_v17 = vsel %vm73_vm0, %v101_v12, 0.0  ;;  %v107_v18 = vsel %vm73_vm0, %v99_v15, 0.0  ;;  %v110_v28 = vsel %vm73_vm0, %v100_v21, 0.0  ;;  %v119_v35 = vsel %vm73_vm0, %v103_v31, 0.0  ;;  %v5862_v61 = vld [vmem:[#allocation2] sm:$0xff] }
  0x1c   :  { %114 = vadd.xlane.f32.xlu2 %v113_v17  ;;  %108 = vadd.xlane.f32.xlu0 %v107_v18  ;;  %v116_v37 = vsel %vm73_vm0, %v102_v32, 0.0  ;;  %v122_v43 = vsel %vm73_vm0, %v104_v39, 0.0  ;;  %v125_v50 = vsel %vm73_vm0, %v105_v47, 0.0  ;;  %v128_v57 = vsel %vm73_vm0, %v106_v54, 0.0  ;;  %s244_s2 = scalar_select %p243_p0, 1.0, 0.0 }
  0x1d   :  { %v260_v62 = vmul.f32 %v5579_v58, %v5862_v61  ;;  %v180_v1 = vsel %vm73_vm0, %v158_v63, 0.0  ;;  %v214_v15 = vlaneseq  ;;  %vm224_vm1 = vcmask 1041409   ;;  %v308_v63 = vld [vmem:[%s7071_s7] sm:$0xf]  ;;  %s1019_s27 = scalar_select %p1018_p1, 1.0, 0.0 }
  0x1e   :  { %163 = vadd.xlane.f32.xlu1 %v162_v24  ;;  %vm226_vm2 = vcmask 1042434   ;;  %vm228_vm3 = vcmask 1043459   ;;  %vm230_vm4 = vcmask 1044484   ;;  %vm232_vm5 = vcmask 1045509   ;;  %s249_s23 = ssub.f32 1.0, %s244_s2  ;;  %p2542_p3 = scmp.ne.s32.totalorder %s5127_s30, 0 }
  0x1f   :  { %v262_v0 = vsel %vm73_vm0, %v260_v62, 0.0  ;;  %v5868_v20 = vand.u32 127, %v214_v15  ;;  %vm234_vm6 = vcmask 1046534   ;;  %vm236_vm7 = vcmask 1047559   ;;  %s1025_s28 = ssub.f32 1.0, %s1019_s27 }
  0x20   :  { %vm239_vm8 = vcmask 64512   ;;  %vm321_vm9 = vcmask 1043456   ;;  %vm283_vm10 = vcmask 1040384   ;;  %vm77_vm11 = vcmask 130048   ;;  %s2543_s19 = scalar_select %p2542_p3, 1.0, 0.0 }
  0x24   :  { %166 = vadd.xlane.f32.xlu2 %v165_v26  ;;  %111 = vadd.xlane.f32.xlu0 %v110_v28 }
  0x26   :  { %169 = vadd.xlane.f32.xlu1 %v168_v34 }
  0x2c   :  { %120 = vadd.xlane.f32.xlu2 %v119_v35  ;;  %117 = vadd.xlane.f32.xlu0 %v116_v37 }
  0x34   :  { %123 = vadd.xlane.f32.xlu2 %v122_v43  ;;  %172 = vadd.xlane.f32.xlu0 %v171_v45 }
  0x3c   :  { %126 = vadd.xlane.f32.xlu2 %v125_v50  ;;  %175 = vadd.xlane.f32.xlu0 %v174_v52 }
  0x3f   :  { %195 = vperm.xlu1 %5574, %v5578_v56  }
  0x44   :  { %129 = vadd.xlane.f32.xlu2 %v128_v57  ;;  %178 = vadd.xlane.f32.xlu0 %v177_v59 }
  0x4c   :  { %263 = vadd.xlane.f32.xlu2 %v262_v0  ;;  %181 = vadd.xlane.f32.xlu0 %v180_v1  ;;  %v310_v0 = vld [vmem:[%s7071_s7 + $0x8] sm:$0xf]  ;;  %v323_v1 = vsel %vm321_vm9, %v308_v63, 0  ;;  %v490_v63 = vld [vmem:[%s7047_s3 + $0x14] sm:$0xf] }
  0x4d   :  { %332 = vmatpush.bf16.msra.mxu1 %v323_v1  ;;  %v574_v1 = vsel %vm321_vm9, %v490_v63, 0 }
  0x89   :  { %v161_v7 = vpop.xlane.xlu1 %160 }
  0x8f   :  { %v115_v3 = vpop.xlane.xlu2 %114  ;;  %v109_v4 = vpop.xlane.xlu0 %108 }
  0x90   :  { %v183_v2 = vadd.f32 %v161_v7, %v109_v4  ;;  %v312_v4 = vld [vmem:[%s7071_s7 + $0x10] sm:$0xf]  ;;  %v311_v7 = vld [vmem:[%s7071_s7 + $0xc] sm:$0xf] }
  0x91   :  { %v164_v10 = vpop.xlane.xlu1 %163 }
  0x97   :  { %v167_v5 = vpop.xlane.xlu2 %166  ;;  %v112_v6 = vpop.xlane.xlu0 %111 }
  0x98   :  { %v185_v17 = vadd.f32 %v167_v5, %v115_v3  ;;  %v184_v18 = vadd.f32 %v164_v10, %v112_v6  ;;  %v365_v3 = vsel %vm321_vm9, %v310_v0, 0  ;;  %v407_v5 = vsel %vm321_vm9, %v312_v4, 0  ;;  %v309_v6 = vld [vmem:[%s7071_s7 + $0x4] sm:$0xf]  ;;  %v314_v10 = vld [vmem:[%s7071_s7 + $0x18] sm:$0xf] }
  0x99   :  { %v170_v13 = vpop.xlane.xlu1 %169  ;;  %374 = vmatpush.bf16.msra.mxu2 %v365_v3  ;;  %416 = vmatpush.bf16.msra.mxu0 %v407_v5  ;;  %v5428_v5 = vld [vmem:[%s7052_s9 + $0x8] sm:$0xff] }
  0x9f   :  { %v118_v8 = vpop.xlane.xlu0 %117  ;;  %v121_v9 = vpop.xlane.xlu2 %120 }
  0xa0   :  { %v186_v19 = vadd.f32 %v170_v13, %v118_v8  ;;  %v344_v8 = vsel %vm321_vm9, %v309_v6, 0  ;;  %v449_v13 = vsel %vm321_vm9, %v314_v10, 0 }
  0xa1   :  { %353 = vmatpush.bf16.msrb.mxu1 %v344_v8  ;;  %458 = vmatpush.bf16.msrb.mxu2 %v449_v13  ;;  %v5427_v8 = vld [vmem:[%s7052_s9] sm:$0xff] }
  0xa7   :  { %v173_v11 = vpop.xlane.xlu0 %172  ;;  %v124_v12 = vpop.xlane.xlu2 %123 }
  0xa8   :  { %v187_v26 = vadd.f32 %v173_v11, %v121_v9  ;;  %v386_v9 = vsel %vm321_vm9, %v311_v7, 0  ;;  %v315_v11 = vld [vmem:[%s7071_s7 + $0x1c] sm:$0xf] }
  0xa9   :  { %395 = vmatpush.bf16.msra.mxu3 %v386_v9 }
  0xaf   :  { %v176_v14 = vpop.xlane.xlu0 %175  ;;  %v127_v16 = vpop.xlane.xlu2 %126 }
  0xb0   :  { %v188_v32 = vadd.f32 %v176_v14, %v124_v12  ;;  %v485_v12 = vld [vmem:[%s7047_s3] sm:$0xf]  ;;  %v470_v14 = vsel %vm321_vm9, %v315_v11, 0 }
  0xb1   :  { %v196_v21 = vpop.permute.xlu1 %195  ;;  %v494_v15 = vsel %vm321_vm9, %v485_v12, 0  ;;  %479 = vmatpush.bf16.msrb.mxu3 %v470_v14 }
  0xb2   :  { %v198_v22 = vadd.f32 %v196_v21, %v183_v2  ;;  %v199_v23 = vadd.f32 %v196_v21, %v184_v18  ;;  %v200_v24 = vadd.f32 %v196_v21, %v185_v17  ;;  %v201_v25 = vadd.f32 %v196_v21, %v186_v19  ;;  %503 = vmatpush.bf16.msrb.mxu0 %v494_v15 }
  0xb3   :  { %v202_v31 = vadd.f32 %v196_v21, %v187_v26  ;;  %v203_v37 = vadd.f32 %v196_v21, %v188_v32  ;;  %v489_v32 = vld [vmem:[%s7047_s3 + $0x10] sm:$0xf] }
  0xb4   :  { %v216_v28 = vperm.slane %v198_v22, %v5868_v20  ;;  %v217_v29 = vperm.slane %v199_v23, %v5868_v20  ;;  %v218_v30 = vperm.slane %v200_v24, %v5868_v20  ;;  %v219_v33 = vperm.slane %v201_v25, %v5868_v20  ;;  %v313_v24 = vld [vmem:[%s7071_s7 + $0x14] sm:$0xf] }
  0xb5   :  { %v220_v39 = vperm.slane %v202_v31, %v5868_v20  ;;  %v221_v44 = vperm.slane %v203_v37, %v5868_v20  ;;  %v428_v31 = vsel %vm321_vm9, %v313_v24, 0  ;;  %v488_v37 = vld [vmem:[%s7047_s3 + $0xc] sm:$0xf] }
  0xb6   :  { %v225_v34 = vsel %vm224_vm1, %v217_v29, %v216_v28  ;;  %v487_v28 = vld [vmem:[%s7047_s3 + $0x8] sm:$0xf] }
  0xb7   :  { %v179_v27 = vpop.xlane.xlu0 %178  ;;  %v227_v35 = vsel %vm226_vm2, %v218_v30, %v225_v34  ;;  %v130_v40 = vpop.xlane.xlu2 %129 }
  0xb8   :  { %v189_v36 = vadd.f32 %v179_v27, %v127_v16  ;;  %v229_v38 = vsel %vm228_vm3, %v219_v33, %v227_v35 }
  0xb9   :  { %v231_v41 = vsel %vm230_vm4, %v220_v39, %v229_v38 }
  0xba   :  { %v204_v42 = vadd.f32 %v196_v21, %v189_v36  ;;  %v233_v46 = vsel %vm232_vm5, %v221_v44, %v231_v41  ;;  %v526_v36 = vsel %vm321_vm9, %v487_v28, 0  ;;  %v247_v28 = vstv %s244_s2  ;;  %s5687_s2 = smov 64  }
  0xbc   :  { %v222_v48 = vperm.slane %v204_v42, %v5868_v20  ;;  %v542_v42 = vsel %vm321_vm9, %v488_v37, 0  ;;  %v5431_v37 = vld [vmem:[%s7054_s11] sm:$0xff] }
  0xbe   :  { %v235_v50 = vsel %vm234_vm6, %v222_v48, %v233_v46  ;;  %v486_v48 = vld [vmem:[%s7047_s3 + $0x4] sm:$0xf] }
  0xbf   :  { %v182_v43 = vpop.xlane.xlu0 %181  ;;  %v264_v52 = vpop.xlane.xlu2 %263 }
  0xc0   :  { %v190_v45 = vadd.f32 %v182_v43, %v130_v40  ;;  %v558_v40 = vsel %vm321_vm9, %v489_v32, 0 }
  0xc2   :  { %v205_v47 = vadd.f32 %v196_v21, %v190_v45 }
  0xc4   :  { %v223_v49 = vperm.slane %v205_v47, %v5868_v20 }
  0xc6   :  { %v237_v51 = vsel %vm236_vm7, %v223_v49, %v235_v50  ;;  %v491_v50 = vld [vmem:[%s7047_s3 + $0x18] sm:$0xf] }
  0xc7   :  { %240 = vst.msk [vmem:[#allocation5] sm:$0xff] %vm239_vm8, %v237_v51 }
  0xce   :  { %v5886_v53 = vld [vmem:[#allocation5] sm:$0xff] }
  0xcf   :  { %v266_v54 = vadd.f32 %v5886_v53, %v264_v52  ;;  %v510_v52 = vsel %vm321_vm9, %v486_v48, 0 }
  0xd1   :  { %v267_v55 = vmax.f32 %v266_v54, 0.0 }
  0xd3   :  { %v269_v56 = vsel %vm239_vm8, %v267_v55, -inf }
  0xd4   :  { %270 = vmax.xlane.f32.xlu1 %v269_v56  ;;  %v590_v56 = vsel %vm321_vm9, %v491_v50, 0 }
 0x147   :  { %v271_v57 = vpop.xlane.xlu1 %270 }
 0x148   :  { %v272_v58 = vsub.f32 %v267_v55, %v271_v57  ;;  %v492_v57 = vld [vmem:[%s7047_s3 + $0x1c] sm:$0xf] }
 0x14a   :  { %v273_v59 = vmul.f32 1.442695, %v272_v58 }
 0x14c   :  { %5597 = vpow2.f32 %v273_v59  ;;  %v606_v59 = vsel %vm321_vm9, %v492_v57, 0 }
 0x152   :  { %v5598_v60 = vpop.eup %5597 }
 0x153   :  { %v275_v62 = vsel %vm239_vm8, %v5598_v60, 0.0 }
 0x154   :  { %276 = vadd.xlane.f32.xlu0 %v275_v62 }
 0x1c7   :  { %v277_v2 = vpop.xlane.xlu0 %276 }
 0x1c8   :  { %5599 = vrcp.f32 %v277_v2  ;;  %v5685_v2 = vmov 0.0  }
 0x1c9   :  { %78 = vst.msk [vmem:[#allocation4] sm:$0xff] %vm77_vm11, %v5685_v2 }
 0x1ce   :  { %v5600_v16 = vpop.eup %5599 }
 0x1cf   :  { %v279_v17 = vmul.f32 %v5600_v16, %v5598_v60 }
 0x1d1   :  { %v280_v18 = vpack.c.bf16 %v279_v17, %v279_v17 }
 0x1d3   :  { %v282_v19 = vrot.slane %v280_v18, 3 }
 0x1d5   :  { %v286_v21 = vsel %vm283_vm10, %v280_v18, %v282_v19  ;;  %v289_v22 = vsel %vm224_vm1, %v280_v18, %v282_v19  ;;  %v293_v23 = vsel %vm226_vm2, %v280_v18, %v282_v19  ;;  %v297_v43 = vsel %vm228_vm3, %v280_v18, %v282_v19 }
 0x1d6   :  { %v4830_v25 = vpack.i.b16 %v286_v21, %v286_v21  ;;  %v291_v26 = vrot.slane %v289_v22, 1  ;;  %v295_v27 = vrot.slane %v293_v23, 2  ;;  %v301_v44 = vunpack.i.h.s16 %v286_v21  ;;  %v5987_v22 = vld [vmem:[%s7072_s8] sm:$0xff]  }
 0x1d7   :  { %v299_v45 = vrot.slane %v297_v43, 3  ;;  %v5432_v43 = vld [vmem:[%s7055_s12] sm:$0xff] }
 0x1d8   :  { %v317_v29 = vperm.slane %v4830_v25, 0  ;;  %v4833_v30 = vpack.i.b16 %v291_v26, %v291_v26  ;;  %v4836_v33 = vpack.i.b16 %v295_v27, %v295_v27  ;;  %v303_v34 = vunpack.i.h.s16 %v291_v26 }
 0x1d9   :  { %v338_v46 = vpack.i.b16 %v301_v44, %v301_v44  ;;  %v307_v47 = vunpack.i.h.s16 %v299_v45  ;;  %v4839_v49 = vpack.i.b16 %v299_v45, %v299_v45  ;;  %v305_v60 = vunpack.i.h.s16 %v295_v27  ;;  %v5433_v27 = vld [vmem:[%s7055_s12 + $0x8] sm:$0xff] }
 0x1da   :  { %4831 = vmatmul.msk.bf16.vlgmr.msra.gmra.mxu1 %vm239_vm8, %v317_v29  ;;  %v360_v35 = vperm.slane %v4833_v30, 0  ;;  %v402_v38 = vperm.slane %v4836_v33, 0  ;;  %v380_v39 = vpack.i.b16 %v303_v34, %v303_v34  ;;  %v246_v25 = vunpack.c.l.bf16 %v5987_v22 }
 0x1db   :  { %437 = vmatpush.bf16.msra.mxu1 %v428_v31  ;;  %v339_v51 = vperm.slane %v338_v46, 0  ;;  %v464_v54 = vpack.i.b16 %v307_v47, %v307_v47  ;;  %v444_v55 = vperm.slane %v4839_v49, 0  ;;  %v422_v62 = vpack.i.b16 %v305_v60, %v305_v60 }
 0x1dc   :  { %4834 = vmatmul.msk.bf16.vlgmr.msra.gmra.mxu2 %vm239_vm8, %v360_v35  ;;  %4837 = vmatmul.msk.bf16.vlgmr.msra.gmra.mxu0 %vm239_vm8, %v402_v38  ;;  %v381_v41 = vperm.slane %v380_v39, 0  ;;  %v251_v30 = vstv %s249_s23  ;;  %v248_v34 = vmul.f32 %v247_v28, %v246_v25  ;;  %v793_v44 = vpack.c.bf16 %v5862_v61, %v5862_v61 }
 0x1dd   :  { %535 = vmatpush.bf16.msra.mxu2 %v526_v36  ;;  %567 = vmatpush.bf16.msra.mxu0 %v558_v40  ;;  %v465_v58 = vperm.slane %v464_v54, 0  ;;  %v423_v0 = vperm.slane %v422_v62, 0 }
 0x1de   :  { %4835 = vmatmul.msk.bf16.vlgmr.msra.gmra.mxu3 %vm239_vm8, %v381_v41 }
 0x1df   :  { %551 = vmatpush.bf16.msra.mxu3 %v542_v42 }
 0x1ea   :  { %4832 = vmatmul.msk.bf16.vlgmr.msrb.gmra.mxu1 %vm239_vm8, %v339_v51 }
 0x1eb   :  { %519 = vmatpush.bf16.msrb.mxu1 %v510_v52 }
 0x1ec   :  { %4840 = vmatmul.msk.bf16.vlgmr.msrb.gmra.mxu2 %vm239_vm8, %v444_v55  ;;  %4842 = vmatmul.msk.bf16.vlgmr.msrb.gmra.mxu0 %vm239_vm8, %v317_v29  ;;  %v250_v29 = vld [vmem:[#allocation4] sm:$0xff] }
 0x1ed   :  { %599 = vmatpush.bf16.msrb.mxu2 %v590_v56 }
 0x1ee   :  { %4841 = vmatmul.msk.bf16.vlgmr.msrb.gmra.mxu3 %vm239_vm8, %v465_v58 }
 0x1ef   :  { %615 = vmatpush.bf16.msrb.mxu3 %v606_v59 }
 0x1fa   :  { %4838 = vmatmul.msk.bf16.vlgmr.msra.gmra.mxu1 %vm239_vm8, %v423_v0 }
 0x1fb   :  { %583 = vmatpush.bf16.msra.mxu1 %v574_v1 }
 0x1fc   :  { %4844 = vmatmul.msk.bf16.vlgmr.msra.gmra.mxu2 %vm239_vm8, %v360_v35  ;;  %4846 = vmatmul.msk.bf16.vlgmr.msra.gmra.mxu0 %vm239_vm8, %v402_v38  ;;  %v252_v35 = vmul.f32 %v251_v30, %v250_v29 }
 0x1fd   :  { %786 = vmatpush.bf16.msra.mxu2 %v5431_v37 }
 0x1fe   :  { %4845 = vmatmul.msk.bf16.vlgmr.msra.gmra.mxu3 %vm239_vm8, %v381_v41  ;;  %v253_v40 = vadd.f32 %v252_v35, %v248_v34 }
 0x1ff   :  { %819 = vmatpush.bf16.msra.mxu3 %v5433_v27 }
 0x200   :  { %v254_v46 = vpack.c.bf16 %v253_v40, %v253_v40 }
 0x203   :  { %820 = vmatpush.bf16.msra.mxu3 %v5432_v43 }
 0x20a   :  { %4843 = vmatmul.msk.bf16.vlgmr.msrb.gmra.mxu1 %vm239_vm8, %v339_v51  ;;  %v5430_v51 = vld [vmem:[%s7053_s10 + $0x8] sm:$0xff] }
 0x20b   :  { %760 = vmatpush.bf16.msrb.mxu1 %v5428_v5  ;;  %701 = vmatpush.bf16.msrb.mxu0 %v5430_v51 }
 0x20c   :  { %4848 = vmatmul.msk.bf16.vlgmr.msrb.gmra.mxu2 %vm239_vm8, %v444_v55 }
 0x20e   :  { %4849 = vmatmul.msk.bf16.vlgmr.msrb.gmra.mxu3 %vm239_vm8, %v465_v58 }
 0x20f   :  { %761 = vmatpush.bf16.msrb.mxu1 %v5427_v8 }
 0x21a   :  { %4847 = vmatmul.msk.bf16.vlgmr.msra.gmra.mxu1 %vm239_vm8, %v423_v0 }
 0x21c   :  { %4872 = vmatmul.msk.bf16.vlgmr.msra.gmra.mxu2 %vm77_vm11, %v254_v46 }
 0x21e   :  { %4881 = vmatmul.msk.bf16.vlgmr.msra.gmra.mxu3 %vm73_vm0, %v793_v44 }
 0x257   :  { %v334_v3 = vpop.f32.mrf.mxu1 }
 0x258   :  { %v621_v18 = vpack.c.bf16 %v334_v3, %v334_v3 }
 0x259   :  { %v418_v4 = vpop.f32.mrf.mxu0 }
 0x25a   :  { %v716_v31 = vunpack.c.l.b16 %v621_v18  ;;  %v625_v36 = vpack.c.bf16 %v418_v4, %v418_v4 }
 0x25c   :  { %v720_v47 = vunpack.c.l.b16 %v625_v36 }
 0x25e   :  { %v730_v60 = vrot.slane %v720_v47, 4 }
 0x25f   :  { %v336_v6 = vpop.f32.mrf.mxu1  ;;  %v376_v7 = vpop.f32.mrf.mxu2 }
 0x260   :  { %v623_v17 = vpack.c.bf16 %v376_v7, %v376_v7  ;;  %v5429_v7 = vld [vmem:[%s7053_s10] sm:$0xff] }
 0x261   :  { %v397_v9 = vpop.f32.mrf.mxu3  ;;  %v420_v10 = vpop.f32.mrf.mxu0  ;;  %702 = vmatpush.bf16.msrb.mxu0 %v5429_v7 }
 0x262   :  { %v624_v23 = vpack.c.bf16 %v397_v9, %v397_v9  ;;  %v718_v26 = vunpack.c.l.b16 %v623_v17 }
 0x264   :  { %v719_v38 = vunpack.c.l.b16 %v624_v23  ;;  %v726_v41 = vrot.slane %v718_v26, 6 }
 0x266   :  { %v728_v52 = vrot.slane %v719_v38, 5 }
 0x267   :  { %v355_v11 = vpop.f32.mrf.mxu1  ;;  %v378_v12 = vpop.f32.mrf.mxu2 }
 0x268   :  { %v622_v13 = vpack.c.bf16 %v355_v11, %v355_v11  ;;  %v75_v12 = vld [vmem:[%s7060_s17] sm:$0xff]  ;;  %s2549_s17 = ssub.f32 1.0, %s2543_s19 }
 0x269   :  { %v399_v14 = vpop.f32.mrf.mxu3  ;;  %v5981_v15 = vpop.f32.mrf.mxu0  ;;  %76 = vst.msk [vmem:[#allocation3] sm:$0xff] %vm73_vm0, %v75_v12 }
 0x26a   :  { %v717_v16 = vunpack.c.l.b16 %v622_v13 }
 0x26c   :  { %v724_v24 = vrot.slane %v717_v16, 7 }
 0x26e   :  { %v725_v39 = vsel %vm224_vm1, %v724_v24, %v716_v31 }
 0x26f   :  { %v357_v19 = vpop.f32.mrf.mxu1  ;;  %v460_v21 = vpop.f32.mrf.mxu2  ;;  %v727_v48 = vsel %vm226_vm2, %v726_v41, %v725_v39 }
 0x270   :  { %v627_v42 = vpack.c.bf16 %v460_v21, %v460_v21  ;;  %v729_v57 = vsel %vm228_vm3, %v728_v52, %v727_v48  ;;  %v852_v17 = vld [vmem:[#allocation3] sm:$0xff]  ;;  %v633_v21 = vpack.c.bf16 %v5981_v15, %v5981_v15 }
 0x271   :  { %v481_v32 = vpop.f32.mrf.mxu3  ;;  %v507_v33 = vpop.f32.mrf.mxu0  ;;  %v731_v0 = vsel %vm230_vm4, %v730_v60, %v729_v57  ;;  %854 = vrot.lane.b32.xlu0 %v852_v17, %s5686_s21 }
 0x272   :  { %v628_v45 = vpack.c.bf16 %v481_v32, %v481_v32  ;;  %v722_v55 = vunpack.c.l.b16 %v627_v42  ;;  %v653_v28 = vunpack.c.l.b16 %v633_v21 }
 0x274   :  { %v723_v56 = vunpack.c.l.b16 %v628_v45  ;;  %v734_v63 = vrot.slane %v722_v55, 2 }
 0x276   :  { %v736_v1 = vrot.slane %v723_v56, 1 }
 0x277   :  { %v439_v49 = vpop.f32.mrf.mxu1  ;;  %v462_v50 = vpop.f32.mrf.mxu2 }
 0x278   :  { %v626_v54 = vpack.c.bf16 %v439_v49, %v439_v49 }
 0x279   :  { %v483_v58 = vpop.f32.mrf.mxu3  ;;  %v569_v59 = vpop.f32.mrf.mxu0 }
 0x27a   :  { %v721_v61 = vunpack.c.l.b16 %v626_v54  ;;  %v637_v30 = vpack.c.bf16 %v569_v59, %v569_v59 }
 0x27c   :  { %v732_v62 = vrot.slane %v721_v61, 3  ;;  %v657_v36 = vunpack.c.l.b16 %v637_v30  ;;  %v5435_v30 = vld [vmem:[%s7057_s14 + $0x8] sm:$0xff] }
 0x27d   :  { %917 = vmatpush.bf16.msra.mxu0 %v5435_v30 }
 0x27e   :  { %v733_v3 = vsel %vm232_vm5, %v732_v62, %v731_v0  ;;  %v667_v46 = vrot.slane %v657_v36, 4 }
 0x27f   :  { %v735_v4 = vsel %vm234_vm6, %v734_v63, %v733_v3  ;;  %v441_v5 = vpop.f32.mrf.mxu1  ;;  %v537_v6 = vpop.f32.mrf.mxu2  ;;  %v5580_v3 = vld [vmem:[%s7056_s13] ss:$0 sm:$0xff] }
 0x280   :  { %v737_v8 = vsel %vm236_vm7, %v736_v1, %v735_v4  ;;  %v635_v19 = vpack.c.bf16 %v537_v6, %v537_v6 }
 0x281   :  { %v738_v9 = vpack.c.b16 %v737_v8, %v737_v8  ;;  %v553_v10 = vpop.f32.mrf.mxu3  ;;  %v571_v11 = vpop.f32.mrf.mxu0 }
 0x282   :  { %v636_v25 = vpack.c.bf16 %v553_v10, %v553_v10  ;;  %v655_v27 = vunpack.c.l.b16 %v635_v19 }
 0x283   :  { %4867 = vmatmul.msk.bf16.vlgmr.msrb.gmra.mxu1 %vm73_vm0, %v738_v9 }
 0x284   :  { %v656_v31 = vunpack.c.l.b16 %v636_v25  ;;  %v663_v33 = vrot.slane %v655_v27, 6 }
 0x286   :  { %v665_v15 = vrot.slane %v656_v31, 5  ;;  %v5434_v31 = vld [vmem:[%s7057_s14] sm:$0xff] }
 0x287   :  { %v521_v13 = vpop.f32.mrf.mxu1  ;;  %v539_v14 = vpop.f32.mrf.mxu2  ;;  %918 = vmatpush.bf16.msra.mxu0 %v5434_v31 }
 0x288   :  { %v634_v2 = vpack.c.bf16 %v521_v13, %v521_v13 }
 0x289   :  { %v555_v16 = vpop.f32.mrf.mxu3 }
 0x28a   :  { %v654_v18 = vunpack.c.l.b16 %v634_v2 }
 0x28c   :  { %v661_v26 = vrot.slane %v654_v18, 7 }
 0x28e   :  { %v662_v32 = vsel %vm224_vm1, %v661_v26, %v653_v28 }
 0x28f   :  { %v523_v23 = vpop.f32.mrf.mxu1  ;;  %v601_v24 = vpop.f32.mrf.mxu2  ;;  %v664_v37 = vsel %vm226_vm2, %v663_v33, %v662_v32 }
 0x290   :  { %v639_v34 = vpack.c.bf16 %v601_v24, %v601_v24  ;;  %v666_v44 = vsel %vm228_vm3, %v665_v15, %v664_v37  ;;  %v5581_v37 = vld [vmem:[%s7048_s4] ss:$0 sm:$0xff] }
 0x291   :  { %v617_v29 = vpop.f32.mrf.mxu3  ;;  %v669_v49 = vsel %vm230_vm4, %v667_v46, %v666_v44 }
 0x292   :  { %v640_v35 = vpack.c.bf16 %v617_v29, %v617_v29  ;;  %v659_v41 = vunpack.c.l.b16 %v639_v34 }
 0x294   :  { %v660_v42 = vunpack.c.l.b16 %v640_v35  ;;  %v673_v48 = vrot.slane %v659_v41, 2 }
 0x296   :  { %v676_v50 = vrot.slane %v660_v42, 1 }
 0x297   :  { %v585_v38 = vpop.f32.mrf.mxu1  ;;  %v603_v39 = vpop.f32.mrf.mxu2 }
 0x298   :  { %v638_v40 = vpack.c.bf16 %v585_v38, %v585_v38 }
 0x299   :  { %v619_v45 = vpop.f32.mrf.mxu3 }
 0x29a   :  { %v658_v43 = vunpack.c.l.b16 %v638_v40  ;;  %v5582_v40 = vld [vmem:[%s7058_s15] ss:$0 sm:$0xff] }
 0x29c   :  { %v670_v47 = vrot.slane %v658_v43, 3 }
 0x29e   :  { %v672_v51 = vsel %vm232_vm5, %v670_v47, %v669_v49 }
 0x29f   :  { %v675_v52 = vsel %vm234_vm6, %v673_v48, %v672_v51  ;;  %v587_v54 = vpop.f32.mrf.mxu1  ;;  %v788_v61 = vpop.f32.mrf.mxu2  ;;  %v6064_v48 = vcvt.s32.f32 %v5868_v20  ;;  %v5441_v20 = vld [vmem:[%s7073_s1 + $0x28] sm:$0xff] }
 0x2a0   :  { %v678_v55 = vsel %vm236_vm7, %v676_v50, %v675_v52  ;;  %v5443_v54 = vld [vmem:[%s7073_s1 + $0x38] sm:$0xff] }
 0x2a1   :  { %v679_v56 = vpack.c.b16 %v678_v55, %v678_v55  ;;  %v822_v57 = vpop.f32.mrf.mxu3  ;;  %1002 = vmatpush.bf16.msra.mxu1 %v5443_v54 }
 0x2a3   :  { %4858 = vmatmul.msk.bf16.vlgmr.msrb.gmra.mxu0 %vm73_vm0, %v679_v56 }
 0x2a7   :  { %v790_v59 = vpop.f32.mrf.mxu2 }
 0x2a8   :  { %v5438_v59 = vld [vmem:[%s7073_s1 + $0x10] sm:$0xff] }
 0x2a9   :  { %v824_v60 = vpop.f32.mrf.mxu3 }
 0x2aa   :  { %v5437_v60 = vld [vmem:[%s7073_s1 + $0x8] sm:$0xff] }
 0x2e3   :  { %v855_v25 = vpop.permute.xlu0 %854 }
 0x300   :  { %v763_v58 = vpop.f32.mrf.mxu1 }
 0x308   :  { %v765_v62 = vpop.f32.mrf.mxu1 }
 0x309   :  { %v5436_v62 = vld [vmem:[%s7073_s1] sm:$0xff] }
 0x320   :  { %v704_v63 = vpop.f32.mrf.mxu0 }
 0x321   :  { %v764_v0 = vadd.f32 %v763_v58, %v704_v63  ;;  %v5439_v58 = vld [vmem:[%s7073_s1 + $0x18] sm:$0xff] }
 0x323   :  { %v792_v1 = vadd.f32 %v788_v61, %v764_v0  ;;  %v5440_v61 = vld [vmem:[%s7073_s1 + $0x20] sm:$0xff]  ;;  %v5689_v0 = vmov 1.0|1.0  }
 0x325   :  { %v826_v4 = vadd.f32 %v822_v57, %v792_v1  ;;  %v1078_v1 = vld [vmem:[%s7071_s7] sm:$0xf] }
 0x327   :  { %v831_v5 = vadd.f32 %v5580_v3, %v826_v4  ;;  %v1079_v3 = vld [vmem:[%s7071_s7 + $0x4] sm:$0xf]  ;;  %v1080_v4 = vld [vmem:[%s7071_s7 + $0x8] sm:$0xf] }
 0x328   :  { %v706_v6 = vpop.f32.mrf.mxu0 }
 0x329   :  { %5601 = vtanh.f32 %v831_v5  ;;  %v4882_v8 = vmul.f32 -1.442695, %v831_v5  ;;  %v1092_v5 = vsel %vm321_vm9, %v1078_v1, 0  ;;  %v1113_v6 = vsel %vm321_vm9, %v1079_v3, 0 }
 0x32a   :  { %1101 = vmatpush.bf16.msrb.mxu2 %v1092_v5  ;;  %1122 = vmatpush.bf16.msrb.mxu3 %v1113_v6  ;;  %v1261_v5 = vld [vmem:[%s7047_s3 + $0x1c] sm:$0xf] }
 0x32b   :  { %5603 = vpow2.f32 %v4882_v8  ;;  %v1084_v8 = vld [vmem:[%s7071_s7 + $0x18] sm:$0xf] }
 0x32f   :  { %v5602_v7 = vpop.eup %5601 }
 0x330   :  { %859 = vrot.lane.b32.xlu2 %v5602_v7, %s5687_s2  ;;  %v1134_v7 = vsel %vm321_vm9, %v1080_v4, 0 }
 0x331   :  { %v5604_v9 = vpop.eup %5603  ;;  %1143 = vmatpush.bf16.msrb.mxu0 %v1134_v7  ;;  %v1375_v7 = vsel %vm321_vm9, %v1261_v5, 0 }
 0x332   :  { %v835_v10 = vadd.f32 1.0, %v5604_v9  ;;  %v1218_v9 = vsel %vm321_vm9, %v1084_v8, 0  ;;  %v5450_v8 = vld [vmem:[%s7055_s12 + $0x8] sm:$0xff] }
 0x334   :  { %5605 = vrcp.f32 %v835_v10  ;;  %v847_v16 = vand.u32 2147483648, %v835_v10  ;;  %vm841_vm13 = vweird.f32 %v835_v10  ;;  %v845_v17 = vand.u32 2147483647, %v835_v10 }
 0x336   :  { %v848_v19 = vor.u32 1.1754944e-38, %v847_v16  ;;  %vm846_vm15 = vcmp.eq.f32.partialorder %v845_v17, 8.507059e+37 }
 0x33a   :  { %v5606_v11 = vpop.eup %5605 }
 0x33b   :  { %v837_v12 = vmul.f32 %v5606_v11, %v835_v10  ;;  %vm842_vm12 = vweird.f32 %v5606_v11  ;;  %v1081_v10 = vld [vmem:[%s7071_s7 + $0xc] sm:$0xf] }
 0x33c   :  { %vm843_vm14 = vmor %vm841_vm13, %vm842_vm12 }
 0x33d   :  { %v838_v13 = vsub.f32 1.0, %v837_v12  ;;  %v1082_v12 = vld [vmem:[%s7071_s7 + $0x10] sm:$0xf] }
 0x33f   :  { %v839_v14 = vmul.f32 %v5606_v11, %v838_v13  ;;  %v1083_v13 = vld [vmem:[%s7071_s7 + $0x14] sm:$0xf] }
 0x340   :  { %v1197_v16 = vsel %vm321_vm9, %v1083_v13, 0  ;;  %v1023_v13 = vstv %s1019_s27 }
 0x341   :  { %v840_v2 = vadd.f32 %v5606_v11, %v839_v14  ;;  %v1256_v14 = vld [vmem:[%s7047_s3 + $0x8] sm:$0xf] }
 0x342   :  { %v1295_v17 = vsel %vm321_vm9, %v1256_v14, 0 }
 0x343   :  { %v844_v18 = vsel %vm843_vm14, %v5606_v11, %v840_v2  ;;  %v1155_v11 = vsel %vm321_vm9, %v1081_v10, 0  ;;  %v1176_v2 = vsel %vm321_vm9, %v1082_v12, 0  ;;  %v5448_v10 = vld [vmem:[%s7054_s11] sm:$0xff]  ;;  %v1022_v12 = vunpack.c.h.bf16 %v5987_v22  ;;  %v5445_v22 = vld [vmem:[%s7052_s9 + $0x8] sm:$0xff] }
 0x344   :  { %v849_v21 = vsel %vm846_vm15, %v848_v19, %v844_v18  ;;  %1164 = vmatpush.bf16.msra.mxu2 %v1155_v11  ;;  %1185 = vmatpush.bf16.msra.mxu3 %v1176_v2  ;;  %v1027_v2 = vstv %s1025_s28  ;;  %s5027_s28 = sld [smem:[#allocation7 + $0x2]] }
 0x345   :  { %v857_v26 = vmul.f32 %v855_v25, %v849_v21  ;;  %v1085_v25 = vld [vmem:[%s7071_s7 + $0x1c] sm:$0xf] }
 0x34a   :  { %p1780_p2 = scmp.ne.s32.totalorder %s5027_s28, 0 }
 0x34c   :  { %s1781_s5 = scalar_select %p1780_p2, 1.0, 0.0 }
 0x34e   :  { %s1787_s20 = ssub.f32 1.0, %s1781_s5 }
 0x38a   :  { %v860_v23 = vpop.permute.xlu2 %859 }
 0x38b   :  { %v862_v24 = vmul.f32 %v860_v23, %v849_v21 }
 0x38d   :  { %864 = vrot.lane.b32.xlu2 %v862_v24, %s5686_s21 }
 0x3e7   :  { %v865_v27 = vpop.permute.xlu2 %864 }
 0x3e8   :  { %v867_v28 = vadd.f32 %v865_v27, %v857_v26 }
 0x3ea   :  { %5607 = vtanh.f32 %v867_v28 }
 0x3f0   :  { %v5608_v29 = vpop.eup %5607 }
 0x3f1   :  { %870 = vrot.lane.b32.xlu0 %v5608_v29, %s5687_s2 }
 0x463   :  { %v871_v32 = vpop.permute.xlu0 %870 }
 0x464   :  { %v873_v33 = vmul.f32 %v871_v32, %v849_v21 }
 0x466   :  { %v884_v34 = vpack.c.bf16 %v873_v33, %v873_v33  ;;  %875 = vrot.lane.b32.xlu1 %v873_v33, %s5686_s21  ;;  %v1239_v33 = vsel %vm321_vm9, %v1085_v25, 0 }
 0x468   :  { %894 = vrot.lane.b32.xlu2 %v884_v34, %s5686_s21  ;;  %v1254_v34 = vld [vmem:[%s7047_s3] sm:$0xf] }
 0x4c2   :  { %v895_v35 = vpop.permute.xlu2 %894 }
 0x4c3   :  { %4891 = vmatmul.msk.bf16.vlgmr.msra.gmra.mxu0 %vm73_vm0, %v895_v35 }
 0x4c4   :  { %1206 = vmatpush.bf16.msra.mxu0 %v1197_v16  ;;  %v1024_v16 = vmul.f32 %v1023_v13, %v1022_v12 }
 0x4d8   :  { %v876_v36 = vpop.permute.xlu1 %875 }
 0x4d9   :  { %878 = vst.msk [vmem:[#allocation2] sm:$0xff] %vm73_vm0, %v876_v36 }
 0x4e0   :  { %v6051_v38 = vld [vmem:[#allocation2] sm:$0xff] }
 0x4e1   :  { %v1036_v39 = vmul.f32 %v5581_v37, %v6051_v38  ;;  %v1557_v14 = vpack.c.bf16 %v6051_v38, %v6051_v38 }
 0x4e3   :  { %v1037_v15 = vsel %vm73_vm0, %v1036_v39, 0.0 }
 0x4e4   :  { %1038 = vadd.xlane.f32.xlu0 %v1037_v15  ;;  %v1255_v15 = vld [vmem:[%s7047_s3 + $0x4] sm:$0xf] }
 0x540   :  { %v920_v41 = vpop.f32.mrf.mxu0 }
 0x541   :  { %v921_v42 = vadd.f32 %v5582_v40, %v920_v41  ;;  %v1260_v40 = vld [vmem:[%s7047_s3 + $0x18] sm:$0xf] }
 0x543   :  { %924 = vst [vmem:[%s7061_s18] sm:$0xff] %v921_v42  ;;  %925 = vmax.xlane.f32.xlu1 %v921_v42 }
 0x548   :  { %v922_v43 = vpop.f32.mrf.mxu0 }
 0x557   :  { %v1039_v44 = vpop.xlane.xlu0 %1038 }
 0x558   :  { %v1041_v45 = vadd.f32 %v1039_v44, %v5886_v53  ;;  %v5442_v53 = vld [vmem:[%s7073_s1 + $0x30] sm:$0xff] }
 0x559   :  { %1003 = vmatpush.bf16.msra.mxu1 %v5442_v53  ;;  %v1257_v53 = vld [vmem:[%s7047_s3 + $0xc] sm:$0xf] }
 0x55a   :  { %v1042_v46 = vmax.f32 %v1041_v45, 0.0  ;;  %v1263_v45 = vsel %vm321_vm9, %v1254_v34, 0 }
 0x55c   :  { %v1043_v47 = vsel %vm239_vm8, %v1042_v46, -inf }
 0x55d   :  { %1044 = vmax.xlane.f32.xlu2 %v1043_v47  ;;  %1004 = vmatpush.bf16.msra.mxu1 %v5441_v20  ;;  %v1279_v47 = vsel %vm321_vm9, %v1255_v15, 0 }
 0x561   :  { %1005 = vmatpush.bf16.msra.mxu1 %v5440_v61  ;;  %v1258_v61 = vld [vmem:[%s7047_s3 + $0x10] sm:$0xf] }
 0x565   :  { %1006 = vmatpush.bf16.msra.mxu1 %v5439_v58  ;;  %v1311_v58 = vsel %vm321_vm9, %v1257_v53, 0 }
 0x569   :  { %1007 = vmatpush.bf16.msra.mxu1 %v5438_v59  ;;  %v1259_v59 = vld [vmem:[%s7047_s3 + $0x14] sm:$0xf] }
 0x56a   :  { %v1343_v1 = vsel %vm321_vm9, %v1259_v59, 0 }
 0x56d   :  { %1008 = vmatpush.bf16.msra.mxu1 %v5437_v60 }
 0x571   :  { %1009 = vmatpush.bf16.msra.mxu1 %v5436_v62 }
 0x575   :  { %1227 = vmatpush.bf16.msrb.mxu1 %v1218_v9  ;;  %v5449_v9 = vld [vmem:[%s7055_s12] sm:$0xff] }
 0x5b6   :  { %v926_v49 = vpop.xlane.xlu1 %925 }
 0x5b7   :  { %vm930_vm12 = vcmp.eq.f32.partialorder %v921_v42, %v926_v49  ;;  %v1359_v49 = vsel %vm321_vm9, %v1260_v40, 0 }
 0x5b8   :  { %v931_v50 = vsel %vm930_vm12, %v6064_v48, 128.0 }
 0x5b9   :  { %932 = vmin.xlane.f32.xlu2 %v931_v50 }
 0x5d0   :  { %v1045_v51 = vpop.xlane.xlu2 %1044 }
 0x5d1   :  { %v1046_v52 = vsub.f32 %v1042_v46, %v1045_v51 }
 0x5d3   :  { %v1047_v55 = vmul.f32 1.442695, %v1046_v52 }
 0x5d5   :  { %5609 = vpow2.f32 %v1047_v55 }
 0x5db   :  { %v5610_v56 = vpop.eup %5609 }
 0x5dc   :  { %v1049_v57 = vsel %vm239_vm8, %v5610_v56, 0.0 }
 0x5dd   :  { %1050 = vadd.xlane.f32.xlu0 %v1049_v57 }
 0x5f1   :  { %880 = vrot.lane.b32.xlu0 %v867_v28, %s5688_s0 }
 0x62c   :  { %v933_v63 = vpop.xlane.xlu2 %932 }
 0x62d   :  { %vm934_vm13 = vcmp.eq.f32.partialorder %v6064_v48, %v933_v63  ;;  %v1327_v63 = vsel %vm321_vm9, %v1258_v61, 0 }
 0x62e   :  { %vm4925_vm14 = vmpackc.low %vm934_vm13, %vm934_vm13 }
 0x62f   :  { %4926 = vmatmul.msk.bf16.vlgmr.msra.gmra.mxu1 %vm4925_vm14, %v5689_v0 }
 0x630   :  { %1304 = vmatpush.bf16.msra.mxu1 %v1295_v17 }
 0x650   :  { %v1051_v18 = vpop.xlane.xlu0 %1050 }
 0x651   :  { %5611 = vrcp.f32 %v1051_v18 }
 0x657   :  { %v5612_v19 = vpop.eup %5611 }
 0x658   :  { %v1053_v21 = vmul.f32 %v5612_v19, %v5610_v56 }
 0x65a   :  { %v1054_v23 = vpack.c.bf16 %v1053_v21, %v1053_v21 }
 0x65c   :  { %v1056_v24 = vrot.slane %v1054_v23, 3 }
 0x65e   :  { %v1059_v26 = vsel %vm283_vm10, %v1054_v23, %v1056_v24  ;;  %v1061_v27 = vsel %vm224_vm1, %v1054_v23, %v1056_v24  ;;  %v1067_v28 = vsel %vm228_vm3, %v1054_v23, %v1056_v24  ;;  %v1064_v46 = vsel %vm226_vm2, %v1054_v23, %v1056_v24 }
 0x65f   :  { %v4929_v29 = vpack.i.b16 %v1059_v26, %v1059_v26  ;;  %v1071_v30 = vunpack.i.h.s16 %v1059_v26  ;;  %v1063_v31 = vrot.slane %v1061_v27, 1  ;;  %v1069_v32 = vrot.slane %v1067_v28, 3 }
 0x660   :  { %v1066_v50 = vrot.slane %v1064_v46, 2 }
 0x661   :  { %v1087_v35 = vperm.slane %v4929_v29, 0  ;;  %v1107_v36 = vpack.i.b16 %v1071_v30, %v1071_v30  ;;  %v4932_v37 = vpack.i.b16 %v1063_v31, %v1063_v31  ;;  %v4938_v39 = vpack.i.b16 %v1069_v32, %v1069_v32  ;;  %v5444_v29 = vld [vmem:[%s7052_s9] sm:$0xff] }
 0x662   :  { %v1073_v51 = vunpack.i.h.s16 %v1063_v31  ;;  %v1075_v54 = vunpack.i.h.s16 %v1066_v50  ;;  %v4935_v20 = vpack.i.b16 %v1066_v50, %v1066_v50  ;;  %v1077_v3 = vunpack.i.h.s16 %v1069_v32 }
 0x663   :  { %4930 = vmatmul.msk.bf16.vlgmr.msrb.gmra.mxu2 %vm239_vm8, %v1087_v35  ;;  %v881_v41 = vpop.permute.xlu0 %880  ;;  %v1108_v42 = vperm.slane %v1107_v36, 0  ;;  %v1129_v43 = vperm.slane %v4932_v37, 0  ;;  %v1213_v44 = vperm.slane %v4938_v39, 0 }
 0x664   :  { %883 = vst.msk [vmem:[#allocation3] sm:$0xff] %vm73_vm0, %v881_v41  ;;  %1248 = vmatpush.bf16.msrb.mxu2 %v1239_v33  ;;  %v1149_v55 = vpack.i.b16 %v1073_v51, %v1073_v51  ;;  %v1191_v56 = vpack.i.b16 %v1075_v54, %v1075_v54  ;;  %v1171_v60 = vperm.slane %v4935_v20, 0  ;;  %v1233_v4 = vpack.i.b16 %v1077_v3, %v1077_v3  ;;  %v5447_v20 = vld [vmem:[%s7053_s10 + $0x8] sm:$0xff] }
 0x665   :  { %4931 = vmatmul.msk.bf16.vlgmr.msrb.gmra.mxu3 %vm239_vm8, %v1108_v42  ;;  %4933 = vmatmul.msk.bf16.vlgmr.msrb.gmra.mxu0 %vm239_vm8, %v1129_v43 }
 0x666   :  { %4939 = vmatmul.msk.bf16.vlgmr.msrb.gmra.mxu1 %vm239_vm8, %v1213_v44  ;;  %1272 = vmatpush.bf16.msrb.mxu3 %v1263_v45  ;;  %v1150_v57 = vperm.slane %v1149_v55, 0  ;;  %v1192_v62 = vperm.slane %v1191_v56, 0  ;;  %v1234_v6 = vperm.slane %v1233_v4, 0 }
 0x667   :  { %1288 = vmatpush.bf16.msrb.mxu0 %v1279_v47  ;;  %1368 = vmatpush.bf16.msrb.mxu1 %v1359_v49 }
 0x66b   :  { %v1616_v52 = vld [vmem:[#allocation3] sm:$0xff] }
 0x66c   :  { %1618 = vrot.lane.b32.xlu1 %v1616_v52, %s5686_s21 }
 0x673   :  { %4934 = vmatmul.msk.bf16.vlgmr.msra.gmra.mxu2 %vm239_vm8, %v1150_v57 }
 0x674   :  { %1320 = vmatpush.bf16.msra.mxu2 %v1311_v58 }
 0x675   :  { %4936 = vmatmul.msk.bf16.vlgmr.msra.gmra.mxu3 %vm239_vm8, %v1171_v60  ;;  %4937 = vmatmul.msk.bf16.vlgmr.msra.gmra.mxu0 %vm239_vm8, %v1192_v62 }
 0x676   :  { %4943 = vmatmul.msk.bf16.vlgmr.msra.gmra.mxu1 %vm239_vm8, %v1129_v43  ;;  %1336 = vmatpush.bf16.msra.mxu3 %v1327_v63 }
 0x677   :  { %1352 = vmatpush.bf16.msra.mxu0 %v1343_v1  ;;  %1550 = vmatpush.bf16.msra.mxu1 %v5448_v10 }
 0x683   :  { %4940 = vmatmul.msk.bf16.vlgmr.msrb.gmra.mxu2 %vm239_vm8, %v1234_v6 }
 0x684   :  { %1384 = vmatpush.bf16.msrb.mxu2 %v1375_v7 }
 0x685   :  { %4941 = vmatmul.msk.bf16.vlgmr.msrb.gmra.mxu3 %vm239_vm8, %v1087_v35  ;;  %4942 = vmatmul.msk.bf16.vlgmr.msrb.gmra.mxu0 %vm239_vm8, %v1108_v42 }
 0x686   :  { %4947 = vmatmul.msk.bf16.vlgmr.msrb.gmra.mxu1 %vm239_vm8, %v1213_v44  ;;  %1525 = vmatpush.bf16.msrb.mxu0 %v5445_v22 }
 0x687   :  { %1466 = vmatpush.bf16.msrb.mxu3 %v5447_v20 }
 0x68a   :  { %1526 = vmatpush.bf16.msrb.mxu0 %v5444_v29 }
 0x693   :  { %4944 = vmatmul.msk.bf16.vlgmr.msra.gmra.mxu2 %vm239_vm8, %v1150_v57 }
 0x694   :  { %1583 = vmatpush.bf16.msra.mxu2 %v5450_v8 }
 0x695   :  { %4945 = vmatmul.msk.bf16.vlgmr.msra.gmra.mxu3 %vm239_vm8, %v1171_v60  ;;  %4946 = vmatmul.msk.bf16.vlgmr.msra.gmra.mxu0 %vm239_vm8, %v1192_v62 }
 0x698   :  { %1584 = vmatpush.bf16.msra.mxu2 %v5449_v9 }
 0x6a3   :  { %4948 = vmatmul.msk.bf16.vlgmr.msrb.gmra.mxu2 %vm239_vm8, %v1234_v6 }
 0x6ac   :  { %v1011_v11 = vpop.f32.mrf.mxu1 }
 0x6ad   :  { %1015 = vst.msk [vmem:[#allocation4] sm:$0xff] %vm77_vm11, %v1011_v11 }
 0x6b3   :  { %4980 = vmatmul.msk.bf16.vlgmr.msra.gmra.mxu2 %vm73_vm0, %v1557_v14  ;;  %v5446_v14 = vld [vmem:[%s7053_s10] sm:$0xff] }
 0x6b4   :  { %v1013_v17 = vpop.f32.mrf.mxu1  ;;  %v1026_v18 = vld [vmem:[#allocation4] sm:$0xff]  ;;  %1467 = vmatpush.bf16.msrb.mxu3 %v5446_v14 }
 0x6b5   :  { %v1028_v19 = vmul.f32 %v1027_v2, %v1026_v18 }
 0x6b7   :  { %v1029_v21 = vadd.f32 %v1028_v19, %v1024_v16 }
 0x6b9   :  { %v1030_v23 = vpack.c.bf16 %v1029_v21, %v1029_v21 }
 0x6bb   :  { %4971 = vmatmul.msk.bf16.vlgmr.msra.gmra.mxu1 %vm77_vm11, %v1030_v23 }
 0x6e2   :  { %v1145_v24 = vpop.f32.mrf.mxu0 }
 0x6e3   :  { %v1229_v25 = vpop.f32.mrf.mxu1  ;;  %v1392_v39 = vpack.c.bf16 %v1145_v24, %v1145_v24 }
 0x6e4   :  { %v1396_v56 = vpack.c.bf16 %v1229_v25, %v1229_v25 }
 0x6e5   :  { %v1483_v46 = vunpack.c.l.b16 %v1392_v39 }
 0x6e6   :  { %v1103_v26 = vpop.f32.mrf.mxu2  ;;  %v1487_v63 = vunpack.c.l.b16 %v1396_v56 }
 0x6e7   :  { %v1390_v40 = vpack.c.bf16 %v1103_v26, %v1103_v26  ;;  %v1491_v55 = vrot.slane %v1483_v46, 6 }
 0x6e8   :  { %v1124_v27 = vpop.f32.mrf.mxu3  ;;  %v1499_v9 = vrot.slane %v1487_v63, 2 }
 0x6e9   :  { %v1391_v33 = vpack.c.bf16 %v1124_v27, %v1124_v27  ;;  %v1481_v47 = vunpack.c.l.b16 %v1390_v40 }
 0x6ea   :  { %v1147_v38 = vpop.f32.mrf.mxu0 }
 0x6eb   :  { %v1231_v28 = vpop.f32.mrf.mxu1  ;;  %v1482_v36 = vunpack.c.l.b16 %v1391_v33 }
 0x6ed   :  { %v1489_v43 = vrot.slane %v1482_v36, 7 }
 0x6ee   :  { %v1105_v30 = vpop.f32.mrf.mxu2 }
 0x6ef   :  { %v1490_v51 = vsel %vm224_vm1, %v1489_v43, %v1481_v47 }
 0x6f0   :  { %v1126_v31 = vpop.f32.mrf.mxu3  ;;  %v1492_v61 = vsel %vm226_vm2, %v1491_v55, %v1490_v51 }
 0x6f2   :  { %v1208_v32 = vpop.f32.mrf.mxu0 }
 0x6f3   :  { %v1306_v34 = vpop.f32.mrf.mxu1  ;;  %v1395_v52 = vpack.c.bf16 %v1208_v32, %v1208_v32 }
 0x6f4   :  { %v1404_v26 = vpack.c.bf16 %v1306_v34, %v1306_v34 }
 0x6f5   :  { %v1486_v59 = vunpack.c.l.b16 %v1395_v52 }
 0x6f6   :  { %v1166_v35 = vpop.f32.mrf.mxu2  ;;  %v1424_v31 = vunpack.c.l.b16 %v1404_v26 }
 0x6f7   :  { %v1393_v37 = vpack.c.bf16 %v1166_v35, %v1166_v35  ;;  %v1497_v4 = vrot.slane %v1486_v59, 3 }
 0x6f8   :  { %v1187_v15 = vpop.f32.mrf.mxu3 }
 0x6f9   :  { %v1394_v41 = vpack.c.bf16 %v1187_v15, %v1187_v15  ;;  %v1484_v44 = vunpack.c.l.b16 %v1393_v37  ;;  %v1432_v15 = vrot.slane %v1424_v31, 6 }
 0x6fa   :  { %v1210_v42 = vpop.f32.mrf.mxu0 }
 0x6fb   :  { %v1308_v45 = vpop.f32.mrf.mxu1  ;;  %v1485_v49 = vunpack.c.l.b16 %v1394_v41  ;;  %v1493_v54 = vrot.slane %v1484_v44, 5 }
 0x6fd   :  { %v1495_v57 = vrot.slane %v1485_v49, 4  ;;  %v1494_v60 = vsel %vm228_vm3, %v1493_v54, %v1492_v61 }
 0x6fe   :  { %v1168_v50 = vpop.f32.mrf.mxu2 }
 0x6ff   :  { %v1496_v1 = vsel %vm230_vm4, %v1495_v57, %v1494_v60 }
 0x700   :  { %v1189_v53 = vpop.f32.mrf.mxu3  ;;  %v1498_v7 = vsel %vm232_vm5, %v1497_v4, %v1496_v1 }
 0x701   :  { %v1500_v13 = vsel %vm234_vm6, %v1499_v9, %v1498_v7 }
 0x702   :  { %v1290_v58 = vpop.f32.mrf.mxu0 }
 0x703   :  { %v1370_v62 = vpop.f32.mrf.mxu1  ;;  %v1403_v21 = vpack.c.bf16 %v1290_v58, %v1290_v58 }
 0x704   :  { %v1408_v41 = vpack.c.bf16 %v1370_v62, %v1370_v62 }
 0x705   :  { %v1423_v22 = vunpack.c.l.b16 %v1403_v21 }
 0x706   :  { %v1250_v3 = vpop.f32.mrf.mxu2  ;;  %v1428_v45 = vunpack.c.l.b16 %v1408_v41 }
 0x707   :  { %v1397_v5 = vpack.c.bf16 %v1250_v3, %v1250_v3  ;;  %v1430_v32 = vrot.slane %v1423_v22, 7 }
 0x708   :  { %v1274_v6 = vpop.f32.mrf.mxu3  ;;  %v1440_v54 = vrot.slane %v1428_v45, 2 }
 0x709   :  { %v1488_v8 = vunpack.c.l.b16 %v1397_v5  ;;  %v1402_v24 = vpack.c.bf16 %v1274_v6, %v1274_v6  ;;  %v5583_v5 = vld [vmem:[%s7056_s13] ss:$0 sm:$0xff] }
 0x70a   :  { %v1292_v10 = vpop.f32.mrf.mxu0 }
 0x70b   :  { %v1501_v11 = vrot.slane %v1488_v8, 1  ;;  %v1372_v12 = vpop.f32.mrf.mxu1  ;;  %v1422_v29 = vunpack.c.l.b16 %v1402_v24 }
 0x70d   :  { %v1502_v2 = vsel %vm236_vm7, %v1501_v11, %v1500_v13  ;;  %v1431_v36 = vsel %vm224_vm1, %v1430_v32, %v1422_v29 }
 0x70e   :  { %v1503_v16 = vpack.c.b16 %v1502_v2, %v1502_v2  ;;  %v1252_v17 = vpop.f32.mrf.mxu2  ;;  %v1433_v42 = vsel %vm226_vm2, %v1432_v15, %v1431_v36 }
 0x710   :  { %v1276_v18 = vpop.f32.mrf.mxu3  ;;  %4966 = vmatmul.msk.bf16.vlgmr.msrb.gmra.mxu0 %vm73_vm0, %v1503_v16 }
 0x712   :  { %v1354_v19 = vpop.f32.mrf.mxu0 }
 0x713   :  { %v1407_v37 = vpack.c.bf16 %v1354_v19, %v1354_v19 }
 0x715   :  { %v1427_v43 = vunpack.c.l.b16 %v1407_v37  ;;  %v5584_v37 = vld [vmem:[%s7048_s4] ss:$0 sm:$0xff] }
 0x716   :  { %v1322_v23 = vpop.f32.mrf.mxu2 }
 0x717   :  { %v1405_v25 = vpack.c.bf16 %v1322_v23, %v1322_v23  ;;  %v1438_v49 = vrot.slane %v1427_v43, 3 }
 0x718   :  { %v1338_v27 = vpop.f32.mrf.mxu3 }
 0x719   :  { %v1406_v38 = vpack.c.bf16 %v1338_v27, %v1338_v27  ;;  %v1425_v30 = vunpack.c.l.b16 %v1405_v25  ;;  %v1619_v27 = vpop.permute.xlu1 %1618 }
 0x71a   :  { %v1356_v28 = vpop.f32.mrf.mxu0 }
 0x71b   :  { %v1426_v33 = vunpack.c.l.b16 %v1406_v38  ;;  %v1434_v39 = vrot.slane %v1425_v30, 5 }
 0x71d   :  { %v1436_v34 = vrot.slane %v1426_v33, 4  ;;  %v1435_v44 = vsel %vm228_vm3, %v1434_v39, %v1433_v42  ;;  %v5452_v33 = vld [vmem:[%s7057_s14 + $0x8] sm:$0xff]  ;;  %v6247_v42 = vld [vmem:[#allocation5] sm:$0xff] }
 0x71e   :  { %v1324_v35 = vpop.f32.mrf.mxu2  ;;  %1681 = vmatpush.bf16.msra.mxu3 %v5452_v33 }
 0x71f   :  { %v1437_v46 = vsel %vm230_vm4, %v1436_v34, %v1435_v44  ;;  %v5451_v35 = vld [vmem:[%s7057_s14] sm:$0xff] }
 0x720   :  { %v1340_v40 = vpop.f32.mrf.mxu3  ;;  %v1439_v51 = vsel %vm232_vm5, %v1438_v49, %v1437_v46  ;;  %v5585_v46 = vld [vmem:[%s7058_s15] ss:$0 sm:$0xff] }
 0x721   :  { %v1441_v53 = vsel %vm234_vm6, %v1440_v54, %v1439_v51 }
 0x722   :  { %1682 = vmatpush.bf16.msra.mxu3 %v5451_v35 }
 0x726   :  { %v1386_v47 = vpop.f32.mrf.mxu2 }
 0x727   :  { %v1409_v50 = vpack.c.bf16 %v1386_v47, %v1386_v47 }
 0x729   :  { %v1429_v52 = vunpack.c.l.b16 %v1409_v50 }
 0x72b   :  { %v1442_v55 = vrot.slane %v1429_v52, 1 }
 0x72d   :  { %v1443_v20 = vsel %vm236_vm7, %v1442_v55, %v1441_v53 }
 0x72e   :  { %v1444_v56 = vpack.c.b16 %v1443_v20, %v1443_v20  ;;  %v1388_v61 = vpop.f32.mrf.mxu2  ;;  %v5460_v20 = vld [vmem:[%s7073_s1 + $0x38] sm:$0xff] }
 0x72f   :  { %1764 = vmatpush.bf16.msra.mxu0 %v5460_v20 }
 0x730   :  { %4957 = vmatmul.msk.bf16.vlgmr.msrb.gmra.mxu3 %vm73_vm0, %v1444_v56  ;;  %v5459_v56 = vld [vmem:[%s7073_s1 + $0x30] sm:$0xff] }
 0x733   :  { %1765 = vmatpush.bf16.msra.mxu0 %v5459_v56  ;;  %v2020_v56 = vld [vmem:[%s7047_s3 + $0x10] sm:$0xf] }
 0x736   :  { %v1586_v57 = vpop.f32.mrf.mxu2 }
 0x738   :  { %v1552_v58 = vpop.f32.mrf.mxu1 }
 0x73e   :  { %v1588_v59 = vpop.f32.mrf.mxu2 }
 0x740   :  { %v1554_v60 = vpop.f32.mrf.mxu1 }
 0x78d   :  { %v1528_v62 = vpop.f32.mrf.mxu0 }
 0x795   :  { %v1530_v63 = vpop.f32.mrf.mxu0 }
 0x796   :  { %v5456_v63 = vld [vmem:[%s7073_s1 + $0x18] sm:$0xff] }
 0x7b3   :  { %v1469_v1 = vpop.f32.mrf.mxu3 }
 0x7b4   :  { %v1529_v3 = vadd.f32 %v1528_v62, %v1469_v1  ;;  %v5457_v62 = vld [vmem:[%s7073_s1 + $0x20] sm:$0xff]  ;;  %v5455_v1 = vld [vmem:[%s7073_s1 + $0x10] sm:$0xff] }
 0x7b6   :  { %v1556_v4 = vadd.f32 %v1552_v58, %v1529_v3  ;;  %v5458_v58 = vld [vmem:[%s7073_s1 + $0x28] sm:$0xff]  ;;  %v1840_v3 = vld [vmem:[%s7071_s7] sm:$0xf] }
 0x7b7   :  { %1766 = vmatpush.bf16.msra.mxu0 %v5458_v58  ;;  %v2021_v58 = vld [vmem:[%s7047_s3 + $0x14] sm:$0xf] }
 0x7b8   :  { %v1590_v6 = vadd.f32 %v1586_v57, %v1556_v4  ;;  %v1841_v4 = vld [vmem:[%s7071_s7 + $0x4] sm:$0xf] }
 0x7ba   :  { %v1595_v7 = vadd.f32 %v5583_v5, %v1590_v6  ;;  %v1842_v5 = vld [vmem:[%s7071_s7 + $0x8] sm:$0xf]  ;;  %v1854_v6 = vsel %vm321_vm9, %v1840_v3, 0  ;;  %v2105_v3 = vsel %vm321_vm9, %v2021_v58, 0 }
 0x7bb   :  { %v1471_v8 = vpop.f32.mrf.mxu3  ;;  %1767 = vmatpush.bf16.msra.mxu0 %v5457_v62  ;;  %1863 = vmatpush.bf16.msrb.mxu1 %v1854_v6 }
 0x7bc   :  { %5613 = vtanh.f32 %v1595_v7  ;;  %v4981_v10 = vmul.f32 -1.442695, %v1595_v7  ;;  %v1875_v7 = vsel %vm321_vm9, %v1841_v4, 0  ;;  %v1896_v8 = vsel %vm321_vm9, %v1842_v5, 0 }
 0x7bd   :  { %1884 = vmatpush.bf16.msrb.mxu2 %v1875_v7  ;;  %1905 = vmatpush.bf16.msrb.mxu3 %v1896_v8  ;;  %v2023_v7 = vld [vmem:[%s7047_s3 + $0x1c] sm:$0xf] }
 0x7be   :  { %5615 = vpow2.f32 %v4981_v10  ;;  %v5453_v10 = vld [vmem:[%s7073_s1] sm:$0xff] }
 0x7bf   :  { %1768 = vmatpush.bf16.msra.mxu0 %v5456_v63  ;;  %v2089_v63 = vsel %vm321_vm9, %v2020_v56, 0 }
 0x7c2   :  { %v5614_v9 = vpop.eup %5613 }
 0x7c3   :  { %1623 = vrot.lane.b32.xlu2 %v5614_v9, %s5687_s2  ;;  %1769 = vmatpush.bf16.msra.mxu0 %v5455_v1  ;;  %v5454_v9 = vld [vmem:[%s7073_s1 + $0x8] sm:$0xff] }
 0x7c4   :  { %v5616_v11 = vpop.eup %5615 }
 0x7c5   :  { %v1599_v12 = vadd.f32 1.0, %v5616_v11  ;;  %v1843_v11 = vld [vmem:[%s7071_s7 + $0xc] sm:$0xf] }
 0x7c7   :  { %5617 = vrcp.f32 %v1599_v12  ;;  %v1611_v18 = vand.u32 2147483648, %v1599_v12  ;;  %vm1605_vm12 = vweird.f32 %v1599_v12  ;;  %v1609_v19 = vand.u32 2147483647, %v1599_v12  ;;  %1770 = vmatpush.bf16.msra.mxu0 %v5454_v9 }
 0x7c8   :  { %v2137_v9 = vsel %vm321_vm9, %v2023_v7, 0 }
 0x7c9   :  { %v1612_v23 = vor.u32 1.1754944e-38, %v1611_v18  ;;  %vm1610_vm14 = vcmp.eq.f32.partialorder %v1609_v19, 8.507059e+37 }
 0x7cb   :  { %1771 = vmatpush.bf16.msra.mxu0 %v5453_v10  ;;  %v5467_v10 = vld [vmem:[%s7055_s12 + $0x8] sm:$0xff] }
 0x7cd   :  { %v5618_v13 = vpop.eup %5617 }
 0x7ce   :  { %v1601_v14 = vmul.f32 %v5618_v13, %v1599_v12  ;;  %vm1606_vm15 = vweird.f32 %v5618_v13  ;;  %v1917_v12 = vsel %vm321_vm9, %v1843_v11, 0  ;;  %v5466_v11 = vld [vmem:[%s7055_s12] sm:$0xff] }
 0x7cf   :  { %vm1607_vm13 = vmor %vm1605_vm12, %vm1606_vm15  ;;  %1926 = vmatpush.bf16.msra.mxu1 %v1917_v12 }
 0x7d0   :  { %v1602_v2 = vsub.f32 1.0, %v1601_v14  ;;  %v1845_v14 = vld [vmem:[%s7071_s7 + $0x14] sm:$0xf] }
 0x7d2   :  { %v1603_v16 = vmul.f32 %v5618_v13, %v1602_v2  ;;  %v1846_v2 = vld [vmem:[%s7071_s7 + $0x18] sm:$0xf] }
 0x7d3   :  { %v1980_v18 = vsel %vm321_vm9, %v1846_v2, 0 }
 0x7d4   :  { %v1604_v17 = vadd.f32 %v5618_v13, %v1603_v16  ;;  %1989 = vmatpush.bf16.msrb.mxu0 %v1980_v18  ;;  %v1785_v18 = vstv %s1781_s5 }
 0x7d6   :  { %v1608_v21 = vsel %vm1607_vm13, %v5618_v13, %v1604_v17  ;;  %v1844_v13 = vld [vmem:[%s7071_s7 + $0x10] sm:$0xf]  ;;  %v1959_v17 = vsel %vm321_vm9, %v1845_v14, 0 }
 0x7d7   :  { %v1613_v25 = vsel %vm1610_vm14, %v1612_v23, %v1608_v21  ;;  %v1938_v16 = vsel %vm321_vm9, %v1844_v13, 0  ;;  %v5465_v13 = vld [vmem:[%s7054_s11] sm:$0xff] }
 0x7d8   :  { %v1621_v22 = vmul.f32 %v1619_v27, %v1613_v25  ;;  %1947 = vmatpush.bf16.msra.mxu2 %v1938_v16  ;;  %v5028_v16 = vld [vmem:[%s7072_s8 + $0x8] sm:$0xf] }
 0x81d   :  { %v1624_v24 = vpop.permute.xlu2 %1623 }
 0x81e   :  { %v1626_v26 = vmul.f32 %v1624_v24, %v1613_v25 }
 0x820   :  { %1628 = vrot.lane.b32.xlu0 %v1626_v26, %s5686_s21 }
 0x892   :  { %v1629_v38 = vpop.permute.xlu0 %1628 }
 0x893   :  { %v1631_v28 = vadd.f32 %v1629_v38, %v1621_v22  ;;  %v1847_v22 = vld [vmem:[%s7071_s7 + $0x1c] sm:$0xf] }
 0x894   :  { %v2001_v35 = vsel %vm321_vm9, %v1847_v22, 0 }
 0x895   :  { %5619 = vtanh.f32 %v1631_v28 }
 0x89b   :  { %v5620_v29 = vpop.eup %5619 }
 0x89c   :  { %1634 = vrot.lane.b32.xlu2 %v5620_v29, %s5687_s2 }
 0x8f6   :  { %v1635_v30 = vpop.permute.xlu2 %1634 }
 0x8f7   :  { %v1637_v31 = vmul.f32 %v1635_v30, %v1613_v25  ;;  %v2016_v30 = vld [vmem:[%s7047_s3] sm:$0xf] }
 0x8f9   :  { %v1648_v32 = vpack.c.bf16 %v1637_v31, %v1637_v31  ;;  %1639 = vrot.lane.b32.xlu2 %v1637_v31, %s5686_s21 }
 0x8fb   :  { %1658 = vrot.lane.b32.xlu0 %v1648_v32, %s5686_s21 }
 0x953   :  { %v1640_v36 = vpop.permute.xlu2 %1639 }
 0x954   :  { %1642 = vst.msk [vmem:[#allocation2] sm:$0xff] %vm73_vm0, %v1640_v36  ;;  %v2017_v36 = vld [vmem:[%s7047_s3 + $0x4] sm:$0xf] }
 0x95b   :  { %v6242_v39 = vld [vmem:[#allocation2] sm:$0xff] }
 0x95c   :  { %v1798_v15 = vmul.f32 %v5584_v37, %v6242_v39  ;;  %v2018_v37 = vld [vmem:[%s7047_s3 + $0x8] sm:$0xf]  ;;  %v2319_v12 = vpack.c.bf16 %v6242_v39, %v6242_v39 }
 0x95d   :  { %v5462_v39 = vld [vmem:[%s7052_s9 + $0x8] sm:$0xff] }
 0x95e   :  { %v1799_v40 = vsel %vm73_vm0, %v1798_v15, 0.0 }
 0x95f   :  { %1800 = vadd.xlane.f32.xlu0 %v1799_v40 }
 0x96d   :  { %v1659_v41 = vpop.permute.xlu0 %1658 }
 0x96e   :  { %4990 = vmatmul.msk.bf16.vlgmr.msra.gmra.mxu3 %vm73_vm0, %v1659_v41 }
 0x96f   :  { %1968 = vmatpush.bf16.msra.mxu3 %v1959_v17  ;;  %v1784_v17 = vunpack.c.l.bf16 %v5028_v16 }
 0x9d2   :  { %v1801_v34 = vpop.xlane.xlu0 %1800 }
 0x9d3   :  { %v1803_v43 = vadd.f32 %v6247_v42, %v1801_v34  ;;  %v2025_v34 = vsel %vm321_vm9, %v2016_v30, 0 }
 0x9d5   :  { %v1804_v44 = vmax.f32 %v1803_v43, 0.0  ;;  %v2041_v43 = vsel %vm321_vm9, %v2017_v36, 0 }
 0x9d7   :  { %v1805_v45 = vsel %vm239_vm8, %v1804_v44, -inf }
 0x9d8   :  { %1806 = vmax.xlane.f32.xlu1 %v1805_v45 }
 0x9f1   :  { %v1684_v47 = vpop.f32.mrf.mxu3 }
 0x9f2   :  { %v1685_v49 = vadd.f32 %v5585_v46, %v1684_v47 }
 0x9f4   :  { %4991 = vst [vmem:[%s7061_s18 + $0x8] sm:$0xff] %v1685_v49  ;;  %1690 = vmax.xlane.f32.xlu2 %v1685_v49 }
 0x9f9   :  { %v1686_v50 = vpop.f32.mrf.mxu3 }
 0xa0c   :  { %1644 = vrot.lane.b32.xlu2 %v1631_v28, %s5688_s0 }
 0xa4b   :  { %v1807_v51 = vpop.xlane.xlu1 %1806 }
 0xa4c   :  { %v1808_v52 = vsub.f32 %v1804_v44, %v1807_v51  ;;  %v2057_v44 = vsel %vm321_vm9, %v2018_v37, 0 }
 0xa4e   :  { %v1809_v54 = vmul.f32 1.442695, %v1808_v52 }
 0xa50   :  { %5621 = vpow2.f32 %v1809_v54  ;;  %v2019_v54 = vld [vmem:[%s7047_s3 + $0xc] sm:$0xf] }
 0xa56   :  { %v5622_v55 = vpop.eup %5621 }
 0xa57   :  { %v1811_v53 = vsel %vm239_vm8, %v5622_v55, 0.0 }
 0xa58   :  { %1812 = vadd.xlane.f32.xlu0 %v1811_v53 }
 0xa67   :  { %v1691_v61 = vpop.xlane.xlu2 %1690 }
 0xa68   :  { %vm1692_vm15 = vcmp.eq.f32.partialorder %v1685_v49, %v1691_v61 }
 0xa69   :  { %v1693_v57 = vsel %vm1692_vm15, %v6064_v48, 128.0 }
 0xa6a   :  { %1694 = vmin.xlane.f32.xlu1 %v1693_v57  ;;  %v2073_v57 = vsel %vm321_vm9, %v2019_v54, 0 }
 0xa6f   :  { %v1645_v59 = vpop.permute.xlu2 %1644 }
 0xa70   :  { %1647 = vst.msk [vmem:[#allocation3] sm:$0xff] %vm73_vm0, %v1645_v59  ;;  %v2022_v59 = vld [vmem:[%s7047_s3 + $0x18] sm:$0xf] }
 0xa71   :  { %v2121_v4 = vsel %vm321_vm9, %v2022_v59, 0 }
 0xa77   :  { %v2378_v60 = vld [vmem:[#allocation3] sm:$0xff] }
 0xa83   :  { %2380 = vrot.lane.b32.xlu1 %v2378_v60, %s5686_s21 }
 0xacb   :  { %v1813_v19 = vpop.xlane.xlu0 %1812 }
 0xacc   :  { %5623 = vrcp.f32 %v1813_v19  ;;  %v5461_v19 = vld [vmem:[%s7052_s9] sm:$0xff] }
 0xad2   :  { %v5624_v21 = vpop.eup %5623 }
 0xad3   :  { %v1815_v23 = vmul.f32 %v5624_v21, %v5622_v55 }
 0xad5   :  { %v1816_v24 = vpack.c.bf16 %v1815_v23, %v1815_v23 }
 0xad7   :  { %v1818_v25 = vrot.slane %v1816_v24, 3 }
 0xad9   :  { %v1821_v26 = vsel %vm283_vm10, %v1816_v24, %v1818_v25  ;;  %v1823_v27 = vsel %vm224_vm1, %v1816_v24, %v1818_v25  ;;  %v1826_v45 = vsel %vm226_vm2, %v1816_v24, %v1818_v25  ;;  %v1829_v47 = vsel %vm228_vm3, %v1816_v24, %v1818_v25 }
 0xada   :  { %v5029_v38 = vpack.i.b16 %v1821_v26, %v1821_v26  ;;  %v1833_v28 = vunpack.i.h.s16 %v1821_v26  ;;  %v1825_v29 = vrot.slane %v1823_v27, 1  ;;  %v1828_v46 = vrot.slane %v1826_v45, 2 }
 0xadb   :  { %v1831_v50 = vrot.slane %v1829_v47, 3  ;;  %v1789_v24 = vstv %s1787_s20  ;;  %v1786_v26 = vmul.f32 %v1785_v18, %v1784_v17 }
 0xadc   :  { %v1849_v31 = vperm.slane %v5029_v38, 0  ;;  %v1869_v32 = vpack.i.b16 %v1833_v28, %v1833_v28  ;;  %v5032_v33 = vpack.i.b16 %v1825_v29, %v1825_v29  ;;  %v1835_v49 = vunpack.i.h.s16 %v1825_v29 }
 0xadd   :  { %v1695_v15 = vpop.xlane.xlu1 %1694  ;;  %v1837_v51 = vunpack.i.h.s16 %v1828_v46  ;;  %v5035_v55 = vpack.i.b16 %v1828_v46, %v1828_v46  ;;  %v5038_v53 = vpack.i.b16 %v1831_v50, %v1831_v50  ;;  %v1839_v5 = vunpack.i.h.s16 %v1831_v50 }
 0xade   :  { %vm1696_vm12 = vcmp.eq.f32.partialorder %v6064_v48, %v1695_v15  ;;  %5030 = vmatmul.msk.bf16.vlgmr.msrb.gmra.mxu1 %vm239_vm8, %v1849_v31  ;;  %v1870_v40 = vperm.slane %v1869_v32, 0  ;;  %v1891_v41 = vperm.slane %v5032_v33, 0  ;;  %v1911_v52 = vpack.i.b16 %v1835_v49, %v1835_v49 }
 0xadf   :  { %vm5025_vm13 = vmpackc.low %vm1696_vm12, %vm1696_vm12  ;;  %2010 = vmatpush.bf16.msrb.mxu1 %v2001_v35  ;;  %v1953_v20 = vpack.i.b16 %v1837_v51, %v1837_v51  ;;  %v1933_v60 = vperm.slane %v5035_v55, 0  ;;  %v1975_v62 = vperm.slane %v5038_v53, 0  ;;  %v1995_v6 = vpack.i.b16 %v1839_v5, %v1839_v5 }
 0xae0   :  { %5026 = vmatmul.msk.bf16.vlgmr.msra.gmra.mxu0 %vm5025_vm13, %v5689_v0  ;;  %5031 = vmatmul.msk.bf16.vlgmr.msrb.gmra.mxu2 %vm239_vm8, %v1870_v40  ;;  %v1912_v61 = vperm.slane %v1911_v52, 0 }
 0xae1   :  { %5033 = vmatmul.msk.bf16.vlgmr.msrb.gmra.mxu3 %vm239_vm8, %v1891_v41  ;;  %2034 = vmatpush.bf16.msrb.mxu2 %v2025_v34  ;;  %v1954_v1 = vperm.slane %v1953_v20, 0  ;;  %v1996_v8 = vperm.slane %v1995_v6, 0 }
 0xae2   :  { %2050 = vmatpush.bf16.msrb.mxu3 %v2041_v43  ;;  %2066 = vmatpush.bf16.msra.mxu0 %v2057_v44 }
 0xaee   :  { %5034 = vmatmul.msk.bf16.vlgmr.msra.gmra.mxu1 %vm239_vm8, %v1912_v61 }
 0xaef   :  { %2082 = vmatpush.bf16.msra.mxu1 %v2073_v57 }
 0xaf0   :  { %5036 = vmatmul.msk.bf16.vlgmr.msra.gmra.mxu2 %vm239_vm8, %v1933_v60  ;;  %5039 = vmatmul.msk.bf16.vlgmr.msrb.gmra.mxu0 %vm239_vm8, %v1975_v62 }
 0xaf1   :  { %5037 = vmatmul.msk.bf16.vlgmr.msra.gmra.mxu3 %vm239_vm8, %v1954_v1  ;;  %2098 = vmatpush.bf16.msra.mxu2 %v2089_v63 }
 0xaf2   :  { %2114 = vmatpush.bf16.msra.mxu3 %v2105_v3  ;;  %2130 = vmatpush.bf16.msrb.mxu0 %v2121_v4  ;;  %v5464_v3 = vld [vmem:[%s7053_s10 + $0x8] sm:$0xff] }
 0xafe   :  { %5040 = vmatmul.msk.bf16.vlgmr.msrb.gmra.mxu1 %vm239_vm8, %v1996_v8 }
 0xaff   :  { %2146 = vmatpush.bf16.msrb.mxu1 %v2137_v9 }
 0xb00   :  { %5041 = vmatmul.msk.bf16.vlgmr.msrb.gmra.mxu2 %vm239_vm8, %v1849_v31  ;;  %5043 = vmatmul.msk.bf16.vlgmr.msra.gmra.mxu0 %vm239_vm8, %v1891_v41 }
 0xb01   :  { %5042 = vmatmul.msk.bf16.vlgmr.msrb.gmra.mxu3 %vm239_vm8, %v1870_v40  ;;  %2312 = vmatpush.bf16.msra.mxu0 %v5465_v13 }
 0xb02   :  { %2287 = vmatpush.bf16.msrb.mxu3 %v5462_v39  ;;  %2228 = vmatpush.bf16.msrb.mxu2 %v5464_v3 }
 0xb06   :  { %2288 = vmatpush.bf16.msrb.mxu3 %v5461_v19 }
 0xb0e   :  { %5044 = vmatmul.msk.bf16.vlgmr.msra.gmra.mxu1 %vm239_vm8, %v1912_v61 }
 0xb0f   :  { %2345 = vmatpush.bf16.msra.mxu1 %v5467_v10 }
 0xb10   :  { %5045 = vmatmul.msk.bf16.vlgmr.msra.gmra.mxu2 %vm239_vm8, %v1933_v60  ;;  %5047 = vmatmul.msk.bf16.vlgmr.msrb.gmra.mxu0 %vm239_vm8, %v1975_v62 }
 0xb11   :  { %5046 = vmatmul.msk.bf16.vlgmr.msra.gmra.mxu3 %vm239_vm8, %v1954_v1 }
 0xb13   :  { %2346 = vmatpush.bf16.msra.mxu1 %v5466_v11 }
 0xb1e   :  { %5048 = vmatmul.msk.bf16.vlgmr.msrb.gmra.mxu1 %vm239_vm8, %v1996_v8 }
 0xb2e   :  { %5080 = vmatmul.msk.bf16.vlgmr.msra.gmra.mxu1 %vm73_vm0, %v2319_v12  ;;  %v5463_v12 = vld [vmem:[%s7053_s10] sm:$0xff] }
 0xb2f   :  { %2229 = vmatpush.bf16.msrb.mxu2 %v5463_v12 }
 0xb5b   :  { %v1865_v14 = vpop.f32.mrf.mxu1 }
 0xb5c   :  { %v2152_v40 = vpack.c.bf16 %v1865_v14, %v1865_v14 }
 0xb5d   :  { %v1773_v2 = vpop.f32.mrf.mxu0 }
 0xb5e   :  { %1777 = vst.msk [vmem:[#allocation4] sm:$0xff] %vm77_vm11, %v1773_v2  ;;  %v2243_v46 = vunpack.c.l.b16 %v2152_v40 }
 0xb63   :  { %v1867_v21 = vpop.f32.mrf.mxu1  ;;  %v1886_v23 = vpop.f32.mrf.mxu2 }
 0xb64   :  { %v1907_v25 = vpop.f32.mrf.mxu3  ;;  %v2153_v29 = vpack.c.bf16 %v1886_v23, %v1886_v23 }
 0xb65   :  { %v1775_v27 = vpop.f32.mrf.mxu0  ;;  %v1788_v22 = vld [vmem:[#allocation4] sm:$0xff]  ;;  %v2154_v35 = vpack.c.bf16 %v1907_v25, %v1907_v25 }
 0xb66   :  { %v1790_v38 = vmul.f32 %v1789_v24, %v1788_v22  ;;  %v2244_v37 = vunpack.c.l.b16 %v2153_v29 }
 0xb67   :  { %v2245_v41 = vunpack.c.l.b16 %v2154_v35 }
 0xb68   :  { %v1791_v28 = vadd.f32 %v1790_v38, %v1786_v26  ;;  %v2251_v34 = vrot.slane %v2244_v37, 7 }
 0xb69   :  { %v2253_v50 = vrot.slane %v2245_v41, 6 }
 0xb6a   :  { %v1792_v30 = vpack.c.bf16 %v1791_v28, %v1791_v28  ;;  %v2252_v54 = vsel %vm224_vm1, %v2251_v34, %v2243_v46 }
 0xb6b   :  { %v1888_v31 = vpop.f32.mrf.mxu2  ;;  %v1928_v32 = vpop.f32.mrf.mxu1  ;;  %v2254_v57 = vsel %vm226_vm2, %v2253_v50, %v2252_v54 }
 0xb6c   :  { %v1909_v33 = vpop.f32.mrf.mxu3  ;;  %5071 = vmatmul.msk.bf16.vlgmr.msra.gmra.mxu0 %vm77_vm11, %v1792_v30  ;;  %v2155_v15 = vpack.c.bf16 %v1928_v32, %v1928_v32 }
 0xb6d   :  { %v1991_v36 = vpop.f32.mrf.mxu0 }
 0xb6e   :  { %v2246_v43 = vunpack.c.l.b16 %v2155_v15  ;;  %v2158_v20 = vpack.c.bf16 %v1991_v36, %v1991_v36 }
 0xb70   :  { %v2255_v55 = vrot.slane %v2246_v43, 5  ;;  %v2249_v60 = vunpack.c.l.b16 %v2158_v20 }
 0xb72   :  { %v2256_v58 = vsel %vm228_vm3, %v2255_v55, %v2254_v57  ;;  %v2261_v9 = vrot.slane %v2249_v60, 2 }
 0xb73   :  { %v1930_v44 = vpop.f32.mrf.mxu1  ;;  %v1949_v45 = vpop.f32.mrf.mxu2 }
 0xb74   :  { %v2156_v47 = vpack.c.bf16 %v1949_v45, %v1949_v45  ;;  %v1970_v49 = vpop.f32.mrf.mxu3 }
 0xb75   :  { %v2157_v51 = vpack.c.bf16 %v1970_v49, %v1970_v49  ;;  %v1993_v52 = vpop.f32.mrf.mxu0 }
 0xb76   :  { %v2247_v53 = vunpack.c.l.b16 %v2156_v47 }
 0xb77   :  { %v2248_v56 = vunpack.c.l.b16 %v2157_v51 }
 0xb78   :  { %v2257_v61 = vrot.slane %v2247_v53, 4 }
 0xb79   :  { %v2259_v59 = vrot.slane %v2248_v56, 3 }
 0xb7a   :  { %v2258_v62 = vsel %vm230_vm4, %v2257_v61, %v2256_v58 }
 0xb7b   :  { %v1951_v63 = vpop.f32.mrf.mxu2  ;;  %v2012_v1 = vpop.f32.mrf.mxu1  ;;  %v2260_v7 = vsel %vm232_vm5, %v2259_v59, %v2258_v62 }
 0xb7c   :  { %v1972_v4 = vpop.f32.mrf.mxu3  ;;  %v2159_v5 = vpack.c.bf16 %v2012_v1, %v2012_v1  ;;  %v2262_v11 = vsel %vm234_vm6, %v2261_v9, %v2260_v7 }
 0xb7d   :  { %v2068_v6 = vpop.f32.mrf.mxu0 }
 0xb7e   :  { %v2250_v8 = vunpack.c.l.b16 %v2159_v5  ;;  %v2166_v27 = vpack.c.bf16 %v2068_v6, %v2068_v6 }
 0xb80   :  { %v2263_v10 = vrot.slane %v2250_v8, 1  ;;  %v2186_v29 = vunpack.c.l.b16 %v2166_v27 }
 0xb82   :  { %v2264_v13 = vsel %vm236_vm7, %v2263_v10, %v2262_v11  ;;  %v2194_v34 = vrot.slane %v2186_v29, 6  ;;  %v5586_v10 = vld [vmem:[%s7056_s13] ss:$0 sm:$0xff]  ;;  %v2381_v29 = vpop.permute.xlu1 %2380 }
 0xb83   :  { %v2265_v14 = vpack.c.b16 %v2264_v13, %v2264_v13  ;;  %v2014_v2 = vpop.f32.mrf.mxu1  ;;  %v2036_v16 = vpop.f32.mrf.mxu2 }
 0xb84   :  { %v2052_v39 = vpop.f32.mrf.mxu3  ;;  %v2164_v22 = vpack.c.bf16 %v2036_v16, %v2036_v16 }
 0xb85   :  { %v2070_v17 = vpop.f32.mrf.mxu0  ;;  %5066 = vmatmul.msk.bf16.vlgmr.msrb.gmra.mxu3 %vm73_vm0, %v2265_v14  ;;  %v2165_v18 = vpack.c.bf16 %v2052_v39, %v2052_v39 }
 0xb86   :  { %v2184_v32 = vunpack.c.l.b16 %v2164_v22 }
 0xb87   :  { %v2185_v25 = vunpack.c.l.b16 %v2165_v18 }
 0xb89   :  { %v2192_v38 = vrot.slane %v2185_v25, 7 }
 0xb8b   :  { %v2038_v19 = vpop.f32.mrf.mxu2  ;;  %v2084_v21 = vpop.f32.mrf.mxu1  ;;  %v2193_v15 = vsel %vm224_vm1, %v2192_v38, %v2184_v32 }
 0xb8c   :  { %v2054_v23 = vpop.f32.mrf.mxu3  ;;  %v2167_v26 = vpack.c.bf16 %v2084_v21, %v2084_v21  ;;  %v2195_v46 = vsel %vm226_vm2, %v2194_v34, %v2193_v15 }
 0xb8d   :  { %v2132_v24 = vpop.f32.mrf.mxu0 }
 0xb8e   :  { %v2187_v28 = vunpack.c.l.b16 %v2167_v26  ;;  %v2170_v43 = vpack.c.bf16 %v2132_v24, %v2132_v24 }
 0xb90   :  { %v2196_v40 = vrot.slane %v2187_v28, 5  ;;  %v2190_v50 = vunpack.c.l.b16 %v2170_v43  ;;  %v5587_v43 = vld [vmem:[%s7048_s4] ss:$0 sm:$0xff] }
 0xb92   :  { %v2197_v47 = vsel %vm228_vm3, %v2196_v40, %v2195_v46  ;;  %v2202_v61 = vrot.slane %v2190_v50, 2 }
 0xb93   :  { %v2086_v30 = vpop.f32.mrf.mxu1  ;;  %v2100_v31 = vpop.f32.mrf.mxu2 }
 0xb94   :  { %v2168_v33 = vpack.c.bf16 %v2100_v31, %v2100_v31  ;;  %v2116_v35 = vpop.f32.mrf.mxu3 }
 0xb95   :  { %v2169_v36 = vpack.c.bf16 %v2116_v35, %v2116_v35  ;;  %v2134_v37 = vpop.f32.mrf.mxu0  ;;  %v5469_v35 = vld [vmem:[%s7057_s14 + $0x8] sm:$0xff] }
 0xb96   :  { %v2188_v41 = vunpack.c.l.b16 %v2168_v33  ;;  %2443 = vmatpush.bf16.msra.mxu2 %v5469_v35 }
 0xb97   :  { %v2189_v44 = vunpack.c.l.b16 %v2169_v36  ;;  %v5468_v36 = vld [vmem:[%s7057_s14] sm:$0xff] }
 0xb98   :  { %v2198_v45 = vrot.slane %v2188_v41, 4 }
 0xb99   :  { %v2200_v49 = vrot.slane %v2189_v44, 3 }
 0xb9a   :  { %v2199_v51 = vsel %vm230_vm4, %v2198_v45, %v2197_v47  ;;  %2444 = vmatpush.bf16.msra.mxu2 %v5468_v36 }
 0xb9b   :  { %v2102_v52 = vpop.f32.mrf.mxu2  ;;  %v2148_v54 = vpop.f32.mrf.mxu1  ;;  %v2201_v20 = vsel %vm232_vm5, %v2200_v49, %v2199_v51  ;;  %v5588_v51 = vld [vmem:[%s7058_s15] ss:$0 sm:$0xff] }
 0xb9c   :  { %v2118_v55 = vpop.f32.mrf.mxu3  ;;  %v2171_v53 = vpack.c.bf16 %v2148_v54, %v2148_v54  ;;  %v2203_v58 = vsel %vm234_vm6, %v2202_v61, %v2201_v20 }
 0xb9e   :  { %v2191_v56 = vunpack.c.l.b16 %v2171_v53 }
 0xba0   :  { %v2204_v57 = vrot.slane %v2191_v56, 1 }
 0xba2   :  { %v2205_v59 = vsel %vm236_vm7, %v2204_v57, %v2203_v58  ;;  %v5477_v57 = vld [vmem:[%s7073_s1 + $0x38] sm:$0xff] }
 0xba3   :  { %v2206_v60 = vpack.c.b16 %v2205_v59, %v2205_v59  ;;  %v2150_v62 = vpop.f32.mrf.mxu1  ;;  %2526 = vmatpush.bf16.msra.mxu3 %v5477_v57  ;;  %v5476_v59 = vld [vmem:[%s7073_s1 + $0x30] sm:$0xff] }
 0xba4   :  { %v5475_v62 = vld [vmem:[%s7073_s1 + $0x28] sm:$0xff] }
 0xba5   :  { %5057 = vmatmul.msk.bf16.vlgmr.msrb.gmra.mxu2 %vm73_vm0, %v2206_v60 }
 0xba7   :  { %2527 = vmatpush.bf16.msra.mxu3 %v5476_v59 }
 0xbab   :  { %v2348_v63 = vpop.f32.mrf.mxu1  ;;  %2528 = vmatpush.bf16.msra.mxu3 %v5475_v62  ;;  %v2783_v62 = vld [vmem:[%s7047_s3 + $0x14] sm:$0xf] }
 0xbb3   :  { %v2350_v1 = vpop.f32.mrf.mxu1 }
 0xbb4   :  { %v5474_v1 = vld [vmem:[%s7073_s1 + $0x20] sm:$0xff] }
 0xbb5   :  { %2529 = vmatpush.bf16.msra.mxu3 %v5474_v1 }
 0xbe9   :  { %v2314_v3 = vpop.f32.mrf.mxu0 }
 0xbf1   :  { %v2316_v4 = vpop.f32.mrf.mxu0 }
 0xbf2   :  { %v5472_v4 = vld [vmem:[%s7073_s1 + $0x10] sm:$0xff] }
 0xc08   :  { %v2290_v5 = vpop.f32.mrf.mxu3 }
 0xc10   :  { %v2292_v6 = vpop.f32.mrf.mxu3 }
 0xc11   :  { %v5470_v6 = vld [vmem:[%s7073_s1] sm:$0xff] }
 0xc28   :  { %v2231_v7 = vpop.f32.mrf.mxu2 }
 0xc29   :  { %v2291_v8 = vadd.f32 %v2290_v5, %v2231_v7  ;;  %v5471_v5 = vld [vmem:[%s7073_s1 + $0x8] sm:$0xff]  ;;  %v2602_v7 = vld [vmem:[%s7071_s7] sm:$0xf] }
 0xc2b   :  { %v2318_v9 = vadd.f32 %v2314_v3, %v2291_v8  ;;  %v5473_v3 = vld [vmem:[%s7073_s1 + $0x18] sm:$0xff]  ;;  %v2604_v8 = vld [vmem:[%s7071_s7 + $0x8] sm:$0xf] }
 0xc2c   :  { %2530 = vmatpush.bf16.msra.mxu3 %v5473_v3  ;;  %v2782_v3 = vld [vmem:[%s7047_s3 + $0x10] sm:$0xf] }
 0xc2d   :  { %v2352_v11 = vadd.f32 %v2348_v63, %v2318_v9  ;;  %v2603_v9 = vld [vmem:[%s7071_s7 + $0x4] sm:$0xf] }
 0xc2f   :  { %v2357_v12 = vadd.f32 %v5586_v10, %v2352_v11  ;;  %v2616_v10 = vsel %vm321_vm9, %v2602_v7, 0  ;;  %v2658_v11 = vsel %vm321_vm9, %v2604_v8, 0  ;;  %v2851_v7 = vsel %vm321_vm9, %v2782_v3, 0  ;;  %v5481_v3 = vld [vmem:[%s7053_s10 + $0x8] sm:$0xff] }
 0xc30   :  { %v2233_v13 = vpop.f32.mrf.mxu2  ;;  %2531 = vmatpush.bf16.msra.mxu3 %v5472_v4  ;;  %2625 = vmatpush.bf16.msrb.mxu0 %v2616_v10  ;;  %v2785_v10 = vld [vmem:[%s7047_s3 + $0x1c] sm:$0xf] }
 0xc31   :  { %5625 = vtanh.f32 %v2357_v12  ;;  %v5081_v2 = vmul.f32 -1.442695, %v2357_v12  ;;  %v2637_v12 = vsel %vm321_vm9, %v2603_v9, 0  ;;  %2667 = vmatpush.bf16.msrb.mxu2 %v2658_v11  ;;  %v2608_v13 = vld [vmem:[%s7071_s7 + $0x18] sm:$0xf] }
 0xc32   :  { %2646 = vmatpush.bf16.msrb.mxu1 %v2637_v12  ;;  %v2899_v12 = vsel %vm321_vm9, %v2785_v10, 0 }
 0xc33   :  { %5627 = vpow2.f32 %v5081_v2  ;;  %v2605_v2 = vld [vmem:[%s7071_s7 + $0xc] sm:$0xf] }
 0xc34   :  { %2532 = vmatpush.bf16.msra.mxu3 %v5471_v5 }
 0xc37   :  { %v5626_v14 = vpop.eup %5625 }
 0xc38   :  { %2385 = vrot.lane.b32.xlu0 %v5626_v14, %s5687_s2  ;;  %2533 = vmatpush.bf16.msra.mxu3 %v5470_v6  ;;  %v2742_v14 = vsel %vm321_vm9, %v2608_v13, 0  ;;  %v2867_v6 = vsel %vm321_vm9, %v2783_v62, 0  ;;  %v5484_v13 = vld [vmem:[%s7055_s12 + $0x8] sm:$0xff] }
 0xc39   :  { %v5628_v16 = vpop.eup %5627 }
 0xc3a   :  { %v2361_v39 = vadd.f32 1.0, %v5628_v16  ;;  %v2679_v16 = vsel %vm321_vm9, %v2605_v2, 0 }
 0xc3b   :  { %2688 = vmatpush.bf16.msra.mxu0 %v2679_v16  ;;  %v5482_v16 = vld [vmem:[%s7054_s11] sm:$0xff] }
 0xc3c   :  { %5629 = vrcp.f32 %v2361_v39  ;;  %v2373_v24 = vand.u32 2147483648, %v2361_v39  ;;  %vm2367_vm15 = vweird.f32 %v2361_v39  ;;  %v2371_v25 = vand.u32 2147483647, %v2361_v39  ;;  %2751 = vmatpush.bf16.msrb.mxu3 %v2742_v14  ;;  %v5483_v14 = vld [vmem:[%s7055_s12] sm:$0xff] }
 0xc3e   :  { %v2374_v27 = vor.u32 1.1754944e-38, %v2373_v24  ;;  %vm2372_vm13 = vcmp.eq.f32.partialorder %v2371_v25, 8.507059e+37 }
 0xc42   :  { %v5630_v17 = vpop.eup %5629 }
 0xc43   :  { %v2363_v18 = vmul.f32 %v5630_v17, %v2361_v39  ;;  %vm2368_vm14 = vweird.f32 %v5630_v17  ;;  %v2607_v39 = vld [vmem:[%s7071_s7 + $0x14] sm:$0xf] }
 0xc44   :  { %vm2369_vm12 = vmor %vm2367_vm15, %vm2368_vm14 }
 0xc45   :  { %v2364_v19 = vsub.f32 1.0, %v2363_v18  ;;  %v2721_v18 = vsel %vm321_vm9, %v2607_v39, 0 }
 0xc47   :  { %v2365_v21 = vmul.f32 %v5630_v17, %v2364_v19 }
 0xc49   :  { %v2366_v23 = vadd.f32 %v5630_v17, %v2365_v21  ;;  %v2780_v21 = vld [vmem:[%s7047_s3 + $0x8] sm:$0xf] }
 0xc4a   :  { %v2819_v24 = vsel %vm321_vm9, %v2780_v21, 0 }
 0xc4b   :  { %v2370_v26 = vsel %vm2369_vm12, %v5630_v17, %v2366_v23  ;;  %v2606_v17 = vld [vmem:[%s7071_s7 + $0x10] sm:$0xf] }
 0xc4c   :  { %v2375_v38 = vsel %vm2372_vm13, %v2374_v27, %v2370_v26  ;;  %v2700_v19 = vsel %vm321_vm9, %v2606_v17, 0  ;;  %v5128_v17 = vld [vmem:[%s7072_s8 + $0xc] sm:$0xf] }
 0xc4d   :  { %v2383_v30 = vmul.f32 %v2381_v29, %v2375_v38  ;;  %2709 = vmatpush.bf16.msra.mxu1 %v2700_v19  ;;  %v2609_v29 = vld [vmem:[%s7071_s7 + $0x1c] sm:$0xf]  ;;  %v2551_v19 = vstv %s2549_s17  ;;  %s5227_s17 = sld [smem:[#allocation7 + $0x4]] }
 0xc53   :  { %p3304_p4 = scmp.ne.s32.totalorder %s5227_s17, 0 }
 0xc55   :  { %s3305_s22 = scalar_select %p3304_p4, 1.0, 0.0 }
 0xc57   :  { %s3311_s25 = ssub.f32 1.0, %s3305_s22 }
 0xcaa   :  { %v2386_v22 = vpop.permute.xlu0 %2385 }
 0xcab   :  { %v2388_v28 = vmul.f32 %v2386_v22, %v2375_v38 }
 0xcad   :  { %2390 = vrot.lane.b32.xlu0 %v2388_v28, %s5686_s21 }
 0xd1f   :  { %v2391_v31 = vpop.permute.xlu0 %2390 }
 0xd20   :  { %v2393_v32 = vadd.f32 %v2391_v31, %v2383_v30 }
 0xd22   :  { %5631 = vtanh.f32 %v2393_v32 }
 0xd28   :  { %v5632_v33 = vpop.eup %5631 }
 0xd29   :  { %2396 = vrot.lane.b32.xlu2 %v5632_v33, %s5687_s2 }
 0xd83   :  { %v2397_v37 = vpop.permute.xlu2 %2396 }
 0xd84   :  { %v2399_v15 = vmul.f32 %v2397_v37, %v2375_v38 }
 0xd86   :  { %v2410_v40 = vpack.c.bf16 %v2399_v15, %v2399_v15  ;;  %2401 = vrot.lane.b32.xlu1 %v2399_v15, %s5686_s21 }
 0xd88   :  { %2420 = vrot.lane.b32.xlu0 %v2410_v40, %s5686_s21  ;;  %v2763_v40 = vsel %vm321_vm9, %v2609_v29, 0  ;;  %v5478_v29 = vld [vmem:[%s7052_s9] sm:$0xff] }
 0xdf8   :  { %v2402_v41 = vpop.permute.xlu1 %2401 }
 0xdf9   :  { %2404 = vst.msk [vmem:[#allocation2] sm:$0xff] %vm73_vm0, %v2402_v41  ;;  %v2779_v41 = vld [vmem:[%s7047_s3 + $0x4] sm:$0xf] }
 0xdfa   :  { %v2421_v34 = vpop.permute.xlu0 %2420 }
 0xdfb   :  { %5090 = vmatmul.msk.bf16.vlgmr.msra.gmra.mxu2 %vm73_vm0, %v2421_v34 }
 0xdfc   :  { %2730 = vmatpush.bf16.msra.mxu2 %v2721_v18  ;;  %v2546_v18 = vunpack.c.l.bf16 %v5128_v17 }
 0xe00   :  { %v6436_v44 = vld [vmem:[#allocation2] sm:$0xff] }
 0xe01   :  { %v2560_v45 = vmul.f32 %v5587_v43, %v6436_v44  ;;  %v3081_v2 = vpack.c.bf16 %v6436_v44, %v6436_v44  ;;  %v2547_v44 = vstv %s2543_s19 }
 0xe02   :  { %v2548_v21 = vmul.f32 %v2547_v44, %v2546_v18 }
 0xe03   :  { %v2561_v46 = vsel %vm73_vm0, %v2560_v45, 0.0 }
 0xe04   :  { %2562 = vadd.xlane.f32.xlu2 %v2561_v46 }
 0xe77   :  { %v2563_v47 = vpop.xlane.xlu2 %2562 }
 0xe78   :  { %v2565_v49 = vadd.f32 %v2563_v47, %v6247_v42  ;;  %v2778_v47 = vld [vmem:[%s7047_s3] sm:$0xf] }
 0xe7a   :  { %v2566_v50 = vmax.f32 %v2565_v49, 0.0  ;;  %v2784_v49 = vld [vmem:[%s7047_s3 + $0x18] sm:$0xf] }
 0xe7c   :  { %v2567_v52 = vsel %vm239_vm8, %v2566_v50, -inf }
 0xe7d   :  { %2568 = vmax.xlane.f32.xlu0 %v2567_v52 }
 0xe7e   :  { %v2446_v54 = vpop.f32.mrf.mxu2 }
 0xe7f   :  { %v2447_v55 = vadd.f32 %v5588_v51, %v2446_v54  ;;  %v2803_v54 = vsel %vm321_vm9, %v2779_v41, 0 }
 0xe81   :  { %5091 = vst [vmem:[%s7061_s18 + $0x10] sm:$0xff] %v2447_v55  ;;  %2452 = vmax.xlane.f32.xlu1 %v2447_v55 }
 0xe86   :  { %v2448_v53 = vpop.f32.mrf.mxu2 }
 0xe87   :  { %v2787_v53 = vsel %vm321_vm9, %v2778_v47, 0 }
 0xef0   :  { %v2569_v20 = vpop.xlane.xlu0 %2568 }
 0xef1   :  { %v2570_v56 = vsub.f32 %v2566_v50, %v2569_v20  ;;  %v2883_v20 = vsel %vm321_vm9, %v2784_v49, 0 }
 0xef3   :  { %v2571_v61 = vmul.f32 1.442695, %v2570_v56 }
 0xef4   :  { %v2453_v42 = vpop.xlane.xlu1 %2452 }
 0xef5   :  { %5633 = vpow2.f32 %v2571_v61  ;;  %vm2454_vm14 = vcmp.eq.f32.partialorder %v2447_v55, %v2453_v42 }
 0xef6   :  { %v2455_v58 = vsel %vm2454_vm14, %v6064_v48, 128.0 }
 0xef7   :  { %2456 = vmin.xlane.f32.xlu0 %v2455_v58  ;;  %v2781_v58 = vld [vmem:[%s7047_s3 + $0xc] sm:$0xf] }
 0xef8   :  { %v2835_v1 = vsel %vm321_vm9, %v2781_v58, 0 }
 0xefb   :  { %v5634_v60 = vpop.eup %5633 }
 0xefc   :  { %v2573_v63 = vsel %vm239_vm8, %v5634_v60, 0.0 }
 0xefd   :  { %2574 = vadd.xlane.f32.xlu2 %v2573_v63 }
 0xf15   :  { %2406 = vrot.lane.b32.xlu2 %v2393_v32, %s5688_s0 }
 0xf6a   :  { %v2457_v23 = vpop.xlane.xlu0 %2456 }
 0xf6b   :  { %vm2458_vm15 = vcmp.eq.f32.partialorder %v6064_v48, %v2457_v23 }
 0xf6c   :  { %vm5125_vm12 = vmpackc.low %vm2458_vm15, %vm2458_vm15 }
 0xf6d   :  { %5126 = vmatmul.msk.bf16.vlgmr.msra.gmra.mxu3 %vm5125_vm12, %v5689_v0 }
 0xf6e   :  { %2828 = vmatpush.bf16.msra.mxu3 %v2819_v24 }
 0xf70   :  { %v2575_v25 = vpop.xlane.xlu2 %2574 }
 0xf71   :  { %5635 = vrcp.f32 %v2575_v25 }
 0xf77   :  { %v5636_v26 = vpop.eup %5635 }
 0xf78   :  { %v2577_v27 = vmul.f32 %v5636_v26, %v5634_v60  ;;  %v2407_v22 = vpop.permute.xlu2 %2406 }
 0xf79   :  { %2409 = vst.msk [vmem:[#allocation3] sm:$0xff] %vm73_vm0, %v2407_v22 }
 0xf7a   :  { %v2578_v38 = vpack.c.bf16 %v2577_v27, %v2577_v27 }
 0xf7c   :  { %v2580_v28 = vrot.slane %v2578_v38, 3 }
 0xf7e   :  { %v2583_v30 = vsel %vm283_vm10, %v2578_v38, %v2580_v28  ;;  %v2585_v31 = vsel %vm224_vm1, %v2578_v38, %v2580_v28  ;;  %v2591_v32 = vsel %vm228_vm3, %v2578_v38, %v2580_v28  ;;  %v2588_v55 = vsel %vm226_vm2, %v2578_v38, %v2580_v28  ;;  %v5479_v28 = vld [vmem:[%s7052_s9 + $0x8] sm:$0xff] }
 0xf7f   :  { %v5129_v33 = vpack.i.b16 %v2583_v30, %v2583_v30  ;;  %v2595_v35 = vunpack.i.h.s16 %v2583_v30  ;;  %v2587_v36 = vrot.slane %v2585_v31, 1  ;;  %v2593_v37 = vrot.slane %v2591_v32, 3 }
 0xf80   :  { %v3140_v15 = vld [vmem:[#allocation3] sm:$0xff]  ;;  %v2590_v56 = vrot.slane %v2588_v55, 2 }
 0xf81   :  { %3142 = vrot.lane.b32.xlu0 %v3140_v15, %s5686_s21  ;;  %v2611_v34 = vperm.slane %v5129_v33, 0  ;;  %v2631_v43 = vpack.i.b16 %v2595_v35, %v2595_v35  ;;  %v5132_v45 = vpack.i.b16 %v2587_v36, %v2587_v36  ;;  %v5138_v46 = vpack.i.b16 %v2593_v37, %v2593_v37 }
 0xf82   :  { %v2597_v61 = vunpack.i.h.s16 %v2587_v36  ;;  %v2599_v42 = vunpack.i.h.s16 %v2590_v56  ;;  %v5135_v59 = vpack.i.b16 %v2590_v56, %v2590_v56  ;;  %v2601_v8 = vunpack.i.h.s16 %v2593_v37 }
 0xf83   :  { %5130 = vmatmul.msk.bf16.vlgmr.msrb.gmra.mxu0 %vm239_vm8, %v2611_v34  ;;  %v2632_v50 = vperm.slane %v2631_v43, 0  ;;  %v2653_v51 = vperm.slane %v5132_v45, 0  ;;  %v2737_v52 = vperm.slane %v5138_v46, 0 }
 0xf84   :  { %2772 = vmatpush.bf16.msrb.mxu0 %v2763_v40  ;;  %v2673_v57 = vpack.i.b16 %v2597_v61, %v2597_v61  ;;  %v2715_v60 = vpack.i.b16 %v2599_v42, %v2599_v42  ;;  %v2695_v4 = vperm.slane %v5135_v59, 0  ;;  %v2757_v9 = vpack.i.b16 %v2601_v8, %v2601_v8 }
 0xf85   :  { %5131 = vmatmul.msk.bf16.vlgmr.msrb.gmra.mxu1 %vm239_vm8, %v2632_v50  ;;  %5133 = vmatmul.msk.bf16.vlgmr.msrb.gmra.mxu2 %vm239_vm8, %v2653_v51 }
 0xf86   :  { %5139 = vmatmul.msk.bf16.vlgmr.msrb.gmra.mxu3 %vm239_vm8, %v2737_v52  ;;  %2812 = vmatpush.bf16.msrb.mxu2 %v2803_v54  ;;  %v2674_v63 = vperm.slane %v2673_v57, 0  ;;  %v2716_v5 = vperm.slane %v2715_v60, 0  ;;  %v2758_v11 = vperm.slane %v2757_v9, 0 }
 0xf87   :  { %2796 = vmatpush.bf16.msrb.mxu1 %v2787_v53  ;;  %2892 = vmatpush.bf16.msrb.mxu3 %v2883_v20 }
 0xf93   :  { %5134 = vmatmul.msk.bf16.vlgmr.msra.gmra.mxu0 %vm239_vm8, %v2674_v63 }
 0xf94   :  { %2844 = vmatpush.bf16.msra.mxu0 %v2835_v1 }
 0xf95   :  { %5136 = vmatmul.msk.bf16.vlgmr.msra.gmra.mxu1 %vm239_vm8, %v2695_v4  ;;  %5137 = vmatmul.msk.bf16.vlgmr.msra.gmra.mxu2 %vm239_vm8, %v2716_v5 }
 0xf96   :  { %5143 = vmatmul.msk.bf16.vlgmr.msra.gmra.mxu3 %vm239_vm8, %v2653_v51  ;;  %2876 = vmatpush.bf16.msra.mxu2 %v2867_v6 }
 0xf97   :  { %2860 = vmatpush.bf16.msra.mxu1 %v2851_v7  ;;  %3074 = vmatpush.bf16.msra.mxu3 %v5482_v16  ;;  %v5480_v16 = vld [vmem:[%s7053_s10] sm:$0xff] }
 0xfa3   :  { %5140 = vmatmul.msk.bf16.vlgmr.msrb.gmra.mxu0 %vm239_vm8, %v2758_v11 }
 0xfa4   :  { %2908 = vmatpush.bf16.msrb.mxu0 %v2899_v12 }
 0xfa5   :  { %5141 = vmatmul.msk.bf16.vlgmr.msrb.gmra.mxu1 %vm239_vm8, %v2611_v34  ;;  %5142 = vmatmul.msk.bf16.vlgmr.msrb.gmra.mxu2 %vm239_vm8, %v2632_v50 }
 0xfa6   :  { %5147 = vmatmul.msk.bf16.vlgmr.msrb.gmra.mxu3 %vm239_vm8, %v2737_v52  ;;  %3049 = vmatpush.bf16.msrb.mxu2 %v5479_v28 }
 0xfa7   :  { %2990 = vmatpush.bf16.msrb.mxu1 %v5481_v3 }
 0xfaa   :  { %3050 = vmatpush.bf16.msrb.mxu2 %v5478_v29 }
 0xfab   :  { %2991 = vmatpush.bf16.msrb.mxu1 %v5480_v16 }
 0xfb3   :  { %5144 = vmatmul.msk.bf16.vlgmr.msra.gmra.mxu0 %vm239_vm8, %v2674_v63 }
 0xfb4   :  { %3107 = vmatpush.bf16.msra.mxu0 %v5484_v13 }
 0xfb5   :  { %5145 = vmatmul.msk.bf16.vlgmr.msra.gmra.mxu1 %vm239_vm8, %v2695_v4  ;;  %5146 = vmatmul.msk.bf16.vlgmr.msra.gmra.mxu2 %vm239_vm8, %v2716_v5 }
 0xfb8   :  { %3108 = vmatpush.bf16.msra.mxu0 %v5483_v14 }
 0xfc3   :  { %5148 = vmatmul.msk.bf16.vlgmr.msrb.gmra.mxu0 %vm239_vm8, %v2758_v11 }
 0xfd3   :  { %5180 = vmatmul.msk.bf16.vlgmr.msra.gmra.mxu0 %vm73_vm0, %v3081_v2 }
 0xff0   :  { %v2535_v39 = vpop.f32.mrf.mxu3 }
 0xff1   :  { %2539 = vst.msk [vmem:[#allocation4] sm:$0xff] %vm77_vm11, %v2535_v39 }
 0xff8   :  { %v2537_v23 = vpop.f32.mrf.mxu3  ;;  %v2550_v24 = vld [vmem:[#allocation4] sm:$0xff] }
 0xff9   :  { %v2552_v25 = vmul.f32 %v2551_v19, %v2550_v24 }
 0xffb   :  { %v2553_v26 = vadd.f32 %v2552_v25, %v2548_v21 }
 0xffd   :  { %v2554_v27 = vpack.c.bf16 %v2553_v26, %v2553_v26 }
 0xfff   :  { %5171 = vmatmul.msk.bf16.vlgmr.msra.gmra.mxu3 %vm77_vm11, %v2554_v27 }
0x1000   :  { %v2627_v22 = vpop.f32.mrf.mxu0 }
0x1001   :  { %v2914_v47 = vpack.c.bf16 %v2627_v22, %v2627_v22 }
0x1002   :  { %v2648_v38 = vpop.f32.mrf.mxu1 }
0x1003   :  { %v2915_v37 = vpack.c.bf16 %v2648_v38, %v2648_v38  ;;  %v3005_v61 = vunpack.c.l.b16 %v2914_v47 }
0x1005   :  { %v3006_v43 = vunpack.c.l.b16 %v2915_v37 }
0x1007   :  { %v3013_v52 = vrot.slane %v3006_v43, 7 }
0x1008   :  { %v2629_v30 = vpop.f32.mrf.mxu0  ;;  %v2669_v31 = vpop.f32.mrf.mxu2 }
0x1009   :  { %v2753_v32 = vpop.f32.mrf.mxu3  ;;  %v2916_v40 = vpack.c.bf16 %v2669_v31, %v2669_v31  ;;  %v3014_v59 = vsel %vm224_vm1, %v3013_v52, %v3005_v61 }
0x100a   :  { %v2650_v33 = vpop.f32.mrf.mxu1  ;;  %v2920_v58 = vpack.c.bf16 %v2753_v32, %v2753_v32 }
0x100b   :  { %v3007_v45 = vunpack.c.l.b16 %v2916_v40 }
0x100c   :  { %v3011_v4 = vunpack.c.l.b16 %v2920_v58 }
0x100d   :  { %v3015_v53 = vrot.slane %v3007_v45, 6 }
0x100e   :  { %v3023_v13 = vrot.slane %v3011_v4, 2 }
0x100f   :  { %v3016_v60 = vsel %vm226_vm2, %v3015_v53, %v3014_v59 }
0x1010   :  { %v2671_v35 = vpop.f32.mrf.mxu2  ;;  %v2690_v36 = vpop.f32.mrf.mxu0 }
0x1011   :  { %v2755_v15 = vpop.f32.mrf.mxu3  ;;  %v2917_v34 = vpack.c.bf16 %v2690_v36, %v2690_v36 }
0x1012   :  { %v2711_v41 = vpop.f32.mrf.mxu1 }
0x1013   :  { %v2918_v46 = vpack.c.bf16 %v2711_v41, %v2711_v41  ;;  %v3008_v49 = vunpack.c.l.b16 %v2917_v34 }
0x1015   :  { %v3009_v20 = vunpack.c.l.b16 %v2918_v46  ;;  %v3017_v42 = vrot.slane %v3008_v49, 5 }
0x1017   :  { %v3019_v62 = vrot.slane %v3009_v20, 4  ;;  %v3018_v63 = vsel %vm228_vm3, %v3017_v42, %v3016_v60 }
0x1018   :  { %v2692_v50 = vpop.f32.mrf.mxu0  ;;  %v2732_v51 = vpop.f32.mrf.mxu2 }
0x1019   :  { %v2919_v54 = vpack.c.bf16 %v2732_v51, %v2732_v51  ;;  %v2830_v55 = vpop.f32.mrf.mxu3  ;;  %v3020_v9 = vsel %vm230_vm4, %v3019_v62, %v3018_v63 }
0x101a   :  { %v2713_v56 = vpop.f32.mrf.mxu1  ;;  %v2928_v28 = vpack.c.bf16 %v2830_v55, %v2830_v55 }
0x101b   :  { %v3010_v57 = vunpack.c.l.b16 %v2919_v54 }
0x101c   :  { %v2948_v33 = vunpack.c.l.b16 %v2928_v28 }
0x101d   :  { %v3021_v1 = vrot.slane %v3010_v57, 3 }
0x101e   :  { %v2956_v46 = vrot.slane %v2948_v33, 6 }
0x101f   :  { %v3022_v11 = vsel %vm232_vm5, %v3021_v1, %v3020_v9 }
0x1020   :  { %v2734_v5 = vpop.f32.mrf.mxu2  ;;  %v2774_v6 = vpop.f32.mrf.mxu0  ;;  %v3024_v2 = vsel %vm234_vm6, %v3023_v13, %v3022_v11  ;;  %v5589_v11 = vld [vmem:[%s7056_s13] ss:$0 sm:$0xff] }
0x1021   :  { %v2921_v7 = vpack.c.bf16 %v2774_v6, %v2774_v6  ;;  %v2832_v8 = vpop.f32.mrf.mxu3 }
0x1022   :  { %v2798_v10 = vpop.f32.mrf.mxu1 }
0x1023   :  { %v3012_v12 = vunpack.c.l.b16 %v2921_v7  ;;  %v2926_v29 = vpack.c.bf16 %v2798_v10, %v2798_v10 }
0x1025   :  { %v3025_v14 = vrot.slane %v3012_v12, 1  ;;  %v2946_v37 = vunpack.c.l.b16 %v2926_v29  ;;  %v3143_v29 = vpop.permute.xlu0 %3142 }
0x1027   :  { %v3026_v39 = vsel %vm236_vm7, %v3025_v14, %v3024_v2 }
0x1028   :  { %v3027_v17 = vpack.c.b16 %v3026_v39, %v3026_v39  ;;  %v2776_v18 = vpop.f32.mrf.mxu0  ;;  %v2814_v44 = vpop.f32.mrf.mxu2 }
0x1029   :  { %v2894_v19 = vpop.f32.mrf.mxu3  ;;  %v2927_v23 = vpack.c.bf16 %v2814_v44, %v2814_v44 }
0x102a   :  { %v2800_v21 = vpop.f32.mrf.mxu1  ;;  %5166 = vmatmul.msk.bf16.vlgmr.msrb.gmra.mxu2 %vm73_vm0, %v3027_v17  ;;  %v2932_v47 = vpack.c.bf16 %v2894_v19, %v2894_v19 }
0x102b   :  { %v2947_v22 = vunpack.c.l.b16 %v2927_v23 }
0x102c   :  { %v2952_v54 = vunpack.c.l.b16 %v2932_v47 }
0x102d   :  { %v2954_v31 = vrot.slane %v2947_v22, 7 }
0x102e   :  { %v2964_v57 = vrot.slane %v2952_v54, 2 }
0x102f   :  { %v2955_v34 = vsel %vm224_vm1, %v2954_v31, %v2946_v37 }
0x1030   :  { %v2816_v24 = vpop.f32.mrf.mxu2  ;;  %v2846_v25 = vpop.f32.mrf.mxu0  ;;  %v2957_v49 = vsel %vm226_vm2, %v2956_v46, %v2955_v34  ;;  %v5590_v34 = vld [vmem:[%s7048_s4] ss:$0 sm:$0xff] }
0x1031   :  { %v2896_v26 = vpop.f32.mrf.mxu3  ;;  %v2929_v38 = vpack.c.bf16 %v2846_v25, %v2846_v25 }
0x1032   :  { %v2862_v27 = vpop.f32.mrf.mxu1 }
0x1033   :  { %v2930_v30 = vpack.c.bf16 %v2862_v27, %v2862_v27  ;;  %v2949_v32 = vunpack.c.l.b16 %v2929_v38 }
0x1035   :  { %v2950_v40 = vunpack.c.l.b16 %v2930_v30  ;;  %v2958_v43 = vrot.slane %v2949_v32, 5 }
0x1037   :  { %v2960_v50 = vrot.slane %v2950_v40, 4  ;;  %v2959_v51 = vsel %vm228_vm3, %v2958_v43, %v2957_v49  ;;  %v5485_v40 = vld [vmem:[%s7057_s14] sm:$0xff]  ;;  %v6631_v49 = vld [vmem:[#allocation5] sm:$0xff] }
0x1038   :  { %v2848_v35 = vpop.f32.mrf.mxu0  ;;  %v2878_v36 = vpop.f32.mrf.mxu2 }
0x1039   :  { %v2931_v15 = vpack.c.bf16 %v2878_v36, %v2878_v36  ;;  %v2961_v56 = vsel %vm230_vm4, %v2960_v50, %v2959_v51 }
0x103a   :  { %v2864_v41 = vpop.f32.mrf.mxu1 }
0x103b   :  { %v2951_v45 = vunpack.c.l.b16 %v2931_v15  ;;  %v5486_v15 = vld [vmem:[%s7057_s14 + $0x8] sm:$0xff] }
0x103c   :  { %3205 = vmatpush.bf16.msra.mxu1 %v5486_v15  ;;  %v3540_v15 = vld [vmem:[%s7047_s3] sm:$0xf] }
0x103d   :  { %v2962_v52 = vrot.slane %v2951_v45, 3 }
0x103f   :  { %v2963_v61 = vsel %vm232_vm5, %v2962_v52, %v2961_v56 }
0x1040   :  { %v2880_v55 = vpop.f32.mrf.mxu2  ;;  %v2910_v53 = vpop.f32.mrf.mxu0  ;;  %v2965_v59 = vsel %vm234_vm6, %v2964_v57, %v2963_v61  ;;  %3206 = vmatpush.bf16.msra.mxu1 %v5485_v40  ;;  %v3541_v40 = vld [vmem:[%s7047_s3 + $0x4] sm:$0xf] }
0x1041   :  { %v2933_v20 = vpack.c.bf16 %v2910_v53, %v2910_v53  ;;  %v5591_v55 = vld [vmem:[%s7058_s15] ss:$0 sm:$0xff] }
0x1043   :  { %v2953_v42 = vunpack.c.l.b16 %v2933_v20 }
0x1045   :  { %v2966_v58 = vrot.slane %v2953_v42, 1 }
0x1047   :  { %v2967_v60 = vsel %vm236_vm7, %v2966_v58, %v2965_v59 }
0x1048   :  { %v2968_v62 = vpack.c.b16 %v2967_v60, %v2967_v60  ;;  %v2912_v63 = vpop.f32.mrf.mxu0  ;;  %v5494_v60 = vld [vmem:[%s7073_s1 + $0x38] sm:$0xff] }
0x1049   :  { %3288 = vmatpush.bf16.msra.mxu2 %v5494_v60  ;;  %v5492_v63 = vld [vmem:[%s7073_s1 + $0x28] sm:$0xff] }
0x104a   :  { %5157 = vmatmul.msk.bf16.vlgmr.msrb.gmra.mxu1 %vm73_vm0, %v2968_v62  ;;  %v5493_v62 = vld [vmem:[%s7073_s1 + $0x30] sm:$0xff] }
0x104d   :  { %3289 = vmatpush.bf16.msra.mxu2 %v5493_v62  ;;  %v3543_v62 = vld [vmem:[%s7047_s3 + $0xc] sm:$0xf] }
0x1050   :  { %v3110_v1 = vpop.f32.mrf.mxu0 }
0x1051   :  { %3290 = vmatpush.bf16.msra.mxu2 %v5492_v63 }
0x1058   :  { %v3112_v3 = vpop.f32.mrf.mxu0 }
0x1059   :  { %v5491_v3 = vld [vmem:[%s7073_s1 + $0x20] sm:$0xff] }
0x105a   :  { %3291 = vmatpush.bf16.msra.mxu2 %v5491_v3  ;;  %v3544_v3 = vld [vmem:[%s7047_s3 + $0x10] sm:$0xf] }
0x1082   :  { %v3076_v4 = vpop.f32.mrf.mxu3 }
0x108a   :  { %v3078_v5 = vpop.f32.mrf.mxu3 }
0x108b   :  { %v5490_v5 = vld [vmem:[%s7073_s1 + $0x18] sm:$0xff] }
0x108c   :  { %3292 = vmatpush.bf16.msra.mxu2 %v5490_v5 }
0x10ad   :  { %v3052_v6 = vpop.f32.mrf.mxu2 }
0x10b5   :  { %v3054_v7 = vpop.f32.mrf.mxu2 }
0x10c7   :  { %v2993_v8 = vpop.f32.mrf.mxu1 }
0x10c8   :  { %v3053_v9 = vadd.f32 %v3052_v6, %v2993_v8  ;;  %v5489_v8 = vld [vmem:[%s7073_s1 + $0x10] sm:$0xff] }
0x10c9   :  { %3293 = vmatpush.bf16.msra.mxu2 %v5489_v8 }
0x10ca   :  { %v3080_v10 = vadd.f32 %v3076_v4, %v3053_v9  ;;  %v5488_v9 = vld [vmem:[%s7073_s1 + $0x8] sm:$0xff] }
0x10cc   :  { %v3114_v12 = vadd.f32 %v3110_v1, %v3080_v10  ;;  %v5487_v10 = vld [vmem:[%s7073_s1] sm:$0xff] }
0x10cd   :  { %3294 = vmatpush.bf16.msra.mxu2 %v5488_v9  ;;  %v3613_v9 = vsel %vm321_vm9, %v3544_v3, 0 }
0x10ce   :  { %v3119_v13 = vadd.f32 %v5589_v11, %v3114_v12  ;;  %v3364_v11 = vld [vmem:[%s7071_s7] sm:$0xf] }
0x10cf   :  { %v2995_v14 = vpop.f32.mrf.mxu1  ;;  %v3378_v12 = vsel %vm321_vm9, %v3364_v11, 0 }
0x10d0   :  { %5637 = vtanh.f32 %v3119_v13  ;;  %v5181_v16 = vmul.f32 -1.442695, %v3119_v13  ;;  %3387 = vmatpush.bf16.msrb.mxu3 %v3378_v12  ;;  %v3365_v13 = vld [vmem:[%s7071_s7 + $0x4] sm:$0xf]  ;;  %v3366_v14 = vld [vmem:[%s7071_s7 + $0x8] sm:$0xf] }
0x10d1   :  { %3295 = vmatpush.bf16.msra.mxu2 %v5487_v10 }
0x10d2   :  { %5639 = vpow2.f32 %v5181_v16  ;;  %v3420_v16 = vsel %vm321_vm9, %v3366_v14, 0 }
0x10d3   :  { %3429 = vmatpush.bf16.msrb.mxu1 %v3420_v16  ;;  %v5501_v16 = vld [vmem:[%s7055_s12 + $0x8] sm:$0xff] }
0x10d6   :  { %v5638_v2 = vpop.eup %5637 }
0x10d7   :  { %3147 = vrot.lane.b32.xlu1 %v5638_v2, %s5687_s2  ;;  %v3399_v2 = vsel %vm321_vm9, %v3365_v13, 0  ;;  %v3547_v13 = vld [vmem:[%s7047_s3 + $0x1c] sm:$0xf] }
0x10d8   :  { %v5640_v39 = vpop.eup %5639  ;;  %3408 = vmatpush.bf16.msrb.mxu0 %v3399_v2  ;;  %v3661_v2 = vsel %vm321_vm9, %v3547_v13, 0 }
0x10d9   :  { %v3123_v17 = vadd.f32 1.0, %v5640_v39  ;;  %v3367_v39 = vld [vmem:[%s7071_s7 + $0xc] sm:$0xf] }
0x10db   :  { %5641 = vrcp.f32 %v3123_v17  ;;  %v3135_v24 = vand.u32 2147483648, %v3123_v17  ;;  %vm3129_vm14 = vweird.f32 %v3123_v17  ;;  %v3133_v25 = vand.u32 2147483647, %v3123_v17 }
0x10dd   :  { %v3136_v27 = vor.u32 1.1754944e-38, %v3135_v24  ;;  %vm3134_vm12 = vcmp.eq.f32.partialorder %v3133_v25, 8.507059e+37 }
0x10e1   :  { %v5642_v18 = vpop.eup %5641 }
0x10e2   :  { %v3125_v44 = vmul.f32 %v5642_v18, %v3123_v17  ;;  %vm3130_vm13 = vweird.f32 %v5642_v18  ;;  %v3441_v17 = vsel %vm321_vm9, %v3367_v39, 0  ;;  %v5500_v39 = vld [vmem:[%s7055_s12] sm:$0xff] }
0x10e3   :  { %vm3131_vm15 = vmor %vm3129_vm14, %vm3130_vm13  ;;  %3450 = vmatpush.bf16.msra.mxu3 %v3441_v17 }
0x10e4   :  { %v3126_v19 = vsub.f32 1.0, %v3125_v44 }
0x10e6   :  { %v3127_v21 = vmul.f32 %v5642_v18, %v3126_v19  ;;  %v3368_v19 = vld [vmem:[%s7071_s7 + $0x10] sm:$0xf] }
0x10e7   :  { %v3462_v24 = vsel %vm321_vm9, %v3368_v19, 0 }
0x10e8   :  { %v3128_v23 = vadd.f32 %v5642_v18, %v3127_v21  ;;  %v3369_v21 = vld [vmem:[%s7071_s7 + $0x14] sm:$0xf]  ;;  %3471 = vmatpush.bf16.msra.mxu0 %v3462_v24 }
0x10e9   :  { %v3483_v25 = vsel %vm321_vm9, %v3369_v21, 0  ;;  %v5228_v21 = vld [vmem:[%s7072_s8 + $0x10] sm:$0xf] }
0x10ea   :  { %v3132_v26 = vsel %vm3131_vm15, %v5642_v18, %v3128_v23  ;;  %v3370_v18 = vld [vmem:[%s7071_s7 + $0x18] sm:$0xf] }
0x10eb   :  { %v3137_v38 = vsel %vm3134_vm12, %v3136_v27, %v3132_v26  ;;  %v3504_v44 = vsel %vm321_vm9, %v3370_v18, 0  ;;  %v5499_v18 = vld [vmem:[%s7054_s11] sm:$0xff] }
0x10ec   :  { %v3145_v30 = vmul.f32 %v3143_v29, %v3137_v38  ;;  %3513 = vmatpush.bf16.msrb.mxu2 %v3504_v44 }
0x1149   :  { %v3148_v22 = vpop.permute.xlu1 %3147 }
0x114a   :  { %v3150_v28 = vmul.f32 %v3148_v22, %v3137_v38 }
0x114c   :  { %3152 = vrot.lane.b32.xlu2 %v3150_v28, %s5686_s21 }
0x11a6   :  { %v3153_v31 = vpop.permute.xlu2 %3152 }
0x11a7   :  { %v3155_v32 = vadd.f32 %v3153_v31, %v3145_v30 }
0x11a9   :  { %5643 = vtanh.f32 %v3155_v32 }
0x11af   :  { %v5644_v33 = vpop.eup %5643 }
0x11b0   :  { %3158 = vrot.lane.b32.xlu1 %v5644_v33, %s5687_s2  ;;  %v3371_v33 = vld [vmem:[%s7071_s7 + $0x1c] sm:$0xf] }
0x1222   :  { %v3159_v35 = vpop.permute.xlu1 %3158 }
0x1223   :  { %v3161_v36 = vmul.f32 %v3159_v35, %v3137_v38  ;;  %v3542_v38 = vld [vmem:[%s7047_s3 + $0x8] sm:$0xf] }
0x1224   :  { %v3581_v30 = vsel %vm321_vm9, %v3542_v38, 0 }
0x1225   :  { %v3172_v37 = vpack.c.bf16 %v3161_v36, %v3161_v36  ;;  %3163 = vrot.lane.b32.xlu2 %v3161_v36, %s5686_s21 }
0x1227   :  { %3182 = vrot.lane.b32.xlu0 %v3172_v37, %s5686_s21 }
0x127f   :  { %v3164_v41 = vpop.permute.xlu2 %3163 }
0x1280   :  { %3166 = vst.msk [vmem:[#allocation2] sm:$0xff] %vm73_vm0, %v3164_v41 }
0x1287   :  { %v6626_v43 = vld [vmem:[#allocation2] sm:$0xff] }
0x1288   :  { %v3322_v45 = vmul.f32 %v5590_v34, %v6626_v43  ;;  %v3843_v17 = vpack.c.bf16 %v6626_v43, %v6626_v43  ;;  %v3308_v43 = vunpack.c.l.bf16 %v5228_v21 }
0x128a   :  { %v3323_v46 = vsel %vm73_vm0, %v3322_v45, 0.0 }
0x128b   :  { %3324 = vadd.xlane.f32.xlu1 %v3323_v46  ;;  %v3525_v46 = vsel %vm321_vm9, %v3371_v33, 0 }
0x1299   :  { %v3183_v47 = vpop.permute.xlu0 %3182 }
0x129a   :  { %5190 = vmatmul.msk.bf16.vlgmr.msra.gmra.mxu1 %vm73_vm0, %v3183_v47 }
0x129b   :  { %3492 = vmatpush.bf16.msra.mxu1 %v3483_v25  ;;  %v3309_v25 = vstv %s3305_s22 }
0x12fe   :  { %v3325_v50 = vpop.xlane.xlu1 %3324 }
0x12ff   :  { %v3327_v51 = vadd.f32 %v6631_v49, %v3325_v50 }
0x1301   :  { %v3328_v52 = vmax.f32 %v3327_v51, 0.0 }
0x1303   :  { %v3329_v54 = vsel %vm239_vm8, %v3328_v52, -inf }
0x1304   :  { %3330 = vmax.xlane.f32.xlu0 %v3329_v54  ;;  %v3565_v54 = vsel %vm321_vm9, %v3541_v40, 0 }
0x1317   :  { %v3208_v53 = vpop.f32.mrf.mxu1 }
0x1318   :  { %v3209_v20 = vadd.f32 %v5591_v55, %v3208_v53 }
0x131a   :  { %5191 = vst [vmem:[%s7061_s18 + $0x18] sm:$0xff] %v3209_v20  ;;  %3214 = vmax.xlane.f32.xlu2 %v3209_v20 }
0x131f   :  { %v3210_v56 = vpop.f32.mrf.mxu1 }
0x1332   :  { %3168 = vrot.lane.b32.xlu2 %v3155_v32, %s5688_s0 }
0x1377   :  { %v3331_v61 = vpop.xlane.xlu0 %3330 }
0x1378   :  { %v3332_v42 = vsub.f32 %v3328_v52, %v3331_v61  ;;  %v3549_v52 = vsel %vm321_vm9, %v3540_v15, 0 }
0x137a   :  { %v3333_v57 = vmul.f32 1.442695, %v3332_v42  ;;  %v3546_v42 = vld [vmem:[%s7047_s3 + $0x18] sm:$0xf] }
0x137b   :  { %v3645_v60 = vsel %vm321_vm9, %v3546_v42, 0 }
0x137c   :  { %5645 = vpow2.f32 %v3333_v57 }
0x1382   :  { %v5646_v58 = vpop.eup %5645 }
0x1383   :  { %v3335_v59 = vsel %vm239_vm8, %v5646_v58, 0.0 }
0x1384   :  { %3336 = vadd.xlane.f32.xlu1 %v3335_v59 }
0x138d   :  { %v3215_v1 = vpop.xlane.xlu2 %3214 }
0x138e   :  { %vm3216_vm13 = vcmp.eq.f32.partialorder %v3209_v20, %v3215_v1 }
0x138f   :  { %v3217_v4 = vsel %vm3216_vm13, %v6064_v48, 128.0 }
0x1390   :  { %3218 = vmin.xlane.f32.xlu0 %v3217_v4  ;;  %v3545_v4 = vld [vmem:[%s7047_s3 + $0x14] sm:$0xf] }
0x1391   :  { %v3629_v10 = vsel %vm321_vm9, %v3545_v4, 0 }
0x1395   :  { %v3169_v6 = vpop.permute.xlu2 %3168 }
0x1396   :  { %3171 = vst.msk [vmem:[#allocation3] sm:$0xff] %vm73_vm0, %v3169_v6  ;;  %v3597_v6 = vsel %vm321_vm9, %v3543_v62, 0 }
0x139d   :  { %v3902_v7 = vld [vmem:[#allocation3] sm:$0xff] }
0x13a4   :  { %3904 = vrot.lane.b32.xlu0 %v3902_v7, %s5686_s21 }
0x13f7   :  { %v3337_v23 = vpop.xlane.xlu1 %3336 }
0x13f8   :  { %5647 = vrcp.f32 %v3337_v23 }
0x13fe   :  { %v5648_v26 = vpop.eup %5647 }
0x13ff   :  { %v3339_v27 = vmul.f32 %v5648_v26, %v5646_v58  ;;  %v3313_v26 = vstv %s3311_s25 }
0x1401   :  { %v3340_v22 = vpack.c.bf16 %v3339_v27, %v3339_v27  ;;  %v5496_v27 = vld [vmem:[%s7052_s9 + $0x8] sm:$0xff] }
0x1403   :  { %v3342_v28 = vrot.slane %v3340_v22, 3  ;;  %v3219_v29 = vpop.xlane.xlu0 %3218 }
0x1404   :  { %vm3220_vm14 = vcmp.eq.f32.partialorder %v6064_v48, %v3219_v29 }
0x1405   :  { %vm5225_vm15 = vmpackc.low %vm3220_vm14, %vm3220_vm14  ;;  %v3345_v31 = vsel %vm283_vm10, %v3340_v22, %v3342_v28  ;;  %v3347_v32 = vsel %vm224_vm1, %v3340_v22, %v3342_v28  ;;  %v3353_v47 = vsel %vm228_vm3, %v3340_v22, %v3342_v28  ;;  %v3350_v55 = vsel %vm226_vm2, %v3340_v22, %v3342_v28 }
0x1406   :  { %5226 = vmatmul.msk.bf16.vlgmr.msra.gmra.mxu2 %vm5225_vm15, %v5689_v0  ;;  %v5229_v35 = vpack.i.b16 %v3345_v31, %v3345_v31  ;;  %v3357_v36 = vunpack.i.h.s16 %v3345_v31  ;;  %v3349_v37 = vrot.slane %v3347_v32, 1  ;;  %v3355_v53 = vrot.slane %v3353_v47, 3  ;;  %v5495_v32 = vld [vmem:[%s7052_s9] sm:$0xff] }
0x1407   :  { %3590 = vmatpush.bf16.msra.mxu2 %v3581_v30  ;;  %v3352_v20 = vrot.slane %v3350_v55, 2  ;;  %v3310_v22 = vmul.f32 %v3309_v25, %v3308_v43 }
0x1408   :  { %v3373_v41 = vperm.slane %v5229_v35, 0  ;;  %v3393_v34 = vpack.i.b16 %v3357_v36, %v3357_v36  ;;  %v5232_v45 = vpack.i.b16 %v3349_v37, %v3349_v37  ;;  %v5238_v56 = vpack.i.b16 %v3355_v53, %v3355_v53 }
0x1409   :  { %v3359_v61 = vunpack.i.h.s16 %v3349_v37  ;;  %v3361_v57 = vunpack.i.h.s16 %v3352_v20  ;;  %v5235_v63 = vpack.i.b16 %v3352_v20, %v3352_v20  ;;  %v3363_v11 = vunpack.i.h.s16 %v3355_v53 }
0x140a   :  { %5230 = vmatmul.msk.bf16.vlgmr.msrb.gmra.mxu3 %vm239_vm8, %v3373_v41  ;;  %v3394_v50 = vperm.slane %v3393_v34, 0  ;;  %v3415_v51 = vperm.slane %v5232_v45, 0  ;;  %v3499_v58 = vperm.slane %v5238_v56, 0 }
0x140b   :  { %3534 = vmatpush.bf16.msrb.mxu3 %v3525_v46  ;;  %v3435_v59 = vpack.i.b16 %v3359_v61, %v3359_v61  ;;  %v3477_v1 = vpack.i.b16 %v3361_v57, %v3361_v57  ;;  %v3457_v7 = vperm.slane %v5235_v63, 0  ;;  %v3519_v12 = vpack.i.b16 %v3363_v11, %v3363_v11  ;;  %v5498_v57 = vld [vmem:[%s7053_s10 + $0x8] sm:$0xff] }
0x140c   :  { %5231 = vmatmul.msk.bf16.vlgmr.msrb.gmra.mxu0 %vm239_vm8, %v3394_v50  ;;  %5233 = vmatmul.msk.bf16.vlgmr.msrb.gmra.mxu1 %vm239_vm8, %v3415_v51 }
0x140d   :  { %3558 = vmatpush.bf16.msrb.mxu0 %v3549_v52  ;;  %3574 = vmatpush.bf16.msrb.mxu1 %v3565_v54  ;;  %v3436_v5 = vperm.slane %v3435_v59, 0  ;;  %v3478_v8 = vperm.slane %v3477_v1, 0  ;;  %v3520_v14 = vperm.slane %v3519_v12, 0 }
0x1416   :  { %5239 = vmatmul.msk.bf16.vlgmr.msrb.gmra.mxu2 %vm239_vm8, %v3499_v58 }
0x1417   :  { %3654 = vmatpush.bf16.msrb.mxu2 %v3645_v60 }
0x141a   :  { %5234 = vmatmul.msk.bf16.vlgmr.msra.gmra.mxu3 %vm239_vm8, %v3436_v5 }
0x141b   :  { %3606 = vmatpush.bf16.msra.mxu3 %v3597_v6 }
0x141c   :  { %5236 = vmatmul.msk.bf16.vlgmr.msra.gmra.mxu0 %vm239_vm8, %v3457_v7  ;;  %5237 = vmatmul.msk.bf16.vlgmr.msra.gmra.mxu1 %vm239_vm8, %v3478_v8 }
0x141d   :  { %3622 = vmatpush.bf16.msra.mxu0 %v3613_v9  ;;  %3638 = vmatpush.bf16.msra.mxu1 %v3629_v10 }
0x1426   :  { %5243 = vmatmul.msk.bf16.vlgmr.msra.gmra.mxu2 %vm239_vm8, %v3415_v51 }
0x1427   :  { %3836 = vmatpush.bf16.msra.mxu2 %v5499_v18 }
0x142a   :  { %5240 = vmatmul.msk.bf16.vlgmr.msrb.gmra.mxu3 %vm239_vm8, %v3520_v14 }
0x142b   :  { %3670 = vmatpush.bf16.msrb.mxu3 %v3661_v2 }
0x142c   :  { %5241 = vmatmul.msk.bf16.vlgmr.msrb.gmra.mxu0 %vm239_vm8, %v3373_v41  ;;  %5242 = vmatmul.msk.bf16.vlgmr.msrb.gmra.mxu1 %vm239_vm8, %v3394_v50 }
0x142d   :  { %3811 = vmatpush.bf16.msrb.mxu1 %v5496_v27  ;;  %3752 = vmatpush.bf16.msrb.mxu0 %v5498_v57 }
0x1431   :  { %3812 = vmatpush.bf16.msrb.mxu1 %v5495_v32 }
0x1436   :  { %5247 = vmatmul.msk.bf16.vlgmr.msrb.gmra.mxu2 %vm239_vm8, %v3499_v58 }
0x143a   :  { %5244 = vmatmul.msk.bf16.vlgmr.msra.gmra.mxu3 %vm239_vm8, %v3436_v5 }
0x143b   :  { %3869 = vmatpush.bf16.msra.mxu3 %v5501_v16 }
0x143c   :  { %5245 = vmatmul.msk.bf16.vlgmr.msra.gmra.mxu0 %vm239_vm8, %v3457_v7  ;;  %5246 = vmatmul.msk.bf16.vlgmr.msra.gmra.mxu1 %vm239_vm8, %v3478_v8 }
0x143f   :  { %3870 = vmatpush.bf16.msra.mxu3 %v5500_v39 }
0x144a   :  { %5248 = vmatmul.msk.bf16.vlgmr.msrb.gmra.mxu3 %vm239_vm8, %v3520_v14 }
0x145a   :  { %5280 = vmatmul.msk.bf16.vlgmr.msra.gmra.mxu3 %vm73_vm0, %v3843_v17 }
0x1489   :  { %v3297_v44 = vpop.f32.mrf.mxu2  ;;  %v3410_v19 = vpop.f32.mrf.mxu0 }
0x148a   :  { %3301 = vst.msk [vmem:[#allocation4] sm:$0xff] %vm77_vm11, %v3297_v44  ;;  %v3431_v23 = vpop.f32.mrf.mxu1  ;;  %v3677_v41 = vpack.c.bf16 %v3410_v19, %v3410_v19 }
0x148b   :  { %v3678_v47 = vpack.c.bf16 %v3431_v23, %v3431_v23  ;;  %v5497_v23 = vld [vmem:[%s7053_s10] sm:$0xff] }
0x148c   :  { %v3768_v50 = vunpack.c.l.b16 %v3677_v41  ;;  %3753 = vmatpush.bf16.msrb.mxu0 %v5497_v23 }
0x148d   :  { %v3389_v24 = vpop.f32.mrf.mxu3  ;;  %v3769_v20 = vunpack.c.l.b16 %v3678_v47 }
0x148e   :  { %v3676_v45 = vpack.c.bf16 %v3389_v24, %v3389_v24  ;;  %v3775_v61 = vrot.slane %v3768_v50, 7 }
0x148f   :  { %v3777_v62 = vrot.slane %v3769_v20, 6 }
0x1490   :  { %v3767_v54 = vunpack.c.l.b16 %v3676_v45 }
0x1491   :  { %v3299_v38 = vpop.f32.mrf.mxu2  ;;  %v3412_v28 = vpop.f32.mrf.mxu0  ;;  %v3312_v29 = vld [vmem:[#allocation4] sm:$0xff] }
0x1492   :  { %v3433_v30 = vpop.f32.mrf.mxu1  ;;  %v3314_v31 = vmul.f32 %v3313_v26, %v3312_v29  ;;  %v3776_v58 = vsel %vm224_vm1, %v3775_v61, %v3767_v54 }
0x1493   :  { %v3778_v1 = vsel %vm226_vm2, %v3777_v62, %v3776_v58 }
0x1494   :  { %v3315_v33 = vadd.f32 %v3314_v31, %v3310_v22 }
0x1495   :  { %v3391_v35 = vpop.f32.mrf.mxu3 }
0x1496   :  { %v3316_v36 = vpack.c.bf16 %v3315_v33, %v3315_v33 }
0x1498   :  { %5271 = vmatmul.msk.bf16.vlgmr.msra.gmra.mxu2 %vm77_vm11, %v3316_v36 }
0x1499   :  { %v3473_v37 = vpop.f32.mrf.mxu0  ;;  %v3515_v15 = vpop.f32.mrf.mxu2 }
0x149a   :  { %v3494_v40 = vpop.f32.mrf.mxu1  ;;  %v3680_v56 = vpack.c.bf16 %v3473_v37, %v3473_v37  ;;  %v3682_v3 = vpack.c.bf16 %v3515_v15, %v3515_v15 }
0x149b   :  { %v3681_v59 = vpack.c.bf16 %v3494_v40, %v3494_v40 }
0x149c   :  { %v3771_v63 = vunpack.c.l.b16 %v3680_v56  ;;  %v3773_v10 = vunpack.c.l.b16 %v3682_v3 }
0x149d   :  { %v3452_v34 = vpop.f32.mrf.mxu3  ;;  %v3772_v6 = vunpack.c.l.b16 %v3681_v59 }
0x149e   :  { %v3679_v46 = vpack.c.bf16 %v3452_v34, %v3452_v34  ;;  %v3781_v9 = vrot.slane %v3771_v63, 4  ;;  %v3785_v39 = vrot.slane %v3773_v10, 2 }
0x149f   :  { %v3783_v13 = vrot.slane %v3772_v6, 3 }
0x14a0   :  { %v3770_v55 = vunpack.c.l.b16 %v3679_v46 }
0x14a1   :  { %v3475_v51 = vpop.f32.mrf.mxu0  ;;  %v3517_v52 = vpop.f32.mrf.mxu2 }
0x14a2   :  { %v3496_v53 = vpop.f32.mrf.mxu1  ;;  %v3779_v60 = vrot.slane %v3770_v55, 5 }
0x14a4   :  { %v3780_v7 = vsel %vm228_vm3, %v3779_v60, %v3778_v1 }
0x14a5   :  { %v3454_v42 = vpop.f32.mrf.mxu3  ;;  %v3782_v11 = vsel %vm230_vm4, %v3781_v9, %v3780_v7 }
0x14a6   :  { %v3784_v16 = vsel %vm232_vm5, %v3783_v13, %v3782_v11 }
0x14a7   :  { %v3786_v21 = vsel %vm234_vm6, %v3785_v39, %v3784_v16  ;;  %v5592_v16 = vld [vmem:[%s7056_s13] ss:$0 sm:$0xff] }
0x14a9   :  { %v3560_v4 = vpop.f32.mrf.mxu0  ;;  %v3592_v5 = vpop.f32.mrf.mxu2 }
0x14aa   :  { %v3576_v8 = vpop.f32.mrf.mxu1  ;;  %v3690_v28 = vpack.c.bf16 %v3592_v5, %v3592_v5  ;;  %v3688_v32 = vpack.c.bf16 %v3560_v4, %v3560_v4 }
0x14ab   :  { %v3689_v22 = vpack.c.bf16 %v3576_v8, %v3576_v8 }
0x14ac   :  { %v3710_v33 = vunpack.c.l.b16 %v3690_v28  ;;  %v3708_v34 = vunpack.c.l.b16 %v3688_v32 }
0x14ad   :  { %v3536_v12 = vpop.f32.mrf.mxu3  ;;  %v3709_v30 = vunpack.c.l.b16 %v3689_v22 }
0x14ae   :  { %v3683_v14 = vpack.c.bf16 %v3536_v12, %v3536_v12  ;;  %v3718_v45 = vrot.slane %v3710_v33, 6  ;;  %v3905_v33 = vpop.permute.xlu0 %3904 }
0x14af   :  { %v3716_v37 = vrot.slane %v3709_v30, 7 }
0x14b0   :  { %v3774_v2 = vunpack.c.l.b16 %v3683_v14 }
0x14b1   :  { %v3562_v17 = vpop.f32.mrf.mxu0  ;;  %v3594_v18 = vpop.f32.mrf.mxu2  ;;  %v3717_v47 = vsel %vm224_vm1, %v3716_v37, %v3708_v34 }
0x14b2   :  { %v3787_v44 = vrot.slane %v3774_v2, 1  ;;  %v3578_v19 = vpop.f32.mrf.mxu1  ;;  %v3719_v54 = vsel %vm226_vm2, %v3718_v45, %v3717_v47 }
0x14b4   :  { %v3788_v43 = vsel %vm236_vm7, %v3787_v44, %v3786_v21 }
0x14b5   :  { %v3789_v24 = vpack.c.b16 %v3788_v43, %v3788_v43  ;;  %v3538_v25 = vpop.f32.mrf.mxu3 }
0x14b7   :  { %5266 = vmatmul.msk.bf16.vlgmr.msrb.gmra.mxu1 %vm73_vm0, %v3789_v24 }
0x14b9   :  { %v3624_v26 = vpop.f32.mrf.mxu0  ;;  %v3656_v27 = vpop.f32.mrf.mxu2 }
0x14ba   :  { %v3640_v38 = vpop.f32.mrf.mxu1  ;;  %v3692_v41 = vpack.c.bf16 %v3624_v26, %v3624_v26  ;;  %v3694_v55 = vpack.c.bf16 %v3656_v27, %v3656_v27 }
0x14bb   :  { %v3693_v50 = vpack.c.bf16 %v3640_v38, %v3640_v38 }
0x14bc   :  { %v3712_v52 = vunpack.c.l.b16 %v3692_v41  ;;  %v3714_v61 = vunpack.c.l.b16 %v3694_v55  ;;  %v5502_v41 = vld [vmem:[%s7057_s14] sm:$0xff] }
0x14bd   :  { %v3608_v29 = vpop.f32.mrf.mxu3  ;;  %v3713_v53 = vunpack.c.l.b16 %v3693_v50 }
0x14be   :  { %v3691_v31 = vpack.c.bf16 %v3608_v29, %v3608_v29  ;;  %v3722_v56 = vrot.slane %v3712_v52, 4  ;;  %v3726_v63 = vrot.slane %v3714_v61, 2 }
0x14bf   :  { %v3724_v58 = vrot.slane %v3713_v53, 3  ;;  %v5594_v53 = vld [vmem:[%s7058_s15] ss:$0 sm:$0xff] }
0x14c0   :  { %v3711_v15 = vunpack.c.l.b16 %v3691_v31 }
0x14c1   :  { %v3626_v35 = vpop.f32.mrf.mxu0  ;;  %v3658_v36 = vpop.f32.mrf.mxu2 }
0x14c2   :  { %v3642_v40 = vpop.f32.mrf.mxu1  ;;  %v3720_v51 = vrot.slane %v3711_v15, 5 }
0x14c3   :  { %v5503_v40 = vld [vmem:[%s7057_s14 + $0x8] sm:$0xff] }
0x14c4   :  { %v3721_v20 = vsel %vm228_vm3, %v3720_v51, %v3719_v54  ;;  %3967 = vmatpush.bf16.msra.mxu0 %v5503_v40  ;;  %v5593_v51 = vld [vmem:[%s7048_s4] ss:$0 sm:$0xff] }
0x14c5   :  { %v3610_v46 = vpop.f32.mrf.mxu3  ;;  %v3723_v42 = vsel %vm230_vm4, %v3722_v56, %v3721_v20 }
0x14c6   :  { %v3725_v62 = vsel %vm232_vm5, %v3724_v58, %v3723_v42 }
0x14c7   :  { %v3727_v3 = vsel %vm234_vm6, %v3726_v63, %v3725_v62 }
0x14c8   :  { %3968 = vmatpush.bf16.msra.mxu0 %v5502_v41 }
0x14cd   :  { %v3672_v57 = vpop.f32.mrf.mxu3 }
0x14ce   :  { %v3695_v59 = vpack.c.bf16 %v3672_v57, %v3672_v57 }
0x14d0   :  { %v3715_v60 = vunpack.c.l.b16 %v3695_v59 }
0x14d2   :  { %v3728_v1 = vrot.slane %v3715_v60, 1 }
0x14d4   :  { %v3729_v4 = vsel %vm236_vm7, %v3728_v1, %v3727_v3  ;;  %v5511_v3 = vld [vmem:[%s7073_s1 + $0x38] sm:$0xff] }
0x14d5   :  { %v3730_v5 = vpack.c.b16 %v3729_v4, %v3729_v4  ;;  %v3674_v6 = vpop.f32.mrf.mxu3  ;;  %4050 = vmatpush.bf16.msra.mxu1 %v5511_v3  ;;  %v5510_v4 = vld [vmem:[%s7073_s1 + $0x30] sm:$0xff]  ;;  %v4305_v3 = vld [vmem:[%s7047_s3 + $0xc] sm:$0xf] }
0x14d6   :  { %v5509_v6 = vld [vmem:[%s7073_s1 + $0x28] sm:$0xff] }
0x14d7   :  { %5257 = vmatmul.msk.bf16.vlgmr.msrb.gmra.mxu0 %vm73_vm0, %v3730_v5 }
0x14d9   :  { %4051 = vmatpush.bf16.msra.mxu1 %v5510_v4 }
0x14dd   :  { %v3872_v7 = vpop.f32.mrf.mxu3  ;;  %4052 = vmatpush.bf16.msra.mxu1 %v5509_v6  ;;  %v4306_v6 = vld [vmem:[%s7047_s3 + $0x10] sm:$0xf] }
0x14e5   :  { %v3874_v8 = vpop.f32.mrf.mxu3 }
0x14e6   :  { %v5508_v8 = vld [vmem:[%s7073_s1 + $0x20] sm:$0xff] }
0x14e7   :  { %4053 = vmatpush.bf16.msra.mxu1 %v5508_v8  ;;  %v4359_v8 = vsel %vm321_vm9, %v4305_v3, 0 }
0x151b   :  { %v3838_v9 = vpop.f32.mrf.mxu2 }
0x1523   :  { %v3840_v10 = vpop.f32.mrf.mxu2 }
0x1524   :  { %v5506_v10 = vld [vmem:[%s7073_s1 + $0x10] sm:$0xff] }
0x1534   :  { %v3814_v11 = vpop.f32.mrf.mxu1 }
0x153c   :  { %v3816_v12 = vpop.f32.mrf.mxu1 }
0x153d   :  { %v5504_v12 = vld [vmem:[%s7073_s1] sm:$0xff] }
0x1554   :  { %v3755_v13 = vpop.f32.mrf.mxu0 }
0x1555   :  { %v3815_v14 = vadd.f32 %v3814_v11, %v3755_v13  ;;  %v5505_v11 = vld [vmem:[%s7073_s1 + $0x8] sm:$0xff]  ;;  %v4126_v13 = vld [vmem:[%s7071_s7] sm:$0xf] }
0x1557   :  { %v3842_v2 = vadd.f32 %v3838_v9, %v3815_v14  ;;  %v5507_v9 = vld [vmem:[%s7073_s1 + $0x18] sm:$0xff]  ;;  %v4127_v14 = vld [vmem:[%s7071_s7 + $0x4] sm:$0xf] }
0x1558   :  { %4054 = vmatpush.bf16.msra.mxu1 %v5507_v9  ;;  %v4307_v9 = vld [vmem:[%s7047_s3 + $0x14] sm:$0xf] }
0x1559   :  { %v3876_v39 = vadd.f32 %v3872_v7, %v3842_v2  ;;  %v4140_v2 = vsel %vm321_vm9, %v4126_v13, 0  ;;  %v4391_v13 = vsel %vm321_vm9, %v4307_v9, 0 }
0x155a   :  { %4149 = vmatpush.bf16.msrb.mxu2 %v4140_v2 }
0x155b   :  { %v3881_v17 = vadd.f32 %v5592_v16, %v3876_v39  ;;  %v4161_v16 = vsel %vm321_vm9, %v4127_v14, 0  ;;  %v4128_v39 = vld [vmem:[%s7071_s7 + $0x8] sm:$0xf] }
0x155c   :  { %v3757_v18 = vpop.f32.mrf.mxu0  ;;  %4055 = vmatpush.bf16.msra.mxu1 %v5506_v10  ;;  %4170 = vmatpush.bf16.msrb.mxu3 %v4161_v16  ;;  %v4309_v16 = vld [vmem:[%s7047_s3 + $0x1c] sm:$0xf] }
0x155d   :  { %5649 = vtanh.f32 %v3881_v17  ;;  %v5281_v19 = vmul.f32 -1.442695, %v3881_v17  ;;  %v4132_v17 = vld [vmem:[%s7071_s7 + $0x18] sm:$0xf]  ;;  %v4182_v18 = vsel %vm321_vm9, %v4128_v39, 0 }
0x155e   :  { %4191 = vmatpush.bf16.msrb.mxu0 %v4182_v18  ;;  %v5518_v18 = vld [vmem:[%s7055_s12 + $0x8] sm:$0xff] }
0x155f   :  { %5651 = vpow2.f32 %v5281_v19  ;;  %v4129_v19 = vld [vmem:[%s7071_s7 + $0xc] sm:$0xf] }
0x1560   :  { %4056 = vmatpush.bf16.msra.mxu1 %v5505_v11 }
0x1563   :  { %v5650_v44 = vpop.eup %5649 }
0x1564   :  { %3909 = vrot.lane.b32.xlu1 %v5650_v44, %s5687_s2  ;;  %4057 = vmatpush.bf16.msra.mxu1 %v5504_v12  ;;  %v4266_v44 = vsel %vm321_vm9, %v4132_v17, 0  ;;  %v4375_v12 = vsel %vm321_vm9, %v4306_v6, 0  ;;  %v4423_v17 = vsel %vm321_vm9, %v4309_v16, 0 }
0x1565   :  { %v5652_v21 = vpop.eup %5651 }
0x1566   :  { %v3885_v23 = vadd.f32 1.0, %v5652_v21 }
0x1568   :  { %5653 = vrcp.f32 %v3885_v23  ;;  %v3897_v22 = vand.u32 2147483648, %v3885_v23  ;;  %vm3891_vm13 = vweird.f32 %v3885_v23  ;;  %v3895_v38 = vand.u32 2147483647, %v3885_v23  ;;  %4275 = vmatpush.bf16.msrb.mxu1 %v4266_v44  ;;  %v5517_v44 = vld [vmem:[%s7055_s12] sm:$0xff] }
0x156a   :  { %v3898_v29 = vor.u32 1.1754944e-38, %v3897_v22  ;;  %vm3896_vm15 = vcmp.eq.f32.partialorder %v3895_v38, 8.507059e+37 }
0x156e   :  { %v5654_v43 = vpop.eup %5653 }
0x156f   :  { %v3887_v24 = vmul.f32 %v5654_v43, %v3885_v23  ;;  %vm3892_vm12 = vweird.f32 %v5654_v43  ;;  %v4203_v23 = vsel %vm321_vm9, %v4129_v19, 0  ;;  %v5516_v19 = vld [vmem:[%s7054_s11] sm:$0xff] }
0x1570   :  { %vm3893_vm14 = vmor %vm3891_vm13, %vm3892_vm12  ;;  %4212 = vmatpush.bf16.msra.mxu2 %v4203_v23 }
0x1571   :  { %v3888_v25 = vsub.f32 1.0, %v3887_v24  ;;  %v4131_v24 = vld [vmem:[%s7071_s7 + $0x14] sm:$0xf] }
0x1573   :  { %v3889_v26 = vmul.f32 %v5654_v43, %v3888_v25 }
0x1575   :  { %v3890_v27 = vadd.f32 %v5654_v43, %v3889_v26  ;;  %v4245_v26 = vsel %vm321_vm9, %v4131_v24, 0 }
0x1577   :  { %v3894_v28 = vsel %vm3893_vm14, %v5654_v43, %v3890_v27  ;;  %v4130_v43 = vld [vmem:[%s7071_s7 + $0x10] sm:$0xf]  ;;  %v4304_v27 = vld [vmem:[%s7047_s3 + $0x8] sm:$0xf] }
0x1578   :  { %v3899_v31 = vsel %vm3896_vm15, %v3898_v29, %v3894_v28  ;;  %v4224_v25 = vsel %vm321_vm9, %v4130_v43, 0  ;;  %v4343_v22 = vsel %vm321_vm9, %v4304_v27, 0  ;;  %v5328_v43 = vld [vmem:[%s7072_s8 + $0x14] sm:$0xf] }
0x1579   :  { %v3907_v35 = vmul.f32 %v3905_v33, %v3899_v31  ;;  %4233 = vmatpush.bf16.msra.mxu3 %v4224_v25  ;;  %v4133_v33 = vld [vmem:[%s7071_s7 + $0x1c] sm:$0xf]  ;;  %s5327_s7 = sld [smem:[#allocation7 + $0x5]]  ;;  %v4070_v24 = vunpack.c.l.bf16 %v5328_v43 }
0x157f   :  { %p4066_p5 = scmp.ne.s32.totalorder %s5327_s7, 0 }
0x1581   :  { %s4067_s12 = scalar_select %p4066_p5, 1.0, 0.0 }
0x1583   :  { %s4073_s17 = ssub.f32 1.0, %s4067_s12  ;;  %v4071_v25 = vstv %s4067_s12 }
0x1584   :  { %v4072_v27 = vmul.f32 %v4071_v25, %v4070_v24  ;;  %v5514_v25 = vld [vmem:[%s7053_s10] sm:$0xff] }
0x15d6   :  { %v3910_v30 = vpop.permute.xlu1 %3909 }
0x15d7   :  { %v3912_v32 = vmul.f32 %v3910_v30, %v3899_v31 }
0x15d9   :  { %3914 = vrot.lane.b32.xlu0 %v3912_v32, %s5686_s21 }
0x164b   :  { %v3915_v36 = vpop.permute.xlu0 %3914 }
0x164c   :  { %v3917_v37 = vadd.f32 %v3915_v36, %v3907_v35 }
0x164e   :  { %5655 = vtanh.f32 %v3917_v37 }
0x1654   :  { %v5656_v15 = vpop.eup %5655 }
0x1655   :  { %3920 = vrot.lane.b32.xlu2 %v5656_v15, %s5687_s2 }
0x16af   :  { %v3921_v34 = vpop.permute.xlu2 %3920 }
0x16b0   :  { %v3923_v45 = vmul.f32 %v3921_v34, %v3899_v31 }
0x16b2   :  { %v3934_v46 = vpack.c.bf16 %v3923_v45, %v3923_v45  ;;  %3925 = vrot.lane.b32.xlu0 %v3923_v45, %s5686_s21 }
0x16b4   :  { %3944 = vrot.lane.b32.xlu1 %v3934_v46, %s5686_s21  ;;  %v4287_v46 = vsel %vm321_vm9, %v4133_v33, 0 }
0x1724   :  { %v3926_v47 = vpop.permute.xlu0 %3925 }
0x1725   :  { %3928 = vst.msk [vmem:[#allocation2] sm:$0xff] %vm73_vm0, %v3926_v47  ;;  %v4302_v47 = vld [vmem:[%s7047_s3] sm:$0xf] }
0x1726   :  { %v3945_v50 = vpop.permute.xlu1 %3944 }
0x1727   :  { %5290 = vmatmul.msk.bf16.vlgmr.msra.gmra.mxu0 %vm73_vm0, %v3945_v50 }
0x1728   :  { %4254 = vmatpush.bf16.msra.mxu0 %v4245_v26  ;;  %v4075_v26 = vstv %s4073_s17 }
0x172c   :  { %v6820_v52 = vld [vmem:[#allocation2] sm:$0xff] }
0x172d   :  { %v4084_v54 = vmul.f32 %v5593_v51, %v6820_v52 }
0x172f   :  { %v4085_v55 = vsel %vm73_vm0, %v4084_v54, 0.0 }
0x1730   :  { %4086 = vadd.xlane.f32.xlu2 %v4085_v55 }
0x17a3   :  { %v4087_v20 = vpop.xlane.xlu2 %4086 }
0x17a4   :  { %v4089_v56 = vadd.f32 %v4087_v20, %v6631_v49  ;;  %v3970_v61 = vpop.f32.mrf.mxu0  ;;  %v4308_v20 = vld [vmem:[%s7047_s3 + $0x18] sm:$0xf] }
0x17a5   :  { %v3971_v42 = vadd.f32 %v5594_v53, %v3970_v61  ;;  %v4303_v53 = vld [vmem:[%s7047_s3 + $0x4] sm:$0xf] }
0x17a6   :  { %v4090_v57 = vmax.f32 %v4089_v56, 0.0 }
0x17a7   :  { %5291 = vst [vmem:[%s7061_s18 + $0x20] sm:$0xff] %v3971_v42  ;;  %3976 = vmax.xlane.f32.xlu0 %v3971_v42 }
0x17a8   :  { %v4091_v58 = vsel %vm239_vm8, %v4090_v57, -inf }
0x17a9   :  { %4092 = vmax.xlane.f32.xlu1 %v4091_v58 }
0x17ac   :  { %v3972_v59 = vpop.f32.mrf.mxu0 }
0x17ad   :  { %v4327_v59 = vsel %vm321_vm9, %v4303_v53, 0 }
0x181a   :  { %v3977_v60 = vpop.xlane.xlu0 %3976 }
0x181b   :  { %vm3978_vm12 = vcmp.eq.f32.partialorder %v3971_v42, %v3977_v60  ;;  %v4407_v60 = vsel %vm321_vm9, %v4308_v20, 0 }
0x181c   :  { %v4093_v62 = vpop.xlane.xlu1 %4092  ;;  %v3979_v63 = vsel %vm3978_vm12, %v6064_v48, 128.0 }
0x181d   :  { %v4094_v1 = vsub.f32 %v4090_v57, %v4093_v62  ;;  %3980 = vmin.xlane.f32.xlu1 %v3979_v63  ;;  %v4311_v57 = vsel %vm321_vm9, %v4302_v47, 0 }
0x181f   :  { %v4095_v49 = vmul.f32 1.442695, %v4094_v1 }
0x1821   :  { %5657 = vpow2.f32 %v4095_v49 }
0x1827   :  { %v5658_v5 = vpop.eup %5657 }
0x1828   :  { %v4097_v7 = vsel %vm239_vm8, %v5658_v5, 0.0 }
0x1829   :  { %4098 = vadd.xlane.f32.xlu2 %v4097_v7 }
0x1841   :  { %3930 = vrot.lane.b32.xlu2 %v3917_v37, %s5688_s0 }
0x1890   :  { %v3981_v21 = vpop.xlane.xlu1 %3980 }
0x1891   :  { %vm3982_vm13 = vcmp.eq.f32.partialorder %v6064_v48, %v3981_v21  ;;  %v4605_v21 = vpack.c.bf16 %v6820_v52, %v6820_v52 }
0x1892   :  { %vm5325_vm14 = vmpackc.low %vm3982_vm13, %vm3982_vm13 }
0x1893   :  { %5326 = vmatmul.msk.bf16.vlgmr.msra.gmra.mxu1 %vm5325_vm14, %v5689_v0 }
0x1894   :  { %4352 = vmatpush.bf16.msra.mxu1 %v4343_v22 }
0x189c   :  { %v4099_v38 = vpop.xlane.xlu2 %4098 }
0x189d   :  { %5659 = vrcp.f32 %v4099_v38 }
0x18a3   :  { %v5660_v28 = vpop.eup %5659 }
0x18a4   :  { %v4101_v29 = vmul.f32 %v5660_v28, %v5658_v5  ;;  %v3931_v30 = vpop.permute.xlu2 %3930 }
0x18a5   :  { %3933 = vst.msk [vmem:[#allocation3] sm:$0xff] %vm73_vm0, %v3931_v30 }
0x18a6   :  { %v4102_v31 = vpack.c.bf16 %v4101_v29, %v4101_v29 }
0x18a8   :  { %v4104_v32 = vrot.slane %v4102_v31, 3 }
0x18aa   :  { %v4107_v35 = vsel %vm283_vm10, %v4102_v31, %v4104_v32  ;;  %v4109_v36 = vsel %vm224_vm1, %v4102_v31, %v4104_v32  ;;  %v4115_v37 = vsel %vm228_vm3, %v4102_v31, %v4104_v32  ;;  %v4112_v58 = vsel %vm226_vm2, %v4102_v31, %v4104_v32 }
0x18ab   :  { %v5329_v15 = vpack.i.b16 %v4107_v35, %v4107_v35  ;;  %v4119_v40 = vunpack.i.h.s16 %v4107_v35  ;;  %v4111_v41 = vrot.slane %v4109_v36, 1  ;;  %v4117_v34 = vrot.slane %v4115_v37, 3  ;;  %v5513_v35 = vld [vmem:[%s7052_s9 + $0x8] sm:$0xff] }
0x18ac   :  { %v4664_v45 = vld [vmem:[#allocation3] sm:$0xff]  ;;  %v4114_v62 = vrot.slane %v4112_v58, 2 }
0x18ad   :  { %4666 = vrot.lane.b32.xlu1 %v4664_v45, %s5686_s21  ;;  %v4135_v50 = vperm.slane %v5329_v15, 0  ;;  %v4155_v51 = vpack.i.b16 %v4119_v40, %v4119_v40  ;;  %v5332_v54 = vpack.i.b16 %v4111_v41, %v4111_v41  ;;  %v5338_v55 = vpack.i.b16 %v4117_v34, %v4117_v34  ;;  %v5512_v15 = vld [vmem:[%s7052_s9] sm:$0xff] }
0x18ae   :  { %v4121_v63 = vunpack.i.h.s16 %v4111_v41  ;;  %v4123_v1 = vunpack.i.h.s16 %v4114_v62  ;;  %v5335_v4 = vpack.i.b16 %v4114_v62, %v4114_v62  ;;  %v4125_v14 = vunpack.i.h.s16 %v4117_v34 }
0x18af   :  { %5330 = vmatmul.msk.bf16.vlgmr.msrb.gmra.mxu2 %vm239_vm8, %v4135_v50  ;;  %v4156_v56 = vperm.slane %v4155_v51, 0  ;;  %v4177_v61 = vperm.slane %v5332_v54, 0  ;;  %v4261_v42 = vperm.slane %v5338_v55, 0 }
0x18b0   :  { %4296 = vmatpush.bf16.msrb.mxu2 %v4287_v46  ;;  %v4197_v49 = vpack.i.b16 %v4121_v63, %v4121_v63  ;;  %v4239_v5 = vpack.i.b16 %v4123_v1, %v4123_v1  ;;  %v4219_v10 = vperm.slane %v5335_v4, 0  ;;  %v4281_v2 = vpack.i.b16 %v4125_v14, %v4125_v14 }
0x18b1   :  { %5331 = vmatmul.msk.bf16.vlgmr.msrb.gmra.mxu3 %vm239_vm8, %v4156_v56  ;;  %5333 = vmatmul.msk.bf16.vlgmr.msrb.gmra.mxu0 %vm239_vm8, %v4177_v61 }
0x18b2   :  { %5339 = vmatmul.msk.bf16.vlgmr.msrb.gmra.mxu1 %vm239_vm8, %v4261_v42  ;;  %4320 = vmatpush.bf16.msrb.mxu3 %v4311_v57  ;;  %v4198_v7 = vperm.slane %v4197_v49, 0  ;;  %v4240_v11 = vperm.slane %v4239_v5, 0  ;;  %v4282_v39 = vperm.slane %v4281_v2, 0  ;;  %v5515_v5 = vld [vmem:[%s7053_s10 + $0x8] sm:$0xff] }
0x18b3   :  { %4336 = vmatpush.bf16.msrb.mxu0 %v4327_v59  ;;  %4416 = vmatpush.bf16.msrb.mxu1 %v4407_v60 }
0x18bf   :  { %5334 = vmatmul.msk.bf16.vlgmr.msra.gmra.mxu2 %vm239_vm8, %v4198_v7 }
0x18c0   :  { %4368 = vmatpush.bf16.msra.mxu2 %v4359_v8 }
0x18c1   :  { %5336 = vmatmul.msk.bf16.vlgmr.msra.gmra.mxu3 %vm239_vm8, %v4219_v10  ;;  %5337 = vmatmul.msk.bf16.vlgmr.msra.gmra.mxu0 %vm239_vm8, %v4240_v11 }
0x18c2   :  { %5343 = vmatmul.msk.bf16.vlgmr.msra.gmra.mxu1 %vm239_vm8, %v4177_v61  ;;  %4384 = vmatpush.bf16.msra.mxu3 %v4375_v12 }
0x18c3   :  { %4400 = vmatpush.bf16.msra.mxu0 %v4391_v13  ;;  %4598 = vmatpush.bf16.msra.mxu1 %v5516_v19 }
0x18cf   :  { %5340 = vmatmul.msk.bf16.vlgmr.msrb.gmra.mxu2 %vm239_vm8, %v4282_v39 }
0x18d0   :  { %4432 = vmatpush.bf16.msrb.mxu2 %v4423_v17 }
0x18d1   :  { %5341 = vmatmul.msk.bf16.vlgmr.msrb.gmra.mxu3 %vm239_vm8, %v4135_v50  ;;  %5342 = vmatmul.msk.bf16.vlgmr.msrb.gmra.mxu0 %vm239_vm8, %v4156_v56 }
0x18d2   :  { %5347 = vmatmul.msk.bf16.vlgmr.msrb.gmra.mxu1 %vm239_vm8, %v4261_v42  ;;  %4573 = vmatpush.bf16.msrb.mxu0 %v5513_v35 }
0x18d3   :  { %4514 = vmatpush.bf16.msrb.mxu3 %v5515_v5 }
0x18d6   :  { %4574 = vmatpush.bf16.msrb.mxu0 %v5512_v15 }
0x18d7   :  { %4515 = vmatpush.bf16.msrb.mxu3 %v5514_v25 }
0x18df   :  { %5344 = vmatmul.msk.bf16.vlgmr.msra.gmra.mxu2 %vm239_vm8, %v4198_v7 }
0x18e0   :  { %4631 = vmatpush.bf16.msra.mxu2 %v5518_v18 }
0x18e1   :  { %5345 = vmatmul.msk.bf16.vlgmr.msra.gmra.mxu3 %vm239_vm8, %v4219_v10  ;;  %5346 = vmatmul.msk.bf16.vlgmr.msra.gmra.mxu0 %vm239_vm8, %v4240_v11 }
0x18e4   :  { %4632 = vmatpush.bf16.msra.mxu2 %v5517_v44 }
0x18ef   :  { %5348 = vmatmul.msk.bf16.vlgmr.msrb.gmra.mxu2 %vm239_vm8, %v4282_v39 }
0x18ff   :  { %5380 = vmatmul.msk.bf16.vlgmr.msra.gmra.mxu2 %vm73_vm0, %v4605_v21 }
0x1910   :  { %v4059_v23 = vpop.f32.mrf.mxu1 }
0x1911   :  { %4063 = vst.msk [vmem:[#allocation4] sm:$0xff] %vm77_vm11, %v4059_v23 }
0x1918   :  { %v4061_v22 = vpop.f32.mrf.mxu1  ;;  %v4074_v38 = vld [vmem:[#allocation4] sm:$0xff] }
0x1919   :  { %v4076_v52 = vmul.f32 %v4075_v26, %v4074_v38 }
0x191b   :  { %v4077_v28 = vadd.f32 %v4076_v52, %v4072_v27 }
0x191d   :  { %v4078_v29 = vpack.c.bf16 %v4077_v28, %v4077_v28 }
0x191f   :  { %5371 = vmatmul.msk.bf16.vlgmr.msra.gmra.mxu1 %vm77_vm11, %v4078_v29 }
0x192e   :  { %v4193_v30 = vpop.f32.mrf.mxu0 }
0x192f   :  { %v4277_v31 = vpop.f32.mrf.mxu1  ;;  %v4440_v54 = vpack.c.bf16 %v4193_v30, %v4193_v30 }
0x1930   :  { %v4444_v6 = vpack.c.bf16 %v4277_v31, %v4277_v31 }
0x1931   :  { %v4531_v58 = vunpack.c.l.b16 %v4440_v54 }
0x1932   :  { %v4151_v32 = vpop.f32.mrf.mxu2  ;;  %v4535_v13 = vunpack.c.l.b16 %v4444_v6 }
0x1933   :  { %v4438_v53 = vpack.c.bf16 %v4151_v32, %v4151_v32  ;;  %v4539_v3 = vrot.slane %v4531_v58, 6 }
0x1934   :  { %v4172_v33 = vpop.f32.mrf.mxu3  ;;  %v4547_v19 = vrot.slane %v4535_v13, 2 }
0x1935   :  { %v4439_v45 = vpack.c.bf16 %v4172_v33, %v4172_v33  ;;  %v4529_v59 = vunpack.c.l.b16 %v4438_v53 }
0x1936   :  { %v4195_v36 = vpop.f32.mrf.mxu0 }
0x1937   :  { %v4279_v37 = vpop.f32.mrf.mxu1  ;;  %v4530_v50 = vunpack.c.l.b16 %v4439_v45 }
0x1939   :  { %v4537_v61 = vrot.slane %v4530_v50, 7 }
0x193a   :  { %v4153_v40 = vpop.f32.mrf.mxu2 }
0x193b   :  { %v4538_v63 = vsel %vm224_vm1, %v4537_v61, %v4529_v59 }
0x193c   :  { %v4174_v41 = vpop.f32.mrf.mxu3  ;;  %v4540_v7 = vsel %vm226_vm2, %v4539_v3, %v4538_v63 }
0x193e   :  { %v4256_v34 = vpop.f32.mrf.mxu0 }
0x193f   :  { %v4354_v46 = vpop.f32.mrf.mxu1  ;;  %v4443_v1 = vpack.c.bf16 %v4256_v34, %v4256_v34 }
0x1940   :  { %v4452_v32 = vpack.c.bf16 %v4354_v46, %v4354_v46 }
0x1941   :  { %v4534_v10 = vunpack.c.l.b16 %v4443_v1 }
0x1942   :  { %v4214_v47 = vpop.f32.mrf.mxu2  ;;  %v4472_v41 = vunpack.c.l.b16 %v4452_v32 }
0x1943   :  { %v4441_v51 = vpack.c.bf16 %v4214_v47, %v4214_v47  ;;  %v4545_v16 = vrot.slane %v4534_v10, 3 }
0x1944   :  { %v4235_v55 = vpop.f32.mrf.mxu3 }
0x1945   :  { %v4442_v20 = vpack.c.bf16 %v4235_v55, %v4235_v55  ;;  %v4532_v42 = vunpack.c.l.b16 %v4441_v51  ;;  %v4480_v55 = vrot.slane %v4472_v41, 6  ;;  %v5519_v41 = vld [vmem:[%s7057_s14] sm:$0xff] }
0x1946   :  { %v4258_v56 = vpop.f32.mrf.mxu0 }
0x1947   :  { %v4356_v57 = vpop.f32.mrf.mxu1  ;;  %v4533_v60 = vunpack.c.l.b16 %v4442_v20  ;;  %v4541_v49 = vrot.slane %v4532_v42, 5 }
0x1949   :  { %v4543_v8 = vrot.slane %v4533_v60, 4  ;;  %v4542_v11 = vsel %vm228_vm3, %v4541_v49, %v4540_v7 }
0x194a   :  { %v4216_v62 = vpop.f32.mrf.mxu2 }
0x194b   :  { %v4544_v14 = vsel %vm230_vm4, %v4543_v8, %v4542_v11 }
0x194c   :  { %v4237_v4 = vpop.f32.mrf.mxu3  ;;  %v4546_v18 = vsel %vm232_vm5, %v4545_v16, %v4544_v14 }
0x194d   :  { %v4548_v24 = vsel %vm234_vm6, %v4547_v19, %v4546_v18 }
0x194e   :  { %v4338_v9 = vpop.f32.mrf.mxu0 }
0x194f   :  { %v4418_v12 = vpop.f32.mrf.mxu1  ;;  %v4451_v28 = vpack.c.bf16 %v4338_v9, %v4338_v9 }
0x1950   :  { %v4456_v20 = vpack.c.bf16 %v4418_v12, %v4418_v12 }
0x1951   :  { %v4471_v35 = vunpack.c.l.b16 %v4451_v28 }
0x1952   :  { %v4298_v2 = vpop.f32.mrf.mxu2  ;;  %v4476_v57 = vunpack.c.l.b16 %v4456_v20 }
0x1953   :  { %v4445_v39 = vpack.c.bf16 %v4298_v2, %v4298_v2  ;;  %v4478_v34 = vrot.slane %v4471_v35, 7 }
0x1954   :  { %v4322_v17 = vpop.f32.mrf.mxu3  ;;  %v4488_v49 = vrot.slane %v4476_v57, 2  ;;  %v5525_v57 = vld [vmem:[%s7073_s1 + $0x20] sm:$0xff] }
0x1955   :  { %v4536_v44 = vunpack.c.l.b16 %v4445_v39  ;;  %v4450_v30 = vpack.c.bf16 %v4322_v17, %v4322_v17  ;;  %v5595_v39 = vld [vmem:[%s7056_s13] ss:$0 sm:$0xff] }
0x1956   :  { %v4340_v21 = vpop.f32.mrf.mxu0 }
0x1957   :  { %v4549_v23 = vrot.slane %v4536_v44, 1  ;;  %v4420_v43 = vpop.f32.mrf.mxu1  ;;  %v4470_v15 = vunpack.c.l.b16 %v4450_v30 }
0x1959   :  { %v4550_v26 = vsel %vm236_vm7, %v4549_v23, %v4548_v24  ;;  %v4479_v50 = vsel %vm224_vm1, %v4478_v34, %v4470_v15 }
0x195a   :  { %v4551_v27 = vpack.c.b16 %v4550_v26, %v4550_v26  ;;  %v4300_v22 = vpop.f32.mrf.mxu2  ;;  %v4481_v56 = vsel %vm226_vm2, %v4480_v55, %v4479_v50  ;;  %v5596_v55 = vld [vmem:[%s7058_s15] ss:$0 sm:$0xff] }
0x195c   :  { %v4324_v38 = vpop.f32.mrf.mxu3  ;;  %5366 = vmatmul.msk.bf16.vlgmr.msrb.gmra.mxu0 %vm73_vm0, %v4551_v27 }
0x195e   :  { %v4402_v52 = vpop.f32.mrf.mxu0 }
0x195f   :  { %v4455_v51 = vpack.c.bf16 %v4402_v52, %v4402_v52 }
0x1961   :  { %v4475_v61 = vunpack.c.l.b16 %v4455_v51 }
0x1962   :  { %v4370_v29 = vpop.f32.mrf.mxu2 }
0x1963   :  { %v4453_v31 = vpack.c.bf16 %v4370_v29, %v4370_v29  ;;  %v4486_v60 = vrot.slane %v4475_v61, 3  ;;  %v5527_v61 = vld [vmem:[%s7073_s1 + $0x30] sm:$0xff] }
0x1964   :  { %v4386_v33 = vpop.f32.mrf.mxu3 }
0x1965   :  { %v4454_v36 = vpack.c.bf16 %v4386_v33, %v4386_v33  ;;  %v4473_v40 = vunpack.c.l.b16 %v4453_v31  ;;  %v4667_v33 = vpop.permute.xlu1 %4666 }
0x1966   :  { %v4404_v37 = vpop.f32.mrf.mxu0 }
0x1967   :  { %v4474_v45 = vunpack.c.l.b16 %v4454_v36  ;;  %v4482_v54 = vrot.slane %v4473_v40, 5  ;;  %v5520_v40 = vld [vmem:[%s7057_s14 + $0x8] sm:$0xff] }
0x1968   :  { %4729 = vmatpush.bf16.msra.mxu3 %v5520_v40 }
0x1969   :  { %v4484_v46 = vrot.slane %v4474_v45, 4  ;;  %v4483_v42 = vsel %vm228_vm3, %v4482_v54, %v4481_v56 }
0x196a   :  { %v4372_v47 = vpop.f32.mrf.mxu2 }
0x196b   :  { %v4485_v58 = vsel %vm230_vm4, %v4484_v46, %v4483_v42  ;;  %v5528_v46 = vld [vmem:[%s7073_s1 + $0x38] sm:$0xff]  ;;  %v5526_v42 = vld [vmem:[%s7073_s1 + $0x28] sm:$0xff] }
0x196c   :  { %v4388_v53 = vpop.f32.mrf.mxu3  ;;  %v4487_v63 = vsel %vm232_vm5, %v4486_v60, %v4485_v58  ;;  %4730 = vmatpush.bf16.msra.mxu3 %v5519_v41  ;;  %4812 = vmatpush.bf16.msra.mxu0 %v5528_v46  ;;  %v5524_v58 = vld [vmem:[%s7073_s1 + $0x18] sm:$0xff]  ;;  %v5522_v60 = vld [vmem:[%s7073_s1 + $0x8] sm:$0xff] }
0x196d   :  { %v4489_v4 = vsel %vm234_vm6, %v4488_v49, %v4487_v63 }
0x1970   :  { %4813 = vmatpush.bf16.msra.mxu0 %v5527_v61 }
0x1972   :  { %v4434_v59 = vpop.f32.mrf.mxu2 }
0x1973   :  { %v4457_v62 = vpack.c.bf16 %v4434_v59, %v4434_v59  ;;  %v5523_v59 = vld [vmem:[%s7073_s1 + $0x10] sm:$0xff] }
0x1974   :  { %4814 = vmatpush.bf16.msra.mxu0 %v5526_v42 }
0x1975   :  { %v4477_v1 = vunpack.c.l.b16 %v4457_v62  ;;  %v5521_v62 = vld [vmem:[%s7073_s1] sm:$0xff] }
0x1977   :  { %v4490_v3 = vrot.slane %v4477_v1, 1 }
0x1978   :  { %4815 = vmatpush.bf16.msra.mxu0 %v5525_v57 }
0x1979   :  { %v4491_v5 = vsel %vm236_vm7, %v4490_v3, %v4489_v4 }
0x197a   :  { %v4492_v6 = vpack.c.b16 %v4491_v5, %v4491_v5  ;;  %v4436_v7 = vpop.f32.mrf.mxu2 }
0x197c   :  { %5357 = vmatmul.msk.bf16.vlgmr.msrb.gmra.mxu3 %vm73_vm0, %v4492_v6  ;;  %4816 = vmatpush.bf16.msra.mxu0 %v5524_v58 }
0x1980   :  { %4817 = vmatpush.bf16.msra.mxu0 %v5523_v59 }
0x1982   :  { %v4634_v8 = vpop.f32.mrf.mxu2 }
0x1984   :  { %4818 = vmatpush.bf16.msra.mxu0 %v5522_v60 }
0x1988   :  { %4819 = vmatpush.bf16.msra.mxu0 %v5521_v62 }
0x198a   :  { %v4636_v9 = vpop.f32.mrf.mxu2 }
0x199c   :  { %v4600_v10 = vpop.f32.mrf.mxu1 }
0x19a4   :  { %v4602_v11 = vpop.f32.mrf.mxu1 }
0x19d9   :  { %v4576_v12 = vpop.f32.mrf.mxu0 }
0x19e1   :  { %v4578_v13 = vpop.f32.mrf.mxu0 }
0x19ff   :  { %v4517_v14 = vpop.f32.mrf.mxu3 }
0x1a00   :  { %v4577_v2 = vadd.f32 %v4576_v12, %v4517_v14 }
0x1a02   :  { %v4604_v16 = vadd.f32 %v4600_v10, %v4577_v2 }
0x1a04   :  { %v4638_v17 = vadd.f32 %v4634_v8, %v4604_v16 }
0x1a06   :  { %v4643_v18 = vadd.f32 %v5595_v39, %v4638_v17 }
0x1a07   :  { %v4519_v44 = vpop.f32.mrf.mxu3 }
0x1a08   :  { %5661 = vtanh.f32 %v4643_v18  ;;  %v5381_v21 = vmul.f32 -1.442695, %v4643_v18 }
0x1a0a   :  { %5663 = vpow2.f32 %v5381_v21 }
0x1a0e   :  { %v5662_v19 = vpop.eup %5661 }
0x1a0f   :  { %4671 = vrot.lane.b32.xlu0 %v5662_v19, %s5687_s2 }
0x1a10   :  { %v5664_v23 = vpop.eup %5663 }
0x1a11   :  { %v4647_v43 = vadd.f32 1.0, %v5664_v23 }
0x1a13   :  { %5665 = vrcp.f32 %v4647_v43  ;;  %v4659_v38 = vand.u32 2147483648, %v4647_v43  ;;  %vm4653_vm2 = vweird.f32 %v4647_v43  ;;  %v4657_v52 = vand.u32 2147483647, %v4647_v43 }
0x1a15   :  { %v4660_v29 = vor.u32 1.1754944e-38, %v4659_v38  ;;  %vm4658_vm4 = vcmp.eq.f32.partialorder %v4657_v52, 8.507059e+37 }
0x1a19   :  { %v5666_v24 = vpop.eup %5665 }
0x1a1a   :  { %v4649_v25 = vmul.f32 %v5666_v24, %v4647_v43  ;;  %vm4654_vm1 = vweird.f32 %v5666_v24 }
0x1a1b   :  { %vm4655_vm3 = vmor %vm4653_vm2, %vm4654_vm1 }
0x1a1c   :  { %v4650_v26 = vsub.f32 1.0, %v4649_v25 }
0x1a1e   :  { %v4651_v27 = vmul.f32 %v5666_v24, %v4650_v26 }
0x1a20   :  { %v4652_v22 = vadd.f32 %v5666_v24, %v4651_v27 }
0x1a22   :  { %v4656_v28 = vsel %vm4655_vm3, %v5666_v24, %v4652_v22 }
0x1a23   :  { %v4661_v31 = vsel %vm4658_vm4, %v4660_v29, %v4656_v28 }
0x1a24   :  { %v4669_v35 = vmul.f32 %v4667_v33, %v4661_v31 }
0x1a81   :  { %v4672_v30 = vpop.permute.xlu0 %4671 }
0x1a82   :  { %v4674_v32 = vmul.f32 %v4672_v30, %v4661_v31 }
0x1a84   :  { %4676 = vrot.lane.b32.xlu0 %v4674_v32, %s5686_s21 }
0x1af6   :  { %v4677_v36 = vpop.permute.xlu0 %4676 }
0x1af7   :  { %v4679_v37 = vadd.f32 %v4677_v36, %v4669_v35 }
0x1af9   :  { %5667 = vtanh.f32 %v4679_v37 }
0x1aff   :  { %v5668_v15 = vpop.eup %5667 }
0x1b00   :  { %4682 = vrot.lane.b32.xlu2 %v5668_v15, %s5687_s2 }
0x1b5a   :  { %v4683_v34 = vpop.permute.xlu2 %4682 }
0x1b5b   :  { %v4685_v45 = vmul.f32 %v4683_v34, %v4661_v31 }
0x1b5d   :  { %v4696_v47 = vpack.c.bf16 %v4685_v45, %v4685_v45 }
0x1b5f   :  { %4706 = vrot.lane.b32.xlu0 %v4696_v47, %s5686_s21 }
0x1b67   :  { %4687 = vrot.lane.b32.xlu0 %v4685_v45, %s5686_s21 }
0x1b6f   :  { %4692 = vrot.lane.b32.xlu0 %v4679_v37, %s5688_s0 }
0x1bd1   :  { %v4707_v50 = vpop.permute.xlu0 %4706 }
0x1bd2   :  { %5390 = vmatmul.msk.bf16.vlgmr.msra.gmra.mxu3 %vm73_vm0, %v4707_v50 }
0x1bd9   :  { %v4688_v51 = vpop.permute.xlu0 %4687 }
0x1bda   :  { %4690 = vst.msk [vmem:[#allocation2] sm:$0xff] %vm73_vm0, %v4688_v51 }
0x1be1   :  { %v4693_v54 = vpop.permute.xlu0 %4692 }
0x1be2   :  { %4695 = vst.msk [vmem:[#allocation3] sm:$0xff] %vm73_vm0, %v4693_v54 }
0x1c55   :  { %v4732_v53 = vpop.f32.mrf.mxu3 }
0x1c56   :  { %v4733_v20 = vadd.f32 %v5596_v55, %v4732_v53 }
0x1c58   :  { %5391 = vst [vmem:[%s7061_s18 + $0x28] sm:$0xff] %v4733_v20  ;;  %4738 = vmax.xlane.f32.xlu1 %v4733_v20 }
0x1c5d   :  { %v4734_v56 = vpop.f32.mrf.mxu3 }
0x1ccb   :  { %v4739_v63 = vpop.xlane.xlu1 %4738 }
0x1ccc   :  { %vm4740_vm0 = vcmp.eq.f32.partialorder %v4733_v20, %v4739_v63 }
0x1ccd   :  { %v4741_v1 = vsel %vm4740_vm0, %v6064_v48, 128.0 }
0x1cce   :  { %4742 = vmin.xlane.f32.xlu2 %v4741_v1 }
0x1d41   :  { %v4743_v49 = vpop.xlane.xlu2 %4742 }
0x1d42   :  { %vm4744_vm5 = vcmp.eq.f32.partialorder %v6064_v48, %v4743_v49 }
0x1d43   :  { %vm5425_vm6 = vmpackc.low %vm4744_vm5, %vm4744_vm5 }
0x1d44   :  { %5426 = vmatmul.msk.bf16.vlgmr.msra.gmra.mxu0 %vm5425_vm6, %v5689_v0 }
0x1dc1   :  { %v4821_v3 = vpop.f32.mrf.mxu0 }
0x1dc2   :  { %4825 = vst.msk [vmem:[#allocation4] sm:$0xff] %vm77_vm11, %v4821_v3 }
0x1dc9   :  { %v4823_v4 = vpop.f32.mrf.mxu0 }

</bundles_post_ra>
